<compile_context>
chip_gen: v5e
topology: v5e:2x2
jax: 0.10.0
libtpu: 0.0.40
codegen_flags: <defaults>
</compile_context>

<pallas_src>
import functools

import numpy as np
import jax
import jax.numpy as jnp
from jax.experimental import pallas as pl
from jax.experimental.pallas import tpu as pltpu

# ----------------------------- model dimensions ------------------------------
IMG_H, IMG_W = 16, 32            # small analog of the (256, 512) agent input images
PROJ_H, PROJ_W = 24, 40          # small analog of the (384, 1280) lidar projection plane
NPIX = PROJ_H * PROJ_W           # 960 projection-plane pixels
HIDDEN = 256                     # LSTM hidden size (h_last/c_last = (2, B, 256))
FEAT = 128                       # fused image feature width
PD_DIM = IMG_H * IMG_W           # predicted-depth head output (flattened H*W) = 512
DEPTH_DIM = IMG_H * IMG_W        # flattened depth input = 512
RGB_DIM = 3 * IMG_H * IMG_W      # flattened rgb input = 1536
ACT_PAD = 128                    # lane-aligned slot reserved for the 6-wide action head
HEAD_PAD = ACT_PAD + PD_DIM      # fused head width (action | predicted depth) = 640
SEQ_LEN = 4
BATCH = 2
NPTS = 64


# ----------------------- precomputed projection constants ---------------------
def _resize_matrix(out_size, in_size):
    """Bilinear (half-pixel-center) resize matrix: out[o] = sum_i M[o, i] * in[i]."""
    o = np.arange(out_size, dtype=np.float64)
    src = (o + 0.5) * (in_size / out_size) - 0.5
    i0 = np.floor(src).astype(np.int64)
    w1 = src - i0
    i0c = np.clip(i0, 0, in_size - 1)
    i1c = np.clip(i0 + 1, 0, in_size - 1)
    m = np.zeros((out_size, in_size), np.float64)
    m[np.arange(out_size), i0c] += 1.0 - w1
    m[np.arange(out_size), i1c] += w1
    return m


def _projection_constants():
    rows = np.repeat(np.arange(PROJ_H), PROJ_W).astype(np.float32)   # flat-pixel row idx
    cols = np.tile(np.arange(PROJ_W), PROJ_H).astype(np.float32)     # flat-pixel col idx
    lh = _resize_matrix(IMG_H, PROJ_H)                               # [16, 24]
    lw = _resize_matrix(IMG_W, PROJ_W)                               # [32, 40]
    # M[i*Wp + j, h*W + w] = Lh[h, i] * Lw[w, j]  (bilinear resize as one matmul)
    m = np.einsum('hi,wj->ijhw', lh, lw).reshape(NPIX, IMG_H * IMG_W)
    return (jnp.asarray(rows.reshape(1, 1, NPIX)),
            jnp.asarray(cols.reshape(1, 1, NPIX)),
            jnp.asarray(m, dtype=jnp.bfloat16))


_ROW_IDX, _COL_IDX, _M_RESIZE = _projection_constants()


# ------------------------- in-kernel helpers (VPU only) ------------------------
def _sin_poly(x):
    # 7th-order odd polynomial; rotation actions are tanh-bounded so |x| <= 1
    # (avoids relying on a sin/cos transcendental lowering in Mosaic).
    x2 = x * x
    return x * (1.0 + x2 * (-1.0 / 6.0 + x2 * (1.0 / 120.0 + x2 * (-1.0 / 5040.0))))


def _cos_poly(x):
    x2 = x * x
    return 1.0 + x2 * (-0.5 + x2 * (1.0 / 24.0 + x2 * (-1.0 / 720.0
                                                       + x2 * (1.0 / 40320.0))))


# =============================== the fused kernel ==============================
def rollout_kernel(
        # inputs (constant index_maps -> DMA'd once, VMEM-resident across all steps)
        ds_pc_ref, rgb_feat_ref, depth0_ref, pos0_ref, pos_tgt_ref, calib_ref,
        row_idx_ref, col_idx_ref,
        wfd_ref, wi1_ref, wh1_ref, b1_ref, wi2_ref, wh2_ref, b2_ref,
        whead_ref, bhead_ref, mres_ref,
        # outputs
        exp_t_ref, exp_r_ref, out_t_ref, out_r_ref,
        pos_out_ref, cur_out_ref, pd_out_ref,
        # VMEM scratch carried across sequence steps
        h1_s, c1_s, h2_s, c2_s, pos_s, exp_pos_s, depth_s):
    t = pl.program_id(0)

    @pl.when(t == 0)
    def _init():
        h1_s[...] = jnp.zeros_like(h1_s)
        c1_s[...] = jnp.zeros_like(c1_s)
        h2_s[...] = jnp.zeros_like(h2_s)
        c2_s[...] = jnp.zeros_like(c2_s)
        pos_s[...] = pos0_ref[...]
        exp_pos_s[...] = pos0_ref[...]
        depth_s[...] = depth0_ref[...]

    # -------- expert P-controller (env.expert_step_real stand-in) --------------------
    exp_pos = exp_pos_s[...]
    expert = jnp.clip(0.1 * (pos_tgt_ref[...] - exp_pos), -0.5, 0.5)          # [B, 6]
    # only the expert pose is needed downstream (exp_new_source is discarded upstream)
    exp_pos_s[...] = exp_pos + expert
    exp_t_ref[0] = expert[:, 0:3]
    exp_r_ref[0] = expert[:, 3:6]

    # -------- agent forward: feature projection + 2 LSTM cells + fused heads ---------
    feat = jnp.tanh(
        rgb_feat_ref[...]
        + jnp.dot(depth_s[...].astype(jnp.bfloat16), wfd_ref[...],
                  preferred_element_type=jnp.float32))                         # [B, FEAT]

    def lstm_cell(h, c, xin, wi_ref, wh_ref, b_ref):
        g = (jnp.dot(xin.astype(jnp.bfloat16), wi_ref[...],
                     preferred_element_type=jnp.float32)
             + jnp.dot(h.astype(jnp.bfloat16), wh_ref[...],
                       preferred_element_type=jnp.float32)
             + b_ref[...])                                                     # [B, 4H]
        i = jax.nn.sigmoid(g[:, 0:HIDDEN])
        f = jax.nn.sigmoid(g[:, HIDDEN:2 * HIDDEN])
        gg = jnp.tanh(g[:, 2 * HIDDEN:3 * HIDDEN])
        o = jax.nn.sigmoid(g[:, 3 * HIDDEN:4 * HIDDEN])
        cn = f * c + i * gg
        hn = o * jnp.tanh(cn)
        return hn, cn

    h1n, c1n = lstm_cell(h1_s[...], c1_s[...], feat, wi1_ref, wh1_ref, b1_ref)
    h2n, c2n = lstm_cell(h2_s[...], c2_s[...], h1n, wi2_ref, wh2_ref, b2_ref)
    h1_s[...] = h1n
    c1_s[...] = c1n
    h2_s[...] = h2n
    c2_s[...] = c2n

    head = (jnp.dot(h2n.astype(jnp.bfloat16), whead_ref[...],
                    preferred_element_type=jnp.float32) + bhead_ref[...])      # [B, 640]
    act = jnp.tanh(head[:, 0:6])                                               # [B, 6]
    pd_out_ref[...] = head[:, ACT_PAD:ACT_PAD + PD_DIM]                        # [B, 512]
    out_t_ref[0] = act[:, 0:3]
    out_r_ref[0] = act[:, 3:6]

    # -------- env.step_continous stand-in: rigid transform of ds_pc_source -----------
    pc = ds_pc_ref[...]                                                        # [B, 3, N]
    x0, y0, z0 = pc[:, 0, :], pc[:, 1, :], pc[:, 2, :]                         # [B, N]
    tx, ty, tz = act[:, 0:1], act[:, 1:2], act[:, 2:3]                         # [B, 1]
    rx, ry, rz = act[:, 3:4], act[:, 4:5], act[:, 5:6]
    cx, sx = _cos_poly(rx), _sin_poly(rx)
    cy, sy = _cos_poly(ry), _sin_poly(ry)
    cz, sz = _cos_poly(rz), _sin_poly(rz)
    # R = Rz @ Ry @ Rx applied component-wise (no 3x3 matrices materialized)
    y1 = cx * y0 - sx * z0
    z1 = sx * y0 + cx * z0
    x2 = cy * x0 + sy * z1
    z2 = cy * z1 - sy * x0
    xf = cz * x2 - sz * y1 + tx
    yf = sz * x2 + cz * y1 + ty
    zf = z2 + tz
    cur_out_ref[:, 0:1, :] = xf[:, None, :]
    cur_out_ref[:, 1:2, :] = yf[:, None, :]
    cur_out_ref[:, 2:3, :] = zf[:, None, :]

    pos_new = pos_s[...] + act                       # pose accumulates [t | r]
    pos_s[...] = pos_new
    pos_out_ref[...] = pos_new

    # -------- lidar_project_depth stand-in: pinhole + scatter-max + bilinear resize --
    c = calib_ref[...]                                                         # [B, 12]
    zc = c[:, 8:9] * xf + c[:, 9:10] * yf + c[:, 10:11] * zf + c[:, 11:12]     # [B, N]
    inv_z = 1.0 / jnp.maximum(zc, 1e-6)
    u = (c[:, 0:1] * xf + c[:, 1:2] * yf + c[:, 2:3] * zf + c[:, 3:4]) * inv_z
    v = (c[:, 4:5] * xf + c[:, 5:6] * yf + c[:, 6:7] * zf + c[:, 7:8]) * inv_z
    # scatter-max rasterization as a dense compare-and-max: pixel (i, j) keeps the max z
    # over points whose rounded (v, u) lands on it (no data-dependent scatter needed).
    hit = ((jnp.abs(v[:, :, None] - row_idx_ref[...]) < 0.5)
           & (jnp.abs(u[:, :, None] - col_idx_ref[...]) < 0.5)
           & (zc[:, :, None] > 0.0))                                           # [B, N, P]
    depth_proj = jnp.max(jnp.where(hit, zc[:, :, None], 0.0), axis=1)          # [B, P]
    # bilinear resize (PROJ_H, PROJ_W) -> (IMG_H, IMG_W) as one precomputed matmul, /80
    depth_s[...] = jnp.dot(depth_proj.astype(jnp.bfloat16), mres_ref[...],
                           preferred_element_type=jnp.float32) * (1.0 / 80.0)


# ================================ wrapper =====================================
def _const_spec(shape):
    nd = len(shape)
    return pl.BlockSpec(shape, lambda t, _nd=nd: (0,) * _nd)


@functools.partial(jax.jit, static_argnames=("seq_len",))
def generate_seq(ds_pc_source, calib, depth, rgb, pos_src, pos_tgt, seq_len, params):
    B, _, N = ds_pc_source.shape

    # rgb never changes across the rollout: hoist its half of the feature projection
    # (rgb_flat @ Wf_rgb + bf) out of the sequence loop / kernel (one-time XLA matmul).
    rgb_feat = rgb.reshape(B, RGB_DIM) @ params['Wf_rgb'] + params['bf']       # [B, FEAT]
    depth0 = depth.reshape(B, DEPTH_DIM)
    calib_flat = calib.reshape(B, 12)

    args = (ds_pc_source, rgb_feat, depth0, pos_src, pos_tgt, calib_flat,
            _ROW_IDX, _COL_IDX,
            params['Wf_d'], params['Wi1'], params['Wh1'], params['b1'],
            params['Wi2'], params['Wh2'], params['b2'],
            params['W_head'], params['b_head'], _M_RESIZE)

    step_spec = pl.BlockSpec((1, B, 3), lambda t: (t, 0, 0))
    out_shapes = (
        jax.ShapeDtypeStruct((seq_len, B, 3), jnp.float32),   # expert transl per step
        jax.ShapeDtypeStruct((seq_len, B, 3), jnp.float32),   # expert rot per step
        jax.ShapeDtypeStruct((seq_len, B, 3), jnp.float32),   # agent transl per step
        jax.ShapeDtypeStruct((seq_len, B, 3), jnp.float32),   # agent rot per step
        jax.ShapeDtypeStruct((B, 6), jnp.float32),            # final pos_src
        jax.ShapeDtypeStruct((B, 3, N), jnp.float32),         # final current_source
        jax.ShapeDtypeStruct((B, PD_DIM), jnp.float32),       # final predicted depth
    )
    out_specs = (step_spec, step_spec, step_spec, step_spec,
                 _const_spec((B, 6)), _const_spec((B, 3, N)), _const_spec((B, PD_DIM)))

    exp_t, exp_r, out_t, out_r, pos_out, cur_out, pd_out = pl.pallas_call(
        rollout_kernel,
        out_shape=out_shapes,
        grid=(seq_len,),
        in_specs=[_const_spec(a.shape) for a in args],
        out_specs=out_specs,
        scratch_shapes=[pltpu.VMEM((B, HIDDEN), jnp.float32),      # h1
                        pltpu.VMEM((B, HIDDEN), jnp.float32),      # c1
                        pltpu.VMEM((B, HIDDEN), jnp.float32),      # h2
                        pltpu.VMEM((B, HIDDEN), jnp.float32),      # c2
                        pltpu.VMEM((B, 6), jnp.float32),           # agent pose
                        pltpu.VMEM((B, 6), jnp.float32),           # expert pose
                        pltpu.VMEM((B, DEPTH_DIM), jnp.float32)],  # depth fed to agent
        compiler_params=pltpu.CompilerParams(dimension_semantics=("arbitrary",)),
    )(*args)

    predict_depth = pd_out.reshape(B, 1, IMG_H, IMG_W)
    return (exp_t.transpose(1, 0, 2),   # exp_outputs_save_transl [B, T, 3]
            exp_r.transpose(1, 0, 2),   # exp_outputs_save_rot    [B, T, 3]
            out_t.transpose(1, 0, 2),   # outputs_save_transl     [B, T, 3]
            out_r.transpose(1, 0, 2),   # outputs_save_rot        [B, T, 3]
            pos_out, cur_out, predict_depth)


# =============================== parameter init ===============================
def init_params(key):
    ks = jax.random.split(key, 13)

    def init(k, shape, scale=0.02):
        return (scale * jax.random.normal(k, shape)).astype(jnp.float32)

    bf16 = jnp.bfloat16
    wa = init(ks[9], (HIDDEN, 6))
    wd = init(ks[10], (HIDDEN, PD_DIM))
    ba = init(ks[11], (1, 6))
    bd = init(ks[12], (1, PD_DIM))
    # fused, lane-padded head: action head in lanes [0, 6), depth head in [128, 640)
    w_head = jnp.zeros((HIDDEN, HEAD_PAD), jnp.float32)
    w_head = w_head.at[:, 0:6].set(wa).at[:, ACT_PAD:ACT_PAD + PD_DIM].set(wd)
    b_head = jnp.zeros((1, HEAD_PAD), jnp.float32)
    b_head = b_head.at[:, 0:6].set(ba).at[:, ACT_PAD:ACT_PAD + PD_DIM].set(bd)

    return {
        # rgb half of the feature projection: applied once, outside the kernel
        'Wf_rgb': init(ks[0], (RGB_DIM, FEAT)),
        'bf': init(ks[1], (1, FEAT)),
        # in-kernel weights in bfloat16 (halves the one-time weight DMA / VMEM residency)
        'Wf_d': init(ks[2], (DEPTH_DIM, FEAT)).astype(bf16),
        'Wi1': init(ks[3], (FEAT, 4 * HIDDEN)).astype(bf16),
        'Wh1': init(ks[4], (HIDDEN, 4 * HIDDEN)).astype(bf16),
        'b1': init(ks[5], (1, 4 * HIDDEN)),
        'Wi2': init(ks[6], (HIDDEN, 4 * HIDDEN)).astype(bf16),
        'Wh2': init(ks[7], (HIDDEN, 4 * HIDDEN)).astype(bf16),
        'b2': init(ks[8], (1, 4 * HIDDEN)),
        'W_head': w_head.astype(bf16),
        'b_head': b_head,
    }


if __name__ == "__main__":
    key = jax.random.PRNGKey(0)
    ks = jax.random.split(key, 8)

    B, N = BATCH, NPTS
    ds_pc_source = jnp.concatenate([
        2.0 * jax.random.uniform(ks[0], (B, 2, N)) - 1.0,      # x, y in [-1, 1]
        2.0 + 6.0 * jax.random.uniform(ks[1], (B, 1, N)),      # z in [2, 8]
    ], axis=1).astype(jnp.float32)                             # [B, 3, N]
    rgb = jax.random.uniform(ks[2], (B, 3, IMG_H, IMG_W), jnp.float32)
    depth = jax.random.uniform(ks[3], (B, 1, IMG_H, IMG_W), jnp.float32)
    pos_src = 0.1 * jax.random.normal(ks[4], (B, 6), dtype=jnp.float32)
    pos_tgt = 0.1 * jax.random.normal(ks[5], (B, 6), dtype=jnp.float32)
    calib_row = jnp.array([[20.0, 0.0, PROJ_W / 2.0, 0.0],
                           [0.0, 20.0, PROJ_H / 2.0, 0.0],
                           [0.0, 0.0, 1.0, 0.0]], jnp.float32)
    calib = jnp.tile(calib_row[None], (B, 1, 1))               # [B, 3, 4]

    params = init_params(ks[6])

    outs = generate_seq(ds_pc_source, calib, depth, rgb, pos_src, pos_tgt,
                        seq_len=SEQ_LEN, params=params)
    jax.block_until_ready(outs)

    (exp_tr, exp_rot, out_tr, out_rot, pos_src_out, current_source, predict_depth) = outs
    assert exp_tr.shape == (B, SEQ_LEN, 3) and out_rot.shape == (B, SEQ_LEN, 3)
    assert pos_src_out.shape == (B, 6)
    assert current_source.shape == (B, 3, N)
    assert predict_depth.shape == (B, 1, IMG_H, IMG_W)
    assert all(bool(jnp.isfinite(o).all()) for o in
               (exp_tr, exp_rot, out_tr, out_rot, pos_src_out, current_source,
                predict_depth))
    print("KERNEL_OK")
</pallas_src>

<mosaic_0001>
module attributes {stable_mosaic.version = 11 : i64} {
  func.func @rollout_kernel(%arg0: i32, %arg1: memref<2x3x64xf32, #tpu.memory_space<vmem>>, %arg2: memref<2x128xf32, #tpu.memory_space<vmem>>, %arg3: memref<2x512xf32, #tpu.memory_space<vmem>>, %arg4: memref<2x6xf32, #tpu.memory_space<vmem>>, %arg5: memref<2x6xf32, #tpu.memory_space<vmem>>, %arg6: memref<2x12xf32, #tpu.memory_space<vmem>>, %arg7: memref<1x1x960xf32, #tpu.memory_space<vmem>>, %arg8: memref<1x1x960xf32, #tpu.memory_space<vmem>>, %arg9: memref<512x128xbf16, #tpu.memory_space<vmem>>, %arg10: memref<128x1024xbf16, #tpu.memory_space<vmem>>, %arg11: memref<256x1024xbf16, #tpu.memory_space<vmem>>, %arg12: memref<1x1024xf32, #tpu.memory_space<vmem>>, %arg13: memref<256x1024xbf16, #tpu.memory_space<vmem>>, %arg14: memref<256x1024xbf16, #tpu.memory_space<vmem>>, %arg15: memref<1x1024xf32, #tpu.memory_space<vmem>>, %arg16: memref<256x640xbf16, #tpu.memory_space<vmem>>, %arg17: memref<1x640xf32, #tpu.memory_space<vmem>>, %arg18: memref<960x512xbf16, #tpu.memory_space<vmem>>, %arg19: memref<1x2x3xf32, #tpu.memory_space<vmem>>, %arg20: memref<1x2x3xf32, #tpu.memory_space<vmem>>, %arg21: memref<1x2x3xf32, #tpu.memory_space<vmem>>, %arg22: memref<1x2x3xf32, #tpu.memory_space<vmem>>, %arg23: memref<2x6xf32, #tpu.memory_space<vmem>>, %arg24: memref<2x3x64xf32, #tpu.memory_space<vmem>>, %arg25: memref<2x512xf32, #tpu.memory_space<vmem>>, %arg26: memref<2x256xf32, #tpu.memory_space<vmem>>, %arg27: memref<2x256xf32, #tpu.memory_space<vmem>>, %arg28: memref<2x256xf32, #tpu.memory_space<vmem>>, %arg29: memref<2x256xf32, #tpu.memory_space<vmem>>, %arg30: memref<2x6xf32, #tpu.memory_space<vmem>>, %arg31: memref<2x6xf32, #tpu.memory_space<vmem>>, %arg32: memref<2x512xf32, #tpu.memory_space<vmem>>) attributes {dimension_semantics = [#tpu.dimension_semantics<arbitrary>], iteration_bounds = array<i64: 4>, scalar_prefetch = 0 : i64, scratch_operands = 7 : i64, tpu.core_type = #tpu.core_type<tc>, window_params = [{pipeline_mode = #tpu.pipeline_mode<synchronous>, transform_indices = @transform_0, window_bounds = array<i64: 2, 3, 64>}, {pipeline_mode = #tpu.pipeline_mode<synchronous>, transform_indices = @transform_1, window_bounds = array<i64: 2, 128>}, {pipeline_mode = #tpu.pipeline_mode<synchronous>, transform_indices = @transform_2, window_bounds = array<i64: 2, 512>}, {pipeline_mode = #tpu.pipeline_mode<synchronous>, transform_indices = @transform_3, window_bounds = array<i64: 2, 6>}, {pipeline_mode = #tpu.pipeline_mode<synchronous>, transform_indices = @transform_4, window_bounds = array<i64: 2, 6>}, {pipeline_mode = #tpu.pipeline_mode<synchronous>, transform_indices = @transform_5, window_bounds = array<i64: 2, 12>}, {pipeline_mode = #tpu.pipeline_mode<synchronous>, transform_indices = @transform_6, window_bounds = array<i64: 1, 1, 960>}, {pipeline_mode = #tpu.pipeline_mode<synchronous>, transform_indices = @transform_7, window_bounds = array<i64: 1, 1, 960>}, {pipeline_mode = #tpu.pipeline_mode<synchronous>, transform_indices = @transform_8, window_bounds = array<i64: 512, 128>}, {pipeline_mode = #tpu.pipeline_mode<synchronous>, transform_indices = @transform_9, window_bounds = array<i64: 128, 1024>}, {pipeline_mode = #tpu.pipeline_mode<synchronous>, transform_indices = @transform_10, window_bounds = array<i64: 256, 1024>}, {pipeline_mode = #tpu.pipeline_mode<synchronous>, transform_indices = @transform_11, window_bounds = array<i64: 1, 1024>}, {pipeline_mode = #tpu.pipeline_mode<synchronous>, transform_indices = @transform_12, window_bounds = array<i64: 256, 1024>}, {pipeline_mode = #tpu.pipeline_mode<synchronous>, transform_indices = @transform_13, window_bounds = array<i64: 256, 1024>}, {pipeline_mode = #tpu.pipeline_mode<synchronous>, transform_indices = @transform_14, window_bounds = array<i64: 1, 1024>}, {pipeline_mode = #tpu.pipeline_mode<synchronous>, transform_indices = @transform_15, window_bounds = array<i64: 256, 640>}, {pipeline_mode = #tpu.pipeline_mode<synchronous>, transform_indices = @transform_16, window_bounds = array<i64: 1, 640>}, {pipeline_mode = #tpu.pipeline_mode<synchronous>, transform_indices = @transform_17, window_bounds = array<i64: 960, 512>}, {transform_indices = @transform_18, window_bounds = array<i64: 1, 2, 3>}, {transform_indices = @transform_19, window_bounds = array<i64: 1, 2, 3>}, {transform_indices = @transform_20, window_bounds = array<i64: 1, 2, 3>}, {transform_indices = @transform_21, window_bounds = array<i64: 1, 2, 3>}, {pipeline_mode = #tpu.pipeline_mode<synchronous>, transform_indices = @transform_22, window_bounds = array<i64: 2, 6>}, {pipeline_mode = #tpu.pipeline_mode<synchronous>, transform_indices = @transform_23, window_bounds = array<i64: 2, 3, 64>}, {pipeline_mode = #tpu.pipeline_mode<synchronous>, transform_indices = @transform_24, window_bounds = array<i64: 2, 512>}]} {
    %c0_i32 = arith.constant 0 : i32
    %0 = arith.cmpi eq, %arg0, %c0_i32 : i32
    %1 = arith.extui %0 : i1 to i32
    %c0_i32_0 = arith.constant 0 : i32
    %2 = arith.cmpi ne, %1, %c0_i32_0 : i32
    scf.if %2 {
      %cst_136 = arith.constant 0.000000e+00 : f32
      %345 = vector.broadcast %cst_136 : f32 to vector<2x256xf32>
      %c0_137 = arith.constant 0 : index
      %c0_138 = arith.constant 0 : index
      %346 = vector.load %arg26[%c0_137, %c0_138] : memref<2x256xf32, #tpu.memory_space<vmem>>, vector<2x256xf32>
      tpu.vector_store %arg26[%c0_137, %c0_138], %345 {strides = array<i32>} : memref<2x256xf32, #tpu.memory_space<vmem>>, vector<2x256xf32>,
      %cst_139 = arith.constant 0.000000e+00 : f32
      %347 = vector.broadcast %cst_139 : f32 to vector<2x256xf32>
      %c0_140 = arith.constant 0 : index
      %c0_141 = arith.constant 0 : index
      %348 = vector.load %arg27[%c0_140, %c0_141] : memref<2x256xf32, #tpu.memory_space<vmem>>, vector<2x256xf32>
      tpu.vector_store %arg27[%c0_140, %c0_141], %347 {strides = array<i32>} : memref<2x256xf32, #tpu.memory_space<vmem>>, vector<2x256xf32>,
      %cst_142 = arith.constant 0.000000e+00 : f32
      %349 = vector.broadcast %cst_142 : f32 to vector<2x256xf32>
      %c0_143 = arith.constant 0 : index
      %c0_144 = arith.constant 0 : index
      %350 = vector.load %arg28[%c0_143, %c0_144] : memref<2x256xf32, #tpu.memory_space<vmem>>, vector<2x256xf32>
      tpu.vector_store %arg28[%c0_143, %c0_144], %349 {strides = array<i32>} : memref<2x256xf32, #tpu.memory_space<vmem>>, vector<2x256xf32>,
      %cst_145 = arith.constant 0.000000e+00 : f32
      %351 = vector.broadcast %cst_145 : f32 to vector<2x256xf32>
      %c0_146 = arith.constant 0 : index
      %c0_147 = arith.constant 0 : index
      %352 = vector.load %arg29[%c0_146, %c0_147] : memref<2x256xf32, #tpu.memory_space<vmem>>, vector<2x256xf32>
      tpu.vector_store %arg29[%c0_146, %c0_147], %351 {strides = array<i32>} : memref<2x256xf32, #tpu.memory_space<vmem>>, vector<2x256xf32>,
      %c0_148 = arith.constant 0 : index
      %c0_149 = arith.constant 0 : index
      %353 = vector.load %arg4[%c0_148, %c0_149] : memref<2x6xf32, #tpu.memory_space<vmem>>, vector<2x6xf32>
      %c0_150 = arith.constant 0 : index
      %c0_151 = arith.constant 0 : index
      %354 = vector.load %arg30[%c0_150, %c0_151] : memref<2x6xf32, #tpu.memory_space<vmem>>, vector<2x6xf32>
      tpu.vector_store %arg30[%c0_150, %c0_151], %353 {strides = array<i32>} : memref<2x6xf32, #tpu.memory_space<vmem>>, vector<2x6xf32>,
      %c0_152 = arith.constant 0 : index
      %c0_153 = arith.constant 0 : index
      %355 = vector.load %arg4[%c0_152, %c0_153] : memref<2x6xf32, #tpu.memory_space<vmem>>, vector<2x6xf32>
      %c0_154 = arith.constant 0 : index
      %c0_155 = arith.constant 0 : index
      %356 = vector.load %arg31[%c0_154, %c0_155] : memref<2x6xf32, #tpu.memory_space<vmem>>, vector<2x6xf32>
      tpu.vector_store %arg31[%c0_154, %c0_155], %355 {strides = array<i32>} : memref<2x6xf32, #tpu.memory_space<vmem>>, vector<2x6xf32>,
      %c0_156 = arith.constant 0 : index
      %c0_157 = arith.constant 0 : index
      %357 = vector.load %arg3[%c0_156, %c0_157] : memref<2x512xf32, #tpu.memory_space<vmem>>, vector<2x512xf32>
      %c0_158 = arith.constant 0 : index
      %c0_159 = arith.constant 0 : index
      %358 = vector.load %arg32[%c0_158, %c0_159] : memref<2x512xf32, #tpu.memory_space<vmem>>, vector<2x512xf32>
      tpu.vector_store %arg32[%c0_158, %c0_159], %357 {strides = array<i32>} : memref<2x512xf32, #tpu.memory_space<vmem>>, vector<2x512xf32>,
    } else {
    }
    %c0 = arith.constant 0 : index
    %c0_1 = arith.constant 0 : index
    %3 = vector.load %arg31[%c0, %c0_1] : memref<2x6xf32, #tpu.memory_space<vmem>>, vector<2x6xf32>
    %c0_2 = arith.constant 0 : index
    %c0_3 = arith.constant 0 : index
    %4 = vector.load %arg5[%c0_2, %c0_3] : memref<2x6xf32, #tpu.memory_space<vmem>>, vector<2x6xf32>
    %5 = arith.subf %4, %3 : vector<2x6xf32>
    %cst = arith.constant 1.000000e-01 : f32
    %6 = vector.broadcast %cst : f32 to vector<2x6xf32>
    %7 = arith.mulf %6, %5 : vector<2x6xf32>
    %cst_4 = arith.constant -5.000000e-01 : f32
    %cst_5 = arith.constant 5.000000e-01 : f32
    %8 = vector.broadcast %cst_4 : f32 to vector<2x6xf32>
    %9 = arith.maximumf %8, %7 : vector<2x6xf32>
    %10 = vector.broadcast %cst_5 : f32 to vector<2x6xf32>
    %11 = arith.minimumf %10, %9 : vector<2x6xf32>
    %12 = arith.addf %3, %11 : vector<2x6xf32>
    %c0_6 = arith.constant 0 : index
    %c0_7 = arith.constant 0 : index
    %13 = vector.load %arg31[%c0_6, %c0_7] : memref<2x6xf32, #tpu.memory_space<vmem>>, vector<2x6xf32>
    tpu.vector_store %arg31[%c0_6, %c0_7], %12 {strides = array<i32>} : memref<2x6xf32, #tpu.memory_space<vmem>>, vector<2x6xf32>,
    %14 = vector.extract_strided_slice %11 {offsets = [0, 0], sizes = [2, 3], strides = [1, 1]} : vector<2x6xf32> to vector<2x3xf32>
    %c0_8 = arith.constant 0 : index
    %c0_9 = arith.constant 0 : index
    %c0_10 = arith.constant 0 : index
    %15 = vector.load %arg19[%c0_8, %c0_9, %c0_10] : memref<1x2x3xf32, #tpu.memory_space<vmem>>, vector<1x2x3xf32>
    %16 = vector.shape_cast %15 : vector<1x2x3xf32> to vector<2x3xf32>
    %17 = vector.shape_cast %14 : vector<2x3xf32> to vector<1x2x3xf32>
    tpu.vector_store %arg19[%c0_8, %c0_9, %c0_10], %17 {strides = array<i32>} : memref<1x2x3xf32, #tpu.memory_space<vmem>>, vector<1x2x3xf32>,
    %18 = vector.extract_strided_slice %11 {offsets = [0, 3], sizes = [2, 3], strides = [1, 1]} : vector<2x6xf32> to vector<2x3xf32>
    %c0_11 = arith.constant 0 : index
    %c0_12 = arith.constant 0 : index
    %c0_13 = arith.constant 0 : index
    %19 = vector.load %arg20[%c0_11, %c0_12, %c0_13] : memref<1x2x3xf32, #tpu.memory_space<vmem>>, vector<1x2x3xf32>
    %20 = vector.shape_cast %19 : vector<1x2x3xf32> to vector<2x3xf32>
    %21 = vector.shape_cast %18 : vector<2x3xf32> to vector<1x2x3xf32>
    tpu.vector_store %arg20[%c0_11, %c0_12, %c0_13], %21 {strides = array<i32>} : memref<1x2x3xf32, #tpu.memory_space<vmem>>, vector<1x2x3xf32>,
    %c0_14 = arith.constant 0 : index
    %c0_15 = arith.constant 0 : index
    %22 = vector.load %arg2[%c0_14, %c0_15] : memref<2x128xf32, #tpu.memory_space<vmem>>, vector<2x128xf32>
    %c0_16 = arith.constant 0 : index
    %c0_17 = arith.constant 0 : index
    %23 = vector.load %arg32[%c0_16, %c0_17] : memref<2x512xf32, #tpu.memory_space<vmem>>, vector<2x512xf32>
    %24 = arith.truncf %23 : vector<2x512xf32> to vector<2x512xbf16>
    %c0_18 = arith.constant 0 : index
    %c0_19 = arith.constant 0 : index
    %25 = vector.load %arg9[%c0_18, %c0_19] : memref<512x128xbf16, #tpu.memory_space<vmem>>, vector<512x128xbf16>
    %cst_20 = arith.constant dense<0.000000e+00> : vector<2x128xf32>
    %26 = tpu.matmul %24, %25, %cst_20 {dimension_numbers = #tpu.dot_dimension_numbers<[1], [0], [0], [1], [0, 0, 1, 1], [], []>} : vector<2x512xbf16>, vector<512x128xbf16>, vector<2x128xf32> -> vector<2x128xf32>
    %27 = arith.addf %22, %26 : vector<2x128xf32>
    %28 = math.tanh %27 : vector<2x128xf32>
    %c0_21 = arith.constant 0 : index
    %c0_22 = arith.constant 0 : index
    %29 = vector.load %arg26[%c0_21, %c0_22] : memref<2x256xf32, #tpu.memory_space<vmem>>, vector<2x256xf32>
    %c0_23 = arith.constant 0 : index
    %c0_24 = arith.constant 0 : index
    %30 = vector.load %arg27[%c0_23, %c0_24] : memref<2x256xf32, #tpu.memory_space<vmem>>, vector<2x256xf32>
    %31 = arith.truncf %28 : vector<2x128xf32> to vector<2x128xbf16>
    %c0_25 = arith.constant 0 : index
    %c0_26 = arith.constant 0 : index
    %32 = vector.load %arg10[%c0_25, %c0_26] : memref<128x1024xbf16, #tpu.memory_space<vmem>>, vector<128x1024xbf16>
    %cst_27 = arith.constant dense<0.000000e+00> : vector<2x1024xf32>
    %33 = tpu.matmul %31, %32, %cst_27 {dimension_numbers = #tpu.dot_dimension_numbers<[1], [0], [0], [1], [0, 0, 1, 1], [], []>} : vector<2x128xbf16>, vector<128x1024xbf16>, vector<2x1024xf32> -> vector<2x1024xf32>
    %34 = arith.truncf %29 : vector<2x256xf32> to vector<2x256xbf16>
    %c0_28 = arith.constant 0 : index
    %c0_29 = arith.constant 0 : index
    %35 = vector.load %arg11[%c0_28, %c0_29] : memref<256x1024xbf16, #tpu.memory_space<vmem>>, vector<256x1024xbf16>
    %cst_30 = arith.constant dense<0.000000e+00> : vector<2x1024xf32>
    %36 = tpu.matmul %34, %35, %cst_30 {dimension_numbers = #tpu.dot_dimension_numbers<[1], [0], [0], [1], [0, 0, 1, 1], [], []>} : vector<2x256xbf16>, vector<256x1024xbf16>, vector<2x1024xf32> -> vector<2x1024xf32>
    %37 = arith.addf %33, %36 : vector<2x1024xf32>
    %c0_31 = arith.constant 0 : index
    %c0_32 = arith.constant 0 : index
    %38 = vector.load %arg12[%c0_31, %c0_32] : memref<1x1024xf32, #tpu.memory_space<vmem>>, vector<1x1024xf32>
    %39 = vector.broadcast %38 : vector<1x1024xf32> to vector<2x1024xf32>
    %40 = arith.addf %37, %39 : vector<2x1024xf32>
    %41 = vector.extract_strided_slice %40 {offsets = [0, 0], sizes = [2, 256], strides = [1, 1]} : vector<2x1024xf32> to vector<2x256xf32>
    %42 = arith.negf %41 : vector<2x256xf32>
    %43 = math.exp %42 : vector<2x256xf32>
    %cst_33 = arith.constant 1.000000e+00 : f32
    %44 = vector.broadcast %cst_33 : f32 to vector<2x256xf32>
    %45 = arith.addf %44, %43 : vector<2x256xf32>
    %46 = arith.divf %44, %45 : vector<2x256xf32>
    %47 = vector.extract_strided_slice %40 {offsets = [0, 256], sizes = [2, 256], strides = [1, 1]} : vector<2x1024xf32> to vector<2x256xf32>
    %48 = arith.negf %47 : vector<2x256xf32>
    %49 = math.exp %48 : vector<2x256xf32>
    %cst_34 = arith.constant 1.000000e+00 : f32
    %50 = vector.broadcast %cst_34 : f32 to vector<2x256xf32>
    %51 = arith.addf %50, %49 : vector<2x256xf32>
    %52 = arith.divf %50, %51 : vector<2x256xf32>
    %53 = vector.extract_strided_slice %40 {offsets = [0, 512], sizes = [2, 256], strides = [1, 1]} : vector<2x1024xf32> to vector<2x256xf32>
    %54 = math.tanh %53 : vector<2x256xf32>
    %55 = vector.extract_strided_slice %40 {offsets = [0, 768], sizes = [2, 256], strides = [1, 1]} : vector<2x1024xf32> to vector<2x256xf32>
    %56 = arith.negf %55 : vector<2x256xf32>
    %57 = math.exp %56 : vector<2x256xf32>
    %cst_35 = arith.constant 1.000000e+00 : f32
    %58 = vector.broadcast %cst_35 : f32 to vector<2x256xf32>
    %59 = arith.addf %58, %57 : vector<2x256xf32>
    %60 = arith.divf %58, %59 : vector<2x256xf32>
    %61 = arith.mulf %52, %30 : vector<2x256xf32>
    %62 = arith.mulf %46, %54 : vector<2x256xf32>
    %63 = arith.addf %61, %62 : vector<2x256xf32>
    %64 = math.tanh %63 : vector<2x256xf32>
    %65 = arith.mulf %60, %64 : vector<2x256xf32>
    %c0_36 = arith.constant 0 : index
    %c0_37 = arith.constant 0 : index
    %66 = vector.load %arg28[%c0_36, %c0_37] : memref<2x256xf32, #tpu.memory_space<vmem>>, vector<2x256xf32>
    %c0_38 = arith.constant 0 : index
    %c0_39 = arith.constant 0 : index
    %67 = vector.load %arg29[%c0_38, %c0_39] : memref<2x256xf32, #tpu.memory_space<vmem>>, vector<2x256xf32>
    %68 = arith.truncf %65 : vector<2x256xf32> to vector<2x256xbf16>
    %c0_40 = arith.constant 0 : index
    %c0_41 = arith.constant 0 : index
    %69 = vector.load %arg13[%c0_40, %c0_41] : memref<256x1024xbf16, #tpu.memory_space<vmem>>, vector<256x1024xbf16>
    %cst_42 = arith.constant dense<0.000000e+00> : vector<2x1024xf32>
    %70 = tpu.matmul %68, %69, %cst_42 {dimension_numbers = #tpu.dot_dimension_numbers<[1], [0], [0], [1], [0, 0, 1, 1], [], []>} : vector<2x256xbf16>, vector<256x1024xbf16>, vector<2x1024xf32> -> vector<2x1024xf32>
    %71 = arith.truncf %66 : vector<2x256xf32> to vector<2x256xbf16>
    %c0_43 = arith.constant 0 : index
    %c0_44 = arith.constant 0 : index
    %72 = vector.load %arg14[%c0_43, %c0_44] : memref<256x1024xbf16, #tpu.memory_space<vmem>>, vector<256x1024xbf16>
    %cst_45 = arith.constant dense<0.000000e+00> : vector<2x1024xf32>
    %73 = tpu.matmul %71, %72, %cst_45 {dimension_numbers = #tpu.dot_dimension_numbers<[1], [0], [0], [1], [0, 0, 1, 1], [], []>} : vector<2x256xbf16>, vector<256x1024xbf16>, vector<2x1024xf32> -> vector<2x1024xf32>
    %74 = arith.addf %70, %73 : vector<2x1024xf32>
    %c0_46 = arith.constant 0 : index
    %c0_47 = arith.constant 0 : index
    %75 = vector.load %arg15[%c0_46, %c0_47] : memref<1x1024xf32, #tpu.memory_space<vmem>>, vector<1x1024xf32>
    %76 = vector.broadcast %75 : vector<1x1024xf32> to vector<2x1024xf32>
    %77 = arith.addf %74, %76 : vector<2x1024xf32>
    %78 = vector.extract_strided_slice %77 {offsets = [0, 0], sizes = [2, 256], strides = [1, 1]} : vector<2x1024xf32> to vector<2x256xf32>
    %79 = arith.negf %78 : vector<2x256xf32>
    %80 = math.exp %79 : vector<2x256xf32>
    %cst_48 = arith.constant 1.000000e+00 : f32
    %81 = vector.broadcast %cst_48 : f32 to vector<2x256xf32>
    %82 = arith.addf %81, %80 : vector<2x256xf32>
    %83 = arith.divf %81, %82 : vector<2x256xf32>
    %84 = vector.extract_strided_slice %77 {offsets = [0, 256], sizes = [2, 256], strides = [1, 1]} : vector<2x1024xf32> to vector<2x256xf32>
    %85 = arith.negf %84 : vector<2x256xf32>
    %86 = math.exp %85 : vector<2x256xf32>
    %cst_49 = arith.constant 1.000000e+00 : f32
    %87 = vector.broadcast %cst_49 : f32 to vector<2x256xf32>
    %88 = arith.addf %87, %86 : vector<2x256xf32>
    %89 = arith.divf %87, %88 : vector<2x256xf32>
    %90 = vector.extract_strided_slice %77 {offsets = [0, 512], sizes = [2, 256], strides = [1, 1]} : vector<2x1024xf32> to vector<2x256xf32>
    %91 = math.tanh %90 : vector<2x256xf32>
    %92 = vector.extract_strided_slice %77 {offsets = [0, 768], sizes = [2, 256], strides = [1, 1]} : vector<2x1024xf32> to vector<2x256xf32>
    %93 = arith.negf %92 : vector<2x256xf32>
    %94 = math.exp %93 : vector<2x256xf32>
    %cst_50 = arith.constant 1.000000e+00 : f32
    %95 = vector.broadcast %cst_50 : f32 to vector<2x256xf32>
    %96 = arith.addf %95, %94 : vector<2x256xf32>
    %97 = arith.divf %95, %96 : vector<2x256xf32>
    %98 = arith.mulf %89, %67 : vector<2x256xf32>
    %99 = arith.mulf %83, %91 : vector<2x256xf32>
    %100 = arith.addf %98, %99 : vector<2x256xf32>
    %101 = math.tanh %100 : vector<2x256xf32>
    %102 = arith.mulf %97, %101 : vector<2x256xf32>
    %c0_51 = arith.constant 0 : index
    %c0_52 = arith.constant 0 : index
    %103 = vector.load %arg26[%c0_51, %c0_52] : memref<2x256xf32, #tpu.memory_space<vmem>>, vector<2x256xf32>
    tpu.vector_store %arg26[%c0_51, %c0_52], %65 {strides = array<i32>} : memref<2x256xf32, #tpu.memory_space<vmem>>, vector<2x256xf32>,
    %c0_53 = arith.constant 0 : index
    %c0_54 = arith.constant 0 : index
    %104 = vector.load %arg27[%c0_53, %c0_54] : memref<2x256xf32, #tpu.memory_space<vmem>>, vector<2x256xf32>
    tpu.vector_store %arg27[%c0_53, %c0_54], %63 {strides = array<i32>} : memref<2x256xf32, #tpu.memory_space<vmem>>, vector<2x256xf32>,
    %c0_55 = arith.constant 0 : index
    %c0_56 = arith.constant 0 : index
    %105 = vector.load %arg28[%c0_55, %c0_56] : memref<2x256xf32, #tpu.memory_space<vmem>>, vector<2x256xf32>
    tpu.vector_store %arg28[%c0_55, %c0_56], %102 {strides = array<i32>} : memref<2x256xf32, #tpu.memory_space<vmem>>, vector<2x256xf32>,
    %c0_57 = arith.constant 0 : index
    %c0_58 = arith.constant 0 : index
    %106 = vector.load %arg29[%c0_57, %c0_58] : memref<2x256xf32, #tpu.memory_space<vmem>>, vector<2x256xf32>
    tpu.vector_store %arg29[%c0_57, %c0_58], %100 {strides = array<i32>} : memref<2x256xf32, #tpu.memory_space<vmem>>, vector<2x256xf32>,
    %107 = arith.truncf %102 : vector<2x256xf32> to vector<2x256xbf16>
    %c0_59 = arith.constant 0 : index
    %c0_60 = arith.constant 0 : index
    %108 = vector.load %arg16[%c0_59, %c0_60] : memref<256x640xbf16, #tpu.memory_space<vmem>>, vector<256x640xbf16>
    %cst_61 = arith.constant dense<0.000000e+00> : vector<2x640xf32>
    %109 = tpu.matmul %107, %108, %cst_61 {dimension_numbers = #tpu.dot_dimension_numbers<[1], [0], [0], [1], [0, 0, 1, 1], [], []>} : vector<2x256xbf16>, vector<256x640xbf16>, vector<2x640xf32> -> vector<2x640xf32>
    %c0_62 = arith.constant 0 : index
    %c0_63 = arith.constant 0 : index
    %110 = vector.load %arg17[%c0_62, %c0_63] : memref<1x640xf32, #tpu.memory_space<vmem>>, vector<1x640xf32>
    %111 = vector.broadcast %110 : vector<1x640xf32> to vector<2x640xf32>
    %112 = arith.addf %109, %111 : vector<2x640xf32>
    %113 = vector.extract_strided_slice %112 {offsets = [0, 0], sizes = [2, 6], strides = [1, 1]} : vector<2x640xf32> to vector<2x6xf32>
    %114 = math.tanh %113 : vector<2x6xf32>
    %115 = vector.extract_strided_slice %112 {offsets = [0, 128], sizes = [2, 512], strides = [1, 1]} : vector<2x640xf32> to vector<2x512xf32>
    %c0_64 = arith.constant 0 : index
    %c0_65 = arith.constant 0 : index
    %116 = vector.load %arg25[%c0_64, %c0_65] : memref<2x512xf32, #tpu.memory_space<vmem>>, vector<2x512xf32>
    tpu.vector_store %arg25[%c0_64, %c0_65], %115 {strides = array<i32>} : memref<2x512xf32, #tpu.memory_space<vmem>>, vector<2x512xf32>,
    %117 = vector.extract_strided_slice %114 {offsets = [0, 0], sizes = [2, 3], strides = [1, 1]} : vector<2x6xf32> to vector<2x3xf32>
    %c0_66 = arith.constant 0 : index
    %c0_67 = arith.constant 0 : index
    %c0_68 = arith.constant 0 : index
    %118 = vector.load %arg21[%c0_66, %c0_67, %c0_68] : memref<1x2x3xf32, #tpu.memory_space<vmem>>, vector<1x2x3xf32>
    %119 = vector.shape_cast %118 : vector<1x2x3xf32> to vector<2x3xf32>
    %120 = vector.shape_cast %117 : vector<2x3xf32> to vector<1x2x3xf32>
    tpu.vector_store %arg21[%c0_66, %c0_67, %c0_68], %120 {strides = array<i32>} : memref<1x2x3xf32, #tpu.memory_space<vmem>>, vector<1x2x3xf32>,
    %121 = vector.extract_strided_slice %114 {offsets = [0, 3], sizes = [2, 3], strides = [1, 1]} : vector<2x6xf32> to vector<2x3xf32>
    %c0_69 = arith.constant 0 : index
    %c0_70 = arith.constant 0 : index
    %c0_71 = arith.constant 0 : index
    %122 = vector.load %arg22[%c0_69, %c0_70, %c0_71] : memref<1x2x3xf32, #tpu.memory_space<vmem>>, vector<1x2x3xf32>
    %123 = vector.shape_cast %122 : vector<1x2x3xf32> to vector<2x3xf32>
    %124 = vector.shape_cast %121 : vector<2x3xf32> to vector<1x2x3xf32>
    tpu.vector_store %arg22[%c0_69, %c0_70, %c0_71], %124 {strides = array<i32>} : memref<1x2x3xf32, #tpu.memory_space<vmem>>, vector<1x2x3xf32>,
    %c0_72 = arith.constant 0 : index
    %c0_73 = arith.constant 0 : index
    %c0_74 = arith.constant 0 : index
    %125 = vector.load %arg1[%c0_72, %c0_73, %c0_74] : memref<2x3x64xf32, #tpu.memory_space<vmem>>, vector<2x3x64xf32>
    %126 = vector.extract_strided_slice %125 {offsets = [0, 0, 0], sizes = [2, 1, 64], strides = [1, 1, 1]} : vector<2x3x64xf32> to vector<2x1x64xf32>
    %127 = vector.shape_cast %126 : vector<2x1x64xf32> to vector<2x64xf32>
    %128 = vector.extract_strided_slice %125 {offsets = [0, 1, 0], sizes = [2, 1, 64], strides = [1, 1, 1]} : vector<2x3x64xf32> to vector<2x1x64xf32>
    %129 = vector.shape_cast %128 : vector<2x1x64xf32> to vector<2x64xf32>
    %130 = vector.extract_strided_slice %125 {offsets = [0, 2, 0], sizes = [2, 1, 64], strides = [1, 1, 1]} : vector<2x3x64xf32> to vector<2x1x64xf32>
    %131 = vector.shape_cast %130 : vector<2x1x64xf32> to vector<2x64xf32>
    %132 = vector.extract_strided_slice %114 {offsets = [0, 0], sizes = [2, 1], strides = [1, 1]} : vector<2x6xf32> to vector<2x1xf32>
    %133 = vector.extract_strided_slice %114 {offsets = [0, 1], sizes = [2, 1], strides = [1, 1]} : vector<2x6xf32> to vector<2x1xf32>
    %134 = vector.extract_strided_slice %114 {offsets = [0, 2], sizes = [2, 1], strides = [1, 1]} : vector<2x6xf32> to vector<2x1xf32>
    %135 = vector.extract_strided_slice %114 {offsets = [0, 3], sizes = [2, 1], strides = [1, 1]} : vector<2x6xf32> to vector<2x1xf32>
    %136 = vector.extract_strided_slice %114 {offsets = [0, 4], sizes = [2, 1], strides = [1, 1]} : vector<2x6xf32> to vector<2x1xf32>
    %137 = vector.extract_strided_slice %114 {offsets = [0, 5], sizes = [2, 1], strides = [1, 1]} : vector<2x6xf32> to vector<2x1xf32>
    %138 = arith.mulf %135, %135 : vector<2x1xf32>
    %cst_75 = arith.constant 2.48015876E-5 : f32
    %139 = vector.broadcast %cst_75 : f32 to vector<2x1xf32>
    %140 = arith.mulf %138, %139 : vector<2x1xf32>
    %cst_76 = arith.constant -0.00138888892 : f32
    %141 = vector.broadcast %cst_76 : f32 to vector<2x1xf32>
    %142 = arith.addf %141, %140 : vector<2x1xf32>
    %143 = arith.mulf %138, %142 : vector<2x1xf32>
    %cst_77 = arith.constant 0.0416666679 : f32
    %144 = vector.broadcast %cst_77 : f32 to vector<2x1xf32>
    %145 = arith.addf %144, %143 : vector<2x1xf32>
    %146 = arith.mulf %138, %145 : vector<2x1xf32>
    %cst_78 = arith.constant -5.000000e-01 : f32
    %147 = vector.broadcast %cst_78 : f32 to vector<2x1xf32>
    %148 = arith.addf %147, %146 : vector<2x1xf32>
    %149 = arith.mulf %138, %148 : vector<2x1xf32>
    %cst_79 = arith.constant 1.000000e+00 : f32
    %150 = vector.broadcast %cst_79 : f32 to vector<2x1xf32>
    %151 = arith.addf %150, %149 : vector<2x1xf32>
    %152 = arith.mulf %135, %135 : vector<2x1xf32>
    %cst_80 = arith.constant -1.98412701E-4 : f32
    %153 = vector.broadcast %cst_80 : f32 to vector<2x1xf32>
    %154 = arith.mulf %152, %153 : vector<2x1xf32>
    %cst_81 = arith.constant 0.00833333377 : f32
    %155 = vector.broadcast %cst_81 : f32 to vector<2x1xf32>
    %156 = arith.addf %155, %154 : vector<2x1xf32>
    %157 = arith.mulf %152, %156 : vector<2x1xf32>
    %cst_82 = arith.constant -0.166666672 : f32
    %158 = vector.broadcast %cst_82 : f32 to vector<2x1xf32>
    %159 = arith.addf %158, %157 : vector<2x1xf32>
    %160 = arith.mulf %152, %159 : vector<2x1xf32>
    %cst_83 = arith.constant 1.000000e+00 : f32
    %161 = vector.broadcast %cst_83 : f32 to vector<2x1xf32>
    %162 = arith.addf %161, %160 : vector<2x1xf32>
    %163 = arith.mulf %135, %162 : vector<2x1xf32>
    %164 = arith.mulf %136, %136 : vector<2x1xf32>
    %cst_84 = arith.constant 2.48015876E-5 : f32
    %165 = vector.broadcast %cst_84 : f32 to vector<2x1xf32>
    %166 = arith.mulf %164, %165 : vector<2x1xf32>
    %cst_85 = arith.constant -0.00138888892 : f32
    %167 = vector.broadcast %cst_85 : f32 to vector<2x1xf32>
    %168 = arith.addf %167, %166 : vector<2x1xf32>
    %169 = arith.mulf %164, %168 : vector<2x1xf32>
    %cst_86 = arith.constant 0.0416666679 : f32
    %170 = vector.broadcast %cst_86 : f32 to vector<2x1xf32>
    %171 = arith.addf %170, %169 : vector<2x1xf32>
    %172 = arith.mulf %164, %171 : vector<2x1xf32>
    %cst_87 = arith.constant -5.000000e-01 : f32
    %173 = vector.broadcast %cst_87 : f32 to vector<2x1xf32>
    %174 = arith.addf %173, %172 : vector<2x1xf32>
    %175 = arith.mulf %164, %174 : vector<2x1xf32>
    %cst_88 = arith.constant 1.000000e+00 : f32
    %176 = vector.broadcast %cst_88 : f32 to vector<2x1xf32>
    %177 = arith.addf %176, %175 : vector<2x1xf32>
    %178 = arith.mulf %136, %136 : vector<2x1xf32>
    %cst_89 = arith.constant -1.98412701E-4 : f32
    %179 = vector.broadcast %cst_89 : f32 to vector<2x1xf32>
    %180 = arith.mulf %178, %179 : vector<2x1xf32>
    %cst_90 = arith.constant 0.00833333377 : f32
    %181 = vector.broadcast %cst_90 : f32 to vector<2x1xf32>
    %182 = arith.addf %181, %180 : vector<2x1xf32>
    %183 = arith.mulf %178, %182 : vector<2x1xf32>
    %cst_91 = arith.constant -0.166666672 : f32
    %184 = vector.broadcast %cst_91 : f32 to vector<2x1xf32>
    %185 = arith.addf %184, %183 : vector<2x1xf32>
    %186 = arith.mulf %178, %185 : vector<2x1xf32>
    %cst_92 = arith.constant 1.000000e+00 : f32
    %187 = vector.broadcast %cst_92 : f32 to vector<2x1xf32>
    %188 = arith.addf %187, %186 : vector<2x1xf32>
    %189 = arith.mulf %136, %188 : vector<2x1xf32>
    %190 = arith.mulf %137, %137 : vector<2x1xf32>
    %cst_93 = arith.constant 2.48015876E-5 : f32
    %191 = vector.broadcast %cst_93 : f32 to vector<2x1xf32>
    %192 = arith.mulf %190, %191 : vector<2x1xf32>
    %cst_94 = arith.constant -0.00138888892 : f32
    %193 = vector.broadcast %cst_94 : f32 to vector<2x1xf32>
    %194 = arith.addf %193, %192 : vector<2x1xf32>
    %195 = arith.mulf %190, %194 : vector<2x1xf32>
    %cst_95 = arith.constant 0.0416666679 : f32
    %196 = vector.broadcast %cst_95 : f32 to vector<2x1xf32>
    %197 = arith.addf %196, %195 : vector<2x1xf32>
    %198 = arith.mulf %190, %197 : vector<2x1xf32>
    %cst_96 = arith.constant -5.000000e-01 : f32
    %199 = vector.broadcast %cst_96 : f32 to vector<2x1xf32>
    %200 = arith.addf %199, %198 : vector<2x1xf32>
    %201 = arith.mulf %190, %200 : vector<2x1xf32>
    %cst_97 = arith.constant 1.000000e+00 : f32
    %202 = vector.broadcast %cst_97 : f32 to vector<2x1xf32>
    %203 = arith.addf %202, %201 : vector<2x1xf32>
    %204 = arith.mulf %137, %137 : vector<2x1xf32>
    %cst_98 = arith.constant -1.98412701E-4 : f32
    %205 = vector.broadcast %cst_98 : f32 to vector<2x1xf32>
    %206 = arith.mulf %204, %205 : vector<2x1xf32>
    %cst_99 = arith.constant 0.00833333377 : f32
    %207 = vector.broadcast %cst_99 : f32 to vector<2x1xf32>
    %208 = arith.addf %207, %206 : vector<2x1xf32>
    %209 = arith.mulf %204, %208 : vector<2x1xf32>
    %cst_100 = arith.constant -0.166666672 : f32
    %210 = vector.broadcast %cst_100 : f32 to vector<2x1xf32>
    %211 = arith.addf %210, %209 : vector<2x1xf32>
    %212 = arith.mulf %204, %211 : vector<2x1xf32>
    %cst_101 = arith.constant 1.000000e+00 : f32
    %213 = vector.broadcast %cst_101 : f32 to vector<2x1xf32>
    %214 = arith.addf %213, %212 : vector<2x1xf32>
    %215 = arith.mulf %137, %214 : vector<2x1xf32>
    %216 = vector.broadcast %151 : vector<2x1xf32> to vector<2x64xf32>
    %217 = arith.mulf %216, %129 : vector<2x64xf32>
    %218 = vector.broadcast %163 : vector<2x1xf32> to vector<2x64xf32>
    %219 = arith.mulf %218, %131 : vector<2x64xf32>
    %220 = arith.subf %217, %219 : vector<2x64xf32>
    %221 = vector.broadcast %163 : vector<2x1xf32> to vector<2x64xf32>
    %222 = arith.mulf %221, %129 : vector<2x64xf32>
    %223 = vector.broadcast %151 : vector<2x1xf32> to vector<2x64xf32>
    %224 = arith.mulf %223, %131 : vector<2x64xf32>
    %225 = arith.addf %222, %224 : vector<2x64xf32>
    %226 = vector.broadcast %177 : vector<2x1xf32> to vector<2x64xf32>
    %227 = arith.mulf %226, %127 : vector<2x64xf32>
    %228 = vector.broadcast %189 : vector<2x1xf32> to vector<2x64xf32>
    %229 = arith.mulf %228, %225 : vector<2x64xf32>
    %230 = arith.addf %227, %229 : vector<2x64xf32>
    %231 = vector.broadcast %177 : vector<2x1xf32> to vector<2x64xf32>
    %232 = arith.mulf %231, %225 : vector<2x64xf32>
    %233 = vector.broadcast %189 : vector<2x1xf32> to vector<2x64xf32>
    %234 = arith.mulf %233, %127 : vector<2x64xf32>
    %235 = arith.subf %232, %234 : vector<2x64xf32>
    %236 = vector.broadcast %203 : vector<2x1xf32> to vector<2x64xf32>
    %237 = arith.mulf %236, %230 : vector<2x64xf32>
    %238 = vector.broadcast %215 : vector<2x1xf32> to vector<2x64xf32>
    %239 = arith.mulf %238, %220 : vector<2x64xf32>
    %240 = arith.subf %237, %239 : vector<2x64xf32>
    %241 = vector.broadcast %132 : vector<2x1xf32> to vector<2x64xf32>
    %242 = arith.addf %240, %241 : vector<2x64xf32>
    %243 = vector.broadcast %215 : vector<2x1xf32> to vector<2x64xf32>
    %244 = arith.mulf %243, %230 : vector<2x64xf32>
    %245 = vector.broadcast %203 : vector<2x1xf32> to vector<2x64xf32>
    %246 = arith.mulf %245, %220 : vector<2x64xf32>
    %247 = arith.addf %244, %246 : vector<2x64xf32>
    %248 = vector.broadcast %133 : vector<2x1xf32> to vector<2x64xf32>
    %249 = arith.addf %247, %248 : vector<2x64xf32>
    %250 = vector.broadcast %134 : vector<2x1xf32> to vector<2x64xf32>
    %251 = arith.addf %235, %250 : vector<2x64xf32>
    %252 = vector.shape_cast %242 : vector<2x64xf32> to vector<2x1x64xf32>
    %c0_102 = arith.constant 0 : index
    %c0_103 = arith.constant 0 : index
    %c0_104 = arith.constant 0 : index
    %253 = vector.load %arg24[%c0_102, %c0_103, %c0_104] : memref<2x3x64xf32, #tpu.memory_space<vmem>>, vector<2x1x64xf32>
    tpu.vector_store %arg24[%c0_102, %c0_103, %c0_104], %252 {strides = array<i32>} : memref<2x3x64xf32, #tpu.memory_space<vmem>>, vector<2x1x64xf32>,
    %254 = vector.shape_cast %249 : vector<2x64xf32> to vector<2x1x64xf32>
    %c0_105 = arith.constant 0 : index
    %c1 = arith.constant 1 : index
    %c0_106 = arith.constant 0 : index
    %255 = vector.load %arg24[%c0_105, %c1, %c0_106] : memref<2x3x64xf32, #tpu.memory_space<vmem>>, vector<2x1x64xf32>
    tpu.vector_store %arg24[%c0_105, %c1, %c0_106], %254 {strides = array<i32>} : memref<2x3x64xf32, #tpu.memory_space<vmem>>, vector<2x1x64xf32>,
    %256 = vector.shape_cast %251 : vector<2x64xf32> to vector<2x1x64xf32>
    %c0_107 = arith.constant 0 : index
    %c2 = arith.constant 2 : index
    %c0_108 = arith.constant 0 : index
    %257 = vector.load %arg24[%c0_107, %c2, %c0_108] : memref<2x3x64xf32, #tpu.memory_space<vmem>>, vector<2x1x64xf32>
    tpu.vector_store %arg24[%c0_107, %c2, %c0_108], %256 {strides = array<i32>} : memref<2x3x64xf32, #tpu.memory_space<vmem>>, vector<2x1x64xf32>,
    %c0_109 = arith.constant 0 : index
    %c0_110 = arith.constant 0 : index
    %258 = vector.load %arg30[%c0_109, %c0_110] : memref<2x6xf32, #tpu.memory_space<vmem>>, vector<2x6xf32>
    %259 = arith.addf %258, %114 : vector<2x6xf32>
    %c0_111 = arith.constant 0 : index
    %c0_112 = arith.constant 0 : index
    %260 = vector.load %arg30[%c0_111, %c0_112] : memref<2x6xf32, #tpu.memory_space<vmem>>, vector<2x6xf32>
    tpu.vector_store %arg30[%c0_111, %c0_112], %259 {strides = array<i32>} : memref<2x6xf32, #tpu.memory_space<vmem>>, vector<2x6xf32>,
    %c0_113 = arith.constant 0 : index
    %c0_114 = arith.constant 0 : index
    %261 = vector.load %arg23[%c0_113, %c0_114] : memref<2x6xf32, #tpu.memory_space<vmem>>, vector<2x6xf32>
    tpu.vector_store %arg23[%c0_113, %c0_114], %259 {strides = array<i32>} : memref<2x6xf32, #tpu.memory_space<vmem>>, vector<2x6xf32>,
    %c0_115 = arith.constant 0 : index
    %c0_116 = arith.constant 0 : index
    %262 = vector.load %arg6[%c0_115, %c0_116] : memref<2x12xf32, #tpu.memory_space<vmem>>, vector<2x12xf32>
    %263 = vector.extract_strided_slice %262 {offsets = [0, 8], sizes = [2, 1], strides = [1, 1]} : vector<2x12xf32> to vector<2x1xf32>
    %264 = vector.broadcast %263 : vector<2x1xf32> to vector<2x64xf32>
    %265 = arith.mulf %264, %242 : vector<2x64xf32>
    %266 = vector.extract_strided_slice %262 {offsets = [0, 9], sizes = [2, 1], strides = [1, 1]} : vector<2x12xf32> to vector<2x1xf32>
    %267 = vector.broadcast %266 : vector<2x1xf32> to vector<2x64xf32>
    %268 = arith.mulf %267, %249 : vector<2x64xf32>
    %269 = arith.addf %265, %268 : vector<2x64xf32>
    %270 = vector.extract_strided_slice %262 {offsets = [0, 10], sizes = [2, 1], strides = [1, 1]} : vector<2x12xf32> to vector<2x1xf32>
    %271 = vector.broadcast %270 : vector<2x1xf32> to vector<2x64xf32>
    %272 = arith.mulf %271, %251 : vector<2x64xf32>
    %273 = arith.addf %269, %272 : vector<2x64xf32>
    %274 = vector.extract_strided_slice %262 {offsets = [0, 11], sizes = [2, 1], strides = [1, 1]} : vector<2x12xf32> to vector<2x1xf32>
    %275 = vector.broadcast %274 : vector<2x1xf32> to vector<2x64xf32>
    %276 = arith.addf %273, %275 : vector<2x64xf32>
    %cst_117 = arith.constant 9.99999997E-7 : f32
    %277 = vector.broadcast %cst_117 : f32 to vector<2x64xf32>
    %278 = arith.maximumf %276, %277 : vector<2x64xf32>
    %cst_118 = arith.constant 1.000000e+00 : f32
    %279 = vector.broadcast %cst_118 : f32 to vector<2x64xf32>
    %280 = arith.divf %279, %278 : vector<2x64xf32>
    %281 = vector.extract_strided_slice %262 {offsets = [0, 0], sizes = [2, 1], strides = [1, 1]} : vector<2x12xf32> to vector<2x1xf32>
    %282 = vector.broadcast %281 : vector<2x1xf32> to vector<2x64xf32>
    %283 = arith.mulf %282, %242 : vector<2x64xf32>
    %284 = vector.extract_strided_slice %262 {offsets = [0, 1], sizes = [2, 1], strides = [1, 1]} : vector<2x12xf32> to vector<2x1xf32>
    %285 = vector.broadcast %284 : vector<2x1xf32> to vector<2x64xf32>
    %286 = arith.mulf %285, %249 : vector<2x64xf32>
    %287 = arith.addf %283, %286 : vector<2x64xf32>
    %288 = vector.extract_strided_slice %262 {offsets = [0, 2], sizes = [2, 1], strides = [1, 1]} : vector<2x12xf32> to vector<2x1xf32>
    %289 = vector.broadcast %288 : vector<2x1xf32> to vector<2x64xf32>
    %290 = arith.mulf %289, %251 : vector<2x64xf32>
    %291 = arith.addf %287, %290 : vector<2x64xf32>
    %292 = vector.extract_strided_slice %262 {offsets = [0, 3], sizes = [2, 1], strides = [1, 1]} : vector<2x12xf32> to vector<2x1xf32>
    %293 = vector.broadcast %292 : vector<2x1xf32> to vector<2x64xf32>
    %294 = arith.addf %291, %293 : vector<2x64xf32>
    %295 = arith.mulf %294, %280 : vector<2x64xf32>
    %296 = vector.extract_strided_slice %262 {offsets = [0, 4], sizes = [2, 1], strides = [1, 1]} : vector<2x12xf32> to vector<2x1xf32>
    %297 = vector.broadcast %296 : vector<2x1xf32> to vector<2x64xf32>
    %298 = arith.mulf %297, %242 : vector<2x64xf32>
    %299 = vector.extract_strided_slice %262 {offsets = [0, 5], sizes = [2, 1], strides = [1, 1]} : vector<2x12xf32> to vector<2x1xf32>
    %300 = vector.broadcast %299 : vector<2x1xf32> to vector<2x64xf32>
    %301 = arith.mulf %300, %249 : vector<2x64xf32>
    %302 = arith.addf %298, %301 : vector<2x64xf32>
    %303 = vector.extract_strided_slice %262 {offsets = [0, 6], sizes = [2, 1], strides = [1, 1]} : vector<2x12xf32> to vector<2x1xf32>
    %304 = vector.broadcast %303 : vector<2x1xf32> to vector<2x64xf32>
    %305 = arith.mulf %304, %251 : vector<2x64xf32>
    %306 = arith.addf %302, %305 : vector<2x64xf32>
    %307 = vector.extract_strided_slice %262 {offsets = [0, 7], sizes = [2, 1], strides = [1, 1]} : vector<2x12xf32> to vector<2x1xf32>
    %308 = vector.broadcast %307 : vector<2x1xf32> to vector<2x64xf32>
    %309 = arith.addf %306, %308 : vector<2x64xf32>
    %310 = arith.mulf %309, %280 : vector<2x64xf32>
    %311 = vector.shape_cast %310 : vector<2x64xf32> to vector<2x64x1xf32>
    %c0_119 = arith.constant 0 : index
    %c0_120 = arith.constant 0 : index
    %c0_121 = arith.constant 0 : index
    %312 = vector.load %arg7[%c0_119, %c0_120, %c0_121] : memref<1x1x960xf32, #tpu.memory_space<vmem>>, vector<1x1x960xf32>
    %313 = vector.broadcast %311 : vector<2x64x1xf32> to vector<2x64x960xf32>
    %314 = vector.broadcast %312 : vector<1x1x960xf32> to vector<2x64x960xf32>
    %315 = arith.subf %313, %314 : vector<2x64x960xf32>
    %316 = math.absf %315 : vector<2x64x960xf32>
    %cst_122 = arith.constant 5.000000e-01 : f32
    %317 = vector.broadcast %cst_122 : f32 to vector<2x64x960xf32>
    %318 = arith.cmpf olt, %316, %317 : vector<2x64x960xf32>
    %319 = vector.shape_cast %295 : vector<2x64xf32> to vector<2x64x1xf32>
    %c0_123 = arith.constant 0 : index
    %c0_124 = arith.constant 0 : index
    %c0_125 = arith.constant 0 : index
    %320 = vector.load %arg8[%c0_123, %c0_124, %c0_125] : memref<1x1x960xf32, #tpu.memory_space<vmem>>, vector<1x1x960xf32>
    %321 = vector.broadcast %319 : vector<2x64x1xf32> to vector<2x64x960xf32>
    %322 = vector.broadcast %320 : vector<1x1x960xf32> to vector<2x64x960xf32>
    %323 = arith.subf %321, %322 : vector<2x64x960xf32>
    %324 = math.absf %323 : vector<2x64x960xf32>
    %cst_126 = arith.constant 5.000000e-01 : f32
    %325 = vector.broadcast %cst_126 : f32 to vector<2x64x960xf32>
    %326 = arith.cmpf olt, %324, %325 : vector<2x64x960xf32>
    %327 = arith.andi %318, %326 : vector<2x64x960xi1>
    %328 = vector.shape_cast %276 : vector<2x64xf32> to vector<2x64x1xf32>
    %cst_127 = arith.constant 0.000000e+00 : f32
    %329 = vector.broadcast %cst_127 : f32 to vector<2x64x1xf32>
    %330 = arith.cmpf ogt, %328, %329 : vector<2x64x1xf32>
    %331 = vector.broadcast %330 : vector<2x64x1xi1> to vector<2x64x960xi1>
    %332 = arith.andi %327, %331 : vector<2x64x960xi1>
    %333 = vector.shape_cast %276 : vector<2x64xf32> to vector<2x64x1xf32>
    %cst_128 = arith.constant 0.000000e+00 : f32
    %334 = vector.shape_cast %333 : vector<2x64x1xf32> to vector<2x64x1xf32>
    %335 = vector.broadcast %334 : vector<2x64x1xf32> to vector<2x64x960xf32>
    %336 = vector.broadcast %cst_128 : f32 to vector<2x64x960xf32>
    %337 = arith.select %332, %335, %336 : vector<2x64x960xi1>, vector<2x64x960xf32>
    %cst_129 = arith.constant dense<0xFF800000> : vector<2x960xf32>
    %338 = vector.multi_reduction <maximumf>, %337, %cst_129 [1] : vector<2x64x960xf32> to vector<2x960xf32>
    %339 = arith.truncf %338 : vector<2x960xf32> to vector<2x960xbf16>
    %c0_130 = arith.constant 0 : index
    %c0_131 = arith.constant 0 : index
    %340 = vector.load %arg18[%c0_130, %c0_131] : memref<960x512xbf16, #tpu.memory_space<vmem>>, vector<960x512xbf16>
    %cst_132 = arith.constant dense<0.000000e+00> : vector<2x512xf32>
    %341 = tpu.matmul %339, %340, %cst_132 {dimension_numbers = #tpu.dot_dimension_numbers<[1], [0], [0], [1], [0, 0, 1, 1], [], []>} : vector<2x960xbf16>, vector<960x512xbf16>, vector<2x512xf32> -> vector<2x512xf32>
    %cst_133 = arith.constant 1.250000e-02 : f32
    %342 = vector.broadcast %cst_133 : f32 to vector<2x512xf32>
    %343 = arith.mulf %341, %342 : vector<2x512xf32>
    %c0_134 = arith.constant 0 : index
    %c0_135 = arith.constant 0 : index
    %344 = vector.load %arg32[%c0_134, %c0_135] : memref<2x512xf32, #tpu.memory_space<vmem>>, vector<2x512xf32>
    tpu.vector_store %arg32[%c0_134, %c0_135], %343 {strides = array<i32>} : memref<2x512xf32, #tpu.memory_space<vmem>>, vector<2x512xf32>,
    return
  }
  func.func @transform_0(%arg0: i32) -> (i32, i32, i32) {
    %c0_i32 = arith.constant 0 : i32
    %c0_i32_0 = arith.constant 0 : i32
    %c0_i32_1 = arith.constant 0 : i32
    %c0_i32_2 = arith.constant 0 : i32
    return %c0_i32, %c0_i32_0, %c0_i32_1 : i32, i32, i32
  }
  func.func @transform_1(%arg0: i32) -> (i32, i32) {
    %c0_i32 = arith.constant 0 : i32
    %c0_i32_0 = arith.constant 0 : i32
    %c0_i32_1 = arith.constant 0 : i32
    return %c0_i32, %c0_i32_0 : i32, i32
  }
  func.func @transform_2(%arg0: i32) -> (i32, i32) {
    %c0_i32 = arith.constant 0 : i32
    %c0_i32_0 = arith.constant 0 : i32
    %c0_i32_1 = arith.constant 0 : i32
    return %c0_i32, %c0_i32_0 : i32, i32
  }
  func.func @transform_3(%arg0: i32) -> (i32, i32) {
    %c0_i32 = arith.constant 0 : i32
    %c0_i32_0 = arith.constant 0 : i32
    %c0_i32_1 = arith.constant 0 : i32
    return %c0_i32, %c0_i32_0 : i32, i32
  }
  func.func @transform_4(%arg0: i32) -> (i32, i32) {
    %c0_i32 = arith.constant 0 : i32
    %c0_i32_0 = arith.constant 0 : i32
    %c0_i32_1 = arith.constant 0 : i32
    return %c0_i32, %c0_i32_0 : i32, i32
  }
  func.func @transform_5(%arg0: i32) -> (i32, i32) {
    %c0_i32 = arith.constant 0 : i32
    %c0_i32_0 = arith.constant 0 : i32
    %c0_i32_1 = arith.constant 0 : i32
    return %c0_i32, %c0_i32_0 : i32, i32
  }
  func.func @transform_6(%arg0: i32) -> (i32, i32, i32) {
    %c0_i32 = arith.constant 0 : i32
    %c0_i32_0 = arith.constant 0 : i32
    %c0_i32_1 = arith.constant 0 : i32
    %c0_i32_2 = arith.constant 0 : i32
    return %c0_i32, %c0_i32_0, %c0_i32_1 : i32, i32, i32
  }
  func.func @transform_7(%arg0: i32) -> (i32, i32, i32) {
    %c0_i32 = arith.constant 0 : i32
    %c0_i32_0 = arith.constant 0 : i32
    %c0_i32_1 = arith.constant 0 : i32
    %c0_i32_2 = arith.constant 0 : i32
    return %c0_i32, %c0_i32_0, %c0_i32_1 : i32, i32, i32
  }
  func.func @transform_8(%arg0: i32) -> (i32, i32) {
    %c0_i32 = arith.constant 0 : i32
    %c0_i32_0 = arith.constant 0 : i32
    %c0_i32_1 = arith.constant 0 : i32
    return %c0_i32, %c0_i32_0 : i32, i32
  }
  func.func @transform_9(%arg0: i32) -> (i32, i32) {
    %c0_i32 = arith.constant 0 : i32
    %c0_i32_0 = arith.constant 0 : i32
    %c0_i32_1 = arith.constant 0 : i32
    return %c0_i32, %c0_i32_0 : i32, i32
  }
  func.func @transform_10(%arg0: i32) -> (i32, i32) {
    %c0_i32 = arith.constant 0 : i32
    %c0_i32_0 = arith.constant 0 : i32
    %c0_i32_1 = arith.constant 0 : i32
    return %c0_i32, %c0_i32_0 : i32, i32
  }
  func.func @transform_11(%arg0: i32) -> (i32, i32) {
    %c0_i32 = arith.constant 0 : i32
    %c0_i32_0 = arith.constant 0 : i32
    %c0_i32_1 = arith.constant 0 : i32
    return %c0_i32, %c0_i32_0 : i32, i32
  }
  func.func @transform_12(%arg0: i32) -> (i32, i32) {
    %c0_i32 = arith.constant 0 : i32
    %c0_i32_0 = arith.constant 0 : i32
    %c0_i32_1 = arith.constant 0 : i32
    return %c0_i32, %c0_i32_0 : i32, i32
  }
  func.func @transform_13(%arg0: i32) -> (i32, i32) {
    %c0_i32 = arith.constant 0 : i32
    %c0_i32_0 = arith.constant 0 : i32
    %c0_i32_1 = arith.constant 0 : i32
    return %c0_i32, %c0_i32_0 : i32, i32
  }
  func.func @transform_14(%arg0: i32) -> (i32, i32) {
    %c0_i32 = arith.constant 0 : i32
    %c0_i32_0 = arith.constant 0 : i32
    %c0_i32_1 = arith.constant 0 : i32
    return %c0_i32, %c0_i32_0 : i32, i32
  }
  func.func @transform_15(%arg0: i32) -> (i32, i32) {
    %c0_i32 = arith.constant 0 : i32
    %c0_i32_0 = arith.constant 0 : i32
    %c0_i32_1 = arith.constant 0 : i32
    return %c0_i32, %c0_i32_0 : i32, i32
  }
  func.func @transform_16(%arg0: i32) -> (i32, i32) {
    %c0_i32 = arith.constant 0 : i32
    %c0_i32_0 = arith.constant 0 : i32
    %c0_i32_1 = arith.constant 0 : i32
    return %c0_i32, %c0_i32_0 : i32, i32
  }
  func.func @transform_17(%arg0: i32) -> (i32, i32) {
    %c0_i32 = arith.constant 0 : i32
    %c0_i32_0 = arith.constant 0 : i32
    %c0_i32_1 = arith.constant 0 : i32
    return %c0_i32, %c0_i32_0 : i32, i32
  }
  func.func @transform_18(%arg0: i32) -> (i32, i32, i32) {
    %c0_i32 = arith.constant 0 : i32
    %c0_i32_0 = arith.constant 0 : i32
    %c0_i32_1 = arith.constant 0 : i32
    return %arg0, %c0_i32, %c0_i32_0 : i32, i32, i32
  }
  func.func @transform_19(%arg0: i32) -> (i32, i32, i32) {
    %c0_i32 = arith.constant 0 : i32
    %c0_i32_0 = arith.constant 0 : i32
    %c0_i32_1 = arith.constant 0 : i32
    return %arg0, %c0_i32, %c0_i32_0 : i32, i32, i32
  }
  func.func @transform_20(%arg0: i32) -> (i32, i32, i32) {
    %c0_i32 = arith.constant 0 : i32
    %c0_i32_0 = arith.constant 0 : i32
    %c0_i32_1 = arith.constant 0 : i32
    return %arg0, %c0_i32, %c0_i32_0 : i32, i32, i32
  }
  func.func @transform_21(%arg0: i32) -> (i32, i32, i32) {
    %c0_i32 = arith.constant 0 : i32
    %c0_i32_0 = arith.constant 0 : i32
    %c0_i32_1 = arith.constant 0 : i32
    return %arg0, %c0_i32, %c0_i32_0 : i32, i32, i32
  }
  func.func @transform_22(%arg0: i32) -> (i32, i32) {
    %c0_i32 = arith.constant 0 : i32
    %c0_i32_0 = arith.constant 0 : i32
    %c0_i32_1 = arith.constant 0 : i32
    return %c0_i32, %c0_i32_0 : i32, i32
  }
  func.func @transform_23(%arg0: i32) -> (i32, i32, i32) {
    %c0_i32 = arith.constant 0 : i32
    %c0_i32_0 = arith.constant 0 : i32
    %c0_i32_1 = arith.constant 0 : i32
    %c0_i32_2 = arith.constant 0 : i32
    return %c0_i32, %c0_i32_0, %c0_i32_1 : i32, i32, i32
  }
  func.func @transform_24(%arg0: i32) -> (i32, i32) {
    %c0_i32 = arith.constant 0 : i32
    %c0_i32_0 = arith.constant 0 : i32
    %c0_i32_1 = arith.constant 0 : i32
    return %c0_i32, %c0_i32_0 : i32, i32
  }
}

</mosaic_0001>

<bundles_post_ra>
// kernel: generate_seq.1
= control target key start
LH: loop header
LB: loop body
LE: loop exit
PB: predicated region body
PF: predicated region fallthrough
CT: control target
= control target key end

     0   :  { %s20038_s0 = inlined_call_operand.vmem [shape: f32[2,3,64], index: 0, kind: input, shape index: {}]   ;;  %s20039_s1 = inlined_call_operand.vmem [shape: f32[2,128], index: 1, kind: input, shape index: {}]   ;;  %s20040_s2 = inlined_call_operand.vmem [shape: f32[2,512], index: 2, kind: input, shape index: {}]   ;;  %s20041_s3 = inlined_call_operand.vmem [shape: f32[2,6], index: 3, kind: input, shape index: {}]   ;;  %s20042_s4 = inlined_call_operand.vmem [shape: f32[2,6], index: 4, kind: input, shape index: {}]   ;;  %s20043_s5 = inlined_call_operand.vmem [shape: f32[2,12], index: 5, kind: input, shape index: {}]   ;;  %s20044_s6 = inlined_call_operand.vmem [shape: f32[1,1,960], index: 6, kind: input, shape index: {}]   ;;  %s20045_s7 = inlined_call_operand.vmem [shape: f32[1,1,960], index: 7, kind: input, shape index: {}]   ;;  %s20046_s8 = inlined_call_operand.hbm [shape: bf16[512,128], index: 8, kind: input, shape index: {}]   ;;  %s20047_s9 = inlined_call_operand.vmem [shape: bf16[128,1024], index: 9, kind: input, shape index: {}]   ;;  %s20048_s10 = inlined_call_operand.vmem [shape: bf16[256,1024], index: 10, kind: input, shape index: {}]   ;;  %s20049_s11 = inlined_call_operand.vmem [shape: f32[1,1024], index: 11, kind: input, shape index: {}]   ;;  %s20050_s12 = inlined_call_operand.hbm [shape: bf16[256,1024], index: 12, kind: input, shape index: {}]   ;;  %s20051_s13 = inlined_call_operand.hbm [shape: bf16[256,1024], index: 13, kind: input, shape index: {}]   ;;  %s20052_s14 = inlined_call_operand.vmem [shape: f32[1,1024], index: 14, kind: input, shape index: {}]   ;;  %s20053_s15 = inlined_call_operand.hbm [shape: bf16[256,640], index: 15, kind: input, shape index: {}]   ;;  %s20054_s16 = inlined_call_operand.vmem [shape: f32[1,640], index: 16, kind: input, shape index: {}]   ;;  %s20055_s17 = inlined_call_operand.hbm [shape: bf16[960,512], index: 17, kind: input, shape index: {}]   ;;  %s20056_s18 = inlined_call_operand.vmem [shape: f32[4,2,3], index: 18, kind: output, shape index: {0}]   ;;  %s20057_s19 = inlined_call_operand.vmem [shape: f32[4,2,3], index: 19, kind: output, shape index: {1}]   ;;  %s20058_s20 = inlined_call_operand.vmem [shape: f32[4,2,3], index: 20, kind: output, shape index: {2}]   ;;  %s20059_s21 = inlined_call_operand.vmem [shape: f32[4,2,3], index: 21, kind: output, shape index: {3}]   ;;  %s20060_s22 = inlined_call_operand.hbm [shape: f32[2,6], index: 22, kind: output, shape index: {4}]   ;;  %s20061_s23 = inlined_call_operand.vmem [shape: f32[2,3,64], index: 23, kind: output, shape index: {5}]   ;;  %s20062_s24 = inlined_call_operand.vmem [shape: f32[2,512], index: 24, kind: output, shape index: {6}]  }
   0x1   :  { %20113 = sst [smem:[#allocation58_spill]] %s20038_s0 }
   0x2   :  { %20114 = sst [smem:[#allocation59_spill]] %s20039_s1 }
   0x3   :  { %20115 = sst [smem:[#allocation60_spill]] %s20040_s2 }
   0x4   :  { %20116 = sst [smem:[#allocation61_spill]] %s20041_s3 }
   0x5   :  { %20117 = sst [smem:[#allocation62_spill]] %s20042_s4 }
   0x6   :  { %20118 = sst [smem:[#allocation63_spill]] %s20043_s5 }
   0x7   :  { %20119 = sst [smem:[#allocation64_spill]] %s20044_s6 }
   0x8   :  { %20120 = sst [smem:[#allocation65_spill]] %s20045_s7 }
   0x9   :  { %20121 = sst [smem:[#allocation66_spill]] %s20046_s8 }
   0xa   :  { %20122 = sst [smem:[#allocation67_spill]] %s20050_s12 }
   0xb   :  { %20123 = sst [smem:[#allocation68_spill]] %s20053_s15 }
   0xc   :  { %20124 = sst [smem:[#allocation69_spill]] %s20054_s16 }
   0xd   :  { %20125 = sst [smem:[#allocation70_spill]] %s20060_s22 }
   0xe   :  { %20126 = sst [smem:[#allocation71_spill]] %s20061_s23 }
   0xf   :  { %20127 = sst [smem:[#allocation72_spill]] %s20062_s24 }
  0x10   :  { %30 = vsyncpa [#allocation10], 0 }
  0x11   :  { %31 = vsyncpa [#allocation13], 0 }
  0x12   :  { %32 = vsyncpa [#allocation16], 0 }
  0x13   :  { %33 = vsyncpa [#allocation11], 0  ;;  %s14363_s5 = smov 0  }
  0x14 LB: > { %20128 = sst [smem:[#allocation23_spill]] %s14208_s5  ;;  %s14372_s6 = sadd.s32 4294967295, %s14208_s5   ;;  %s14208_s5 = sphi %s14363_s5, %s39_s5  }
  0x15   : > { %s20129_s12 = sld [smem:[#allocation67_spill]]  ;;  %p9758_p0 = scmp.ge.s32.totalorder %s14208_s5, 1 }
  0x16   : > { %p589_p1 = scmp.lt.s32.totalorder %s14208_s5, 5  ;;  %p9759_p2 = scmp.ne.s32.totalorder %s14372_s6, 0 }
  0x17   : > { %p13836_p3 = scmp.eq.s32.totalorder %s14372_s6, 0  ;;  %s14210_s29 = smov [#allocation12]  }
  0x18   : > { %p14378_p4 = pnand %p9758_p0, %p589_p1  ;;  %s649_s0 = sshll.u32 %s14210_s29, 4  ;;  %s650_s0 = int_to_ptr.vmem [resolvable:$true] %s649_s0 }
  0x19   : > { %s20131_s15 = sld [smem:[#allocation68_spill]]  ;;  %s14211_s8 = smov [#allocation15]  }
  0x1a   : > { %p13820_p5 = pneg %p14378_p4  ;;  %s680_s4 = sshll.u32 %s14211_s8, 4  ;;  %s681_s4 = int_to_ptr.vmem [resolvable:$true] %s680_s4 }
  0x1b   : > { %s647_s28 = sshll.u32 %s20129_s12, 4  ;;  %s14212_s1 = smov 512   ;;  %s648_s28 = int_to_ptr.hbm [resolvable:$true] %s647_s28 }
  0x1c   : > { %p14389_p6 = pnand %p13836_p3, %p13820_p5  ;;  %s14213_s26 = smov 32  }
  0x1d   : > { %s20133_s7 = sld [smem:[#allocation66_spill]]  ;;  %s14214_s12 = smov 320  }
  0x1e   : > { %13826 = dma.hbm_to_vmem [thread:$0]  (!%p14389_p6), %s648_s28, 16384, %s650_s0, [#allocation13], %s14212_s1, %s14212_s1, %s14213_s26  }
  0x1f   : > { %s678_s3 = sshll.u32 %s20131_s15, 4  ;;  %s14215_s15 = smov 20   ;;  %s679_s3 = int_to_ptr.hbm [resolvable:$true] %s678_s3 }
  0x20   : > { %13832 = dma.hbm_to_vmem [thread:$0]  (!%p14389_p6), %s679_s3, 10240, %s681_s4, [#allocation16], %s14214_s12, %s14214_s12, %s14215_s15  }
  0x21   : > { %s14216_s5 = smov [#allocation9]   ;;  %s14217_s23 = smov 64  }
  0x22   : > { %s626_s22 = sshll.u32 %s14216_s5, 4  ;;  %s14218_s8 = smov 4   ;;  %s627_s22 = int_to_ptr.vmem [resolvable:$true] %s626_s22 }
  0x23   : > { %s624_s30 = sshll.u32 %s20133_s7, 4  ;;  %s661_s0 = sshll.u32 %s20051_s13, 4  ;;  %s625_s30 = int_to_ptr.hbm [resolvable:$true] %s624_s30  ;;  %s662_s0 = int_to_ptr.hbm [resolvable:$true] %s661_s0 }
  0x24   : > { %13823 = dma.hbm_to_vmem [thread:$0]  (!%p14389_p6), %s625_s30, 4096, %s627_s22, [#allocation10], %s14217_s23, %s14217_s23, %s14218_s8  }
  0x25   : > { %s14219_s27 = smov [#allocation14]   ;;  %s695_s12 = sshll.u32 %s20055_s17, 4  ;;  %s696_s12 = int_to_ptr.hbm [resolvable:$true] %s695_s12 }
  0x26   : > { %s663_s29 = sshll.u32 %s14219_s27, 4  ;;  %s14220_s15 = smov [#allocation17]   ;;  %s664_s29 = int_to_ptr.vmem [resolvable:$true] %s663_s29 }
  0x27   : > { %13829 = dma.hbm_to_vmem [thread:$0]  (!%p14389_p6), %s662_s0, 16384, %s664_s29, [#allocation13], %s14212_s1, %s14212_s1, %s14213_s26  }
  0x28   : > { %s697_s5 = sshll.u32 %s14220_s15, 4  ;;  %s14221_s3 = smov 256   ;;  %s698_s5 = int_to_ptr.vmem [resolvable:$true] %s697_s5 }
  0x29   : > { %s14222_s22 = smov 16   ;;  %713 = sbr.rel (%p14378_p4) target bundleno = 1888 (0x760), region = 92 }
  0x2a   : > { %13835 = dma.hbm_to_vmem [thread:$0]  (!%p14389_p6), %s696_s12, 30720, %s698_s5, [#allocation16], %s14221_s3, %s14221_s3, %s14222_s22  }
  0x2e   : > { %14191 = dma.done.wait (%p13836_p3), [#allocation10], 4096  }
  0x2f   : > { %14193 = vsyncadd (%p13836_p3), [#allocation10], 4294963200 }
  0x30   : > { %14195 = dma.done.wait (%p13836_p3), [#allocation13], 32768  }
  0x31   : > { %14197 = vsyncadd (%p13836_p3), [#allocation13], 4294934528 }
  0x32   : > { %14199 = dma.done.wait (%p13836_p3), [#allocation16], 40960  }
  0x33   : > { %14201 = vsyncadd (%p13836_p3), [#allocation16], 4294926336  ;;  %p806_p7 = scmp.lt.s32.totalorder %s14372_s6, 3  ;;  %s20134_s15 = sld [smem:[#allocation61_spill]] (!%p9759_p2) }
  0x34   : > { %s20135_s24 = sld [smem:[#allocation60_spill]] (!%p9759_p2) }
  0x35   : > { %s807_s16 = scalar_select %p806_p7, %s14372_s6, 3 }
  0x36   : > { %826 = sbr.rel (%p9759_p2) target bundleno = 67 (0x43), region = 116 }
  0x37   : > { %s14428_s23 = sshll.u32 %s807_s16, 1 }
  0x38   : > { %s809_s25 = scalar_lea.vmem %s20056_s18, %s14428_s23  ;;  %s813_s26 = scalar_lea.vmem %s20057_s19, %s14428_s23 }
  0x39   : > { %s817_s28 = scalar_lea.vmem %s20058_s20, %s14428_s23  ;;  %s821_s29 = scalar_lea.vmem %s20059_s21, %s14428_s23 }
  0x3b   : > { %v14223_v0 = vmov 0.0   ;;  %v831_v1 = vld [vmem:[%s20134_s15] sm:$0x3]  ;;  %vm832_vm0 = vcmask 41984  }
  0x3c   : > { %827 = vst [vmem:[#allocation2] sm:$0xf] %v14223_v0  ;;  %v834_v2 = vld [vmem:[%s20134_s15] sm:$0x3] }
  0x3d   : > { %828 = vst [vmem:[#allocation3] sm:$0xf] %v14223_v0  ;;  %v836_v3 = vld [vmem:[%s20135_s24] sm:$0xff] }
  0x3e   : > { %829 = vst [vmem:[#allocation4] sm:$0xf] %v14223_v0 }
  0x3f   : > { %830 = vst [vmem:[#allocation5] sm:$0xf] %v14223_v0 }
  0x40   : > { %833 = vst.msk [vmem:[#allocation6] sm:$0x3] %vm832_vm0, %v831_v1 }
  0x41   : > { %835 = vst.msk [vmem:[#allocation7] sm:$0x3] %vm832_vm0, %v834_v2 }
  0x42   : > { %837 = vst [vmem:[#allocation8] sm:$0xff] %v836_v3 }
  0x43 PF: > { %v13003_v4 = vld [vmem:[#allocation9 + $0x38] sm:$0xff]  ;;  %v13002_v8 = vld [vmem:[#allocation9 + $0x30] sm:$0xff]  ;;  %v13001_v12 = vld [vmem:[#allocation9 + $0x28] sm:$0xff]  ;;  %s20136_s12 = sld [smem:[#allocation59_spill]]  ;;  %s14236_s16 = smov 125  }
  0x44   : > { %v13011_v5 = vld [vmem:[#allocation9 + $0x78] sm:$0xff]  ;;  %1126 = vmatpush.bf16.msra.mxu0 %v13003_v4  ;;  %v13010_v9 = vld [vmem:[#allocation9 + $0x70] sm:$0xff]  ;;  %v13009_v13 = vld [vmem:[#allocation9 + $0x68] sm:$0xff]  ;;  %s20180_s7 = sld [smem:[#allocation63_spill]]  ;;  %p13846_p8 = scmp.eq.s32.totalorder %s14372_s6, 3 }
  0x45   : > { %v13019_v6 = vld [vmem:[#allocation9 + $0xb8] sm:$0xff]  ;;  %1139 = vmatpush.bf16.msra.mxu1 %v13011_v5  ;;  %v13018_v10 = vld [vmem:[#allocation9 + $0xb0] sm:$0xff]  ;;  %v13017_v14 = vld [vmem:[#allocation9 + $0xa8] sm:$0xff]  ;;  %s20181_s3 = sld [smem:[#allocation69_spill]]  ;;  %s14237_s0 = smov [#allocation18]  }
  0x46   : > { %v13027_v7 = vld [vmem:[#allocation9 + $0xf8] sm:$0xff]  ;;  %1152 = vmatpush.bf16.msra.mxu2 %v13019_v6  ;;  %v13026_v11 = vld [vmem:[#allocation9 + $0xf0] sm:$0xff]  ;;  %v13025_v15 = vld [vmem:[#allocation9 + $0xe8] sm:$0xff]  ;;  %s20182_s24 = sld [smem:[#allocation72_spill]]  ;;  %s9568_s27 = sshll.u32 %s14237_s0, 4  ;;  %s9569_s27 = int_to_ptr.vmem [resolvable:$true] %s9568_s27 }
  0x47   : > { %1165 = vmatpush.bf16.msra.mxu3 %v13027_v7  ;;  %v13000_v16 = vld [vmem:[#allocation9 + $0x20] sm:$0xff]  ;;  %v12999_v21 = vld [vmem:[#allocation9 + $0x18] sm:$0xff]  ;;  %v12998_v25 = vld [vmem:[#allocation9 + $0x10] sm:$0xff]  ;;  %s20183_s30 = sld [smem:[#allocation58_spill]] }
  0x48   : > { %1127 = vmatpush.bf16.msra.mxu0 %v13002_v8  ;;  %v13008_v17 = vld [vmem:[#allocation9 + $0x60] sm:$0xff]  ;;  %v13007_v22 = vld [vmem:[#allocation9 + $0x58] sm:$0xff]  ;;  %v13006_v26 = vld [vmem:[#allocation9 + $0x50] sm:$0xff]  ;;  %s20194_s22 = sld [smem:[#allocation64_spill]] }
  0x49   : > { %1140 = vmatpush.bf16.msra.mxu1 %v13010_v9  ;;  %v13016_v18 = vld [vmem:[#allocation9 + $0xa0] sm:$0xff]  ;;  %v855_v20 = vld [vmem:[#allocation8] sm:$0xff]  ;;  %v13014_v27 = vld [vmem:[#allocation9 + $0x90] sm:$0xff] }
  0x4a   : > { %1153 = vmatpush.bf16.msra.mxu2 %v13018_v10  ;;  %v13024_v19 = vld [vmem:[#allocation9 + $0xe0] sm:$0xff]  ;;  %857 = vst [vmem:[#allocation1] ss:$4 sm:$0xff] %v855_v20  ;;  %v13015_v23 = vld [vmem:[#allocation9 + $0x98] sm:$0xff]  ;;  %v13022_v28 = vld [vmem:[#allocation9 + $0xd0] sm:$0xff] }
  0x4b   : > { %1166 = vmatpush.bf16.msra.mxu3 %v13026_v11  ;;  %v13023_v24 = vld [vmem:[#allocation9 + $0xd8] sm:$0xff]  ;;  %v12997_v29 = vld [vmem:[#allocation9 + $0x8] sm:$0xff]  ;;  %v1180_v31 = vld [vmem:[#allocation2] sm:$0xf] }
  0x4c   : > { %1128 = vmatpush.bf16.msra.mxu0 %v13001_v12  ;;  %v13005_v30 = vld [vmem:[#allocation9 + $0x48] sm:$0xff]  ;;  %v12996_v38 = vld [vmem:[#allocation9] sm:$0xff]  ;;  %v10130_v40 = vld [vmem:[%s20048_s10 + $0x1c0] sm:$0xf] }
  0x4d   : > { %1141 = vmatpush.bf16.msra.mxu1 %v13009_v13  ;;  %v13013_v36 = vld [vmem:[#allocation9 + $0x88] sm:$0xff]  ;;  %v13004_v39 = vld [vmem:[#allocation9 + $0x40] sm:$0xff]  ;;  %v13152_v41 = vld [vmem:[%s20048_s10 + $0x1dc] sm:$0xf0] }
  0x4e   : > { %1154 = vmatpush.bf16.msra.mxu2 %v13017_v14  ;;  %v13021_v37 = vld [vmem:[#allocation9 + $0xc8] sm:$0xff]  ;;  %v13012_v42 = vld [vmem:[#allocation9 + $0x80] sm:$0xff]  ;;  %v10386_v44 = vld [vmem:[%s20048_s10 + $0x3c0] sm:$0xf]  ;;  %v10131_v53 = vor.u32 %v13152_v41, %v10130_v40 }
  0x4f   : > { %1167 = vmatpush.bf16.msra.mxu3 %v13025_v15  ;;  %v13020_v43 = vld [vmem:[#allocation9 + $0xc0] sm:$0xff]  ;;  %v13216_v45 = vld [vmem:[%s20048_s10 + $0x3dc] sm:$0xf0]  ;;  %v1181_v57 = vld [vmem:[#allocation3] sm:$0xf] }
  0x50   : > { %1129 = vmatpush.bf16.msra.mxu0 %v13000_v16  ;;  %v13148_v46 = vld [vmem:[%s20048_s10 + $0x1c4] sm:$0xf]  ;;  %v10098_v50 = vld [vmem:[%s20048_s10 + $0x180] sm:$0xf]  ;;  %v10387_v54 = vor.u32 %v13216_v45, %v10386_v44 }
  0x51   : > { %1142 = vmatpush.bf16.msra.mxu1 %v13008_v17  ;;  %v14457_v32 = vld.sshfl [vmem:[#allocation1 + $0x10] sm:$0xff pattern:$0x73625140]  ;;  %v14459_v33 = vld.sshfl [vmem:[#allocation1 + $0x18] sm:$0xff pattern:$0x73625140] }
  0x52   : > { %1155 = vmatpush.bf16.msra.mxu2 %v13016_v18  ;;  %v14461_v34 = vld.sshfl [vmem:[#allocation1] sm:$0xff pattern:$0x73625140]  ;;  %v14463_v35 = vld.sshfl [vmem:[#allocation1 + $0x8] sm:$0xff pattern:$0x73625140]  ;;  %v868_v63 = vpack.c.bf16 %v14457_v32, %v14457_v32  ;;  %v869_v0 = vpack.c.bf16 %v14459_v33, %v14459_v33 }
  0x53   : > { %1168 = vmatpush.bf16.msra.mxu3 %v13024_v19  ;;  %1248 = vst [vmem:[#allocation1] ss:$4 sm:$0xff] %v1180_v31  ;;  %v10132_v47 = vld [vmem:[%s20048_s10 + $0x1e0] sm:$0xf0]  ;;  %v13144_v51 = vld [vmem:[%s20048_s10 + $0x19c] sm:$0xf0]  ;;  %v866_v3 = vpack.c.bf16 %v14461_v34, %v14461_v34  ;;  %v867_v4 = vpack.c.bf16 %v14463_v35, %v14463_v35 }
  0x54   : > { %1130 = vmatpush.bf16.msra.mxu0 %v12999_v21  ;;  %v13212_v48 = vld [vmem:[%s20048_s10 + $0x3c4] sm:$0xf]  ;;  %v10354_v52 = vld [vmem:[%s20048_s10 + $0x380] sm:$0xf]  ;;  %v10135_v58 = vor.u32 %v13148_v46, %v10132_v47  ;;  %v10099_v5 = vor.u32 %v13144_v51, %v10098_v50  ;;  %v2813_v17 = vld [vmem:[#allocation4] sm:$0xf] }
  0x55   : > { %1143 = vmatpush.bf16.msra.mxu1 %v13007_v22  ;;  %v10388_v49 = vld [vmem:[%s20048_s10 + $0x3e0] sm:$0xf0]  ;;  %v13208_v55 = vld [vmem:[%s20048_s10 + $0x39c] sm:$0xf0] }
  0x56   : > { %1156 = vmatpush.bf16.msra.mxu2 %v13015_v23  ;;  %v13140_v56 = vld [vmem:[%s20048_s10 + $0x184] sm:$0xf]  ;;  %v10391_v59 = vor.u32 %v13212_v48, %v10388_v49  ;;  %v10355_v6 = vor.u32 %v13208_v55, %v10354_v52  ;;  %v10066_v7 = vld [vmem:[%s20048_s10 + $0x140] sm:$0xf] }
  0x57   : > { %1169 = vmatpush.bf16.msra.mxu3 %v13023_v24  ;;  %v10100_v60 = vld [vmem:[%s20048_s10 + $0x1a0] sm:$0xf0]  ;;  %v13136_v8 = vld [vmem:[%s20048_s10 + $0x15c] sm:$0xf0] }
  0x58   : > { %1131 = vmatpush.bf16.msra.mxu0 %v12998_v25  ;;  %v13204_v61 = vld [vmem:[%s20048_s10 + $0x384] sm:$0xf]  ;;  %v10103_v9 = vor.u32 %v13140_v56, %v10100_v60  ;;  %v10322_v11 = vld [vmem:[%s20048_s10 + $0x340] sm:$0xf]  ;;  %v10067_v20 = vor.u32 %v13136_v8, %v10066_v7 }
  0x59   : > { %1144 = vmatpush.bf16.msra.mxu1 %v13006_v26  ;;  %v10356_v62 = vld [vmem:[%s20048_s10 + $0x3a0] sm:$0xf0]  ;;  %v13200_v12 = vld [vmem:[%s20048_s10 + $0x35c] sm:$0xf0] }
  0x5a   : > { %1157 = vmatpush.bf16.msra.mxu2 %v13014_v27  ;;  %v14517_v1 = vld.sshfl [vmem:[#allocation1] sm:$0xff pattern:$0x73625140]  ;;  %v14519_v2 = vld.sshfl [vmem:[#allocation1 + $0x8] sm:$0xff pattern:$0x73625140]  ;;  %v10359_v10 = vor.u32 %v13204_v61, %v10356_v62  ;;  %v10323_v21 = vor.u32 %v13200_v12, %v10322_v11 }
  0x5b   : > { %1170 = vmatpush.bf16.msra.mxu3 %v13022_v28  ;;  %2798 = vst [vmem:[#allocation1] ss:$4 sm:$0xff] %v1181_v57  ;;  %v13132_v13 = vld [vmem:[%s20048_s10 + $0x144] sm:$0xf]  ;;  %v10034_v18 = vld [vmem:[%s20048_s10 + $0x100] sm:$0xf] }
  0x5c   : > { %1132 = vmatpush.bf16.msra.mxu0 %v12997_v29  ;;  %v10068_v14 = vld [vmem:[%s20048_s10 + $0x160] sm:$0xf0]  ;;  %v13128_v19 = vld [vmem:[%s20048_s10 + $0x11c] sm:$0xf0] }
  0x5d   : > { %1145 = vmatpush.bf16.msra.mxu1 %v13005_v30  ;;  %v13196_v15 = vld [vmem:[%s20048_s10 + $0x344] sm:$0xf]  ;;  %v10290_v22 = vld [vmem:[%s20048_s10 + $0x300] sm:$0xf]  ;;  %v10071_v25 = vor.u32 %v13132_v13, %v10068_v14  ;;  %v10035_v32 = vor.u32 %v13128_v19, %v10034_v18  ;;  %v10138_v18 = vld [vmem:[%s20048_s10 + $0x1c8] sm:$0xf] }
  0x5e   : > { %1158 = vmatpush.bf16.msra.mxu2 %v13013_v36  ;;  %v10324_v16 = vld [vmem:[%s20048_s10 + $0x360] sm:$0xf0]  ;;  %v13192_v23 = vld [vmem:[%s20048_s10 + $0x31c] sm:$0xf0]  ;;  %v13153_v19 = vld [vmem:[%s20048_s10 + $0x1e4] sm:$0xf0] }
  0x5f   : > { %1171 = vmatpush.bf16.msra.mxu3 %v13021_v37  ;;  %v13124_v24 = vld [vmem:[%s20048_s10 + $0x104] sm:$0xf]  ;;  %v10327_v26 = vor.u32 %v13196_v15, %v10324_v16  ;;  %v10291_v33 = vor.u32 %v13192_v23, %v10290_v22  ;;  %v10002_v34 = vld [vmem:[%s20048_s10 + $0xc0] sm:$0xf]  ;;  %v13149_v22 = vld [vmem:[%s20048_s10 + $0x1cc] sm:$0xf] }
  0x60   : > { %1133 = vmatpush.bf16.msra.mxu0 %v12996_v38  ;;  %v10036_v27 = vld [vmem:[%s20048_s10 + $0x120] sm:$0xf0]  ;;  %v13120_v35 = vld [vmem:[%s20048_s10 + $0xdc] sm:$0xf0] }
  0x61   : > { %1146 = vmatpush.bf16.msra.mxu1 %v13004_v39  ;;  %v13188_v28 = vld [vmem:[%s20048_s10 + $0x304] sm:$0xf]  ;;  %v10039_v36 = vor.u32 %v13124_v24, %v10036_v27  ;;  %v10258_v38 = vld [vmem:[%s20048_s10 + $0x2c0] sm:$0xf]  ;;  %v10003_v44 = vor.u32 %v13120_v35, %v10002_v34  ;;  %v10396_v27 = vld [vmem:[%s20048_s10 + $0x3e8] sm:$0xf0] }
  0x62   : > { %1159 = vmatpush.bf16.msra.mxu2 %v13012_v42  ;;  %v10292_v29 = vld [vmem:[%s20048_s10 + $0x320] sm:$0xf0]  ;;  %v14575_v31 = vld.sshfl [vmem:[#allocation1 + $0x8] sm:$0xff pattern:$0x73625140] }
  0x63   : > { %1172 = vmatpush.bf16.msra.mxu3 %v13020_v43  ;;  %1134 = vmatmul.bf16.vlgmr.msra.gmra.mxu0 %v866_v3  ;;  %v14573_v30 = vld.sshfl [vmem:[#allocation1] sm:$0xff pattern:$0x73625140]  ;;  %v10295_v37 = vor.u32 %v13188_v28, %v10292_v29  ;;  %v10106_v34 = vld [vmem:[%s20048_s10 + $0x188] sm:$0xf] }
  0x64   : > { %2023 = vmatpush.bf16.msrb.mxu0 %v10131_v53  ;;  %1147 = vmatmul.bf16.vlgmr.msra.gmra.mxu1 %v867_v4  ;;  %2946 = vst [vmem:[#allocation1] ss:$4 sm:$0xff] %v2813_v17  ;;  %v13184_v39 = vld [vmem:[%s20048_s10 + $0x2dc] sm:$0xf0]  ;;  %v13116_v40 = vld [vmem:[%s20048_s10 + $0xc4] sm:$0xf] }
  0x65   : > { %2036 = vmatpush.bf16.msrb.mxu1 %v10387_v54  ;;  %1160 = vmatmul.bf16.vlgmr.msra.gmra.mxu2 %v868_v63  ;;  %v10004_v41 = vld [vmem:[%s20048_s10 + $0xe0] sm:$0xf0]  ;;  %v10259_v45 = vor.u32 %v13184_v39, %v10258_v38  ;;  %v9970_v46 = vld [vmem:[%s20048_s10 + $0x80] sm:$0xf]  ;;  %v13145_v35 = vld [vmem:[%s20048_s10 + $0x1a4] sm:$0xf0] }
  0x66   : > { %2049 = vmatpush.bf16.msrb.mxu2 %v10135_v58  ;;  %1173 = vmatmul.bf16.vlgmr.msra.gmra.mxu3 %v869_v0  ;;  %v13180_v42 = vld [vmem:[%s20048_s10 + $0x2c4] sm:$0xf]  ;;  %v13112_v47 = vld [vmem:[%s20048_s10 + $0x9c] sm:$0xf0]  ;;  %v10007_v48 = vor.u32 %v13116_v40, %v10004_v41  ;;  %v10362_v38 = vld [vmem:[%s20048_s10 + $0x388] sm:$0xf] }
  0x67   : > { %2062 = vmatpush.bf16.msrb.mxu3 %v10391_v59  ;;  %v10260_v43 = vld [vmem:[%s20048_s10 + $0x2e0] sm:$0xf0]  ;;  %v10226_v50 = vld [vmem:[%s20048_s10 + $0x280] sm:$0xf]  ;;  %v9971_v56 = vor.u32 %v13112_v47, %v9970_v46  ;;  %v13209_v39 = vld [vmem:[%s20048_s10 + $0x3a4] sm:$0xf0]  ;;  %v10107_v46 = vor.u32 %v13145_v35, %v10106_v34 }
  0x68   : > { %2024 = vmatpush.bf16.msrb.mxu0 %v10099_v5  ;;  %v10263_v49 = vor.u32 %v13180_v42, %v10260_v43  ;;  %v13176_v51 = vld [vmem:[%s20048_s10 + $0x29c] sm:$0xf0]  ;;  %v13108_v52 = vld [vmem:[%s20048_s10 + $0x84] sm:$0xf]  ;;  %v13141_v40 = vld [vmem:[%s20048_s10 + $0x18c] sm:$0xf]  ;;  %v10363_v47 = vor.u32 %v13209_v39, %v10362_v38 }
  0x69   : > { %2037 = vmatpush.bf16.msrb.mxu1 %v10355_v6  ;;  %v9972_v53 = vld [vmem:[%s20048_s10 + $0xa0] sm:$0xf0]  ;;  %v10227_v57 = vor.u32 %v13176_v51, %v10226_v50  ;;  %v9938_v58 = vld [vmem:[%s20048_s10 + $0x40] sm:$0xf]  ;;  %v10108_v41 = vld [vmem:[%s20048_s10 + $0x1a8] sm:$0xf0] }
  0x6a   : > { %2050 = vmatpush.bf16.msrb.mxu2 %v10103_v9  ;;  %v13172_v54 = vld [vmem:[%s20048_s10 + $0x284] sm:$0xf]  ;;  %v13104_v59 = vld [vmem:[%s20048_s10 + $0x5c] sm:$0xf0]  ;;  %v9975_v60 = vor.u32 %v13108_v52, %v9972_v53  ;;  %v13205_v42 = vld [vmem:[%s20048_s10 + $0x38c] sm:$0xf] }
  0x6b   : > { %2063 = vmatpush.bf16.msrb.mxu3 %v10359_v10  ;;  %v10228_v55 = vld [vmem:[%s20048_s10 + $0x2a0] sm:$0xf0]  ;;  %v10194_v62 = vld [vmem:[%s20048_s10 + $0x240] sm:$0xf]  ;;  %v9939_v7 = vor.u32 %v13104_v59, %v9938_v58  ;;  %v10364_v43 = vld [vmem:[%s20048_s10 + $0x3a8] sm:$0xf0] }
  0x6c   : > { %2025 = vmatpush.bf16.msrb.mxu0 %v10067_v20  ;;  %v10231_v61 = vor.u32 %v13172_v54, %v10228_v55  ;;  %v13168_v63 = vld [vmem:[%s20048_s10 + $0x25c] sm:$0xf0]  ;;  %v13100_v0 = vld [vmem:[%s20048_s10 + $0x44] sm:$0xf]  ;;  %v10394_v20 = vld [vmem:[%s20048_s10 + $0x3c8] sm:$0xf]  ;;  %v10367_v50 = vor.u32 %v13205_v42, %v10364_v43 }
  0x6d   : > { %2038 = vmatpush.bf16.msrb.mxu1 %v10323_v21  ;;  %v9940_v3 = vld [vmem:[%s20048_s10 + $0x60] sm:$0xf0]  ;;  %v9906_v6 = vld [vmem:[%s20048_s10] sm:$0xf]  ;;  %v10195_v8 = vor.u32 %v13168_v63, %v10194_v62  ;;  %v13217_v21 = vld [vmem:[%s20048_s10 + $0x3e4] sm:$0xf0] }
  0x6e   : > { %2051 = vmatpush.bf16.msrb.mxu2 %v10071_v25  ;;  %v13164_v4 = vld [vmem:[%s20048_s10 + $0x244] sm:$0xf]  ;;  %v13096_v9 = vld [vmem:[%s20048_s10 + $0x1c] sm:$0xf0]  ;;  %v9943_v12 = vor.u32 %v13100_v0, %v9940_v3  ;;  %v10140_v25 = vld [vmem:[%s20048_s10 + $0x1e8] sm:$0xf0] }
  0x6f   : > { %2064 = vmatpush.bf16.msrb.mxu3 %v10327_v26  ;;  %v10196_v5 = vld [vmem:[%s20048_s10 + $0x260] sm:$0xf0]  ;;  %v10162_v10 = vld [vmem:[%s20048_s10 + $0x200] sm:$0xf]  ;;  %v9907_v23 = vor.u32 %v13096_v9, %v9906_v6  ;;  %v13213_v26 = vld [vmem:[%s20048_s10 + $0x3cc] sm:$0xf] }
  0x70   : > { %2026 = vmatpush.bf16.msrb.mxu0 %v10035_v32  ;;  %v13160_v11 = vld [vmem:[%s20048_s10 + $0x21c] sm:$0xf0]  ;;  %v10199_v13 = vor.u32 %v13164_v4, %v10196_v5  ;;  %v13092_v14 = vld [vmem:[%s20048_s10 + $0x4] sm:$0xf]  ;;  %v10139_v32 = vor.u32 %v13153_v19, %v10138_v18  ;;  %v13201_v51 = vld [vmem:[%s20048_s10 + $0x364] sm:$0xf0] }
  0x71   : > { %2039 = vmatpush.bf16.msrb.mxu1 %v10291_v33  ;;  %v9908_v15 = vld [vmem:[%s20048_s10 + $0x20] sm:$0xf0]  ;;  %v10163_v24 = vor.u32 %v13160_v11, %v10162_v10  ;;  %v10395_v33 = vor.u32 %v13217_v21, %v10394_v20  ;;  %v13133_v52 = vld [vmem:[%s20048_s10 + $0x14c] sm:$0xf]  ;;  %v10042_v58 = vld [vmem:[%s20048_s10 + $0x108] sm:$0xf] }
  0x72   : > { %2052 = vmatpush.bf16.msrb.mxu2 %v10039_v36  ;;  %v13156_v16 = vld [vmem:[%s20048_s10 + $0x204] sm:$0xf]  ;;  %v9911_v28 = vor.u32 %v13092_v14, %v9908_v15  ;;  %v10143_v36 = vor.u32 %v13149_v22, %v10140_v25  ;;  %v10076_v53 = vld [vmem:[%s20048_s10 + $0x168] sm:$0xf0]  ;;  %v13129_v59 = vld [vmem:[%s20048_s10 + $0x124] sm:$0xf0] }
  0x73   : > { %2065 = vmatpush.bf16.msrb.mxu3 %v10295_v37  ;;  %v10164_v17 = vld [vmem:[%s20048_s10 + $0x220] sm:$0xf0]  ;;  %v10399_v37 = vor.u32 %v13213_v26, %v10396_v27  ;;  %v13197_v54 = vld [vmem:[%s20048_s10 + $0x34c] sm:$0xf]  ;;  %v10298_v62 = vld [vmem:[%s20048_s10 + $0x308] sm:$0xf]  ;;  %v10043_v6 = vor.u32 %v13129_v59, %v10042_v58 }
  0x74   : > { %2027 = vmatpush.bf16.msrb.mxu0 %v10003_v44  ;;  %v10167_v29 = vor.u32 %v13156_v16, %v10164_v17  ;;  %v14723_v44 = vpack.c.bf16 %v14517_v1, %v14517_v1  ;;  %v10111_v1 = vor.u32 %v13141_v40, %v10108_v41  ;;  %v10332_v55 = vld [vmem:[%s20048_s10 + $0x368] sm:$0xf0]  ;;  %v13193_v63 = vld [vmem:[%s20048_s10 + $0x324] sm:$0xf0]  ;;  %v10402_v58 = vld [vmem:[%s20048_s10 + $0x3d0] sm:$0xf] }
  0x75   : > { %2040 = vmatpush.bf16.msrb.mxu1 %v10259_v45  ;;  %v14727_v45 = vpack.c.bf16 %v14519_v2, %v14519_v2  ;;  %v10330_v2 = vld [vmem:[%s20048_s10 + $0x348] sm:$0xf]  ;;  %v13125_v0 = vld [vmem:[%s20048_s10 + $0x10c] sm:$0xf]  ;;  %v13218_v59 = vld [vmem:[%s20048_s10 + $0x3ec] sm:$0xf0] }
  0x76   : > { %2053 = vmatpush.bf16.msrb.mxu2 %v10007_v48  ;;  %v10074_v48 = vld [vmem:[%s20048_s10 + $0x148] sm:$0xf]  ;;  %v10044_v3 = vld [vmem:[%s20048_s10 + $0x128] sm:$0xf0] }
  0x77   : > { %2066 = vmatpush.bf16.msrb.mxu3 %v10263_v49  ;;  %v13137_v49 = vld [vmem:[%s20048_s10 + $0x164] sm:$0xf0]  ;;  %v13189_v4 = vld [vmem:[%s20048_s10 + $0x30c] sm:$0xf]  ;;  %v10047_v10 = vor.u32 %v13125_v0, %v10044_v3  ;;  %v13214_v0 = vld [vmem:[%s20048_s10 + $0x3d4] sm:$0xf] }
  0x78   : > { %2028 = vmatpush.bf16.msrb.mxu0 %v9971_v56  ;;  %v10075_v56 = vor.u32 %v13137_v49, %v10074_v48  ;;  %v10300_v5 = vld [vmem:[%s20048_s10 + $0x328] sm:$0xf0]  ;;  %v13121_v9 = vld [vmem:[%s20048_s10 + $0xe4] sm:$0xf0]  ;;  %v10404_v3 = vld [vmem:[%s20048_s10 + $0x3f0] sm:$0xf0] }
  0x79   : > { %2041 = vmatpush.bf16.msrb.mxu1 %v10227_v57  ;;  %v10331_v57 = vor.u32 %v13201_v51, %v10330_v2  ;;  %v10303_v11 = vor.u32 %v13189_v4, %v10300_v5  ;;  %v13117_v14 = vld [vmem:[%s20048_s10 + $0xcc] sm:$0xf]  ;;  %v9978_v20 = vld [vmem:[%s20048_s10 + $0x88] sm:$0xf] }
  0x7a   : > { %2054 = vmatpush.bf16.msrb.mxu2 %v9975_v60  ;;  %v10079_v60 = vor.u32 %v13133_v52, %v10076_v53  ;;  %v10012_v15 = vld [vmem:[%s20048_s10 + $0xe8] sm:$0xf0]  ;;  %v13113_v21 = vld [vmem:[%s20048_s10 + $0xa4] sm:$0xf0] }
  0x7b   : > { %2067 = vmatpush.bf16.msrb.mxu3 %v10231_v61  ;;  %v10335_v61 = vor.u32 %v13197_v54, %v10332_v55  ;;  %v13181_v16 = vld [vmem:[%s20048_s10 + $0x2cc] sm:$0xf]  ;;  %v10015_v22 = vor.u32 %v13117_v14, %v10012_v15  ;;  %v13177_v25 = vld [vmem:[%s20048_s10 + $0x2a4] sm:$0xf0]  ;;  %v13142_v14 = vld [vmem:[%s20048_s10 + $0x194] sm:$0xf] }
  0x7c   : > { %2029 = vmatpush.bf16.msrb.mxu0 %v9939_v7  ;;  %v10299_v7 = vor.u32 %v13193_v63, %v10298_v62  ;;  %v10268_v17 = vld [vmem:[%s20048_s10 + $0x2e8] sm:$0xf0]  ;;  %v9946_v34 = vld [vmem:[%s20048_s10 + $0x48] sm:$0xf]  ;;  %v10148_v63 = vld [vmem:[%s20048_s10 + $0x1f0] sm:$0xf0] }
  0x7d   : > { %2042 = vmatpush.bf16.msrb.mxu1 %v10195_v8  ;;  %v10010_v8 = vld [vmem:[%s20048_s10 + $0xc8] sm:$0xf]  ;;  %v13109_v26 = vld [vmem:[%s20048_s10 + $0x8c] sm:$0xf]  ;;  %v10116_v15 = vld [vmem:[%s20048_s10 + $0x1b0] sm:$0xf0] }
  0x7e   : > { %2055 = vmatpush.bf16.msrb.mxu2 %v9943_v12  ;;  %v10266_v12 = vld [vmem:[%s20048_s10 + $0x2c8] sm:$0xf]  ;;  %v10011_v18 = vor.u32 %v13121_v9, %v10010_v8  ;;  %v9980_v27 = vld [vmem:[%s20048_s10 + $0xa8] sm:$0xf0]  ;;  %v10114_v8 = vld [vmem:[%s20048_s10 + $0x190] sm:$0xf] }
  0x7f   : > { %2068 = vmatpush.bf16.msrb.mxu3 %v10199_v13  ;;  %v13185_v13 = vld [vmem:[%s20048_s10 + $0x2e4] sm:$0xf0]  ;;  %v13101_v40 = vld [vmem:[%s20048_s10 + $0x4c] sm:$0xf]  ;;  %v13146_v9 = vld [vmem:[%s20048_s10 + $0x1ac] sm:$0xf0] }
  0x80   : > { %2030 = vmatpush.bf16.msrb.mxu0 %v9907_v23  ;;  %v10267_v19 = vor.u32 %v13185_v13, %v10266_v12  ;;  %v10271_v23 = vor.u32 %v13181_v16, %v10268_v17  ;;  %v13105_v35 = vld [vmem:[%s20048_s10 + $0x64] sm:$0xf0]  ;;  %v9948_v41 = vld [vmem:[%s20048_s10 + $0x68] sm:$0xf0]  ;;  %v10370_v12 = vld [vmem:[%s20048_s10 + $0x390] sm:$0xf] }
  0x81   : > { %2043 = vmatpush.bf16.msrb.mxu1 %v10163_v24  ;;  %v10234_v24 = vld [vmem:[%s20048_s10 + $0x288] sm:$0xf]  ;;  %v13165_v42 = vld [vmem:[%s20048_s10 + $0x24c] sm:$0xf]  ;;  %v9951_v2 = vor.u32 %v13101_v40, %v9948_v41  ;;  %v13210_v13 = vld [vmem:[%s20048_s10 + $0x3ac] sm:$0xf0] }
  0x82   : > { %2056 = vmatpush.bf16.msrb.mxu2 %v9911_v28  ;;  %v13173_v28 = vld [vmem:[%s20048_s10 + $0x28c] sm:$0xf]  ;;  %v10202_v38 = vld [vmem:[%s20048_s10 + $0x248] sm:$0xf]  ;;  %v13206_v16 = vld [vmem:[%s20048_s10 + $0x394] sm:$0xf] }
  0x83   : > { %2069 = vmatpush.bf16.msrb.mxu3 %v10167_v29  ;;  %2031 = vmatmul.bf16.vlgmr.msrb.gmra.mxu0 %v14723_v44  ;;  %v10236_v29 = vld [vmem:[%s20048_s10 + $0x2a8] sm:$0xf0]  ;;  %v13169_v39 = vld [vmem:[%s20048_s10 + $0x264] sm:$0xf0]  ;;  %v10372_v17 = vld [vmem:[%s20048_s10 + $0x3b0] sm:$0xf0] }
  0x84   : > { %2075 = vmatpush.bf16.msra.mxu0 %v10139_v32  ;;  %2044 = vmatmul.bf16.vlgmr.msrb.gmra.mxu1 %v14727_v45  ;;  %v9979_v32 = vor.u32 %v13113_v21, %v9978_v20  ;;  %v10204_v43 = vld [vmem:[%s20048_s10 + $0x268] sm:$0xf0]  ;;  %v10203_v48 = vor.u32 %v13169_v39, %v10202_v38  ;;  %v13097_v49 = vld [vmem:[%s20048_s10 + $0x24] sm:$0xf0]  ;;  %v10082_v20 = vld [vmem:[%s20048_s10 + $0x150] sm:$0xf] }
  0x85   : > { %2088 = vmatpush.bf16.msra.mxu1 %v10395_v33  ;;  %2057 = vmatmul.bf16.vlgmr.msrb.gmra.mxu2 %v14723_v44  ;;  %v10235_v33 = vor.u32 %v13177_v25, %v10234_v24  ;;  %v10207_v51 = vor.u32 %v13165_v42, %v10204_v43  ;;  %v13093_v52 = vld [vmem:[%s20048_s10 + $0xc] sm:$0xf]  ;;  %v13138_v21 = vld [vmem:[%s20048_s10 + $0x16c] sm:$0xf0]  ;;  %v13126_v40 = vld [vmem:[%s20048_s10 + $0x114] sm:$0xf] }
  0x86   : > { %2101 = vmatpush.bf16.msra.mxu2 %v10143_v36  ;;  %2070 = vmatmul.bf16.vlgmr.msrb.gmra.mxu3 %v14727_v45  ;;  %v9983_v36 = vor.u32 %v13109_v26, %v9980_v27  ;;  %v9916_v53 = vld [vmem:[%s20048_s10 + $0x28] sm:$0xf0]  ;;  %v10338_v24 = vld [vmem:[%s20048_s10 + $0x350] sm:$0xf]  ;;  %v13134_v26 = vld [vmem:[%s20048_s10 + $0x154] sm:$0xf] }
  0x87   : > { %2114 = vmatpush.bf16.msra.mxu3 %v10399_v37  ;;  %v10239_v37 = vor.u32 %v13173_v28, %v10236_v29  ;;  %v13157_v54 = vld [vmem:[%s20048_s10 + $0x20c] sm:$0xf]  ;;  %v9919_v4 = vor.u32 %v13093_v52, %v9916_v53  ;;  %v13202_v25 = vld [vmem:[%s20048_s10 + $0x36c] sm:$0xf0]  ;;  %v10084_v27 = vld [vmem:[%s20048_s10 + $0x170] sm:$0xf0] }
  0x88   : > { %2076 = vmatpush.bf16.msra.mxu0 %v10107_v46  ;;  %v9914_v46 = vld [vmem:[%s20048_s10 + $0x8] sm:$0xf]  ;;  %v10172_v55 = vld [vmem:[%s20048_s10 + $0x228] sm:$0xf0]  ;;  %v13198_v28 = vld [vmem:[%s20048_s10 + $0x354] sm:$0xf] }
  0x89   : > { %2089 = vmatpush.bf16.msra.mxu1 %v10363_v47  ;;  %v9947_v47 = vor.u32 %v13105_v35, %v9946_v34  ;;  %v10175_v5 = vor.u32 %v13157_v54, %v10172_v55  ;;  %v10340_v29 = vld [vmem:[%s20048_s10 + $0x370] sm:$0xf0]  ;;  %v10050_v34 = vld [vmem:[%s20048_s10 + $0x110] sm:$0xf] }
  0x8a   : > { %2102 = vmatpush.bf16.msra.mxu2 %v10111_v1  ;;  %v10170_v1 = vld [vmem:[%s20048_s10 + $0x208] sm:$0xf]  ;;  %v13130_v35 = vld [vmem:[%s20048_s10 + $0x12c] sm:$0xf0]  ;;  %v10052_v41 = vld [vmem:[%s20048_s10 + $0x130] sm:$0xf0] }
  0x8b   : > { %2115 = vmatpush.bf16.msra.mxu3 %v10367_v50  ;;  %v13161_v50 = vld [vmem:[%s20048_s10 + $0x224] sm:$0xf0]  ;;  %v10306_v38 = vld [vmem:[%s20048_s10 + $0x310] sm:$0xf]  ;;  %v13190_v42 = vld [vmem:[%s20048_s10 + $0x314] sm:$0xf] }
  0x8c   : > { %2077 = vmatpush.bf16.msra.mxu0 %v10075_v56  ;;  %v10146_v56 = vld [vmem:[%s20048_s10 + $0x1d0] sm:$0xf]  ;;  %v10171_v62 = vor.u32 %v13161_v50, %v10170_v1  ;;  %v10308_v43 = vld [vmem:[%s20048_s10 + $0x330] sm:$0xf0]  ;;  %v10055_v1 = vor.u32 %v13126_v40, %v10052_v41  ;;  %v13215_v40 = vld [vmem:[%s20048_s10 + $0x3dc] sm:$0xf] }
  0x8d   : > { %2090 = vmatpush.bf16.msra.mxu1 %v10331_v57  ;;  %v13154_v57 = vld [vmem:[%s20048_s10 + $0x1ec] sm:$0xf0]  ;;  %v10311_v50 = vor.u32 %v13190_v42, %v10308_v43  ;;  %v13118_v52 = vld [vmem:[%s20048_s10 + $0xd4] sm:$0xf]  ;;  %v10412_v41 = vld [vmem:[%s20048_s10 + $0x3f8] sm:$0xf0] }
  0x8e   : > { %2103 = vmatpush.bf16.msra.mxu2 %v10079_v60  ;;  %v13150_v60 = vld [vmem:[%s20048_s10 + $0x1d4] sm:$0xf]  ;;  %v13194_v39 = vld [vmem:[%s20048_s10 + $0x32c] sm:$0xf0] }
  0x8f   : > { %2116 = vmatpush.bf16.msra.mxu3 %v10335_v61  ;;  %v9915_v61 = vor.u32 %v13097_v49, %v9914_v46  ;;  %v10051_v46 = vor.u32 %v13130_v35, %v10050_v34  ;;  %v13122_v49 = vld [vmem:[%s20048_s10 + $0xec] sm:$0xf0]  ;;  %v10020_v53 = vld [vmem:[%s20048_s10 + $0xf0] sm:$0xf0]  ;;  %v10410_v34 = vld [vmem:[%s20048_s10 + $0x3d8] sm:$0xf] }
  0x90   : > { %2078 = vmatpush.bf16.msra.mxu0 %v10043_v6  ;;  %v10147_v6 = vor.u32 %v13154_v57, %v10146_v56  ;;  %v13182_v54 = vld [vmem:[%s20048_s10 + $0x2d4] sm:$0xf]  ;;  %v13219_v35 = vld [vmem:[%s20048_s10 + $0x3f4] sm:$0xf0] }
  0x91   : > { %2091 = vmatpush.bf16.msra.mxu1 %v10299_v7  ;;  %v10403_v7 = vor.u32 %v13218_v59, %v10402_v58  ;;  %v10276_v55 = vld [vmem:[%s20048_s10 + $0x2f0] sm:$0xf0]  ;;  %v9986_v58 = vld [vmem:[%s20048_s10 + $0x90] sm:$0xf] }
  0x92   : > { %2104 = vmatpush.bf16.msra.mxu2 %v10047_v10  ;;  %v10151_v10 = vor.u32 %v13150_v60, %v10148_v63  ;;  %v13114_v59 = vld [vmem:[%s20048_s10 + $0xac] sm:$0xf0]  ;;  %v10023_v60 = vor.u32 %v13118_v52, %v10020_v53  ;;  %v13143_v52 = vld [vmem:[%s20048_s10 + $0x19c] sm:$0xf] }
  0x93   : > { %2117 = vmatpush.bf16.msra.mxu3 %v10303_v11  ;;  %v10407_v11 = vor.u32 %v13214_v0, %v10404_v3  ;;  %v13178_v63 = vld [vmem:[%s20048_s10 + $0x2ac] sm:$0xf0]  ;;  %v13110_v0 = vld [vmem:[%s20048_s10 + $0x94] sm:$0xf]  ;;  %v10124_v53 = vld [vmem:[%s20048_s10 + $0x1b8] sm:$0xf0] }
  0x94   : > { %2079 = vmatpush.bf16.msra.mxu0 %v10011_v18  ;;  %v10115_v18 = vor.u32 %v13146_v9, %v10114_v8  ;;  %v9988_v3 = vld [vmem:[%s20048_s10 + $0xb0] sm:$0xf0]  ;;  %v9954_v8 = vld [vmem:[%s20048_s10 + $0x50] sm:$0xf] }
  0x95   : > { %2092 = vmatpush.bf16.msra.mxu1 %v10267_v19  ;;  %v10371_v19 = vor.u32 %v13210_v13, %v10370_v12  ;;  %v13106_v9 = vld [vmem:[%s20048_s10 + $0x6c] sm:$0xf0] }
  0x96   : > { %2105 = vmatpush.bf16.msra.mxu2 %v10015_v22  ;;  %v10119_v22 = vor.u32 %v13142_v14, %v10116_v15  ;;  %v10210_v12 = vld [vmem:[%s20048_s10 + $0x250] sm:$0xf]  ;;  %v13102_v14 = vld [vmem:[%s20048_s10 + $0x54] sm:$0xf] }
  0x97   : > { %2118 = vmatpush.bf16.msra.mxu3 %v10271_v23  ;;  %v10375_v23 = vor.u32 %v13206_v16, %v10372_v17  ;;  %v13170_v13 = vld [vmem:[%s20048_s10 + $0x26c] sm:$0xf0]  ;;  %v9956_v15 = vld [vmem:[%s20048_s10 + $0x70] sm:$0xf0] }
  0x98   : > { %2080 = vmatpush.bf16.msra.mxu0 %v9979_v32  ;;  %v10083_v32 = vor.u32 %v13138_v21, %v10082_v20  ;;  %v13166_v16 = vld [vmem:[%s20048_s10 + $0x254] sm:$0xf]  ;;  %v10211_v20 = vor.u32 %v13170_v13, %v10210_v12  ;;  %v13098_v21 = vld [vmem:[%s20048_s10 + $0x2c] sm:$0xf0]  ;;  %v10314_v12 = vld [vmem:[%s20048_s10 + $0x318] sm:$0xf] }
  0x99   : > { %2093 = vmatpush.bf16.msra.mxu1 %v10235_v33  ;;  %v10339_v33 = vor.u32 %v13202_v25, %v10338_v24  ;;  %v10212_v17 = vld [vmem:[%s20048_s10 + $0x270] sm:$0xf0]  ;;  %v9959_v24 = vor.u32 %v13102_v14, %v9956_v15  ;;  %v13195_v13 = vld [vmem:[%s20048_s10 + $0x334] sm:$0xf0]  ;;  %v13127_v14 = vld [vmem:[%s20048_s10 + $0x11c] sm:$0xf] }
  0x9a   : > { %2106 = vmatpush.bf16.msra.mxu2 %v9983_v36  ;;  %v10087_v36 = vor.u32 %v13134_v26, %v10084_v27  ;;  %v10215_v25 = vor.u32 %v13166_v16, %v10212_v17  ;;  %v13094_v26 = vld [vmem:[%s20048_s10 + $0x14] sm:$0xf]  ;;  %v10060_v15 = vld [vmem:[%s20048_s10 + $0x138] sm:$0xf0] }
  0x9b   : > { %2119 = vmatpush.bf16.msra.mxu3 %v10239_v37  ;;  %v10343_v37 = vor.u32 %v13198_v28, %v10340_v29  ;;  %v9924_v27 = vld [vmem:[%s20048_s10 + $0x30] sm:$0xf0]  ;;  %v13191_v16 = vld [vmem:[%s20048_s10 + $0x31c] sm:$0xf] }
  0x9c   : > { %2081 = vmatpush.bf16.msra.mxu0 %v9947_v47  ;;  %v10307_v47 = vor.u32 %v13194_v39, %v10306_v38  ;;  %v13158_v28 = vld [vmem:[%s20048_s10 + $0x214] sm:$0xf]  ;;  %v10156_v39 = vld [vmem:[%s20048_s10 + $0x1f8] sm:$0xf0]  ;;  %v9927_v42 = vor.u32 %v13094_v26, %v9924_v27 }
  0x9d   : > { %2094 = vmatpush.bf16.msra.mxu1 %v10203_v48  ;;  %v10018_v48 = vld [vmem:[%s20048_s10 + $0xd0] sm:$0xf]  ;;  %v10180_v29 = vld [vmem:[%s20048_s10 + $0x230] sm:$0xf0]  ;;  %v10316_v17 = vld [vmem:[%s20048_s10 + $0x338] sm:$0xf0] }
  0x9e   : > { %2107 = vmatpush.bf16.msra.mxu2 %v9951_v2  ;;  %v10274_v2 = vld [vmem:[%s20048_s10 + $0x2d0] sm:$0xf]  ;;  %v10019_v56 = vor.u32 %v13122_v49, %v10018_v48  ;;  %v10183_v43 = vor.u32 %v13158_v28, %v10180_v29  ;;  %v10122_v48 = vld [vmem:[%s20048_s10 + $0x198] sm:$0xf]  ;;  %v13119_v26 = vld [vmem:[%s20048_s10 + $0xdc] sm:$0xf] }
  0x9f   : > { %2120 = vmatpush.bf16.msra.mxu3 %v10207_v51  ;;  %v13186_v51 = vld [vmem:[%s20048_s10 + $0x2ec] sm:$0xf0]  ;;  %v13147_v49 = vld [vmem:[%s20048_s10 + $0x1b4] sm:$0xf0]  ;;  %v10028_v27 = vld [vmem:[%s20048_s10 + $0xf8] sm:$0xf0] }
  0xa0   : > { %2082 = vmatpush.bf16.msra.mxu0 %v9915_v61  ;;  %v10275_v57 = vor.u32 %v13186_v51, %v10274_v2  ;;  %v10279_v61 = vor.u32 %v13182_v54, %v10276_v55  ;;  %v10378_v2 = vld [vmem:[%s20048_s10 + $0x398] sm:$0xf]  ;;  %v13207_v54 = vld [vmem:[%s20048_s10 + $0x39c] sm:$0xf] }
  0xa1   : > { %2095 = vmatpush.bf16.msra.mxu1 %v10171_v62  ;;  %v10242_v62 = vld [vmem:[%s20048_s10 + $0x290] sm:$0xf]  ;;  %v13211_v51 = vld [vmem:[%s20048_s10 + $0x3b4] sm:$0xf0]  ;;  %v10380_v55 = vld [vmem:[%s20048_s10 + $0x3b8] sm:$0xf0] }
  0xa2   : > { %2108 = vmatpush.bf16.msra.mxu2 %v9919_v4  ;;  %v13174_v4 = vld [vmem:[%s20048_s10 + $0x294] sm:$0xf]  ;;  %v13183_v28 = vld [vmem:[%s20048_s10 + $0x2dc] sm:$0xf] }
  0xa3   : > { %2121 = vmatpush.bf16.msra.mxu3 %v10175_v5  ;;  %2083 = vmatmul.bf16.vlgmr.msra.gmra.mxu0 %v14723_v44  ;;  %v10244_v5 = vld [vmem:[%s20048_s10 + $0x2b0] sm:$0xf0]  ;;  %v10284_v29 = vld [vmem:[%s20048_s10 + $0x2f8] sm:$0xf0] }
  0xa4   : > { %2127 = vmatpush.bf16.msrb.mxu0 %v10147_v6  ;;  %2096 = vmatmul.bf16.vlgmr.msra.gmra.mxu1 %v14727_v45  ;;  %v9987_v6 = vor.u32 %v13114_v59, %v9986_v58  ;;  %v10090_v58 = vld [vmem:[%s20048_s10 + $0x158] sm:$0xf] }
  0xa5   : > { %2140 = vmatpush.bf16.msrb.mxu1 %v10403_v7  ;;  %2109 = vmatmul.bf16.vlgmr.msra.gmra.mxu2 %v14723_v44  ;;  %v10243_v7 = vor.u32 %v13178_v63, %v10242_v62  ;;  %v13139_v59 = vld [vmem:[%s20048_s10 + $0x174] sm:$0xf0] }
  0xa6   : > { %2153 = vmatpush.bf16.msrb.mxu2 %v10151_v10  ;;  %2122 = vmatmul.bf16.vlgmr.msra.gmra.mxu3 %v14727_v45  ;;  %v9991_v10 = vor.u32 %v13110_v0, %v9988_v3  ;;  %v10346_v62 = vld [vmem:[%s20048_s10 + $0x358] sm:$0xf]  ;;  %v13135_v0 = vld [vmem:[%s20048_s10 + $0x15c] sm:$0xf] }
  0xa7   : > { %2166 = vmatpush.bf16.msrb.mxu3 %v10407_v11  ;;  %v10247_v11 = vor.u32 %v13174_v4, %v10244_v5  ;;  %v13203_v63 = vld [vmem:[%s20048_s10 + $0x374] sm:$0xf0]  ;;  %v10092_v3 = vld [vmem:[%s20048_s10 + $0x178] sm:$0xf0] }
  0xa8   : > { %2128 = vmatpush.bf16.msrb.mxu0 %v10115_v18  ;;  %v9922_v18 = vld [vmem:[%s20048_s10 + $0x10] sm:$0xf]  ;;  %v13199_v4 = vld [vmem:[%s20048_s10 + $0x35c] sm:$0xf] }
  0xa9   : > { %2141 = vmatpush.bf16.msrb.mxu1 %v10371_v19  ;;  %v9955_v19 = vor.u32 %v13106_v9, %v9954_v8  ;;  %v10348_v5 = vld [vmem:[%s20048_s10 + $0x378] sm:$0xf0]  ;;  %v10058_v8 = vld [vmem:[%s20048_s10 + $0x118] sm:$0xf] }
  0xaa   : > { %2154 = vmatpush.bf16.msrb.mxu2 %v10119_v22  ;;  %v10178_v22 = vld [vmem:[%s20048_s10 + $0x210] sm:$0xf]  ;;  %v13131_v9 = vld [vmem:[%s20048_s10 + $0x134] sm:$0xf0] }
  0xab   : > { %2167 = vmatpush.bf16.msrb.mxu3 %v10375_v23  ;;  %v13162_v23 = vld [vmem:[%s20048_s10 + $0x22c] sm:$0xf0] }
  0xac   : > { %2129 = vmatpush.bf16.msrb.mxu0 %v10083_v32  ;;  %v10154_v32 = vld [vmem:[%s20048_s10 + $0x1d8] sm:$0xf]  ;;  %v10179_v38 = vor.u32 %v13162_v23, %v10178_v22  ;;  %v10063_v22 = vor.u32 %v13127_v14, %v10060_v15  ;;  %v10319_v23 = vor.u32 %v13191_v16, %v10316_v17  ;;  %v13085_v14 = vld [vmem:[%s20047_s9 + $0x1cc] sm:$0xf] }
  0xad   : > { %2142 = vmatpush.bf16.msrb.mxu1 %v10339_v33  ;;  %v13155_v33 = vld [vmem:[%s20048_s10 + $0x1f4] sm:$0xf0]  ;;  %v10652_v15 = vld [vmem:[%s20047_s9 + $0x1e8] sm:$0xf0] }
  0xae   : > { %2155 = vmatpush.bf16.msrb.mxu2 %v10087_v36  ;;  %v13151_v36 = vld [vmem:[%s20048_s10 + $0x1dc] sm:$0xf] }
  0xaf   : > { %2168 = vmatpush.bf16.msrb.mxu3 %v10343_v37  ;;  %v9923_v37 = vor.u32 %v13098_v21, %v9922_v18  ;;  %v10059_v18 = vor.u32 %v13131_v9, %v10058_v8  ;;  %v13123_v21 = vld [vmem:[%s20048_s10 + $0xf4] sm:$0xf0]  ;;  %v13084_v8 = vld [vmem:[%s20047_s9 + $0x1c4] sm:$0xf] }
  0xb0   : > { %2130 = vmatpush.bf16.msrb.mxu0 %v10051_v46  ;;  %v10155_v46 = vor.u32 %v13155_v33, %v10154_v32  ;;  %v10644_v9 = vld [vmem:[%s20047_s9 + $0x1e0] sm:$0xf0] }
  0xb1   : > { %2143 = vmatpush.bf16.msrb.mxu1 %v10307_v47  ;;  %v10411_v47 = vor.u32 %v13219_v35, %v10410_v34  ;;  %v9994_v34 = vld [vmem:[%s20048_s10 + $0x98] sm:$0xf] }
  0xb2   : > { %2156 = vmatpush.bf16.msrb.mxu2 %v10055_v1  ;;  %v10159_v1 = vor.u32 %v13151_v36, %v10156_v39  ;;  %v13115_v35 = vld [vmem:[%s20048_s10 + $0xb4] sm:$0xf0]  ;;  %v10031_v36 = vor.u32 %v13119_v26, %v10028_v27  ;;  %v10618_v26 = vld [vmem:[%s20047_s9 + $0x188] sm:$0xf] }
  0xb3   : > { %2169 = vmatpush.bf16.msrb.mxu3 %v10311_v50  ;;  %v10415_v50 = vor.u32 %v13215_v40, %v10412_v41  ;;  %v13179_v39 = vld [vmem:[%s20048_s10 + $0x2b4] sm:$0xf0]  ;;  %v13111_v40 = vld [vmem:[%s20048_s10 + $0x9c] sm:$0xf]  ;;  %v13081_v27 = vld [vmem:[%s20047_s9 + $0x1a4] sm:$0xf0] }
  0xb4   : > { %2131 = vmatpush.bf16.msrb.mxu0 %v10019_v56  ;;  %v10123_v56 = vor.u32 %v13147_v49, %v10122_v48  ;;  %v9996_v41 = vld [vmem:[%s20048_s10 + $0xb8] sm:$0xf0]  ;;  %v9962_v48 = vld [vmem:[%s20048_s10 + $0x58] sm:$0xf] }
  0xb5   : > { %2144 = vmatpush.bf16.msrb.mxu1 %v10275_v57  ;;  %v10379_v57 = vor.u32 %v13211_v51, %v10378_v2  ;;  %v13107_v49 = vld [vmem:[%s20048_s10 + $0x74] sm:$0xf0] }
  0xb6   : > { %2157 = vmatpush.bf16.msrb.mxu2 %v10023_v60  ;;  %v10127_v60 = vor.u32 %v13143_v52, %v10124_v53  ;;  %v10218_v2 = vld [vmem:[%s20048_s10 + $0x258] sm:$0xf]  ;;  %v13103_v52 = vld [vmem:[%s20048_s10 + $0x5c] sm:$0xf] }
  0xb7   : > { %2170 = vmatpush.bf16.msrb.mxu3 %v10279_v61  ;;  %v10383_v61 = vor.u32 %v13207_v54, %v10380_v55  ;;  %v13171_v51 = vld [vmem:[%s20048_s10 + $0x274] sm:$0xf0]  ;;  %v9964_v53 = vld [vmem:[%s20048_s10 + $0x78] sm:$0xf0] }
  0xb8   : > { %2132 = vmatpush.bf16.msrb.mxu0 %v9987_v6  ;;  %v10091_v6 = vor.u32 %v13139_v59, %v10090_v58  ;;  %v13167_v54 = vld [vmem:[%s20048_s10 + $0x25c] sm:$0xf]  ;;  %v10219_v58 = vor.u32 %v13171_v51, %v10218_v2  ;;  %v13099_v59 = vld [vmem:[%s20048_s10 + $0x34] sm:$0xf0]  ;;  %v10554_v2 = vld [vmem:[%s20047_s9 + $0x108] sm:$0xf] }
  0xb9   : > { %2145 = vmatpush.bf16.msrb.mxu1 %v10243_v7  ;;  %v10347_v7 = vor.u32 %v13203_v63, %v10346_v62  ;;  %v10220_v55 = vld [vmem:[%s20048_s10 + $0x278] sm:$0xf0]  ;;  %v9967_v62 = vor.u32 %v13103_v52, %v9964_v53  ;;  %v13065_v51 = vld [vmem:[%s20047_s9 + $0x124] sm:$0xf0]  ;;  %v13061_v52 = vld [vmem:[%s20047_s9 + $0x10c] sm:$0xf] }
  0xba   : > { %2158 = vmatpush.bf16.msrb.mxu2 %v9991_v10  ;;  %v10095_v10 = vor.u32 %v13135_v0, %v10092_v3  ;;  %v10223_v63 = vor.u32 %v13167_v54, %v10220_v55  ;;  %v13095_v0 = vld [vmem:[%s20048_s10 + $0x1c] sm:$0xf]  ;;  %v10556_v53 = vld [vmem:[%s20047_s9 + $0x128] sm:$0xf0] }
  0xbb   : > { %2171 = vmatpush.bf16.msrb.mxu3 %v10247_v11  ;;  %v10351_v11 = vor.u32 %v13199_v4, %v10348_v5  ;;  %v9932_v3 = vld [vmem:[%s20048_s10 + $0x38] sm:$0xf0] }
  0xbc   : > { %2133 = vmatpush.bf16.msrb.mxu0 %v9955_v19  ;;  %v10315_v19 = vor.u32 %v13195_v13, %v10314_v12  ;;  %v13159_v4 = vld [vmem:[%s20048_s10 + $0x21c] sm:$0xf]  ;;  %v13089_v13 = vld [vmem:[%s20047_s9 + $0x1e4] sm:$0xf0]  ;;  %v9935_v16 = vor.u32 %v13095_v0, %v9932_v3 }
  0xbd   : > { %2146 = vmatpush.bf16.msrb.mxu1 %v10211_v20  ;;  %v10026_v20 = vld [vmem:[%s20048_s10 + $0xd8] sm:$0xf]  ;;  %v10188_v5 = vld [vmem:[%s20048_s10 + $0x238] sm:$0xf0]  ;;  %v10522_v0 = vld [vmem:[%s20047_s9 + $0xc8] sm:$0xf] }
  0xbe   : > { %2159 = vmatpush.bf16.msrb.mxu2 %v9959_v24  ;;  %v10282_v24 = vld [vmem:[%s20048_s10 + $0x2d8] sm:$0xf]  ;;  %v10027_v32 = vor.u32 %v13123_v21, %v10026_v20  ;;  %v10191_v17 = vor.u32 %v13159_v4, %v10188_v5  ;;  %v10610_v20 = vld [vmem:[%s20047_s9 + $0x180] sm:$0xf]  ;;  %v13057_v4 = vld [vmem:[%s20047_s9 + $0xe4] sm:$0xf0] }
  0xbf   : > { %2172 = vmatpush.bf16.msrb.mxu3 %v10215_v25  ;;  %v13187_v25 = vld [vmem:[%s20048_s10 + $0x2f4] sm:$0xf0]  ;;  %v13080_v21 = vld [vmem:[%s20047_s9 + $0x19c] sm:$0xf0]  ;;  %v13053_v5 = vld [vmem:[%s20047_s9 + $0xcc] sm:$0xf] }
  0xc0   : > { %2134 = vmatpush.bf16.msrb.mxu0 %v9923_v37  ;;  %v10283_v33 = vor.u32 %v13187_v25, %v10282_v24  ;;  %v10287_v37 = vor.u32 %v13183_v28, %v10284_v29  ;;  %v13076_v24 = vld [vmem:[%s20047_s9 + $0x184] sm:$0xf]  ;;  %v13077_v28 = vld [vmem:[%s20047_s9 + $0x18c] sm:$0xf] }
  0xc1   : > { %2147 = vmatpush.bf16.msrb.mxu1 %v10179_v38  ;;  %v10250_v38 = vld [vmem:[%s20048_s10 + $0x298] sm:$0xf]  ;;  %v10612_v25 = vld [vmem:[%s20047_s9 + $0x1a0] sm:$0xf0]  ;;  %v10620_v29 = vld [vmem:[%s20047_s9 + $0x1a8] sm:$0xf0] }
  0xc2   : > { %2160 = vmatpush.bf16.msrb.mxu2 %v9927_v42  ;;  %v13175_v42 = vld [vmem:[%s20048_s10 + $0x29c] sm:$0xf] }
  0xc3   : > { %2173 = vmatpush.bf16.msrb.mxu3 %v10183_v43  ;;  %2135 = vmatmul.bf16.vlgmr.msrb.gmra.mxu0 %v14723_v44  ;;  %v10252_v43 = vld [vmem:[%s20048_s10 + $0x2b8] sm:$0xf0] }
  0xc4   : > { %2179 = vmatpush.bf16.msra.mxu0 %v10155_v46  ;;  %2148 = vmatmul.bf16.vlgmr.msrb.gmra.mxu1 %v14727_v45  ;;  %v9995_v46 = vor.u32 %v13115_v35, %v9994_v34  ;;  %v10578_v34 = vld [vmem:[%s20047_s9 + $0x140] sm:$0xf] }
  0xc5   : > { %2192 = vmatpush.bf16.msra.mxu1 %v10411_v47  ;;  %2161 = vmatmul.bf16.vlgmr.msrb.gmra.mxu2 %v14723_v44  ;;  %v10251_v47 = vor.u32 %v13179_v39, %v10250_v38  ;;  %v13072_v35 = vld [vmem:[%s20047_s9 + $0x15c] sm:$0xf0]  ;;  %v13068_v38 = vld [vmem:[%s20047_s9 + $0x144] sm:$0xf] }
  0xc6   : > { %2205 = vmatpush.bf16.msra.mxu2 %v10159_v1  ;;  %2174 = vmatmul.bf16.vlgmr.msrb.gmra.mxu3 %v14727_v45  ;;  %v9999_v1 = vor.u32 %v13111_v40, %v9996_v41  ;;  %v10580_v39 = vld [vmem:[%s20047_s9 + $0x160] sm:$0xf0]  ;;  %v10586_v40 = vld [vmem:[%s20047_s9 + $0x148] sm:$0xf] }
  0xc7   : > { %2218 = vmatpush.bf16.msra.mxu3 %v10415_v50  ;;  %v10255_v50 = vor.u32 %v13175_v42, %v10252_v43  ;;  %v13073_v41 = vld [vmem:[%s20047_s9 + $0x164] sm:$0xf0]  ;;  %v13069_v42 = vld [vmem:[%s20047_s9 + $0x14c] sm:$0xf] }
  0xc8   : > { %2180 = vmatpush.bf16.msra.mxu0 %v10123_v56  ;;  %v9930_v56 = vld [vmem:[%s20048_s10 + $0x18] sm:$0xf]  ;;  %v10588_v43 = vld [vmem:[%s20047_s9 + $0x168] sm:$0xf0] }
  0xc9   : > { %2193 = vmatpush.bf16.msra.mxu1 %v10379_v57  ;;  %v9963_v57 = vor.u32 %v13107_v49, %v9962_v48  ;;  %v10546_v48 = vld [vmem:[%s20047_s9 + $0x100] sm:$0xf] }
  0xca   : > { %2206 = vmatpush.bf16.msra.mxu2 %v10127_v60  ;;  %v10186_v60 = vld [vmem:[%s20048_s10 + $0x218] sm:$0xf]  ;;  %v13064_v49 = vld [vmem:[%s20047_s9 + $0x11c] sm:$0xf0] }
  0xcb   : > { %2219 = vmatpush.bf16.msra.mxu3 %v10383_v61  ;;  %v13163_v61 = vld [vmem:[%s20048_s10 + $0x234] sm:$0xf0]  ;;  %v10547_v54 = vor.u32 %v13064_v49, %v10546_v48  ;;  %v10420_v48 = vld [vmem:[%s20047_s9 + $0x20] sm:$0xf0] }
  0xcc   : > { %2181 = vmatpush.bf16.msra.mxu0 %v10091_v6  ;;  %v10642_v6 = vld [vmem:[%s20047_s9 + $0x1c0] sm:$0xf]  ;;  %v10187_v12 = vor.u32 %v13163_v61, %v10186_v60  ;;  %v10555_v60 = vor.u32 %v13065_v51, %v10554_v2  ;;  %v10559_v61 = vor.u32 %v13061_v52, %v10556_v53  ;;  %v10428_v52 = vld [vmem:[%s20047_s9 + $0x28] sm:$0xf0]  ;;  %v10658_v53 = vld [vmem:[%s20047_s9 + $0x1d0] sm:$0xf] }
  0xcd   : > { %2194 = vmatpush.bf16.msra.mxu1 %v10347_v7  ;;  %v13088_v7 = vld [vmem:[%s20047_s9 + $0x1dc] sm:$0xf0] }
  0xce   : > { %2207 = vmatpush.bf16.msra.mxu2 %v10095_v10  ;;  %v10650_v10 = vld [vmem:[%s20047_s9 + $0x1c8] sm:$0xf] }
  0xcf   : > { %2220 = vmatpush.bf16.msra.mxu3 %v10351_v11  ;;  %v9931_v11 = vor.u32 %v13099_v59, %v9930_v56  ;;  %v13056_v59 = vld [vmem:[%s20047_s9 + $0xdc] sm:$0xf0] }
  0xd0   : > { %2182 = vmatpush.bf16.msra.mxu0 %v10059_v18  ;;  %v10643_v18 = vor.u32 %v13088_v7, %v10642_v6  ;;  %v10524_v6 = vld [vmem:[%s20047_s9 + $0xe8] sm:$0xf0] }
  0xd1   : > { %2195 = vmatpush.bf16.msra.mxu1 %v10315_v19  ;;  %v10647_v19 = vor.u32 %v13084_v8, %v10644_v9  ;;  %v10482_v9 = vld [vmem:[%s20047_s9 + $0x80] sm:$0xf] }
  0xd2   : > { %2208 = vmatpush.bf16.msra.mxu2 %v10063_v22  ;;  %v10651_v22 = vor.u32 %v13089_v13, %v10650_v10  ;;  %v13048_v10 = vld [vmem:[%s20047_s9 + $0x9c] sm:$0xf0] }
  0xd3   : > { %2221 = vmatpush.bf16.msra.mxu3 %v10319_v23  ;;  %v10655_v23 = vor.u32 %v13085_v14, %v10652_v15  ;;  %v13044_v15 = vld [vmem:[%s20047_s9 + $0x84] sm:$0xf] }
  0xd4   : > { %2183 = vmatpush.bf16.msra.mxu0 %v10027_v32  ;;  %v10611_v32 = vor.u32 %v13080_v21, %v10610_v20  ;;  %v13045_v20 = vld [vmem:[%s20047_s9 + $0x8c] sm:$0xf] }
  0xd5   : > { %2196 = vmatpush.bf16.msra.mxu1 %v10283_v33  ;;  %v10615_v33 = vor.u32 %v13076_v24, %v10612_v25  ;;  %v10492_v21 = vld [vmem:[%s20047_s9 + $0xa8] sm:$0xf0]  ;;  %v10483_v24 = vor.u32 %v13048_v10, %v10482_v9  ;;  %v13078_v10 = vld [vmem:[%s20047_s9 + $0x194] sm:$0xf] }
  0xd6   : > { %2209 = vmatpush.bf16.msra.mxu2 %v10031_v36  ;;  %v10619_v36 = vor.u32 %v13081_v27, %v10618_v26  ;;  %v10450_v26 = vld [vmem:[%s20047_s9 + $0x40] sm:$0xf] }
  0xd7   : > { %2222 = vmatpush.bf16.msra.mxu3 %v10287_v37  ;;  %v10623_v37 = vor.u32 %v13077_v28, %v10620_v29  ;;  %v13040_v27 = vld [vmem:[%s20047_s9 + $0x5c] sm:$0xf0] }
  0xd8   : > { %2184 = vmatpush.bf16.msra.mxu0 %v9995_v46  ;;  %v10579_v46 = vor.u32 %v13072_v35, %v10578_v34  ;;  %v13036_v34 = vld [vmem:[%s20047_s9 + $0x44] sm:$0xf] }
  0xd9   : > { %2197 = vmatpush.bf16.msra.mxu1 %v10251_v47  ;;  %v10583_v47 = vor.u32 %v13068_v38, %v10580_v39  ;;  %v10452_v35 = vld [vmem:[%s20047_s9 + $0x60] sm:$0xf0]  ;;  %v13041_v38 = vld [vmem:[%s20047_s9 + $0x64] sm:$0xf0]  ;;  %v13037_v39 = vld [vmem:[%s20047_s9 + $0x4c] sm:$0xf] }
  0xda   : > { %2210 = vmatpush.bf16.msra.mxu2 %v9999_v1  ;;  %v10587_v1 = vor.u32 %v13073_v41, %v10586_v40  ;;  %v10460_v40 = vld [vmem:[%s20047_s9 + $0x68] sm:$0xf0]  ;;  %v10418_v41 = vld [vmem:[%s20047_s9] sm:$0xf] }
  0xdb   : > { %2223 = vmatpush.bf16.msra.mxu3 %v10255_v50  ;;  %v10591_v50 = vor.u32 %v13069_v42, %v10588_v43  ;;  %v10451_v42 = vor.u32 %v13040_v27, %v10450_v26  ;;  %v10455_v43 = vor.u32 %v13036_v34, %v10452_v35  ;;  %v13075_v26 = vld [vmem:[%s20047_s9 + $0x174] sm:$0xf0]  ;;  %v13071_v27 = vld [vmem:[%s20047_s9 + $0x15c] sm:$0xf]  ;;  %v13066_v34 = vld [vmem:[%s20047_s9 + $0x12c] sm:$0xf0] }
  0xdc   : > { %2185 = vmatpush.bf16.msra.mxu0 %v9963_v57 }
  0xdd   : > { %2198 = vmatpush.bf16.msra.mxu1 %v10219_v58  ;;  %v10514_v58 = vld [vmem:[%s20047_s9 + $0xc0] sm:$0xf] }
  0xde   : > { %2211 = vmatpush.bf16.msra.mxu2 %v9967_v62  ;;  %v13052_v62 = vld [vmem:[%s20047_s9 + $0xc4] sm:$0xf]  ;;  %v10515_v7 = vor.u32 %v13056_v59, %v10514_v58 }
  0xdf   : > { %2224 = vmatpush.bf16.msra.mxu3 %v10223_v63  ;;  %v10516_v63 = vld [vmem:[%s20047_s9 + $0xe0] sm:$0xf0] }
  0xe0   : > { %2186 = vmatpush.bf16.msra.mxu0 %v9931_v11  ;;  %v1135_v56 = vpop.f32.mrf.mxu0  ;;  %v10519_v8 = vor.u32 %v13052_v62, %v10516_v63  ;;  %v10523_v11 = vor.u32 %v13057_v4, %v10522_v0  ;;  %v10668_v62 = vld [vmem:[%s20047_s9 + $0x1f8] sm:$0xf0] }
  0xe1   : > { %2199 = vmatpush.bf16.msra.mxu1 %v10187_v12  ;;  %v1148_v57 = vpop.f32.mrf.mxu1  ;;  %v10527_v12 = vor.u32 %v13053_v5, %v10524_v6  ;;  %v10626_v6 = vld [vmem:[%s20047_s9 + $0x190] sm:$0xf] }
  0xe2   : > { %2212 = vmatpush.bf16.msra.mxu2 %v9935_v16  ;;  %v1149_v3 = vadd.f32 %v1148_v57, %v1135_v56  ;;  %v10484_v16 = vld [vmem:[%s20047_s9 + $0xa0] sm:$0xf0]  ;;  %v10660_v56 = vld [vmem:[%s20047_s9 + $0x1f0] sm:$0xf0]  ;;  %v10666_v57 = vld [vmem:[%s20047_s9 + $0x1d8] sm:$0xf] }
  0xe3   : > { %2225 = vmatpush.bf16.msra.mxu3 %v10191_v17  ;;  %2187 = vmatmul.bf16.vlgmr.msra.gmra.mxu0 %v14723_v44  ;;  %v10490_v17 = vld [vmem:[%s20047_s9 + $0x88] sm:$0xf]  ;;  %v10487_v25 = vor.u32 %v13044_v15, %v10484_v16  ;;  %v13079_v15 = vld [vmem:[%s20047_s9 + $0x19c] sm:$0xf] }
  0xe4   : > { %2551 = vmatpush.bf16.msrb.mxu0 %v10643_v18  ;;  %2200 = vmatmul.bf16.vlgmr.msra.gmra.mxu1 %v14727_v45  ;;  %v10636_v16 = vld [vmem:[%s20047_s9 + $0x1b8] sm:$0xf0] }
  0xe5   : > { %2564 = vmatpush.bf16.msrb.mxu1 %v10647_v19  ;;  %2213 = vmatmul.bf16.vlgmr.msra.gmra.mxu2 %v14723_v44  ;;  %v13060_v44 = vld [vmem:[%s20047_s9 + $0x104] sm:$0xf]  ;;  %v13049_v19 = vld [vmem:[%s20047_s9 + $0xa4] sm:$0xf0] }
  0xe6   : > { %2577 = vmatpush.bf16.msrb.mxu2 %v10651_v22  ;;  %2226 = vmatmul.bf16.vlgmr.msra.gmra.mxu3 %v14727_v45  ;;  %v10548_v45 = vld [vmem:[%s20047_s9 + $0x120] sm:$0xf0]  ;;  %v854_v22 = vld [vmem:[%s20136_s12] sm:$0x3]  ;;  %s20184_s12 = sld [smem:[#allocation71_spill]] }
  0xe7   : > { %2590 = vmatpush.bf16.msrb.mxu3 %v10655_v23  ;;  %v10551_v55 = vor.u32 %v13060_v44, %v10548_v45  ;;  %v13033_v44 = vld [vmem:[%s20047_s9 + $0x24] sm:$0xf0]  ;;  %v13029_v45 = vld [vmem:[%s20047_s9 + $0xc] sm:$0xf] }
  0xe8   : > { %2552 = vmatpush.bf16.msrb.mxu0 %v10611_v32  ;;  %v1161_v13 = vpop.f32.mrf.mxu2  ;;  %v1137_v28 = vpop.f32.mrf.mxu0  ;;  %v10491_v32 = vor.u32 %v13049_v19, %v10490_v17  ;;  %v10431_v0 = vor.u32 %v13029_v45, %v10428_v52  ;;  %v10594_v19 = vld [vmem:[%s20047_s9 + $0x150] sm:$0xf]  ;;  %v13054_v45 = vld [vmem:[%s20047_s9 + $0xd4] sm:$0xf] }
  0xe9   : > { %2565 = vmatpush.bf16.msrb.mxu1 %v10615_v33  ;;  %v1174_v14 = vpop.f32.mrf.mxu3  ;;  %v1162_v18 = vadd.f32 %v1161_v13, %v1149_v3  ;;  %v1150_v29 = vpop.f32.mrf.mxu1  ;;  %v10495_v33 = vor.u32 %v13045_v20, %v10492_v21  ;;  %v13074_v20 = vld [vmem:[%s20047_s9 + $0x16c] sm:$0xf0]  ;;  %v10604_v28 = vld [vmem:[%s20047_s9 + $0x178] sm:$0xf0] }
  0xea   : > { %2578 = vmatpush.bf16.msrb.mxu2 %v10619_v36  ;;  %v10458_v36 = vld [vmem:[%s20047_s9 + $0x48] sm:$0xf]  ;;  %v10595_v29 = vor.u32 %v13074_v20, %v10594_v19  ;;  %v10468_v19 = vld [vmem:[%s20047_s9 + $0x70] sm:$0xf0]  ;;  %v10474_v20 = vld [vmem:[%s20047_s9 + $0x58] sm:$0xf] }
  0xeb   : > { %2591 = vmatpush.bf16.msrb.mxu3 %v10623_v37  ;;  %v1175_v23 = vadd.f32 %v1174_v14, %v1162_v18  ;;  %v10459_v49 = vor.u32 %v13041_v38, %v10458_v36  ;;  %v13083_v14 = vld [vmem:[%s20047_s9 + $0x1b4] sm:$0xf0]  ;;  %v10607_v36 = vor.u32 %v13071_v27, %v10604_v28  ;;  %v10564_v38 = vld [vmem:[%s20047_s9 + $0x130] sm:$0xf0]  ;;  %v13034_v27 = vld [vmem:[%s20047_s9 + $0x2c] sm:$0xf0] }
  0xec   : > { %2553 = vmatpush.bf16.msrb.mxu0 %v10579_v46  ;;  %v13032_v46 = vld [vmem:[%s20047_s9 + $0x1c] sm:$0xf0]  ;;  %v13030_v28 = vld [vmem:[%s20047_s9 + $0x14] sm:$0xf] }
  0xed   : > { %2566 = vmatpush.bf16.msrb.mxu1 %v10583_v47  ;;  %v1178_v37 = vadd.f32 %v1175_v23, %v854_v22  ;;  %v13028_v47 = vld [vmem:[%s20047_s9 + $0x4] sm:$0xf]  ;;  %v10419_v58 = vor.u32 %v13032_v46, %v10418_v41  ;;  %v10639_v22 = vor.u32 %v13079_v15, %v10636_v16  ;;  %v13070_v23 = vld [vmem:[%s20047_s9 + $0x154] sm:$0xf]  ;;  %v13063_v41 = vld [vmem:[%s20047_s9 + $0x11c] sm:$0xf] }
  0xee   : > { %2579 = vmatpush.bf16.msrb.mxu2 %v10587_v1  ;;  %v10463_v1 = vor.u32 %v13037_v39, %v10460_v40  ;;  %v10423_v59 = vor.u32 %v13028_v47, %v10420_v48  ;;  %v10570_v39 = vld [vmem:[%s20047_s9 + $0x118] sm:$0xf]  ;;  %v10530_v47 = vld [vmem:[%s20047_s9 + $0xd0] sm:$0xf] }
  0xef   : > { %2592 = vmatpush.bf16.msrb.mxu3 %v10591_v50  ;;  %13938 = vtanh.f32 %v1178_v37  ;;  %v10426_v50 = vld [vmem:[%s20047_s9 + $0x8] sm:$0xf]  ;;  %v13062_v37 = vld [vmem:[%s20047_s9 + $0x114] sm:$0xf]  ;;  %v13067_v40 = vld [vmem:[%s20047_s9 + $0x134] sm:$0xf0] }
  0xf0   : > { %2554 = vmatpush.bf16.msrb.mxu0 %v10547_v54  ;;  %v1163_v2 = vpop.f32.mrf.mxu2  ;;  %v13090_v54 = vld [vmem:[%s20047_s9 + $0x1ec] sm:$0xf0]  ;;  %v10427_v63 = vor.u32 %v13033_v44, %v10426_v50  ;;  %v10567_v46 = vor.u32 %v13062_v37, %v10564_v38  ;;  %v10571_v50 = vor.u32 %v13067_v40, %v10570_v39  ;;  %v10444_v39 = vld [vmem:[%s20047_s9 + $0x38] sm:$0xf0]  ;;  %v10904_v40 = vld [vmem:[#allocation14 + $0x1c0] sm:$0xf] }
  0xf1   : > { %2567 = vmatpush.bf16.msrb.mxu1 %v10551_v55  ;;  %v1176_v51 = vpop.f32.mrf.mxu3  ;;  %v13086_v55 = vld [vmem:[%s20047_s9 + $0x1d4] sm:$0xf]  ;;  %v10659_v4 = vor.u32 %v13090_v54, %v10658_v53  ;;  %v13058_v48 = vld [vmem:[%s20047_s9 + $0xec] sm:$0xf0]  ;;  %v13059_v53 = vld [vmem:[%s20047_s9 + $0xf4] sm:$0xf0] }
  0xf2   : > { %2580 = vmatpush.bf16.msrb.mxu2 %v10555_v60  ;;  %v13091_v60 = vld [vmem:[%s20047_s9 + $0x1f4] sm:$0xf0]  ;;  %v10663_v5 = vor.u32 %v13086_v55, %v10660_v56  ;;  %v10532_v2 = vld [vmem:[%s20047_s9 + $0xf0] sm:$0xf0]  ;;  %v13055_v54 = vld [vmem:[%s20047_s9 + $0xdc] sm:$0xf]  ;;  %v10531_v56 = vor.u32 %v13058_v48, %v10530_v47 }
  0xf3   : > { %2593 = vmatpush.bf16.msrb.mxu3 %v10559_v61  ;;  %v13087_v61 = vld [vmem:[%s20047_s9 + $0x1dc] sm:$0xf]  ;;  %v10538_v51 = vld [vmem:[%s20047_s9 + $0xd8] sm:$0xf] }
  0xf4   : > { %2555 = vmatpush.bf16.msrb.mxu0 %v10515_v7  ;;  %v13082_v7 = vld [vmem:[%s20047_s9 + $0x1ac] sm:$0xf0]  ;;  %v10671_v9 = vor.u32 %v13087_v61, %v10668_v62  ;;  %v10540_v55 = vld [vmem:[%s20047_s9 + $0xf8] sm:$0xf0]  ;;  %v13046_v62 = vld [vmem:[%s20047_s9 + $0x94] sm:$0xf] }
  0xf5   : > { %2568 = vmatpush.bf16.msrb.mxu1 %v10519_v8  ;;  %v13939_v3 = vpop.eup %13938  ;;  %v10667_v8 = vor.u32 %v13091_v60, %v10666_v57  ;;  %v10627_v17 = vor.u32 %v13082_v7, %v10626_v6  ;;  %v10535_v57 = vor.u32 %v13054_v45, %v10532_v2  ;;  %v10539_v60 = vor.u32 %v13059_v53, %v10538_v51  ;;  %v13047_v6 = vld [vmem:[%s20047_s9 + $0x9c] sm:$0xf]  ;;  %v10872_v53 = vld [vmem:[#allocation14 + $0x180] sm:$0xf] }
  0xf6   : > { %2581 = vmatpush.bf16.msrb.mxu2 %v10523_v11  ;;  %v10628_v11 = vld [vmem:[%s20047_s9 + $0x1b0] sm:$0xf0]  ;;  %v15507_v13 = vpack.c.bf16 %v13939_v3, %v13939_v3  ;;  %v10543_v61 = vor.u32 %v13055_v54, %v10540_v55  ;;  %v10508_v7 = vld [vmem:[%s20047_s9 + $0xb8] sm:$0xf0]  ;;  %v13400_v54 = vld [vmem:[#allocation14 + $0x19c] sm:$0xf0] }
  0xf7   : > { %2594 = vmatpush.bf16.msrb.mxu3 %v10527_v12  ;;  %v10634_v12 = vld [vmem:[%s20047_s9 + $0x198] sm:$0xf]  ;;  %v10631_v18 = vor.u32 %v13078_v10, %v10628_v11  ;;  %v10466_v11 = vld [vmem:[%s20047_s9 + $0x50] sm:$0xf] }
  0xf8   : > { %2556 = vmatpush.bf16.msrb.mxu0 %v10483_v24  ;;  %v10635_v21 = vor.u32 %v13083_v14, %v10634_v12  ;;  %v10596_v24 = vld [vmem:[%s20047_s9 + $0x170] sm:$0xf0]  ;;  %v13042_v12 = vld [vmem:[%s20047_s9 + $0x6c] sm:$0xf0] }
  0xf9   : > { %2569 = vmatpush.bf16.msrb.mxu1 %v10487_v25  ;;  %v10602_v25 = vld [vmem:[%s20047_s9 + $0x158] sm:$0xf] }
  0xfa   : > { %2582 = vmatpush.bf16.msrb.mxu2 %v10491_v32  ;;  %v10599_v32 = vor.u32 %v13070_v23, %v10596_v24  ;;  %v10603_v35 = vor.u32 %v13075_v26, %v10602_v25  ;;  %v10476_v23 = vld [vmem:[%s20047_s9 + $0x78] sm:$0xf0]  ;;  %v10434_v24 = vld [vmem:[%s20047_s9 + $0x10] sm:$0xf]  ;;  %v10467_v25 = vor.u32 %v13042_v12, %v10466_v11  ;;  %v10842_v11 = vld [vmem:[#allocation14 + $0x160] sm:$0xf0] }
  0xfb   : > { %2595 = vmatpush.bf16.msrb.mxu3 %v10495_v33  ;;  %v10562_v33 = vld [vmem:[%s20047_s9 + $0x110] sm:$0xf]  ;;  %v10435_v47 = vor.u32 %v13034_v27, %v10434_v24  ;;  %v13452_v12 = vld [vmem:[#allocation14 + $0x344] sm:$0xf] }
  0xfc   : > { %2557 = vmatpush.bf16.msrb.mxu0 %v10451_v42  ;;  %v10572_v42 = vld [vmem:[%s20047_s9 + $0x138] sm:$0xf0]  ;;  %v10810_v24 = vld [vmem:[#allocation14 + $0x120] sm:$0xf0] }
  0xfd   : > { %2570 = vmatpush.bf16.msrb.mxu1 %v10455_v43  ;;  %v10563_v43 = vor.u32 %v13066_v34, %v10562_v33  ;;  %v10575_v44 = vor.u32 %v13063_v41, %v10572_v42  ;;  %v10442_v34 = vld [vmem:[%s20047_s9 + $0x18] sm:$0xf]  ;;  %v13408_v41 = vld [vmem:[#allocation14 + $0x1dc] sm:$0xf0] }
  0xfe   : > { %2583 = vmatpush.bf16.msrb.mxu2 %v10459_v49  ;;  %v11160_v42 = vld [vmem:[#allocation14 + $0x3c0] sm:$0xf]  ;;  %v10905_v2 = vor.u32 %v13408_v41, %v10904_v40  ;;  %v10778_v40 = vld [vmem:[#allocation14 + $0xe0] sm:$0xf0] }
  0xff   : > { %2596 = vmatpush.bf16.msrb.mxu3 %v10463_v1  ;;  %v13436_v41 = vld [vmem:[#allocation14 + $0x2c4] sm:$0xf] }
 0x100   : > { %2558 = vmatpush.bf16.msrb.mxu0 %v10419_v58  ;;  %v2032_v49 = vpop.f32.mrf.mxu0  ;;  %v10498_v58 = vld [vmem:[%s20047_s9 + $0x90] sm:$0xf] }
 0x101   : > { %2571 = vmatpush.bf16.msrb.mxu1 %v10423_v59  ;;  %v2045_v1 = vpop.f32.mrf.mxu1  ;;  %v13050_v59 = vld [vmem:[%s20047_s9 + $0xac] sm:$0xf0] }
 0x102   : > { %2584 = vmatpush.bf16.msrb.mxu2 %v10427_v63  ;;  %v15585_v52 = vadd.f32 %v2045_v1, %v2032_v49  ;;  %v10500_v63 = vld [vmem:[%s20047_s9 + $0xb0] sm:$0xf0]  ;;  %v10906_v49 = vld [vmem:[#allocation14 + $0x1e0] sm:$0xf0] }
 0x103   : > { %2597 = vmatpush.bf16.msrb.mxu3 %v10431_v0  ;;  %2559 = vmatmul.bf16.vlgmr.msrb.gmra.mxu0 %v15507_v13  ;;  %v10506_v0 = vld [vmem:[%s20047_s9 + $0x98] sm:$0xf]  ;;  %v10503_v10 = vor.u32 %v13046_v62, %v10500_v63  ;;  %v13468_v1 = vld [vmem:[#allocation14 + $0x3c4] sm:$0xf]  ;;  %v10873_v63 = vor.u32 %v13400_v54, %v10872_v53 }
 0x104   : > { %2603 = vmatpush.bf16.msra.mxu0 %v10659_v4  ;;  %2572 = vmatmul.bf16.vlgmr.msrb.gmra.mxu1 %v15507_v13  ;;  %v11130_v62 = vld [vmem:[#allocation14 + $0x3a0] sm:$0xf0] }
 0x105   : > { %2616 = vmatpush.bf16.msra.mxu1 %v10663_v5  ;;  %2585 = vmatmul.bf16.vlgmr.msrb.gmra.mxu2 %v15507_v13  ;;  %v13051_v5 = vld [vmem:[%s20047_s9 + $0xb4] sm:$0xf0]  ;;  %v10746_v53 = vld [vmem:[#allocation14 + $0xa0] sm:$0xf0] }
 0x106   : > { %2629 = vmatpush.bf16.msra.mxu2 %v10667_v8  ;;  %2598 = vmatmul.bf16.vlgmr.msrb.gmra.mxu3 %v15507_v13  ;;  %v10507_v16 = vor.u32 %v13051_v5, %v10506_v0  ;;  %v13428_v54 = vld [vmem:[#allocation14 + $0x284] sm:$0xf] }
 0x107   : > { %2642 = vmatpush.bf16.msra.mxu3 %v10671_v9  ;;  %v10499_v9 = vor.u32 %v13050_v59, %v10498_v58  ;;  %v13464_v58 = vld [vmem:[#allocation14 + $0x39c] sm:$0xf0]  ;;  %v13396_v59 = vld [vmem:[#allocation14 + $0x184] sm:$0xf] }
 0x108   : > { %2604 = vmatpush.bf16.msra.mxu0 %v10627_v17  ;;  %v2058_v3 = vpop.f32.mrf.mxu2  ;;  %v2034_v14 = vpop.f32.mrf.mxu0  ;;  %v10511_v17 = vor.u32 %v13047_v6, %v10508_v7  ;;  %v11096_v7 = vld [vmem:[#allocation14 + $0x340] sm:$0xf] }
 0x109   : > { %2617 = vmatpush.bf16.msra.mxu1 %v10631_v18  ;;  %v2071_v4 = vpop.f32.mrf.mxu3  ;;  %v2047_v15 = vpop.f32.mrf.mxu1  ;;  %v13038_v18 = vld [vmem:[%s20047_s9 + $0x54] sm:$0xf]  ;;  %v11098_v14 = vld [vmem:[#allocation14 + $0x360] sm:$0xf0] }
 0x10a   : > { %2630 = vmatpush.bf16.msra.mxu2 %v10635_v21  ;;  %v15620_v8 = vadd.f32 %v2071_v4, %v2058_v3  ;;  %v13043_v21 = vld [vmem:[%s20047_s9 + $0x74] sm:$0xf0]  ;;  %v10471_v26 = vor.u32 %v13038_v18, %v10468_v19  ;;  %v10840_v3 = vld [vmem:[#allocation14 + $0x140] sm:$0xf] }
 0x10b   : > { %2643 = vmatpush.bf16.msra.mxu3 %v10639_v22  ;;  %v13039_v22 = vld [vmem:[%s20047_s9 + $0x5c] sm:$0xf]  ;;  %v13392_v4 = vld [vmem:[#allocation14 + $0x15c] sm:$0xf0] }
 0x10c   : > { %2605 = vmatpush.bf16.msra.mxu0 %v10595_v29  ;;  %v10436_v29 = vld [vmem:[%s20047_s9 + $0x30] sm:$0xf0]  ;;  %v10479_v33 = vor.u32 %v13039_v22, %v10476_v23  ;;  %v10841_v15 = vor.u32 %v13392_v4, %v10840_v3  ;;  %v13384_v18 = vld [vmem:[#allocation14 + $0x11c] sm:$0xf0]  ;;  %v13380_v23 = vld [vmem:[#allocation14 + $0x104] sm:$0xf] }
 0x10d   : > { %2618 = vmatpush.bf16.msra.mxu1 %v10599_v32  ;;  %v10475_v32 = vor.u32 %v13043_v21, %v10474_v20  ;;  %v10439_v48 = vor.u32 %v13030_v28, %v10436_v29  ;;  %v11101_v20 = vor.u32 %v13452_v12, %v11098_v14  ;;  %v11064_v21 = vld [vmem:[#allocation14 + $0x300] sm:$0xf] }
 0x10e   : > { %2631 = vmatpush.bf16.msra.mxu2 %v10603_v35  ;;  %v13035_v35 = vld [vmem:[%s20047_s9 + $0x34] sm:$0xf0]  ;;  %v13448_v22 = vld [vmem:[#allocation14 + $0x31c] sm:$0xf0] }
 0x10f   : > { %2644 = vmatpush.bf16.msra.mxu3 %v10607_v36  ;;  %v13031_v36 = vld [vmem:[%s20047_s9 + $0x1c] sm:$0xf]  ;;  %v10776_v28 = vld [vmem:[#allocation14 + $0xc0] sm:$0xf] }
 0x110   : > { %2606 = vmatpush.bf16.msra.mxu0 %v10563_v43  ;;  %v2060_v37 = vpop.f32.mrf.mxu2  ;;  %v13472_v43 = vld [vmem:[#allocation14 + $0x3dc] sm:$0xf0]  ;;  %v10447_v45 = vor.u32 %v13031_v36, %v10444_v39 }
 0x111   : > { %2619 = vmatpush.bf16.msra.mxu1 %v10567_v46  ;;  %v2073_v38 = vpop.f32.mrf.mxu3  ;;  %v13404_v46 = vld [vmem:[#allocation14 + $0x1c4] sm:$0xf]  ;;  %v11161_v51 = vor.u32 %v13472_v43, %v11160_v42  ;;  %v13376_v29 = vld [vmem:[#allocation14 + $0xdc] sm:$0xf0] }
 0x112   : > { %2632 = vmatpush.bf16.msra.mxu2 %v10571_v50  ;;  %v11162_v50 = vld [vmem:[#allocation14 + $0x3e0] sm:$0xf0]  ;;  %v10909_v55 = vor.u32 %v13404_v46, %v10906_v49  ;;  %v11032_v36 = vld [vmem:[#allocation14 + $0x2c0] sm:$0xf]  ;;  %v10777_v43 = vor.u32 %v13376_v29, %v10776_v28  ;;  %v13405_v28 = vld [vmem:[#allocation14 + $0x1cc] sm:$0xf] }
 0x113   : > { %2645 = vmatpush.bf16.msra.mxu3 %v10575_v44  ;;  %v10443_v44 = vor.u32 %v13035_v35, %v10442_v34  ;;  %v10813_v34 = vor.u32 %v13380_v23, %v10810_v24  ;;  %v13440_v37 = vld [vmem:[#allocation14 + $0x2dc] sm:$0xf0]  ;;  %v13372_v38 = vld [vmem:[#allocation14 + $0xc4] sm:$0xf] }
 0x114   : > { %2607 = vmatpush.bf16.msra.mxu0 %v10531_v56  ;;  %v11165_v56 = vor.u32 %v13468_v1, %v11162_v50  ;;  %v11034_v42 = vld [vmem:[#allocation14 + $0x2e0] sm:$0xf0]  ;;  %v11033_v46 = vor.u32 %v13440_v37, %v11032_v36  ;;  %v10781_v49 = vor.u32 %v13372_v38, %v10778_v40  ;;  %v11000_v50 = vld [vmem:[#allocation14 + $0x280] sm:$0xf] }
 0x115   : > { %2620 = vmatpush.bf16.msra.mxu1 %v10535_v57  ;;  %v11128_v57 = vld [vmem:[#allocation14 + $0x380] sm:$0xf]  ;;  %v11037_v1 = vor.u32 %v13436_v41, %v11034_v42  ;;  %v10938_v24 = vld [vmem:[#allocation14 + $0x220] sm:$0xf0] }
 0x116   : > { %2633 = vmatpush.bf16.msra.mxu2 %v10539_v60  ;;  %v10874_v60 = vld [vmem:[#allocation14 + $0x1a0] sm:$0xf0]  ;;  %v11129_v0 = vor.u32 %v13464_v58, %v11128_v57  ;;  %v10968_v3 = vld [vmem:[#allocation14 + $0x240] sm:$0xf] }
 0x117   : > { %2646 = vmatpush.bf16.msra.mxu3 %v10543_v61  ;;  %v13460_v61 = vld [vmem:[#allocation14 + $0x384] sm:$0xf]  ;;  %v10877_v5 = vor.u32 %v13396_v59, %v10874_v60  ;;  %v10712_v59 = vld [vmem:[#allocation14 + $0x40] sm:$0xf] }
 0x118   : > { %2608 = vmatpush.bf16.msra.mxu0 %v10499_v9  ;;  %v11133_v6 = vor.u32 %v13460_v61, %v11130_v62  ;;  %v13456_v9 = vld [vmem:[#allocation14 + $0x35c] sm:$0xf0]  ;;  %v2948_v40 = vld.sshfl [vmem:[#allocation1 + $0x8] sm:$0xff pattern:$0x73625140] }
 0x119   : > { %2621 = vmatpush.bf16.msra.mxu1 %v10503_v10  ;;  %v13388_v10 = vld [vmem:[#allocation14 + $0x144] sm:$0xf]  ;;  %v13360_v60 = vld [vmem:[#allocation14 + $0x5c] sm:$0xf0] }
 0x11a   : > { %2634 = vmatpush.bf16.msra.mxu2 %v10507_v16  ;;  %v11097_v16 = vor.u32 %v13456_v9, %v11096_v7  ;;  %v10845_v19 = vor.u32 %v13388_v10, %v10842_v11  ;;  %v13424_v4 = vld [vmem:[#allocation14 + $0x25c] sm:$0xf0]  ;;  %v13420_v7 = vld [vmem:[#allocation14 + $0x244] sm:$0xf]  ;;  %v10713_v11 = vor.u32 %v13360_v60, %v10712_v59 }
 0x11b   : > { %2647 = vmatpush.bf16.msra.mxu3 %v10511_v17  ;;  %v10808_v17 = vld [vmem:[#allocation14 + $0x100] sm:$0xf]  ;;  %v10970_v9 = vld [vmem:[#allocation14 + $0x260] sm:$0xf0]  ;;  %v10969_v12 = vor.u32 %v13424_v4, %v10968_v3  ;;  %v13453_v3 = vld [vmem:[#allocation14 + $0x34c] sm:$0xf] }
 0x11c   : > { %2609 = vmatpush.bf16.msra.mxu0 %v10467_v25  ;;  %v13444_v25 = vld [vmem:[#allocation14 + $0x304] sm:$0xf]  ;;  %v10809_v27 = vor.u32 %v13384_v18, %v10808_v17  ;;  %v10680_v10 = vld [vmem:[#allocation14] sm:$0xf]  ;;  %v10973_v18 = vor.u32 %v13420_v7, %v10970_v9  ;;  %v11106_v4 = vld [vmem:[#allocation14 + $0x368] sm:$0xf0] }
 0x11d   : > { %2622 = vmatpush.bf16.msra.mxu1 %v10471_v26  ;;  %v11066_v26 = vld [vmem:[#allocation14 + $0x320] sm:$0xf0]  ;;  %v13352_v14 = vld [vmem:[#allocation14 + $0x1c] sm:$0xf0]  ;;  %v10816_v7 = vld [vmem:[#allocation14 + $0x108] sm:$0xf] }
 0x11e   : > { %2635 = vmatpush.bf16.msra.mxu2 %v10475_v32  ;;  %v11069_v35 = vor.u32 %v13444_v25, %v11066_v26  ;;  %v10912_v25 = vld [vmem:[#allocation14 + $0x1c8] sm:$0xf]  ;;  %v10681_v29 = vor.u32 %v13352_v14, %v10680_v10  ;;  %v2947_v38 = vld.sshfl [vmem:[#allocation1] sm:$0xff pattern:$0x73625140] }
 0x11f   : > { %2648 = vmatpush.bf16.msra.mxu3 %v10479_v33  ;;  %v13409_v26 = vld [vmem:[#allocation14 + $0x1e4] sm:$0xf0] }
 0x120   : > { %2610 = vmatpush.bf16.msra.mxu0 %v10435_v47  ;;  %v2084_v32 = vpop.f32.mrf.mxu0  ;;  %v10744_v47 = vld [vmem:[#allocation14 + $0x80] sm:$0xf]  ;;  %v10913_v41 = vor.u32 %v13409_v26, %v10912_v25  ;;  %v13385_v9 = vld [vmem:[#allocation14 + $0x124] sm:$0xf0] }
 0x121   : > { %2623 = vmatpush.bf16.msra.mxu1 %v10439_v48  ;;  %v2097_v33 = vpop.f32.mrf.mxu1  ;;  %v13368_v48 = vld [vmem:[#allocation14 + $0x9c] sm:$0xf0]  ;;  %v13449_v14 = vld [vmem:[#allocation14 + $0x324] sm:$0xf0] }
 0x122   : > { %2636 = vmatpush.bf16.msra.mxu2 %v10443_v44  ;;  %v15674_v39 = vadd.f32 %v2097_v33, %v2084_v32  ;;  %v13432_v44 = vld [vmem:[#allocation14 + $0x29c] sm:$0xf0]  ;;  %v10745_v57 = vor.u32 %v13368_v48, %v10744_v47  ;;  %v10914_v33 = vld [vmem:[#allocation14 + $0x1e8] sm:$0xf0] }
 0x123   : > { %2649 = vmatpush.bf16.msra.mxu3 %v10447_v45  ;;  %2611 = vmatmul.bf16.vlgmr.msra.gmra.mxu0 %v15507_v13  ;;  %v13364_v45 = vld [vmem:[#allocation14 + $0x84] sm:$0xf]  ;;  %v11001_v58 = vor.u32 %v13432_v44, %v11000_v50  ;;  %v10917_v47 = vor.u32 %v13405_v28, %v10914_v33  ;;  %v13397_v50 = vld [vmem:[#allocation14 + $0x18c] sm:$0xf] }
 0x124   : > { %3721 = vmatpush.bf16.msrb.mxu0 %v10905_v2  ;;  %2624 = vmatmul.bf16.vlgmr.msra.gmra.mxu1 %v15507_v13  ;;  %v10882_v44 = vld [vmem:[#allocation14 + $0x1a8] sm:$0xf0] }
 0x125   : > { %3734 = vmatpush.bf16.msrb.mxu1 %v11161_v51  ;;  %2637 = vmatmul.bf16.vlgmr.msra.gmra.mxu2 %v15507_v13  ;;  %v10885_v59 = vor.u32 %v13397_v50, %v10882_v44  ;;  %v13373_v28 = vld [vmem:[#allocation14 + $0xcc] sm:$0xf] }
 0x126   : > { %3747 = vmatpush.bf16.msrb.mxu2 %v10909_v55  ;;  %2650 = vmatmul.bf16.vlgmr.msra.gmra.mxu3 %v15507_v13  ;;  %v11065_v13 = vor.u32 %v13448_v22, %v11064_v21  ;;  %v11002_v55 = vld [vmem:[#allocation14 + $0x2a0] sm:$0xf0]  ;;  %v13437_v33 = vld [vmem:[#allocation14 + $0x2cc] sm:$0xf] }
 0x127   : > { %3760 = vmatpush.bf16.msrb.mxu3 %v11165_v56  ;;  %v13412_v21 = vld [vmem:[#allocation14 + $0x204] sm:$0xf]  ;;  %v11010_v50 = vld [vmem:[#allocation14 + $0x2a8] sm:$0xf0] }
 0x128   : > { %3722 = vmatpush.bf16.msrb.mxu0 %v10873_v63  ;;  %v2110_v2 = vpop.f32.mrf.mxu2  ;;  %v2086_v61 = vpop.f32.mrf.mxu0  ;;  %v10749_v63 = vor.u32 %v13364_v45, %v10746_v53  ;;  %v10941_v37 = vor.u32 %v13412_v21, %v10938_v24  ;;  %v13461_v45 = vld [vmem:[#allocation14 + $0x38c] sm:$0xf]  ;;  %v15680_v53 = vpack.c.bf16 %v2948_v40, %v2948_v40  ;;  %v10784_v21 = vld [vmem:[#allocation14 + $0xc8] sm:$0xf] }
 0x129   : > { %3735 = vmatpush.bf16.msrb.mxu1 %v11129_v0  ;;  %v2123_v51 = vpop.f32.mrf.mxu3  ;;  %v2099_v62 = vpop.f32.mrf.mxu1  ;;  %v11005_v0 = vor.u32 %v13428_v54, %v11002_v55  ;;  %v11104_v61 = vld [vmem:[#allocation14 + $0x348] sm:$0xf] }
 0x12a   : > { %3748 = vmatpush.bf16.msrb.mxu2 %v10877_v5  ;;  %v15676_v56 = vadd.f32 %v2123_v51, %v2110_v2  ;;  %v13356_v5 = vld [vmem:[#allocation14 + $0x44] sm:$0xf]  ;;  %v11138_v2 = vld [vmem:[#allocation14 + $0x3a8] sm:$0xf0]  ;;  %v15678_v51 = vpack.c.bf16 %v2947_v38, %v2947_v38  ;;  %v13457_v62 = vld [vmem:[#allocation14 + $0x364] sm:$0xf0] }
 0x12b   : > { %3761 = vmatpush.bf16.msrb.mxu3 %v11133_v6  ;;  %v10714_v6 = vld [vmem:[#allocation14 + $0x60] sm:$0xf0]  ;;  %v11141_v60 = vor.u32 %v13461_v45, %v11138_v2  ;;  %v13369_v38 = vld [vmem:[#allocation14 + $0xa4] sm:$0xf0] }
 0x12c   : > { %3723 = vmatpush.bf16.msrb.mxu0 %v10841_v15  ;;  %v10936_v15 = vld [vmem:[#allocation14 + $0x200] sm:$0xf]  ;;  %v10717_v17 = vor.u32 %v13356_v5, %v10714_v6  ;;  %v11105_v6 = vor.u32 %v13457_v62, %v11104_v61  ;;  %v10976_v61 = vld [vmem:[#allocation14 + $0x248] sm:$0xf] }
 0x12d   : > { %3736 = vmatpush.bf16.msrb.mxu1 %v11097_v16  ;;  %v13416_v16 = vld [vmem:[#allocation14 + $0x21c] sm:$0xf0]  ;;  %v13425_v62 = vld [vmem:[#allocation14 + $0x264] sm:$0xf0] }
 0x12e   : > { %3749 = vmatpush.bf16.msrb.mxu2 %v10845_v19  ;;  %v13348_v19 = vld [vmem:[#allocation14 + $0x4] sm:$0xf]  ;;  %v10937_v32 = vor.u32 %v13416_v16, %v10936_v15  ;;  %v13381_v15 = vld [vmem:[#allocation14 + $0x10c] sm:$0xf] }
 0x12f   : > { %3762 = vmatpush.bf16.msrb.mxu3 %v11101_v20  ;;  %v10682_v20 = vld [vmem:[#allocation14 + $0x20] sm:$0xf0]  ;;  %v10818_v16 = vld [vmem:[#allocation14 + $0x128] sm:$0xf0] }
 0x130   : > { %3724 = vmatpush.bf16.msrb.mxu0 %v10809_v27  ;;  %v2112_v22 = vpop.f32.mrf.mxu2  ;;  %v11168_v27 = vld [vmem:[#allocation14 + $0x3c8] sm:$0xf]  ;;  %v10685_v36 = vor.u32 %v13348_v19, %v10682_v20  ;;  %v10817_v19 = vor.u32 %v13385_v9, %v10816_v7  ;;  %v10821_v25 = vor.u32 %v13381_v15, %v10818_v16  ;;  %v10977_v7 = vor.u32 %v13425_v62, %v10976_v61  ;;  %v13349_v15 = vld [vmem:[#allocation14 + $0xc] sm:$0xf]  ;;  %v13454_v61 = vld [vmem:[#allocation14 + $0x354] sm:$0xf] }
 0x131   : > { %3737 = vmatpush.bf16.msrb.mxu1 %v11065_v13  ;;  %v2125_v23 = vpop.f32.mrf.mxu3  ;;  %v13473_v13 = vld [vmem:[#allocation14 + $0x3e4] sm:$0xf0]  ;;  %v10690_v16 = vld [vmem:[#allocation14 + $0x28] sm:$0xf0]  ;;  %v11114_v62 = vld [vmem:[#allocation14 + $0x370] sm:$0xf0] }
 0x132   : > { %3750 = vmatpush.bf16.msrb.mxu2 %v10813_v34  ;;  %v13469_v34 = vld [vmem:[#allocation14 + $0x3cc] sm:$0xf]  ;;  %v11169_v42 = vor.u32 %v13473_v13, %v11168_v27  ;;  %v13377_v22 = vld [vmem:[#allocation14 + $0xe4] sm:$0xf0] }
 0x133   : > { %3763 = vmatpush.bf16.msrb.mxu3 %v11069_v35  ;;  %v11170_v35 = vld [vmem:[#allocation14 + $0x3e8] sm:$0xf0]  ;;  %v11040_v27 = vld [vmem:[#allocation14 + $0x2c8] sm:$0xf] }
 0x134   : > { %3725 = vmatpush.bf16.msrb.mxu0 %v10777_v43  ;;  %v10880_v43 = vld [vmem:[#allocation14 + $0x188] sm:$0xf]  ;;  %v11173_v48 = vor.u32 %v13469_v34, %v11170_v35  ;;  %v11042_v34 = vld [vmem:[#allocation14 + $0x2e8] sm:$0xf0]  ;;  %v10785_v35 = vor.u32 %v13377_v22, %v10784_v21  ;;  %v10920_v21 = vld [vmem:[#allocation14 + $0x1d0] sm:$0xf] }
 0x135   : > { %3738 = vmatpush.bf16.msrb.mxu1 %v11033_v46  ;;  %v13401_v46 = vld [vmem:[#allocation14 + $0x1a4] sm:$0xf0]  ;;  %v13410_v22 = vld [vmem:[#allocation14 + $0x1ec] sm:$0xf0] }
 0x136   : > { %3751 = vmatpush.bf16.msrb.mxu2 %v10781_v49  ;;  %v11136_v49 = vld [vmem:[#allocation14 + $0x388] sm:$0xf]  ;;  %v10881_v54 = vor.u32 %v13401_v46, %v10880_v43  ;;  %v13365_v46 = vld [vmem:[#allocation14 + $0x8c] sm:$0xf] }
 0x137   : > { %3764 = vmatpush.bf16.msrb.mxu3 %v11037_v1  ;;  %v13465_v1 = vld [vmem:[#allocation14 + $0x3a4] sm:$0xf0] }
 0x138   : > { %3726 = vmatpush.bf16.msrb.mxu0 %v10745_v57  ;;  %v11137_v55 = vor.u32 %v13465_v1, %v11136_v49  ;;  %v10848_v57 = vld [vmem:[#allocation14 + $0x148] sm:$0xf]  ;;  %v10754_v49 = vld [vmem:[#allocation14 + $0xa8] sm:$0xf0] }
 0x139   : > { %3739 = vmatpush.bf16.msrb.mxu1 %v11001_v58  ;;  %v13393_v58 = vld [vmem:[#allocation14 + $0x164] sm:$0xf0]  ;;  %v13429_v1 = vld [vmem:[#allocation14 + $0x28c] sm:$0xf] }
 0x13a   : > { %3752 = vmatpush.bf16.msrb.mxu2 %v10749_v63  ;;  %v13389_v63 = vld [vmem:[#allocation14 + $0x14c] sm:$0xf]  ;;  %v10849_v5 = vor.u32 %v13393_v58, %v10848_v57  ;;  %v13441_v13 = vld [vmem:[#allocation14 + $0x2e4] sm:$0xf0] }
 0x13b   : > { %3765 = vmatpush.bf16.msrb.mxu3 %v11005_v0  ;;  %v10850_v0 = vld [vmem:[#allocation14 + $0x168] sm:$0xf0]  ;;  %v13433_v43 = vld [vmem:[#allocation14 + $0x2a4] sm:$0xf0] }
 0x13c   : > { %3727 = vmatpush.bf16.msrb.mxu0 %v10713_v11  ;;  %v10853_v10 = vor.u32 %v13389_v63, %v10850_v0  ;;  %v11109_v11 = vor.u32 %v13453_v3, %v11106_v4  ;;  %v13357_v63 = vld [vmem:[#allocation14 + $0x4c] sm:$0xf]  ;;  %v13353_v9 = vld [vmem:[#allocation14 + $0x24] sm:$0xf0] }
 0x13d   : > { %3740 = vmatpush.bf16.msrb.mxu1 %v10969_v12  ;;  %v11072_v12 = vld [vmem:[#allocation14 + $0x308] sm:$0xf]  ;;  %v10722_v0 = vld [vmem:[#allocation14 + $0x68] sm:$0xf0] }
 0x13e   : > { %3753 = vmatpush.bf16.msrb.mxu2 %v10717_v17  ;;  %v13445_v17 = vld [vmem:[#allocation14 + $0x30c] sm:$0xf]  ;;  %v11073_v20 = vor.u32 %v13449_v14, %v11072_v12  ;;  %v10725_v12 = vor.u32 %v13357_v63, %v10722_v0 }
 0x13f   : > { %3766 = vmatpush.bf16.msrb.mxu3 %v10973_v18  ;;  %v11074_v18 = vld [vmem:[#allocation14 + $0x328] sm:$0xf0] }
 0x140   : > { %3728 = vmatpush.bf16.msrb.mxu0 %v10681_v29  ;;  %v2136_v23 = vpop.f32.mrf.mxu0  ;;  %v11077_v26 = vor.u32 %v13445_v17, %v11074_v18  ;;  %v13421_v3 = vld [vmem:[#allocation14 + $0x24c] sm:$0xf] }
 0x141   : > { %3741 = vmatpush.bf16.msrb.mxu1 %v10937_v32  ;;  %v2149_v24 = vpop.f32.mrf.mxu1  ;;  %v10786_v32 = vld [vmem:[#allocation14 + $0xe8] sm:$0xf0] }
 0x142   : > { %3754 = vmatpush.bf16.msrb.mxu2 %v10685_v36  ;;  %v15686_v29 = vadd.f32 %v2149_v24, %v2136_v23  ;;  %v11041_v36 = vor.u32 %v13441_v13, %v11040_v27  ;;  %v10789_v40 = vor.u32 %v13373_v28, %v10786_v32  ;;  %v10978_v4 = vld [vmem:[#allocation14 + $0x268] sm:$0xf0]  ;;  %v11176_v23 = vld [vmem:[#allocation14 + $0x3d0] sm:$0xf]  ;;  %v10922_v13 = vld [vmem:[#allocation14 + $0x1f0] sm:$0xf0] }
 0x143   : > { %3767 = vmatpush.bf16.msrb.mxu3 %v10941_v37  ;;  %3729 = vmatmul.bf16.vlgmr.msrb.gmra.mxu0 %v15678_v51  ;;  %v10752_v37 = vld [vmem:[#allocation14 + $0x88] sm:$0xf]  ;;  %v10981_v14 = vor.u32 %v13421_v3, %v10978_v4  ;;  %v13413_v17 = vld [vmem:[#allocation14 + $0x20c] sm:$0xf]  ;;  %v13474_v24 = vld [vmem:[#allocation14 + $0x3ec] sm:$0xf0] }
 0x144   : > { %3773 = vmatpush.bf16.msra.mxu0 %v10913_v41  ;;  %3742 = vmatmul.bf16.vlgmr.msrb.gmra.mxu1 %v15680_v53  ;;  %v11045_v41 = vor.u32 %v13437_v33, %v11042_v34  ;;  %v10753_v45 = vor.u32 %v13369_v38, %v10752_v37  ;;  %v13470_v28 = vld [vmem:[#allocation14 + $0x3d4] sm:$0xf]  ;;  %v10693_v33 = vor.u32 %v13349_v15, %v10690_v16  ;;  %v10888_v37 = vld [vmem:[#allocation14 + $0x190] sm:$0xf] }
 0x145   : > { %3786 = vmatpush.bf16.msra.mxu1 %v11169_v42  ;;  %3755 = vmatmul.bf16.vlgmr.msrb.gmra.mxu2 %v15678_v51  ;;  %v11008_v42 = vld [vmem:[#allocation14 + $0x288] sm:$0xf]  ;;  %v11178_v32 = vld [vmem:[#allocation14 + $0x3f0] sm:$0xf0]  ;;  %v13402_v38 = vld [vmem:[#allocation14 + $0x1ac] sm:$0xf0] }
 0x146   : > { %3799 = vmatpush.bf16.msra.mxu2 %v10917_v47  ;;  %3768 = vmatmul.bf16.vlgmr.msrb.gmra.mxu3 %v15680_v53  ;;  %v11009_v2 = vor.u32 %v13433_v43, %v11008_v42  ;;  %v11144_v42 = vld [vmem:[#allocation14 + $0x390] sm:$0xf] }
 0x147   : > { %3812 = vmatpush.bf16.msra.mxu3 %v11173_v48  ;;  %v13466_v43 = vld [vmem:[#allocation14 + $0x3ac] sm:$0xf0] }
 0x148   : > { %3774 = vmatpush.bf16.msra.mxu0 %v10881_v54  ;;  %v2162_v47 = vpop.f32.mrf.mxu2  ;;  %v10720_v54 = vld [vmem:[#allocation14 + $0x48] sm:$0xf]  ;;  %v2138_v57 = vpop.f32.mrf.mxu0  ;;  %v10824_v3 = vld [vmem:[#allocation14 + $0x110] sm:$0xf] }
 0x149   : > { %3787 = vmatpush.bf16.msra.mxu1 %v11137_v55  ;;  %v2175_v48 = vpop.f32.mrf.mxu3  ;;  %v13361_v55 = vld [vmem:[#allocation14 + $0x64] sm:$0xf0]  ;;  %v2151_v58 = vpop.f32.mrf.mxu1  ;;  %v11112_v57 = vld [vmem:[#allocation14 + $0x350] sm:$0xf] }
 0x14a   : > { %3800 = vmatpush.bf16.msra.mxu2 %v10885_v59  ;;  %v15688_v44 = vadd.f32 %v2175_v48, %v2162_v47  ;;  %v10757_v59 = vor.u32 %v13365_v46, %v10754_v49  ;;  %v13398_v46 = vld [vmem:[#allocation14 + $0x194] sm:$0xf]  ;;  %v13458_v58 = vld [vmem:[#allocation14 + $0x36c] sm:$0xf0] }
 0x14b   : > { %3813 = vmatpush.bf16.msra.mxu3 %v11141_v60  ;;  %v11013_v60 = vor.u32 %v13429_v1, %v11010_v50  ;;  %v10890_v47 = vld [vmem:[#allocation14 + $0x1b0] sm:$0xf0]  ;;  %v10889_v1 = vor.u32 %v13402_v38, %v10888_v37  ;;  %v11145_v50 = vor.u32 %v13466_v43, %v11144_v42  ;;  %v11113_v0 = vor.u32 %v13458_v58, %v11112_v57  ;;  %v13386_v4 = vld [vmem:[#allocation14 + $0x12c] sm:$0xf0] }
 0x14c   : > { %3775 = vmatpush.bf16.msra.mxu0 %v10849_v5  ;;  %v10688_v5 = vld [vmem:[#allocation14 + $0x8] sm:$0xf]  ;;  %v13462_v48 = vld [vmem:[#allocation14 + $0x394] sm:$0xf]  ;;  %v11016_v38 = vld [vmem:[#allocation14 + $0x290] sm:$0xf] }
 0x14d   : > { %3788 = vmatpush.bf16.msra.mxu1 %v11105_v6  ;;  %v10721_v6 = vor.u32 %v13361_v55, %v10720_v54  ;;  %v11146_v49 = vld [vmem:[#allocation14 + $0x3b0] sm:$0xf0]  ;;  %v10893_v54 = vor.u32 %v13398_v46, %v10890_v47  ;;  %v10984_v58 = vld [vmem:[#allocation14 + $0x250] sm:$0xf] }
 0x14e   : > { %3801 = vmatpush.bf16.msra.mxu2 %v10853_v10  ;;  %v10944_v10 = vld [vmem:[#allocation14 + $0x208] sm:$0xf]  ;;  %v11149_v55 = vor.u32 %v13462_v48, %v11146_v49  ;;  %v10762_v42 = vld [vmem:[#allocation14 + $0xb0] sm:$0xf0] }
 0x14f   : > { %3814 = vmatpush.bf16.msra.mxu3 %v11109_v11  ;;  %v13417_v11 = vld [vmem:[#allocation14 + $0x224] sm:$0xf0]  ;;  %v13430_v43 = vld [vmem:[#allocation14 + $0x294] sm:$0xf] }
 0x150   : > { %3776 = vmatpush.bf16.msra.mxu0 %v10817_v19  ;;  %v2164_v18 = vpop.f32.mrf.mxu2  ;;  %v10945_v27 = vor.u32 %v13417_v11, %v10944_v10  ;;  %v13382_v10 = vld [vmem:[#allocation14 + $0x114] sm:$0xf] }
 0x151   : > { %3789 = vmatpush.bf16.msra.mxu1 %v11073_v20  ;;  %v2177_v19 = vpop.f32.mrf.mxu3  ;;  %v10946_v20 = vld [vmem:[#allocation14 + $0x228] sm:$0xf0]  ;;  %v10826_v11 = vld [vmem:[#allocation14 + $0x130] sm:$0xf0] }
 0x152   : > { %3802 = vmatpush.bf16.msra.mxu2 %v10821_v25  ;;  %v13406_v25 = vld [vmem:[#allocation14 + $0x1d4] sm:$0xf]  ;;  %v10949_v34 = vor.u32 %v13413_v17, %v10946_v20  ;;  %v10825_v17 = vor.u32 %v13386_v4, %v10824_v3  ;;  %v10792_v19 = vld [vmem:[#allocation14 + $0xd0] sm:$0xf] }
 0x153   : > { %3815 = vmatpush.bf16.msra.mxu3 %v11077_v26  ;;  %v10689_v26 = vor.u32 %v13353_v9, %v10688_v5  ;;  %v13450_v9 = vld [vmem:[#allocation14 + $0x32c] sm:$0xf0]  ;;  %v11018_v46 = vld [vmem:[#allocation14 + $0x2b0] sm:$0xf0] }
 0x154   : > { %3777 = vmatpush.bf16.msra.mxu0 %v10785_v35  ;;  %v10921_v35 = vor.u32 %v13410_v22, %v10920_v21  ;;  %v13378_v20 = vld [vmem:[#allocation14 + $0xec] sm:$0xf0]  ;;  %v10829_v22 = vor.u32 %v13382_v10, %v10826_v11  ;;  %v11021_v57 = vor.u32 %v13430_v43, %v11018_v46  ;;  %v13350_v11 = vld [vmem:[#allocation14 + $0x14] sm:$0xf]  ;;  %v10898_v43 = vld [vmem:[#allocation14 + $0x1b8] sm:$0xf0] }
 0x155   : > { %3790 = vmatpush.bf16.msra.mxu1 %v11041_v36  ;;  %v11177_v36 = vor.u32 %v13474_v24, %v11176_v23  ;;  %v11048_v24 = vld [vmem:[#allocation14 + $0x2d0] sm:$0xf]  ;;  %v13463_v46 = vld [vmem:[#allocation14 + $0x39c] sm:$0xf] }
 0x156   : > { %3803 = vmatpush.bf16.msra.mxu2 %v10789_v40  ;;  %v10925_v40 = vor.u32 %v13406_v25, %v10922_v13  ;;  %v13442_v25 = vld [vmem:[#allocation14 + $0x2ec] sm:$0xf0]  ;;  %v13438_v13 = vld [vmem:[#allocation14 + $0x2d4] sm:$0xf] }
 0x157   : > { %3816 = vmatpush.bf16.msra.mxu3 %v11045_v41  ;;  %v11181_v41 = vor.u32 %v13470_v28, %v11178_v32  ;;  %v11050_v28 = vld [vmem:[#allocation14 + $0x2f0] sm:$0xf0]  ;;  %v10793_v32 = vor.u32 %v13378_v20, %v10792_v19  ;;  %v11184_v20 = vld [vmem:[#allocation14 + $0x3d8] sm:$0xf] }
 0x158   : > { %3778 = vmatpush.bf16.msra.mxu0 %v10753_v45  ;;  %v10856_v45 = vld [vmem:[#allocation14 + $0x150] sm:$0xf]  ;;  %v11053_v37 = vor.u32 %v13438_v13, %v11050_v28  ;;  %v11186_v13 = vld [vmem:[#allocation14 + $0x3f8] sm:$0xf0] }
 0x159   : > { %3791 = vmatpush.bf16.msra.mxu1 %v11009_v2  ;;  %v13394_v2 = vld [vmem:[#allocation14 + $0x16c] sm:$0xf0] }
 0x15a   : > { %3804 = vmatpush.bf16.msra.mxu2 %v10757_v59  ;;  %v13390_v59 = vld [vmem:[#allocation14 + $0x154] sm:$0xf]  ;;  %v10857_v63 = vor.u32 %v13394_v2, %v10856_v45  ;;  %v10728_v2 = vld [vmem:[#allocation14 + $0x50] sm:$0xf] }
 0x15b   : > { %3817 = vmatpush.bf16.msra.mxu3 %v11013_v60  ;;  %v10858_v60 = vld [vmem:[#allocation14 + $0x170] sm:$0xf0] }
 0x15c   : > { %3779 = vmatpush.bf16.msra.mxu0 %v10721_v6  ;;  %v10861_v5 = vor.u32 %v13390_v59, %v10858_v60  ;;  %v11117_v6 = vor.u32 %v13454_v61, %v11114_v62  ;;  %v13426_v59 = vld [vmem:[#allocation14 + $0x26c] sm:$0xf0]  ;;  %v13358_v60 = vld [vmem:[#allocation14 + $0x54] sm:$0xf] }
 0x15d   : > { %3792 = vmatpush.bf16.msra.mxu1 %v10977_v7  ;;  %v11080_v7 = vld [vmem:[#allocation14 + $0x310] sm:$0xf]  ;;  %v10730_v61 = vld [vmem:[#allocation14 + $0x70] sm:$0xf0]  ;;  %v10985_v4 = vor.u32 %v13426_v59, %v10984_v58  ;;  %v13459_v58 = vld [vmem:[#allocation14 + $0x374] sm:$0xf0] }
 0x15e   : > { %3805 = vmatpush.bf16.msra.mxu2 %v10725_v12  ;;  %v13446_v12 = vld [vmem:[#allocation14 + $0x314] sm:$0xf]  ;;  %v11081_v18 = vor.u32 %v13450_v9, %v11080_v7  ;;  %v13418_v7 = vld [vmem:[#allocation14 + $0x22c] sm:$0xf0]  ;;  %v10733_v9 = vor.u32 %v13358_v60, %v10730_v61  ;;  %v13391_v59 = vld [vmem:[#allocation14 + $0x15c] sm:$0xf] }
 0x15f   : > { %3818 = vmatpush.bf16.msra.mxu3 %v10981_v14  ;;  %v11082_v14 = vld [vmem:[#allocation14 + $0x330] sm:$0xf0]  ;;  %v10866_v60 = vld [vmem:[#allocation14 + $0x178] sm:$0xf0] }
 0x160   : > { %3780 = vmatpush.bf16.msra.mxu0 %v10689_v26  ;;  %v2188_v15 = vpop.f32.mrf.mxu0  ;;  %v11085_v23 = vor.u32 %v13446_v12, %v11082_v14  ;;  %v13374_v26 = vld [vmem:[#allocation14 + $0xd4] sm:$0xf]  ;;  %v13455_v61 = vld [vmem:[#allocation14 + $0x35c] sm:$0xf] }
 0x161   : > { %3793 = vmatpush.bf16.msra.mxu1 %v10945_v27  ;;  %v2201_v16 = vpop.f32.mrf.mxu1  ;;  %v10794_v27 = vld [vmem:[#allocation14 + $0xf0] sm:$0xf0] }
 0x162   : > { %3806 = vmatpush.bf16.msra.mxu2 %v10693_v33  ;;  %v15694_v21 = vadd.f32 %v2201_v16, %v2188_v15  ;;  %v11049_v33 = vor.u32 %v13442_v25, %v11048_v24  ;;  %v13422_v62 = vld [vmem:[#allocation14 + $0x254] sm:$0xf]  ;;  %v10928_v16 = vld [vmem:[#allocation14 + $0x1d8] sm:$0xf] }
 0x163   : > { %3819 = vmatpush.bf16.msra.mxu3 %v10949_v34  ;;  %3781 = vmatmul.bf16.vlgmr.msra.gmra.mxu0 %v15678_v51  ;;  %v10760_v34 = vld [vmem:[#allocation14 + $0x90] sm:$0xf]  ;;  %v10698_v12 = vld [vmem:[#allocation14 + $0x30] sm:$0xf0] }
 0x164   : > { %3825 = vmatpush.bf16.msrb.mxu0 %v10921_v35  ;;  %3794 = vmatmul.bf16.vlgmr.msra.gmra.mxu1 %v15680_v53  ;;  %v13370_v35 = vld [vmem:[#allocation14 + $0xac] sm:$0xf0]  ;;  %v13414_v14 = vld [vmem:[#allocation14 + $0x214] sm:$0xf]  ;;  %v10701_v28 = vor.u32 %v13350_v11, %v10698_v12  ;;  %v13383_v11 = vld [vmem:[#allocation14 + $0x11c] sm:$0xf] }
 0x165   : > { %3838 = vmatpush.bf16.msrb.mxu1 %v11177_v36  ;;  %3807 = vmatmul.bf16.vlgmr.msra.gmra.mxu2 %v15678_v51  ;;  %v10797_v36 = vor.u32 %v13374_v26, %v10794_v27  ;;  %v10954_v15 = vld [vmem:[#allocation14 + $0x230] sm:$0xf0]  ;;  %v10930_v26 = vld [vmem:[#allocation14 + $0x1f8] sm:$0xf0] }
 0x166   : > { %3851 = vmatpush.bf16.msrb.mxu2 %v10925_v40  ;;  %3820 = vmatmul.bf16.vlgmr.msra.gmra.mxu3 %v15680_v53  ;;  %v13434_v40 = vld [vmem:[#allocation14 + $0x2ac] sm:$0xf0]  ;;  %v13471_v27 = vld [vmem:[#allocation14 + $0x3dc] sm:$0xf] }
 0x167   : > { %3864 = vmatpush.bf16.msrb.mxu3 %v11181_v41  ;;  %v13366_v41 = vld [vmem:[#allocation14 + $0x94] sm:$0xf]  ;;  %v11017_v45 = vor.u32 %v13434_v40, %v11016_v38  ;;  %v11189_v38 = vor.u32 %v13471_v27, %v11186_v13  ;;  %v11152_v40 = vld [vmem:[#allocation14 + $0x398] sm:$0xf]  ;;  %v10834_v12 = vld [vmem:[#allocation14 + $0x138] sm:$0xf0] }
 0x168   : > { %3826 = vmatpush.bf16.msrb.mxu0 %v10889_v1  ;;  %v15696_v47 = vpop.f32.mrf.mxu2  ;;  %v2190_v49 = vpop.f32.mrf.mxu0  ;;  %v10837_v27 = vor.u32 %v13383_v11, %v10834_v12 }
 0x169   : > { %3839 = vmatpush.bf16.msrb.mxu1 %v11145_v50  ;;  %v15698_v48 = vpop.f32.mrf.mxu3  ;;  %v2203_v1 = vpop.f32.mrf.mxu1  ;;  %v10761_v50 = vor.u32 %v13370_v35, %v10760_v34  ;;  %v10896_v35 = vld [vmem:[#allocation14 + $0x198] sm:$0xf]  ;;  %v11154_v49 = vld [vmem:[#allocation14 + $0x3b8] sm:$0xf0] }
 0x16a   : > { %3852 = vmatpush.bf16.msrb.mxu2 %v10893_v54  ;;  %v13362_v54 = vld [vmem:[#allocation14 + $0x6c] sm:$0xf0] }
 0x16b   : > { %3865 = vmatpush.bf16.msrb.mxu3 %v11149_v55  ;;  %v10765_v55 = vor.u32 %v13366_v41, %v10762_v42  ;;  %v10729_v3 = vor.u32 %v13362_v54, %v10728_v2  ;;  %v13467_v41 = vld [vmem:[#allocation14 + $0x3b4] sm:$0xf0]  ;;  %v13399_v42 = vld [vmem:[#allocation14 + $0x19c] sm:$0xf] }
 0x16c   : > { %3827 = vmatpush.bf16.msrb.mxu0 %v10857_v63  ;;  %v10986_v63 = vld [vmem:[#allocation14 + $0x270] sm:$0xf0]  ;;  %v13395_v2 = vld [vmem:[#allocation14 + $0x174] sm:$0xf0]  ;;  %v10901_v54 = vor.u32 %v13399_v42, %v10898_v43 }
 0x16d   : > { %3840 = vmatpush.bf16.msrb.mxu1 %v11113_v0  ;;  %v10696_v0 = vld [vmem:[#allocation14 + $0x10] sm:$0xf]  ;;  %v10989_v10 = vor.u32 %v13422_v62, %v10986_v63  ;;  %v11122_v62 = vld [vmem:[#allocation14 + $0x378] sm:$0xf0]  ;;  %v11024_v42 = vld [vmem:[#allocation14 + $0x298] sm:$0xf] }
 0x16e   : > { %3853 = vmatpush.bf16.msrb.mxu2 %v10861_v5  ;;  %v13354_v5 = vld [vmem:[#allocation14 + $0x2c] sm:$0xf0]  ;;  %v15705_v63 = vld [vmem:[%s20049_s11] sm:$0xff] }
 0x16f   : > { %3866 = vmatpush.bf16.msrb.mxu3 %v11117_v6  ;;  %v10952_v6 = vld [vmem:[#allocation14 + $0x210] sm:$0xf]  ;;  %v10697_v24 = vor.u32 %v13354_v5, %v10696_v0  ;;  %v13387_v5 = vld [vmem:[#allocation14 + $0x134] sm:$0xf0] }
 0x170   : > { %3828 = vmatpush.bf16.msrb.mxu0 %v10825_v17  ;;  %v13411_v17 = vld [vmem:[#allocation14 + $0x1f4] sm:$0xf0]  ;;  %v10953_v25 = vor.u32 %v13418_v7, %v10952_v6  ;;  %v10869_v7 = vor.u32 %v13391_v59, %v10866_v60  ;;  %v13431_v59 = vld [vmem:[#allocation14 + $0x29c] sm:$0xf] }
 0x171   : > { %3841 = vmatpush.bf16.msrb.mxu1 %v11081_v18  ;;  %v2216_v18 = vpop.f32.mrf.mxu2  ;;  %v2229_v19 = vpop.f32.mrf.mxu3  ;;  %v11088_v6 = vld [vmem:[#allocation14 + $0x318] sm:$0xf]  ;;  %v11026_v60 = vld [vmem:[#allocation14 + $0x2b8] sm:$0xf0] }
 0x172   : > { %3854 = vmatpush.bf16.msrb.mxu2 %v10829_v22  ;;  %v13475_v22 = vld [vmem:[#allocation14 + $0x3f4] sm:$0xf0]  ;;  %v11029_v12 = vor.u32 %v13431_v59, %v11026_v60  ;;  %v15766_v59 = vld [vmem:[#allocation12 + $0x384] sm:$0xf] }
 0x173   : > { %3867 = vmatpush.bf16.msrb.mxu3 %v11085_v23  ;;  %v13407_v23 = vld [vmem:[#allocation14 + $0x1dc] sm:$0xf]  ;;  %v11185_v34 = vor.u32 %v13475_v22, %v11184_v20  ;;  %v15768_v60 = vld [vmem:[#allocation12 + $0x3a0] sm:$0xf0] }
 0x174   : > { %3829 = vmatpush.bf16.msrb.mxu0 %v10793_v32  ;;  %v10957_v32 = vor.u32 %v13414_v14, %v10954_v15  ;;  %v13447_v14 = vld [vmem:[#allocation14 + $0x31c] sm:$0xf] }
 0x175   : > { %3842 = vmatpush.bf16.msrb.mxu1 %v11049_v33  ;;  %v10929_v33 = vor.u32 %v13411_v17, %v10928_v16  ;;  %v11090_v15 = vld [vmem:[#allocation14 + $0x338] sm:$0xf0]  ;;  %v2657_v16 = vperm.slane %v15705_v63, 0  ;;  %v2658_v17 = vperm.slane %v15705_v63, 1 }
 0x176   : > { %3855 = vmatpush.bf16.msrb.mxu2 %v10797_v36  ;;  %v13403_v36 = vld [vmem:[#allocation14 + $0x1b4] sm:$0xf0]  ;;  %v11093_v13 = vor.u32 %v13447_v14, %v11090_v15 }
 0x177   : > { %3868 = vmatpush.bf16.msrb.mxu3 %v11053_v37  ;;  %v10933_v37 = vor.u32 %v13407_v23, %v10930_v26  ;;  %v10897_v1 = vor.u32 %v13403_v36, %v10896_v35  ;;  %v13379_v26 = vld [vmem:[#allocation14 + $0xf4] sm:$0xf0]  ;;  %v10802_v36 = vld [vmem:[#allocation14 + $0xf8] sm:$0xf0] }
 0x178   : > { %3830 = vmatpush.bf16.msrb.mxu0 %v10761_v50  ;;  %v11153_v50 = vor.u32 %v13467_v41, %v11152_v40  ;;  %v10768_v40 = vld [vmem:[#allocation14 + $0x98] sm:$0xf] }
 0x179   : > { %3843 = vmatpush.bf16.msrb.mxu1 %v11017_v45  ;;  %v10864_v45 = vld [vmem:[#allocation14 + $0x158] sm:$0xf] }
 0x17a   : > { %3856 = vmatpush.bf16.msrb.mxu2 %v10765_v55  ;;  %v11157_v55 = vor.u32 %v13463_v46, %v11154_v49  ;;  %v10865_v0 = vor.u32 %v13395_v2, %v10864_v45  ;;  %v13371_v41 = vld [vmem:[#allocation14 + $0xb4] sm:$0xf0]  ;;  %v2659_v45 = vperm.slane %v15705_v63, 2  ;;  %v2660_v2 = vperm.slane %v15705_v63, 3 }
 0x17b   : > { %3869 = vmatpush.bf16.msrb.mxu3 %v11021_v57  ;;  %v11120_v57 = vld [vmem:[#allocation14 + $0x358] sm:$0xf] }
 0x17c   : > { %3831 = vmatpush.bf16.msrb.mxu0 %v10729_v3  ;;  %v11121_v3 = vor.u32 %v13459_v58, %v11120_v57  ;;  %v13435_v49 = vld [vmem:[#allocation14 + $0x2b4] sm:$0xf0] }
 0x17d   : > { %3844 = vmatpush.bf16.msrb.mxu1 %v10985_v4  ;;  %v10832_v4 = vld [vmem:[#allocation14 + $0x118] sm:$0xf] }
 0x17e   : > { %3857 = vmatpush.bf16.msrb.mxu2 %v10733_v9  ;;  %v11125_v9 = vor.u32 %v13455_v61, %v11122_v62  ;;  %v10833_v18 = vor.u32 %v13387_v5, %v10832_v4  ;;  %v10769_v4 = vor.u32 %v13371_v41, %v10768_v40  ;;  %v11025_v5 = vor.u32 %v13435_v49, %v11024_v42  ;;  %v10992_v14 = vld [vmem:[#allocation14 + $0x258] sm:$0xf]  ;;  %v15737_v40 = vld [vmem:[#allocation12 + $0x1dc] sm:$0xf0]  ;;  %v15751_v49 = vld [vmem:[#allocation12 + $0x3e0] sm:$0xf0] }
 0x17f   : > { %3870 = vmatpush.bf16.msrb.mxu3 %v10989_v10  ;;  %v13451_v10 = vld [vmem:[#allocation14 + $0x334] sm:$0xf0]  ;;  %v15739_v41 = vld [vmem:[#allocation12 + $0x3c0] sm:$0xf] }
 0x180   : > { %3832 = vmatpush.bf16.msrb.mxu0 %v10697_v24  ;;  %v2560_v19 = vpop.f32.mrf.mxu0  ;;  %v11089_v22 = vor.u32 %v13451_v10, %v11088_v6  ;;  %v13427_v15 = vld [vmem:[#allocation14 + $0x274] sm:$0xf0]  ;;  %v15741_v42 = vld [vmem:[#allocation12 + $0x3dc] sm:$0xf0] }
 0x181   : > { %3845 = vmatpush.bf16.msrb.mxu1 %v10953_v25  ;;  %v2573_v20 = vpop.f32.mrf.mxu1  ;;  %v2561_v23 = vadd.f32 %v2560_v19, %v15585_v52  ;;  %v10800_v25 = vld [vmem:[#allocation14 + $0xd8] sm:$0xf] }
 0x182   : > { %3858 = vmatpush.bf16.msrb.mxu2 %v10701_v28  ;;  %v2574_v24 = vadd.f32 %v2573_v20, %v15620_v8  ;;  %v11056_v28 = vld [vmem:[#allocation14 + $0x2d8] sm:$0xf]  ;;  %v10801_v43 = vor.u32 %v13379_v26, %v10800_v25 }
 0x183   : > { %3871 = vmatpush.bf16.msrb.mxu3 %v10957_v32  ;;  %3833 = vmatmul.bf16.vlgmr.msrb.gmra.mxu0 %v15678_v51  ;;  %v13443_v32 = vld [vmem:[#allocation14 + $0x2f4] sm:$0xf0] }
 0x184   : > { %3877 = vmatpush.bf16.msra.mxu0 %v10929_v33  ;;  %3846 = vmatmul.bf16.vlgmr.msrb.gmra.mxu1 %v15680_v53  ;;  %v13375_v33 = vld [vmem:[#allocation14 + $0xdc] sm:$0xf]  ;;  %v2674_v35 = vadd.f32 %v2658_v17, %v2574_v24  ;;  %v11057_v46 = vor.u32 %v13443_v32, %v11056_v28  ;;  %v15717_v20 = vld [vmem:[#allocation14 + $0x18] sm:$0xf] }
 0x185   : > { %3890 = vmatpush.bf16.msra.mxu1 %v11185_v34  ;;  %3859 = vmatmul.bf16.vlgmr.msrb.gmra.mxu2 %v15678_v51  ;;  %v2673_v34 = vadd.f32 %v2657_v16, %v2561_v23  ;;  %v13359_v16 = vld [vmem:[#allocation14 + $0x5c] sm:$0xf]  ;;  %v15721_v23 = vld [vmem:[#allocation14 + $0x218] sm:$0xf] }
 0x186   : > { %3903 = vmatpush.bf16.msra.mxu2 %v10933_v37  ;;  %3872 = vmatmul.bf16.vlgmr.msrb.gmra.mxu3 %v15680_v53  ;;  %v13439_v37 = vld [vmem:[#allocation14 + $0x2dc] sm:$0xf]  ;;  %v10673_v8 = vmul.f32 -1.442695, %v2674_v35  ;;  %v15723_v24 = vld [vmem:[#allocation14 + $0x234] sm:$0xf0] }
 0x187   : > { %3916 = vmatpush.bf16.msra.mxu3 %v11189_v38  ;;  %v11058_v38 = vld [vmem:[#allocation14 + $0x2f8] sm:$0xf0]  ;;  %v10672_v52 = vmul.f32 -1.442695, %v2673_v34 }
 0x188   : > { %3878 = vmatpush.bf16.msra.mxu0 %v10897_v1  ;;  %v10805_v1 = vor.u32 %v13375_v33, %v10802_v36  ;;  %v2586_v57 = vpop.f32.mrf.mxu2  ;;  %v13423_v17 = vld [vmem:[#allocation14 + $0x25c] sm:$0xf] }
 0x189   : > { %3891 = vmatpush.bf16.msra.mxu1 %v11153_v50  ;;  %v11061_v50 = vor.u32 %v13439_v37, %v11058_v38  ;;  %13940 = vpow2.f32 %v10672_v52  ;;  %v2599_v58 = vpop.f32.mrf.mxu3  ;;  %v2587_v61 = vadd.f32 %v2586_v57, %v15674_v39  ;;  %v10738_v39 = vld [vmem:[#allocation14 + $0x78] sm:$0xf0]  ;;  %v15735_v38 = vld [vmem:[#allocation12 + $0x1c0] sm:$0xf]  ;;  %v15743_v52 = vld [vmem:[#allocation12 + $0x1c4] sm:$0xf] }
 0x18a   : > { %3904 = vmatpush.bf16.msra.mxu2 %v10901_v54  ;;  %v13367_v54 = vld [vmem:[#allocation14 + $0x9c] sm:$0xf]  ;;  %13942 = vpow2.f32 %v10673_v8  ;;  %v2600_v62 = vadd.f32 %v2599_v58, %v15676_v56  ;;  %v10741_v36 = vor.u32 %v13359_v16, %v10738_v39  ;;  %v15745_v8 = vld [vmem:[#allocation12 + $0x1e0] sm:$0xf0]  ;;  %v15801_v16 = vadd.f32 %v15698_v48, %v15696_v47 }
 0x18b   : > { %3917 = vmatpush.bf16.msra.mxu3 %v11157_v55  ;;  %v10770_v55 = vld [vmem:[#allocation14 + $0xb8] sm:$0xf0]  ;;  %v2675_v10 = vadd.f32 %v2659_v45, %v2587_v61  ;;  %v15757_v45 = vld [vmem:[#allocation12 + $0x380] sm:$0xf]  ;;  %v11417_v39 = vor.u32 %v15737_v40, %v15735_v38 }
 0x18c   : > { %3879 = vmatpush.bf16.msra.mxu0 %v10865_v0  ;;  %v2562_v0 = vpop.f32.mrf.mxu0  ;;  %v10773_v6 = vor.u32 %v13367_v54, %v10770_v55  ;;  %v2676_v11 = vadd.f32 %v2660_v2, %v2600_v62  ;;  %v10994_v56 = vld [vmem:[#allocation14 + $0x278] sm:$0xf0]  ;;  %v15759_v2 = vld [vmem:[#allocation12 + $0x39c] sm:$0xf0]  ;;  %v15761_v54 = vld [vmem:[#allocation12 + $0x184] sm:$0xf] }
 0x18d   : > { %3892 = vmatpush.bf16.msra.mxu1 %v11121_v3  ;;  %v2575_v3 = vpop.f32.mrf.mxu1  ;;  %v15727_v28 = vld [vmem:[#allocation14 + $0x38] sm:$0xf0]  ;;  %v10997_v37 = vor.u32 %v13423_v17, %v10994_v56  ;;  %v15763_v55 = vld [vmem:[#allocation12 + $0x1a0] sm:$0xf0]  ;;  %v15770_v61 = vld [vmem:[#allocation12 + $0x140] sm:$0xf]  ;;  %v11673_v17 = vor.u32 %v15741_v42, %v15739_v41  ;;  %v11421_v56 = vor.u32 %v15743_v52, %v15745_v8 }
 0x18e   : > { %3905 = vmatpush.bf16.msra.mxu2 %v10869_v7  ;;  %v10736_v7 = vld [vmem:[#allocation14 + $0x58] sm:$0xf]  ;;  %v10675_v19 = vmul.f32 -1.442695, %v2676_v11  ;;  %v15729_v32 = vld [vmem:[#allocation14 + $0x21c] sm:$0xf]  ;;  %v10961_v3 = vor.u32 %v15723_v24, %v15721_v23  ;;  %v11641_v24 = vor.u32 %v15759_v2, %v15757_v45 }
 0x18f   : > { %3918 = vmatpush.bf16.msra.mxu3 %v11125_v9  ;;  %v13363_v9 = vld [vmem:[#allocation14 + $0x74] sm:$0xf0]  ;;  %v13941_v25 = vpop.eup %13940  ;;  %v15731_v33 = vld [vmem:[#allocation14 + $0x238] sm:$0xf0]  ;;  %v15772_v62 = vld [vmem:[#allocation12 + $0x15c] sm:$0xf0] }
 0x190   : > { %3880 = vmatpush.bf16.msra.mxu0 %v10833_v18  ;;  %v10674_v18 = vmul.f32 -1.442695, %v2675_v10  ;;  %v10737_v26 = vor.u32 %v13363_v9, %v10736_v7  ;;  %v13943_v34 = vpop.eup %13942  ;;  %v15733_v35 = vadd.f32 1.0, %v13941_v25  ;;  %v2588_v57 = vpop.f32.mrf.mxu2  ;;  %v15785_v7 = vld [vmem:[#allocation12 + $0x160] sm:$0xf0]  ;;  %v10965_v10 = vor.u32 %v15729_v32, %v15731_v33 }
 0x191   : > { %3893 = vmatpush.bf16.msra.mxu1 %v11089_v22  ;;  %v15719_v22 = vld [vmem:[#allocation14 + $0x34] sm:$0xf0]  ;;  %v2601_v58 = vpop.f32.mrf.mxu3  ;;  %v15791_v11 = vld [vmem:[#allocation12 + $0x344] sm:$0xf]  ;;  %v11389_v25 = vor.u32 %v15761_v54, %v15763_v55  ;;  %v15833_v32 = vld [vmem:[#allocation12 + $0x2c0] sm:$0xf] }
 0x192   : > { %3906 = vmatpush.bf16.msra.mxu2 %v10837_v27  ;;  %v10993_v27 = vor.u32 %v13427_v15, %v10992_v14  ;;  %13944 = vpow2.f32 %v10674_v18  ;;  %v10705_v0 = vor.u32 %v15719_v22, %v15717_v20  ;;  %v15795_v14 = vld [vmem:[#allocation12 + $0x100] sm:$0xf]  ;;  %v15813_v20 = vld [vmem:[#allocation12 + $0x104] sm:$0xf]  ;;  %v2700_v58 = vand.u32 2147483648, %v15733_v35 }
 0x193   : > { %3919 = vmatpush.bf16.msra.mxu3 %v11093_v13  ;;  %v15725_v13 = vld [vmem:[#allocation14 + $0x1c] sm:$0xf]  ;;  %13946 = vpow2.f32 %v10675_v19  ;;  %v15797_v15 = vld [vmem:[#allocation12 + $0x11c] sm:$0xf0]  ;;  %v15815_v22 = vld [vmem:[#allocation12 + $0x120] sm:$0xf0]  ;;  %vm2694_vm1 = vweird.f32 %v15733_v35 }
 0x194   : > { %3881 = vmatpush.bf16.msra.mxu0 %v10801_v43  ;;  %v15747_v43 = vadd.f32 1.0, %v13943_v34  ;;  %13948 = vrcp.f32 %v15733_v35  ;;  %v10709_v9 = vor.u32 %v15725_v13, %v15727_v28  ;;  %v15809_v18 = vld [vmem:[#allocation12 + $0x300] sm:$0xf]  ;;  %v15844_v41 = vld [vmem:[#allocation12 + $0xc4] sm:$0xf] }
 0x195   : > { %3894 = vmatpush.bf16.msra.mxu1 %v11057_v46  ;;  %v15749_v46 = vld [vmem:[#allocation12 + $0x3c4] sm:$0xf]  ;;  %v15811_v19 = vld [vmem:[#allocation12 + $0x31c] sm:$0xf0] }
 0x196   : > { %3907 = vmatpush.bf16.msra.mxu2 %v10805_v1  ;;  %v15753_v1 = vld [vmem:[#allocation12 + $0x180] sm:$0xf]  ;;  %13950 = vrcp.f32 %v15747_v43  ;;  %v11677_v47 = vor.u32 %v15749_v46, %v15751_v49  ;;  %vm2709_vm2 = vweird.f32 %v15747_v43  ;;  %v2715_v55 = vand.u32 2147483648, %v15747_v43 }
 0x197   : > { %3920 = vmatpush.bf16.msra.mxu3 %v11061_v50  ;;  %v15755_v50 = vld [vmem:[#allocation12 + $0x19c] sm:$0xf0] }
 0x198   : > { %3882 = vmatpush.bf16.msra.mxu0 %v10769_v4  ;;  %v15779_v4 = vld [vmem:[#allocation12 + $0x340] sm:$0xf]  ;;  %v13945_v23 = vpop.eup %13944  ;;  %v11385_v48 = vor.u32 %v15755_v50, %v15753_v1  ;;  %v15855_v1 = vld [vmem:[#allocation12 + $0xe0] sm:$0xf0] }
 0x199   : > { %3895 = vmatpush.bf16.msra.mxu1 %v11025_v5  ;;  %v15781_v5 = vld [vmem:[#allocation12 + $0x35c] sm:$0xf0]  ;;  %v13947_v33 = vpop.eup %13946  ;;  %v15835_v34 = vadd.f32 1.0, %v13945_v23  ;;  %v15857_v50 = vld [vmem:[#allocation12 + $0x2c4] sm:$0xf] }
 0x19a   : > { %3908 = vmatpush.bf16.msra.mxu2 %v10773_v6  ;;  %v15783_v6 = vld [vmem:[#allocation12 + $0x144] sm:$0xf]  ;;  %v15829_v13 = vld [vmem:[#allocation12 + $0xc0] sm:$0xf]  ;;  %v15846_v42 = vpop.eup %13948  ;;  %v15848_v52 = vadd.f32 1.0, %v13947_v33  ;;  %v11609_v8 = vor.u32 %v15781_v5, %v15779_v4 }
 0x19b   : > { %3921 = vmatpush.bf16.msra.mxu3 %v11029_v12  ;;  %v15793_v12 = vld [vmem:[#allocation12 + $0x360] sm:$0xf0]  ;;  %v15831_v28 = vld [vmem:[#allocation12 + $0xdc] sm:$0xf0]  ;;  %v11357_v46 = vor.u32 %v15783_v6, %v15785_v7  ;;  %v2690_v2 = vmul.f32 %v15846_v42, %v15733_v35  ;;  %13952 = vrcp.f32 %v15835_v34  ;;  %v2698_v23 = vand.u32 2147483647, %v15733_v35 }
 0x19c   : > { %3883 = vmatpush.bf16.msra.mxu0 %v10737_v26  ;;  %v15825_v26 = vld [vmem:[#allocation12 + $0x304] sm:$0xf]  ;;  %v15842_v40 = vld [vmem:[#allocation12 + $0x2dc] sm:$0xf0]  ;;  %v15859_v45 = vpop.eup %13950  ;;  %v11613_v57 = vor.u32 %v15791_v11, %v15793_v12  ;;  %13954 = vrcp.f32 %v15848_v52  ;;  %v2753_v54 = vand.u32 2147483648, %v15848_v52  ;;  %vm2695_vm3 = vweird.f32 %v15846_v42 }
 0x19d   : > { %3896 = vmatpush.bf16.msra.mxu1 %v10993_v27  ;;  %v15827_v27 = vld [vmem:[#allocation12 + $0x320] sm:$0xf0]  ;;  %v15881_v11 = vld [vmem:[#allocation12 + $0x280] sm:$0xf]  ;;  %vm15951_vm4 = vcmp.eq.f32.partialorder %v2698_v23, 8.507059e+37  ;;  %vm2710_vm5 = vweird.f32 %v15859_v45  ;;  %vm15970_vm8 = vmor %vm2694_vm1, %vm2695_vm3  ;;  %v20144_v23 = vor.u32 %v15811_v19, %v15809_v18  ;;  %vm2732_vm9 = vweird.f32 %v15835_v34 }
 0x19e   : > { %3909 = vmatpush.bf16.msra.mxu2 %v10741_v36  ;;  %v11645_v36 = vor.u32 %v15766_v59, %v15768_v60  ;;  %v15868_v59 = vld [vmem:[#allocation12 + $0x2e0] sm:$0xf0]  ;;  %v15870_v60 = vld [vmem:[#allocation12 + $0x80] sm:$0xf]  ;;  %v2751_v6 = vand.u32 2147483647, %v15848_v52  ;;  %vm2747_vm10 = vweird.f32 %v15848_v52  ;;  %vm15988_vm11 = vmor %vm2709_vm2, %vm2710_vm5 }
 0x19f   : > { %3922 = vmatpush.bf16.msra.mxu3 %v10997_v37  ;;  %v11353_v37 = vor.u32 %v15772_v62, %v15770_v61  ;;  %v15883_v12 = vld [vmem:[#allocation12 + $0x29c] sm:$0xf0]  ;;  %v15895_v33 = vld [vmem:[#allocation12 + $0x284] sm:$0xf]  ;;  %v2736_v61 = vand.u32 2147483647, %v15835_v34 }
 0x1a0   : > { %3884 = vmatpush.bf16.msra.mxu0 %v10705_v0  ;;  %v15872_v0 = vld [vmem:[#allocation12 + $0x9c] sm:$0xf0]  ;;  %vm2752_vm15 = vcmp.eq.f32.partialorder %v2751_v6, 8.507059e+37  ;;  %vm20073_vm1 = vcmask 1041408  }
 0x1a1   : > { %3897 = vmatpush.bf16.msra.mxu1 %v10961_v3  ;;  %v2705_v3 = vmul.f32 %v15859_v45, %v15747_v43  ;;  %vm2737_vm13 = vcmp.eq.f32.partialorder %v2736_v61, 8.507059e+37 }
 0x1a2   : > { %3910 = vmatpush.bf16.msra.mxu2 %v10709_v9  ;;  %v2691_v9 = vsub.f32 1.0, %v2690_v2  ;;  %v2625_v2 = vpop.f32.mrf.mxu1 }
 0x1a3   : > { %3923 = vmatpush.bf16.msra.mxu3 %v10965_v10  ;;  %v15897_v10 = vld [vmem:[#allocation12 + $0x2a0] sm:$0xf0]  ;;  %3885 = vmatmul.bf16.vlgmr.msra.gmra.mxu0 %v15678_v51  ;;  %v2626_v62 = vadd.f32 %v2625_v2, %v15688_v44  ;;  %v11192_v44 = vld [vmem:[#allocation12] sm:$0xf] }
 0x1a4   : > { %4569 = vmatpush.bf16.msrb.mxu0 %v11417_v39  ;;  %v15885_v39 = vld [vmem:[#allocation12 + $0x84] sm:$0xf]  ;;  %3898 = vmatmul.bf16.vlgmr.msra.gmra.mxu1 %v15680_v53 }
 0x1a5   : > { %4582 = vmatpush.bf16.msrb.mxu1 %v11673_v17  ;;  %3911 = vmatmul.bf16.vlgmr.msra.gmra.mxu2 %v15678_v51  ;;  %v15934_v51 = vor.u32 1.1754944e-38, %v2700_v58 }
 0x1a6   : > { %4595 = vmatpush.bf16.msrb.mxu2 %v11421_v56  ;;  %3924 = vmatmul.bf16.vlgmr.msra.gmra.mxu3 %v15680_v53  ;;  %v2706_v56 = vsub.f32 1.0, %v2705_v3  ;;  %v2738_v3 = vand.u32 2147483648, %v15835_v34  ;;  %v2612_v53 = vpop.f32.mrf.mxu0 }
 0x1a7   : > { %4608 = vmatpush.bf16.msrb.mxu3 %v11677_v47  ;;  %v15893_v47 = vld [vmem:[#allocation12 + $0xa0] sm:$0xf0]  ;;  %v2613_v49 = vadd.f32 %v2612_v53, %v15686_v29  ;;  %v20139_v29 = vperm.slane %v15705_v63, 4 }
 0x1a8   : > { %4570 = vmatpush.bf16.msrb.mxu0 %v11385_v48  ;;  %v2692_v48 = vmul.f32 %v15846_v42, %v2691_v9  ;;  %v2707_v9 = vmul.f32 %v15859_v45, %v2706_v56  ;;  %v2739_v19 = vor.u32 1.1754944e-38, %v2738_v3  ;;  %v2638_v2 = vpop.f32.mrf.mxu2  ;;  %v11224_v3 = vld [vmem:[#allocation12 + $0x40] sm:$0xf]  ;;  %v13220_v56 = vld [vmem:[#allocation12 + $0x4] sm:$0xf]  ;;  %v20162_v18 = vor.u32 %v15885_v39, %v15893_v47 }
 0x1a9   : > { %4583 = vmatpush.bf16.msrb.mxu1 %v11641_v24  ;;  %v15922_v24 = vpop.eup %13952  ;;  %v2677_v5 = vadd.f32 %v20139_v29, %v2613_v49  ;;  %v20143_v49 = vor.u32 %v15797_v15, %v15795_v14  ;;  %v20147_v14 = vor.u32 %v15813_v20, %v15815_v22  ;;  %v20148_v15 = vor.u32 %v15825_v26, %v15827_v27  ;;  %v2651_v53 = vpop.f32.mrf.mxu3  ;;  %v13281_v20 = vld [vmem:[#allocation12 + $0x1e4] sm:$0xf0]  ;;  %v11426_v39 = vld [vmem:[#allocation12 + $0x1e8] sm:$0xf0] }
 0x1aa   : > { %4596 = vmatpush.bf16.msrb.mxu2 %v11389_v25  ;;  %v15928_v25 = vpop.eup %13954  ;;  %vm2733_vm6 = vweird.f32 %v15922_v24  ;;  %v2639_v27 = vadd.f32 %v2638_v2, %v15694_v21  ;;  %v20154_v21 = vor.u32 %v15842_v40, %v15833_v32  ;;  %v13228_v40 = vld [vmem:[#allocation12 + $0x44] sm:$0xf] }
 0x1ab   : > { %4609 = vmatpush.bf16.msrb.mxu3 %v11645_v36  ;;  %v2728_v36 = vmul.f32 %v15922_v24, %v15835_v34  ;;  %v2743_v38 = vmul.f32 %v15928_v25, %v15848_v52  ;;  %vm2748_vm7 = vweird.f32 %v15928_v25  ;;  %13956 = vtanh.f32 %v2677_v5  ;;  %vm16000_vm12 = vmor %vm2732_vm9, %vm2733_vm6  ;;  %v11226_v5 = vld [vmem:[#allocation12 + $0x60] sm:$0xf0] }
 0x1ac   : > { %4571 = vmatpush.bf16.msrb.mxu0 %v11353_v37  ;;  %v2693_v37 = vadd.f32 %v15846_v42, %v2692_v48  ;;  %v2754_v34 = vor.u32 1.1754944e-38, %v2753_v54  ;;  %vm16007_vm14 = vmor %vm2747_vm10, %vm2748_vm7  ;;  %v2652_v48 = vadd.f32 %v2651_v53, %v15801_v16  ;;  %v11480_v16 = vld [vmem:[#allocation12 + $0x240] sm:$0xf] }
 0x1ad   : > { %4584 = vmatpush.bf16.msrb.mxu1 %v11609_v8  ;;  %v2729_v58 = vsub.f32 1.0, %v2728_v36  ;;  %v2744_v4 = vsub.f32 1.0, %v2743_v38  ;;  %v20140_v8 = vperm.slane %v15705_v63, 5  ;;  %v2708_v38 = vadd.f32 %v15859_v45, %v2707_v9  ;;  %v2627_v36 = vpop.f32.mrf.mxu1  ;;  %v13232_v9 = vld [vmem:[#allocation12 + $0x5c] sm:$0xf0] }
 0x1ae   : > { %4597 = vmatpush.bf16.msrb.mxu2 %v11357_v46  ;;  %v2697_v22 = vsel %vm15970_vm8, %v15846_v42, %v2693_v37  ;;  %v2614_v54 = vpop.f32.mrf.mxu0 }
 0x1af   : > { %4610 = vmatpush.bf16.msrb.mxu3 %v11613_v57  ;;  %v2730_v7 = vmul.f32 %v15922_v24, %v2729_v58  ;;  %v2678_v46 = vadd.f32 %v20140_v8, %v2626_v62  ;;  %v2745_v57 = vmul.f32 %v15928_v25, %v2744_v4  ;;  %v2712_v61 = vsel %vm15988_vm11, %v15859_v45, %v2708_v38  ;;  %v13296_v62 = vld [vmem:[#allocation12 + $0x25c] sm:$0xf0]  ;;  %v11682_v54 = vld [vmem:[#allocation12 + $0x3e8] sm:$0xf0] }
 0x1b0   : > { %4572 = vmatpush.bf16.msrb.mxu0 %v20143_v49  ;;  %v2716_v45 = vor.u32 1.1754944e-38, %v2715_v55  ;;  %v20158_v55 = vand.u32 2147483647, %v15747_v43  ;;  %v13224_v38 = vld [vmem:[#allocation12 + $0x1c] sm:$0xf0]  ;;  %v20160_v43 = vor.u32 %v15872_v0, %v15870_v60  ;;  %v11229_v60 = vor.u32 %v13228_v40, %v11226_v5  ;;  %v2640_v2 = vpop.f32.mrf.mxu2 }
 0x1b1   : > { %4585 = vmatpush.bf16.msrb.mxu1 %v20144_v23  ;;  %v2731_v35 = vadd.f32 %v15922_v24, %v2730_v7  ;;  %13958 = vtanh.f32 %v2678_v46  ;;  %v2746_v52 = vadd.f32 %v15928_v25, %v2745_v57  ;;  %v13957_v6 = vpop.eup %13956  ;;  %v11448_v49 = vld [vmem:[#allocation12 + $0x200] sm:$0xf]  ;;  %v2653_v53 = vpop.f32.mrf.mxu3  ;;  %v11650_v40 = vld [vmem:[#allocation12 + $0x3a8] sm:$0xf0]  ;;  %v16085_v2 = vld [vmem:[#allocation12 + $0x2c8] sm:$0xf] }
 0x1b2   : > { %4598 = vmatpush.bf16.msrb.mxu2 %v20147_v14  ;;  %vm2714_vm0 = vcmp.eq.f32.partialorder %v20158_v55, 8.507059e+37  ;;  %v13288_v23 = vld [vmem:[#allocation12 + $0x21c] sm:$0xf0]  ;;  %v11194_v14 = vld [vmem:[#allocation12 + $0x20] sm:$0xf0] }
 0x1b3   : > { %4611 = vmatpush.bf16.msrb.mxu3 %v20148_v15  ;;  %v2735_v26 = vsel %vm16000_vm12, %v15922_v24, %v2731_v35  ;;  %v2750_v42 = vsel %vm16007_vm14, %v15928_v25, %v2746_v52  ;;  %v20153_v24 = vor.u32 %v15831_v28, %v15829_v13  ;;  %v20155_v25 = vor.u32 %v15844_v41, %v15855_v1  ;;  %v11360_v55 = vld [vmem:[#allocation12 + $0x148] sm:$0xf] }
 0x1b4   : > { %v2740_v58 = vsel %vm2737_vm13, %v2739_v19, %v2735_v26  ;;  %v2755_v29 = vsel %vm2752_vm15, %v2754_v34, %v2750_v42  ;;  %v20156_v13 = vor.u32 %v15857_v50, %v15868_v59  ;;  %v20157_v28 = vperm.slane %v15705_v63, 6  ;;  %v13292_v50 = vld [vmem:[#allocation12 + $0x244] sm:$0xf]  ;;  %v13345_v26 = vld [vmem:[#allocation12 + $0x3e4] sm:$0xf0] }
 0x1b5   : > { %4573 = vmatpush.bf16.msrb.mxu0 %v20153_v24  ;;  %4586 = vmatpush.bf16.msrb.mxu1 %v20154_v21  ;;  %v2803_v4 = vmul.f32 %v14573_v30, %v2740_v58  ;;  %v2702_v30 = vsel %vm15951_vm4, %v15934_v51, %v2697_v22  ;;  %v2804_v41 = vmul.f32 %v14575_v31, %v2755_v29  ;;  %v20159_v1 = vperm.slane %v15705_v63, 7  ;;  %v11482_v59 = vld [vmem:[#allocation12 + $0x260] sm:$0xf0]  ;;  %v11680_v22 = vld [vmem:[#allocation12 + $0x3c8] sm:$0xf] }
 0x1b6   : > { %4599 = vmatpush.bf16.msrb.mxu2 %v20155_v25  ;;  %v2679_v32 = vadd.f32 %v20157_v28, %v2639_v27  ;;  %v2805_v8 = vmul.f32 %v13957_v6, %v2702_v30  ;;  %v2717_v46 = vsel %vm2714_vm0, %v2716_v45, %v2712_v61  ;;  %v20161_v31 = vor.u32 %v15883_v12, %v15881_v11  ;;  %v13284_v34 = vld [vmem:[#allocation12 + $0x204] sm:$0xf]  ;;  %v11424_v12 = vld [vmem:[#allocation12 + $0x1c8] sm:$0xf]  ;;  %v13277_v27 = vld [vmem:[#allocation12 + $0x1cc] sm:$0xf] }
 0x1b7   : > { %4612 = vmatpush.bf16.msrb.mxu3 %v20156_v13  ;;  %v2680_v7 = vadd.f32 %v20159_v1, %v2652_v48  ;;  %v13959_v37 = vpop.eup %13958  ;;  %v11225_v63 = vor.u32 %v13232_v9, %v11224_v3  ;;  %v11481_v35 = vor.u32 %v13296_v62, %v11480_v16  ;;  %v20163_v19 = vor.u32 %v15895_v33, %v15897_v10  ;;  %v11450_v11 = vld [vmem:[#allocation12 + $0x220] sm:$0xf0]  ;;  %v13341_v48 = vld [vmem:[#allocation12 + $0x3cc] sm:$0xf]  ;;  %v11392_v61 = vld [vmem:[#allocation12 + $0x188] sm:$0xf] }
 0x1b8   : > { %v10676_v57 = vmul.f32 -1.442695, %v2679_v32  ;;  %v2806_v17 = vmul.f32 %v13959_v37, %v2717_v46  ;;  %v16056_v15 = vadd.f32 %v2805_v8, %v2803_v4  ;;  %v11485_v0 = vor.u32 %v13292_v50, %v11482_v59  ;;  %v13273_v42 = vld [vmem:[#allocation12 + $0x1a4] sm:$0xf0]  ;;  %v13269_v29 = vld [vmem:[#allocation12 + $0x18c] sm:$0xf] }
 0x1b9   : > { %v10677_v51 = vmul.f32 -1.442695, %v2680_v7  ;;  %4574 = vmatpush.bf16.msrb.mxu0 %v20160_v43  ;;  %4587 = vmatpush.bf16.msrb.mxu1 %v20161_v31  ;;  %v11193_v10 = vor.u32 %v13224_v38, %v11192_v44  ;;  %v11449_v33 = vor.u32 %v13288_v23, %v11448_v49  ;;  %v11197_v36 = vor.u32 %v13220_v56, %v11194_v14  ;;  %v11648_v24 = vld [vmem:[#allocation12 + $0x388] sm:$0xf]  ;;  %v11394_v25 = vld [vmem:[#allocation12 + $0x1a8] sm:$0xf0] }
 0x1ba   : > { %13960 = vpow2.f32 %v10676_v57  ;;  %4600 = vmatpush.bf16.msrb.mxu2 %v20162_v18  ;;  %v16064_v52 = vadd.f32 %v2806_v17, %v2804_v41  ;;  %v11453_v3 = vor.u32 %v13284_v34, %v11450_v11  ;;  %v11425_v9 = vor.u32 %v13281_v20, %v11424_v12  ;;  %v13337_v45 = vld [vmem:[#allocation12 + $0x3a4] sm:$0xf0]  ;;  %v13333_v32 = vld [vmem:[#allocation12 + $0x38c] sm:$0xf] }
 0x1bb   : > { %4613 = vmatpush.bf16.msrb.mxu3 %v20163_v19  ;;  %13962 = vpow2.f32 %v10677_v51  ;;  %v11681_v58 = vor.u32 %v13345_v26, %v11680_v22  ;;  %v11429_v62 = vor.u32 %v13277_v27, %v11426_v39  ;;  %v11685_v4 = vor.u32 %v13341_v48, %v11682_v54  ;;  %v13265_v41 = vld [vmem:[#allocation12 + $0x164] sm:$0xf0]  ;;  %v13261_v37 = vld [vmem:[#allocation12 + $0x14c] sm:$0xf] }
 0x1bc   : > { %v4944_v47 = vrot.slane %v16064_v52, 6  ;;  %v11393_v6 = vor.u32 %v13273_v42, %v11392_v61  ;;  %v11649_v30 = vor.u32 %v13337_v45, %v11648_v24  ;;  %v11397_v1 = vor.u32 %v13269_v29, %v11394_v25  ;;  %v11616_v50 = vld [vmem:[#allocation12 + $0x348] sm:$0xf]  ;;  %v11362_v8 = vld [vmem:[#allocation12 + $0x168] sm:$0xf0] }
 0x1bd   : > { %4575 = vmatpush.bf16.msrb.mxu0 %v11225_v63  ;;  %4588 = vmatpush.bf16.msrb.mxu1 %v11481_v35  ;;  %v11653_v7 = vor.u32 %v13333_v32, %v11650_v40  ;;  %v13329_v59 = vld [vmem:[#allocation12 + $0x364] sm:$0xf0]  ;;  %v13325_v46 = vld [vmem:[#allocation12 + $0x34c] sm:$0xf]  ;;  %v11361_v49 = vor.u32 %v13265_v41, %v11360_v55  ;;  %v11365_v31 = vor.u32 %v13261_v37, %v11362_v8  ;;  %v11658_v8 = vld [vmem:[#allocation12 + $0x3b0] sm:$0xf0] }
 0x1be   : > { %4601 = vmatpush.bf16.msrb.mxu2 %v11229_v60  ;;  %v4945_v21 = vsel %vm20073_vm1, %v16056_v15, %v4944_v47  ;;  %v11618_v57 = vld [vmem:[#allocation12 + $0x368] sm:$0xf0]  ;;  %v11328_v44 = vld [vmem:[#allocation12 + $0x108] sm:$0xf]  ;;  %v11617_v23 = vor.u32 %v13329_v59, %v11616_v50 }
 0x1bf   : > { %4614 = vmatpush.bf16.msrb.mxu3 %v11485_v0  ;;  %v13257_v38 = vld [vmem:[#allocation12 + $0x124] sm:$0xf0]  ;;  %v13253_v43 = vld [vmem:[#allocation12 + $0x10c] sm:$0xf]  ;;  %v11621_v63 = vor.u32 %v13325_v46, %v11618_v57  ;;  %4947 = vst [vmem:[#allocation3] sm:$0xf] %v4945_v21 }
 0x1c0   : > { %v13961_v16 = vpop.eup %13960  ;;  %v11584_v17 = vld [vmem:[#allocation12 + $0x308] sm:$0xf]  ;;  %v11330_v35 = vld [vmem:[#allocation12 + $0x128] sm:$0xf0]  ;;  %v11329_v11 = vor.u32 %v13257_v38, %v11328_v44  ;;  %v3730_v47 = vpop.f32.mrf.mxu0 }
 0x1c1   : > { %v13963_v13 = vpop.eup %13962  ;;  %v16069_v28 = vadd.f32 1.0, %v13961_v16  ;;  %4576 = vmatpush.bf16.msrb.mxu0 %v11193_v10  ;;  %4589 = vmatpush.bf16.msrb.mxu1 %v11449_v33  ;;  %v13321_v51 = vld [vmem:[#allocation12 + $0x324] sm:$0xf0]  ;;  %v13317_v56 = vld [vmem:[#allocation12 + $0x30c] sm:$0xf]  ;;  %v11333_v22 = vor.u32 %v13253_v43, %v11330_v35  ;;  %v3743_v10 = vpop.f32.mrf.mxu1 }
 0x1c2   : > { %v16071_v5 = vadd.f32 1.0, %v13963_v13  ;;  %4602 = vmatpush.bf16.msrb.mxu2 %v11197_v36  ;;  %v11586_v14 = vld [vmem:[#allocation12 + $0x328] sm:$0xf0]  ;;  %v16077_v19 = vld [vmem:[#allocation12 + $0xc8] sm:$0xf]  ;;  %v11585_v12 = vor.u32 %v13321_v51, %v11584_v17 }
 0x1c3   : > { %4615 = vmatpush.bf16.msrb.mxu3 %v11453_v3  ;;  %13964 = vrcp.f32 %v16069_v28  ;;  %v16079_v60 = vld [vmem:[#allocation12 + $0xe4] sm:$0xf0]  ;;  %v11589_v26 = vor.u32 %v13317_v56, %v11586_v14  ;;  %v16091_v27 = vld [vmem:[#allocation12 + $0xcc] sm:$0xf]  ;;  %v16098_v3 = vadd.f32 %v3743_v10, %v3730_v47  ;;  %v2776_v21 = vand.u32 2147483647, %v16069_v28 }
 0x1c4   : > { %13966 = vrcp.f32 %v16071_v5  ;;  %v16087_v53 = vld [vmem:[#allocation12 + $0x2e4] sm:$0xf0]  ;;  %v16093_v39 = vld [vmem:[#allocation12 + $0xe8] sm:$0xf0]  ;;  %v11297_v48 = vor.u32 %v16079_v60, %v16077_v19  ;;  %v2793_v16 = vand.u32 2147483648, %v16071_v5  ;;  %vm2772_vm4 = vweird.f32 %v16069_v28 }
 0x1c5   : > { %4621 = vmatpush.bf16.msra.mxu0 %v11425_v9  ;;  %4634 = vmatpush.bf16.msra.mxu1 %v11681_v58  ;;  %13968 = vtanh.f32 %v16056_v15  ;;  %v13309_v54 = vld [vmem:[#allocation12 + $0x2cc] sm:$0xf]  ;;  %v2778_v9 = vand.u32 2147483648, %v16069_v28  ;;  %v11553_v61 = vor.u32 %v16087_v53, %v16085_v2  ;;  %v16104_v42 = vld [vmem:[#allocation12 + $0x88] sm:$0xf]  ;;  %vm2787_vm6 = vweird.f32 %v16071_v5 }
 0x1c6   : > { %4647 = vmatpush.bf16.msra.mxu2 %v11429_v62  ;;  %v11554_v36 = vld [vmem:[#allocation12 + $0x2e8] sm:$0xf0]  ;;  %13970 = vtanh.f32 %v16064_v52  ;;  %v16106_v15 = vld [vmem:[#allocation12 + $0xa4] sm:$0xf0]  ;;  %v2791_v62 = vand.u32 2147483647, %v16071_v5 }
 0x1c7   : > { %4660 = vmatpush.bf16.msra.mxu3 %v11685_v4  ;;  %v11301_v4 = vor.u32 %v16091_v27, %v16093_v39  ;;  %v11520_v45 = vld [vmem:[#allocation12 + $0x288] sm:$0xf]  ;;  %v11557_v13 = vor.u32 %v13309_v54, %v11554_v36  ;;  %v11265_v32 = vor.u32 %v16106_v15, %v16104_v42  ;;  %v13237_v40 = vld [vmem:[#allocation12 + $0x8c] sm:$0xf]  ;;  %v2779_v41 = vor.u32 1.1754944e-38, %v2778_v9 }
 0x1c8   : > { %v13305_v29 = vld [vmem:[#allocation12 + $0x2a4] sm:$0xf0]  ;;  %vm2777_vm7 = vcmp.eq.f32.partialorder %v2776_v21, 8.507059e+37  ;;  %v2794_v46 = vor.u32 1.1754944e-38, %v2793_v16  ;;  %vm2792_vm9 = vcmp.eq.f32.partialorder %v2791_v62, 8.507059e+37  ;;  %v3732_v51 = vpop.f32.mrf.mxu0 }
 0x1c9   : > { %4622 = vmatpush.bf16.msra.mxu0 %v11393_v6  ;;  %4635 = vmatpush.bf16.msra.mxu1 %v11649_v30  ;;  %v16075_v18 = vpop.eup %13964  ;;  %v11266_v6 = vld [vmem:[#allocation12 + $0xa8] sm:$0xf0]  ;;  %v3756_v30 = vpop.f32.mrf.mxu2  ;;  %v11521_v57 = vor.u32 %v13305_v29, %v11520_v45  ;;  %v13233_v17 = vld [vmem:[#allocation12 + $0x64] sm:$0xf0]  ;;  %v13282_v42 = vld [vmem:[#allocation12 + $0x1ec] sm:$0xf0] }
 0x1ca   : > { %4648 = vmatpush.bf16.msra.mxu2 %v11397_v1  ;;  %v16081_v0 = vpop.eup %13966  ;;  %v2768_v34 = vmul.f32 %v16075_v18, %v16069_v28  ;;  %vm2773_vm2 = vweird.f32 %v16075_v18  ;;  %v3769_v55 = vpop.f32.mrf.mxu3  ;;  %v11522_v28 = vld [vmem:[#allocation12 + $0x2a8] sm:$0xf0]  ;;  %v11488_v56 = vld [vmem:[#allocation12 + $0x248] sm:$0xf]  ;;  %v11688_v15 = vld [vmem:[#allocation12 + $0x3d0] sm:$0xf] }
 0x1cb   : > { %4661 = vmatpush.bf16.msra.mxu3 %v11653_v7  ;;  %v2783_v20 = vmul.f32 %v16081_v0, %v16071_v5  ;;  %vm2788_vm3 = vweird.f32 %v16081_v0  ;;  %vm2774_vm5 = vmor %vm2772_vm4, %vm2773_vm2  ;;  %v13301_v7 = vld [vmem:[#allocation12 + $0x28c] sm:$0xf]  ;;  %v16125_v50 = vadd.f32 %v3769_v55, %v3756_v30  ;;  %v13969_v59 = vpop.eup %13968  ;;  %v3745_v43 = vpop.f32.mrf.mxu1  ;;  %v13297_v14 = vld [vmem:[#allocation12 + $0x264] sm:$0xf0] }
 0x1cc   : > { %v2769_v33 = vsub.f32 1.0, %v2768_v34  ;;  %vm16130_vm8 = vmor %vm2787_vm6, %vm2788_vm3  ;;  %v13971_v44 = vpop.eup %13970  ;;  %v11525_v35 = vor.u32 %v13301_v7, %v11522_v28  ;;  %v11234_v60 = vld [vmem:[#allocation12 + $0x68] sm:$0xf0]  ;;  %v13225_v2 = vld [vmem:[#allocation12 + $0x24] sm:$0xf0]  ;;  %v11489_v27 = vor.u32 %v13297_v14, %v11488_v56 }
 0x1cd   : > { %4623 = vmatpush.bf16.msra.mxu0 %v11361_v49  ;;  %4636 = vmatpush.bf16.msra.mxu1 %v11617_v23  ;;  %v2784_v58 = vsub.f32 1.0, %v2783_v20  ;;  %v11269_v49 = vor.u32 %v13237_v40, %v11266_v6  ;;  %v11232_v23 = vld [vmem:[#allocation12 + $0x48] sm:$0xf]  ;;  %v13293_v34 = vld [vmem:[#allocation12 + $0x24c] sm:$0xf] }
 0x1ce   : > { %4649 = vmatpush.bf16.msra.mxu2 %v11365_v31  ;;  %v2770_v24 = vmul.f32 %v16075_v18, %v2769_v33  ;;  %v11456_v53 = vld [vmem:[#allocation12 + $0x208] sm:$0xf]  ;;  %v13221_v47 = vld [vmem:[#allocation12 + $0xc] sm:$0xf]  ;;  %v13346_v21 = vld [vmem:[#allocation12 + $0x3ec] sm:$0xf0] }
 0x1cf   : > { %4662 = vmatpush.bf16.msra.mxu3 %v11621_v63  ;;  %v2785_v52 = vmul.f32 %v16081_v0, %v2784_v58  ;;  %v13289_v39 = vld [vmem:[#allocation12 + $0x224] sm:$0xf0]  ;;  %v13285_v54 = vld [vmem:[#allocation12 + $0x20c] sm:$0xf]  ;;  %v13278_v16 = vld [vmem:[#allocation12 + $0x1d4] sm:$0xf]  ;;  %v11689_v40 = vor.u32 %v13346_v21, %v11688_v15 }
 0x1d0   : > { %v2771_v25 = vadd.f32 %v16075_v18, %v2770_v24  ;;  %v11458_v36 = vld [vmem:[#allocation12 + $0x228] sm:$0xf0]  ;;  %v11457_v62 = vor.u32 %v13289_v39, %v11456_v53  ;;  %v13342_v45 = vld [vmem:[#allocation12 + $0x3d4] sm:$0xf]  ;;  %v11400_v6 = vld [vmem:[#allocation12 + $0x190] sm:$0xf] }
 0x1d1   : > { %4624 = vmatpush.bf16.msra.mxu0 %v11329_v11  ;;  %4637 = vmatpush.bf16.msra.mxu1 %v11585_v12  ;;  %v2786_v1 = vadd.f32 %v16081_v0, %v2785_v52  ;;  %v11200_v12 = vld [vmem:[#allocation12 + $0x8] sm:$0xf]  ;;  %v3758_v9 = vpop.f32.mrf.mxu2  ;;  %v11690_v29 = vld [vmem:[#allocation12 + $0x3f0] sm:$0xf0]  ;;  %v13274_v30 = vld [vmem:[#allocation12 + $0x1ac] sm:$0xf0] }
 0x1d2   : > { %4650 = vmatpush.bf16.msra.mxu2 %v11333_v22  ;;  %v2775_v37 = vsel %vm2774_vm5, %v16075_v18, %v2771_v25  ;;  %v13229_v18 = vld [vmem:[#allocation12 + $0x4c] sm:$0xf]  ;;  %v3771_v58 = vpop.f32.mrf.mxu3  ;;  %v11201_v52 = vor.u32 %v13225_v2, %v11200_v12  ;;  %v13338_v7 = vld [vmem:[#allocation12 + $0x3ac] sm:$0xf0]  ;;  %v13270_v28 = vld [vmem:[#allocation12 + $0x194] sm:$0xf] }
 0x1d3   : > { %4663 = vmatpush.bf16.msra.mxu3 %v11589_v26  ;;  %v2780_v38 = vsel %vm2777_vm7, %v2779_v41, %v2775_v37  ;;  %v2790_v5 = vsel %vm16130_vm8, %v16081_v0, %v2786_v1  ;;  %v11490_v0 = vld [vmem:[#allocation12 + $0x268] sm:$0xf0]  ;;  %v11233_v26 = vor.u32 %v13233_v17, %v11232_v23  ;;  %v11237_v10 = vor.u32 %v13229_v18, %v11234_v60  ;;  %v11656_v1 = vld [vmem:[#allocation12 + $0x390] sm:$0xf]  ;;  %v13334_v37 = vld [vmem:[#allocation12 + $0x394] sm:$0xf] }
 0x1d4   : > { %v2811_v31 = vmul.f32 %v13969_v59, %v2780_v38  ;;  %v2795_v63 = vsel %vm2792_vm9, %v2794_v46, %v2790_v5  ;;  %v11493_v33 = vor.u32 %v13293_v34, %v11490_v0  ;;  %v11693_v41 = vor.u32 %v13342_v45, %v11690_v29  ;;  %v11402_v59 = vld [vmem:[#allocation12 + $0x1b0] sm:$0xf0]  ;;  %v13266_v38 = vld [vmem:[#allocation12 + $0x16c] sm:$0xf0] }
 0x1d5   : > { %4625 = vmatpush.bf16.msra.mxu0 %v11297_v48  ;;  %4638 = vmatpush.bf16.msra.mxu1 %v11553_v61  ;;  %v2812_v19 = vmul.f32 %v13971_v44, %v2795_v63  ;;  %v11202_v48 = vld [vmem:[#allocation12 + $0x28] sm:$0xf0]  ;;  %v11432_v61 = vld [vmem:[#allocation12 + $0x1d0] sm:$0xf]  ;;  %v11401_v46 = vor.u32 %v13274_v30, %v11400_v6  ;;  %v11405_v5 = vor.u32 %v13270_v28, %v11402_v59  ;;  %v13262_v51 = vld [vmem:[#allocation12 + $0x154] sm:$0xf] }
 0x1d6   : > { %4651 = vmatpush.bf16.msra.mxu2 %v11301_v4  ;;  %v16137_v11 = vpack.c.bf16 %v2811_v31, %v2811_v31  ;;  %v11434_v4 = vld [vmem:[#allocation12 + $0x1f0] sm:$0xf0]  ;;  %v11205_v25 = vor.u32 %v13221_v47, %v11202_v48  ;;  %v11368_v44 = vld [vmem:[#allocation12 + $0x150] sm:$0xf] }
 0x1d7   : > { %4664 = vmatpush.bf16.msra.mxu3 %v11557_v13  ;;  %v16139_v20 = vpack.c.bf16 %v2812_v19, %v2812_v19  ;;  %v4937_v22 = vrot.slane %v2812_v19, 6  ;;  %v11461_v13 = vor.u32 %v13285_v54, %v11458_v36  ;;  %v11437_v55 = vor.u32 %v13278_v16, %v11434_v4  ;;  %v11624_v23 = vld [vmem:[#allocation12 + $0x350] sm:$0xf]  ;;  %v11370_v43 = vld [vmem:[#allocation12 + $0x170] sm:$0xf0] }
 0x1d8   : > { %4577 = vmatmul.bf16.vlgmr.msrb.gmra.mxu0 %v16137_v11  ;;  %4603 = vmatmul.bf16.vlgmr.msrb.gmra.mxu2 %v16137_v11  ;;  %v13330_v17 = vld [vmem:[#allocation12 + $0x36c] sm:$0xf0]  ;;  %v11626_v63 = vld [vmem:[#allocation12 + $0x370] sm:$0xf0]  ;;  %v11373_v19 = vor.u32 %v13262_v51, %v11370_v43 }
 0x1d9   : > { %4626 = vmatpush.bf16.msra.mxu0 %v11265_v32  ;;  %4639 = vmatpush.bf16.msra.mxu1 %v11521_v57  ;;  %v4939_v24 = vsel %vm20073_vm1, %v2811_v31, %v4937_v22  ;;  %v11433_v32 = vor.u32 %v13282_v42, %v11432_v61  ;;  %v11657_v57 = vor.u32 %v13338_v7, %v11656_v1  ;;  %v13326_v31 = vld [vmem:[#allocation12 + $0x354] sm:$0xf]  ;;  %v11336_v14 = vld [vmem:[#allocation12 + $0x110] sm:$0xf] }
 0x1da   : > { %4652 = vmatpush.bf16.msra.mxu2 %v11269_v49  ;;  %4590 = vmatmul.bf16.vlgmr.msrb.gmra.mxu1 %v16139_v20  ;;  %4941 = vst [vmem:[#allocation2] sm:$0xf] %v4939_v24  ;;  %v11661_v49 = vor.u32 %v13334_v37, %v11658_v8  ;;  %v11625_v56 = vor.u32 %v13330_v17, %v11624_v23  ;;  %v13258_v18 = vld [vmem:[#allocation12 + $0x12c] sm:$0xf0]  ;;  %v13254_v12 = vld [vmem:[#allocation12 + $0x114] sm:$0xf] }
 0x1db   : > { %4665 = vmatpush.bf16.msra.mxu3 %v11525_v35  ;;  %v11369_v35 = vor.u32 %v13266_v38, %v11368_v44  ;;  %v11629_v60 = vor.u32 %v13326_v31, %v11626_v63  ;;  %v11592_v34 = vld [vmem:[#allocation12 + $0x310] sm:$0xf]  ;;  %v11338_v2 = vld [vmem:[#allocation12 + $0x130] sm:$0xf0] }
 0x1dc   : > { %4616 = vmatmul.bf16.vlgmr.msrb.gmra.mxu3 %v16139_v20  ;;  %v13322_v0 = vld [vmem:[#allocation12 + $0x32c] sm:$0xf0]  ;;  %v13318_v53 = vld [vmem:[#allocation12 + $0x314] sm:$0xf]  ;;  %v11341_v48 = vor.u32 %v13254_v12, %v11338_v2 }
 0x1dd   : > { %4627 = vmatpush.bf16.msra.mxu0 %v11233_v26  ;;  %4640 = vmatpush.bf16.msra.mxu1 %v11489_v27  ;;  %v11594_v22 = vld [vmem:[#allocation12 + $0x330] sm:$0xf0]  ;;  %v11337_v26 = vor.u32 %v13258_v18, %v11336_v14  ;;  %v11593_v27 = vor.u32 %v13322_v0, %v11592_v34  ;;  %v11304_v39 = vld [vmem:[#allocation12 + $0xd0] sm:$0xf] }
 0x1de   : > { %4653 = vmatpush.bf16.msra.mxu2 %v11237_v10  ;;  %v13250_v47 = vld [vmem:[#allocation12 + $0xec] sm:$0xf0]  ;;  %v11597_v54 = vor.u32 %v13318_v53, %v11594_v22  ;;  %v13246_v58 = vld [vmem:[#allocation12 + $0xd4] sm:$0xf]  ;;  %v11440_v53 = vld [vmem:[#allocation12 + $0x1d8] sm:$0xf] }
 0x1df   : > { %4666 = vmatpush.bf16.msra.mxu3 %v11493_v33  ;;  %v11560_v36 = vld [vmem:[#allocation12 + $0x2d0] sm:$0xf]  ;;  %v11306_v42 = vld [vmem:[#allocation12 + $0xf0] sm:$0xf0]  ;;  %v11305_v21 = vor.u32 %v13250_v47, %v11304_v39  ;;  %v13283_v22 = vld [vmem:[#allocation12 + $0x1f4] sm:$0xf0] }
 0x1e0   : > { %v3782_v10 = vpop.f32.mrf.mxu0  ;;  %v13314_v9 = vld [vmem:[#allocation12 + $0x2ec] sm:$0xf0]  ;;  %v13310_v15 = vld [vmem:[#allocation12 + $0x2d4] sm:$0xf]  ;;  %v11309_v4 = vor.u32 %v13246_v58, %v11306_v42  ;;  %v13279_v39 = vld [vmem:[#allocation12 + $0x1dc] sm:$0xf]  ;;  %v11441_v58 = vor.u32 %v13283_v22, %v11440_v53 }
 0x1e1   : > { %4628 = vmatpush.bf16.msra.mxu0 %v11201_v52  ;;  %4641 = vmatpush.bf16.msra.mxu1 %v11457_v62  ;;  %v3795_v33 = vpop.f32.mrf.mxu1  ;;  %v11562_v24 = vld [vmem:[#allocation12 + $0x2f0] sm:$0xf0]  ;;  %v11561_v16 = vor.u32 %v13314_v9, %v11560_v36  ;;  %v11272_v52 = vld [vmem:[#allocation12 + $0x90] sm:$0xf]  ;;  %v13247_v53 = vld [vmem:[#allocation12 + $0xdc] sm:$0xf] }
 0x1e2   : > { %4654 = vmatpush.bf16.msra.mxu2 %v11205_v25  ;;  %v16146_v61 = vadd.f32 %v3795_v33, %v3782_v10  ;;  %v13242_v62 = vld [vmem:[#allocation12 + $0xac] sm:$0xf0]  ;;  %v11565_v45 = vor.u32 %v13310_v15, %v11562_v24  ;;  %v11274_v6 = vld [vmem:[#allocation12 + $0xb0] sm:$0xf0]  ;;  %v11442_v33 = vld [vmem:[#allocation12 + $0x1f8] sm:$0xf0] }
 0x1e3   : > { %4667 = vmatpush.bf16.msra.mxu3 %v11461_v13  ;;  %v11528_v29 = vld [vmem:[#allocation12 + $0x290] sm:$0xf]  ;;  %v13238_v13 = vld [vmem:[#allocation12 + $0x94] sm:$0xf]  ;;  %v11273_v1 = vor.u32 %v13242_v62, %v11272_v52  ;;  %v11408_v15 = vld [vmem:[#allocation12 + $0x198] sm:$0xf] }
 0x1e4   : > { %v13306_v25 = vld [vmem:[#allocation12 + $0x2ac] sm:$0xf0]  ;;  %v13302_v30 = vld [vmem:[#allocation12 + $0x294] sm:$0xf]  ;;  %v13275_v24 = vld [vmem:[#allocation12 + $0x1b4] sm:$0xf0] }
 0x1e5   : > { %4673 = vmatpush.bf16.msrb.mxu0 %v11433_v32  ;;  %4686 = vmatpush.bf16.msrb.mxu1 %v11689_v40  ;;  %v11529_v7 = vor.u32 %v13306_v25, %v11528_v29  ;;  %v11240_v28 = vld [vmem:[#allocation12 + $0x50] sm:$0xf]  ;;  %v13294_v23 = vld [vmem:[#allocation12 + $0x254] sm:$0xf]  ;;  %v11664_v52 = vld [vmem:[#allocation12 + $0x398] sm:$0xf] }
 0x1e6   : > { %4699 = vmatpush.bf16.msrb.mxu2 %v11437_v55  ;;  %v11530_v55 = vld [vmem:[#allocation12 + $0x2b0] sm:$0xf0]  ;;  %v13234_v59 = vld [vmem:[#allocation12 + $0x6c] sm:$0xf0]  ;;  %v13339_v62 = vld [vmem:[#allocation12 + $0x3b4] sm:$0xf0] }
 0x1e7   : > { %4712 = vmatpush.bf16.msrb.mxu3 %v11693_v41  ;;  %v11496_v44 = vld [vmem:[#allocation12 + $0x250] sm:$0xf]  ;;  %v11498_v17 = vld [vmem:[#allocation12 + $0x270] sm:$0xf0]  ;;  %v11241_v43 = vor.u32 %v13234_v59, %v11240_v28  ;;  %v13335_v29 = vld [vmem:[#allocation12 + $0x39c] sm:$0xf] }
 0x1e8   : > { %4629 = vmatmul.bf16.vlgmr.msra.gmra.mxu0 %v16137_v11  ;;  %4655 = vmatmul.bf16.vlgmr.msra.gmra.mxu2 %v16137_v11  ;;  %v3808_v32 = vpop.f32.mrf.mxu2  ;;  %v3784_v37 = vpop.f32.mrf.mxu0  ;;  %v13298_v38 = vld [vmem:[#allocation12 + $0x26c] sm:$0xf0]  ;;  %v11501_v18 = vor.u32 %v13294_v23, %v11498_v17  ;;  %v13286_v34 = vld [vmem:[#allocation12 + $0x214] sm:$0xf]  ;;  %v11666_v25 = vld [vmem:[#allocation12 + $0x3b8] sm:$0xf0] }
 0x1e9   : > { %4674 = vmatpush.bf16.msrb.mxu0 %v11401_v46  ;;  %4687 = vmatpush.bf16.msrb.mxu1 %v11657_v57  ;;  %v3821_v40 = vpop.f32.mrf.mxu3  ;;  %v3797_v8 = vpop.f32.mrf.mxu1  ;;  %v11277_v46 = vor.u32 %v13238_v13, %v11274_v6  ;;  %v11533_v57 = vor.u32 %v13302_v30, %v11530_v55  ;;  %v11208_v51 = vld [vmem:[#allocation12 + $0x10] sm:$0xf]  ;;  %v11497_v31 = vor.u32 %v13298_v38, %v11496_v44  ;;  %v11466_v2 = vld [vmem:[#allocation12 + $0x230] sm:$0xf0]  ;;  %v13267_v6 = vld [vmem:[#allocation12 + $0x174] sm:$0xf0] }
 0x1ea   : > { %4700 = vmatpush.bf16.msrb.mxu2 %v11405_v5  ;;  %4642 = vmatmul.bf16.vlgmr.msra.gmra.mxu1 %v16139_v20  ;;  %v16152_v41 = vadd.f32 %v3821_v40, %v3808_v32  ;;  %v13230_v5 = vld [vmem:[#allocation12 + $0x54] sm:$0xf]  ;;  %v13226_v63 = vld [vmem:[#allocation12 + $0x2c] sm:$0xf0]  ;;  %v11469_v9 = vor.u32 %v13286_v34, %v11466_v2  ;;  %v11409_v13 = vor.u32 %v13275_v24, %v11408_v15  ;;  %v11376_v40 = vld [vmem:[#allocation12 + $0x158] sm:$0xf] }
 0x1eb   : > { %4713 = vmatpush.bf16.msrb.mxu3 %v11661_v49  ;;  %v11242_v49 = vld [vmem:[#allocation12 + $0x70] sm:$0xf0]  ;;  %v11209_v47 = vor.u32 %v13226_v63, %v11208_v51  ;;  %v11665_v32 = vor.u32 %v13339_v62, %v11664_v52  ;;  %v11669_v55 = vor.u32 %v13335_v29, %v11666_v25  ;;  %v13263_v28 = vld [vmem:[#allocation12 + $0x15c] sm:$0xf]  ;;  %v11344_v44 = vld [vmem:[#allocation12 + $0x118] sm:$0xf] }
 0x1ec   : > { %4668 = vmatmul.bf16.vlgmr.msra.gmra.mxu3 %v16139_v20  ;;  %v11245_v14 = vor.u32 %v13230_v5, %v11242_v49  ;;  %v11378_v59 = vld [vmem:[#allocation12 + $0x178] sm:$0xf0]  ;;  %v13259_v38 = vld [vmem:[#allocation12 + $0x134] sm:$0xf0] }
 0x1ed   : > { %4675 = vmatpush.bf16.msrb.mxu0 %v11369_v35  ;;  %4688 = vmatpush.bf16.msrb.mxu1 %v11625_v56  ;;  %v11464_v35 = vld [vmem:[#allocation12 + $0x210] sm:$0xf]  ;;  %v13327_v37 = vld [vmem:[#allocation12 + $0x35c] sm:$0xf]  ;;  %v11381_v5 = vor.u32 %v13263_v28, %v11378_v59  ;;  %v11600_v23 = vld [vmem:[#allocation12 + $0x318] sm:$0xf] }
 0x1ee   : > { %4701 = vmatpush.bf16.msrb.mxu2 %v11373_v19  ;;  %v13290_v56 = vld [vmem:[#allocation12 + $0x22c] sm:$0xf0]  ;;  %v13222_v19 = vld [vmem:[#allocation12 + $0x14] sm:$0xf]  ;;  %v11634_v8 = vld [vmem:[#allocation12 + $0x378] sm:$0xf0] }
 0x1ef   : > { %4714 = vmatpush.bf16.msrb.mxu3 %v11629_v60  ;;  %v11210_v60 = vld [vmem:[#allocation12 + $0x30] sm:$0xf0]  ;;  %v11465_v10 = vor.u32 %v13290_v56, %v11464_v35  ;;  %v11637_v49 = vor.u32 %v13327_v37, %v11634_v8  ;;  %v13323_v17 = vld [vmem:[#allocation12 + $0x334] sm:$0xf0]  ;;  %v13255_v51 = vld [vmem:[#allocation12 + $0x11c] sm:$0xf]  ;;  %v11345_v35 = vor.u32 %v13259_v38, %v11344_v44 }
 0x1f0   : > { %v3810_v0 = vpop.f32.mrf.mxu2  ;;  %v11213_v36 = vor.u32 %v13222_v19, %v11210_v60  ;;  %v11602_v63 = vld [vmem:[#allocation12 + $0x338] sm:$0xf0]  ;;  %v11601_v56 = vor.u32 %v13323_v17, %v11600_v23  ;;  %v13315_v2 = vld [vmem:[#allocation12 + $0x2f4] sm:$0xf0] }
 0x1f1   : > { %4676 = vmatpush.bf16.msrb.mxu0 %v11337_v26  ;;  %4689 = vmatpush.bf16.msrb.mxu1 %v11593_v27  ;;  %v3823_v12 = vpop.f32.mrf.mxu3  ;;  %v11696_v26 = vld [vmem:[#allocation12 + $0x3d8] sm:$0xf]  ;;  %v11538_v52 = vld [vmem:[#allocation12 + $0x2b8] sm:$0xf0] }
 0x1f2   : > { %4702 = vmatpush.bf16.msrb.mxu2 %v11341_v48  ;;  %v13347_v27 = vld [vmem:[#allocation12 + $0x3f4] sm:$0xf0]  ;;  %v13343_v48 = vld [vmem:[#allocation12 + $0x3dc] sm:$0xf] }
 0x1f3   : > { %4715 = vmatpush.bf16.msrb.mxu3 %v11597_v54  ;;  %v11698_v54 = vld [vmem:[#allocation12 + $0x3f8] sm:$0xf0]  ;;  %v11697_v42 = vor.u32 %v13347_v27, %v11696_v26  ;;  %v11568_v12 = vld [vmem:[#allocation12 + $0x2d8] sm:$0xf] }
 0x1f4   : > { %v11314_v26 = vld [vmem:[#allocation12 + $0xf8] sm:$0xf0]  ;;  %v11248_v29 = vld [vmem:[#allocation12 + $0x58] sm:$0xf] }
 0x1f5   : > { %4677 = vmatpush.bf16.msrb.mxu0 %v11305_v21  ;;  %4690 = vmatpush.bf16.msrb.mxu1 %v11561_v16  ;;  %v11445_v21 = vor.u32 %v13279_v39, %v11442_v33  ;;  %v11701_v16 = vor.u32 %v13343_v48, %v11698_v54  ;;  %v13311_v27 = vld [vmem:[#allocation12 + $0x2dc] sm:$0xf]  ;;  %v11280_v33 = vld [vmem:[#allocation12 + $0x98] sm:$0xf]  ;;  %v11317_v54 = vor.u32 %v13247_v53, %v11314_v26 }
 0x1f6   : > { %4703 = vmatpush.bf16.msrb.mxu2 %v11309_v4  ;;  %v13271_v4 = vld [vmem:[#allocation12 + $0x19c] sm:$0xf]  ;;  %v13243_v48 = vld [vmem:[#allocation12 + $0xb4] sm:$0xf0] }
 0x1f7   : > { %4716 = vmatpush.bf16.msrb.mxu3 %v11565_v45  ;;  %v11410_v45 = vld [vmem:[#allocation12 + $0x1b8] sm:$0xf0]  ;;  %v13235_v25 = vld [vmem:[#allocation12 + $0x74] sm:$0xf0] }
 0x1f8   : > { %v11413_v30 = vor.u32 %v13271_v4, %v11410_v45  ;;  %v11570_v39 = vld [vmem:[#allocation12 + $0x2f8] sm:$0xf0]  ;;  %v11281_v4 = vor.u32 %v13243_v48, %v11280_v33  ;;  %v11249_v37 = vor.u32 %v13235_v25, %v11248_v29  ;;  %v2814_v25 = vld [vmem:[#allocation5] sm:$0xf] }
 0x1f9   : > { %4678 = vmatpush.bf16.msrb.mxu0 %v11273_v1  ;;  %4691 = vmatpush.bf16.msrb.mxu1 %v11529_v7  ;;  %v11632_v1 = vld [vmem:[#allocation12 + $0x358] sm:$0xf]  ;;  %v13295_v28 = vld [vmem:[#allocation12 + $0x25c] sm:$0xf]  ;;  %4920 = vst [vmem:[#allocation1] ss:$4 sm:$0xff] %v2814_v25 }
 0x1fa   : > { %4704 = vmatpush.bf16.msrb.mxu2 %v11277_v46  ;;  %v13331_v7 = vld [vmem:[#allocation12 + $0x374] sm:$0xf0]  ;;  %v11377_v46 = vor.u32 %v13267_v6, %v11376_v40  ;;  %v11506_v59 = vld [vmem:[#allocation12 + $0x278] sm:$0xf0] }
 0x1fb   : > { %4717 = vmatpush.bf16.msrb.mxu3 %v11533_v57  ;;  %v11633_v57 = vor.u32 %v13331_v7, %v11632_v1  ;;  %v13231_v1 = vld [vmem:[#allocation12 + $0x5c] sm:$0xf]  ;;  %v11509_v38 = vor.u32 %v13295_v28, %v11506_v59  ;;  %v11830_v28 = vld [vmem:[#allocation15 + $0xf0] sm:$0xf]  ;;  %v13508_v59 = vld [vmem:[#allocation15 + $0x100] sm:$0xf0] }
 0x1fc   : > { %v11250_v7 = vld [vmem:[#allocation12 + $0x78] sm:$0xf0] }
 0x1fd   : > { %4679 = vmatpush.bf16.msrb.mxu0 %v11241_v43  ;;  %4692 = vmatpush.bf16.msrb.mxu1 %v11497_v31  ;;  %v11346_v43 = vld [vmem:[#allocation12 + $0x138] sm:$0xf0]  ;;  %v11253_v44 = vor.u32 %v13231_v1, %v11250_v7 }
 0x1fe   : > { %4705 = vmatpush.bf16.msrb.mxu2 %v11245_v14  ;;  %v13319_v31 = vld [vmem:[#allocation12 + $0x31c] sm:$0xf]  ;;  %v11312_v14 = vld [vmem:[#allocation12 + $0xd8] sm:$0xf]  ;;  %v11349_v34 = vor.u32 %v13255_v51, %v11346_v43 }
 0x1ff   : > { %4718 = vmatpush.bf16.msrb.mxu3 %v11501_v18  ;;  %v13251_v18 = vld [vmem:[#allocation12 + $0xf4] sm:$0xf0]  ;;  %v11605_v0 = vor.u32 %v13319_v31, %v11602_v63  ;;  %v13223_v23 = vld [vmem:[#allocation12 + $0x1c] sm:$0xf] }
 0x200   : > { %v3834_v19 = vpop.f32.mrf.mxu0  ;;  %v11218_v43 = vld [vmem:[#allocation12 + $0x38] sm:$0xf0] }
 0x201   : > { %4680 = vmatpush.bf16.msrb.mxu0 %v11209_v47  ;;  %4693 = vmatpush.bf16.msrb.mxu1 %v11465_v10  ;;  %v3847_v60 = vpop.f32.mrf.mxu1  ;;  %v11313_v47 = vor.u32 %v13251_v18, %v11312_v14  ;;  %v11569_v10 = vor.u32 %v13315_v2, %v11568_v12  ;;  %v13287_v31 = vld [vmem:[#allocation12 + $0x21c] sm:$0xf]  ;;  %v11221_v14 = vor.u32 %v13223_v23, %v11218_v43 }
 0x202   : > { %4706 = vmatpush.bf16.msrb.mxu2 %v11213_v36  ;;  %v16158_v22 = vadd.f32 %v3847_v60, %v3834_v19  ;;  %v11573_v36 = vor.u32 %v13311_v27, %v11570_v39  ;;  %v11474_v63 = vld [vmem:[#allocation12 + $0x238] sm:$0xf0] }
 0x203   : > { %4719 = vmatpush.bf16.msrb.mxu3 %v11469_v9  ;;  %v11536_v9 = vld [vmem:[#allocation12 + $0x298] sm:$0xf]  ;;  %v11477_v18 = vor.u32 %v13287_v31, %v11474_v63  ;;  %v13551_v25 = vld [vmem:[#allocation15 + $0x25c] sm:$0xf] }
 0x204   : > { %4681 = vmatmul.bf16.vlgmr.msrb.gmra.mxu0 %v16137_v11  ;;  %4694 = vmatmul.bf16.vlgmr.msrb.gmra.mxu1 %v16139_v20 }
 0x205   : > { %4725 = vmatpush.bf16.msra.mxu0 %v11441_v58  ;;  %4738 = vmatpush.bf16.msra.mxu1 %v11697_v42  ;;  %v13307_v58 = vld [vmem:[#allocation12 + $0x2b4] sm:$0xf0]  ;;  %v13239_v42 = vld [vmem:[#allocation12 + $0x9c] sm:$0xf] }
 0x206   : > { %4751 = vmatpush.bf16.msra.mxu2 %v11445_v21  ;;  %4720 = vmatmul.bf16.vlgmr.msrb.gmra.mxu3 %v16139_v20  ;;  %v11282_v21 = vld [vmem:[#allocation12 + $0xb8] sm:$0xf0]  ;;  %v11537_v45 = vor.u32 %v13307_v58, %v11536_v9 }
 0x207   : > { %4764 = vmatpush.bf16.msra.mxu3 %v11701_v16  ;;  %4707 = vmatmul.bf16.vlgmr.msrb.gmra.mxu2 %v16137_v11  ;;  %v13303_v16 = vld [vmem:[#allocation12 + $0x29c] sm:$0xf]  ;;  %v11285_v40 = vor.u32 %v13239_v42, %v11282_v21 }
 0x208   : > { %v3860_v15 = vpop.f32.mrf.mxu2  ;;  %v11541_v6 = vor.u32 %v13303_v16, %v11538_v52 }
 0x209   : > { %4726 = vmatpush.bf16.msra.mxu0 %v11409_v13  ;;  %4739 = vmatpush.bf16.msra.mxu1 %v11665_v32  ;;  %v3873_v24 = vpop.f32.mrf.mxu3  ;;  %v3836_v13 = vpop.f32.mrf.mxu0 }
 0x20a   : > { %4752 = vmatpush.bf16.msra.mxu2 %v11413_v30  ;;  %v16160_v62 = vadd.f32 %v3873_v24, %v3860_v15  ;;  %v3849_v32 = vpop.f32.mrf.mxu1  ;;  %v11504_v30 = vld [vmem:[#allocation12 + $0x258] sm:$0xf] }
 0x20b   : > { %4765 = vmatpush.bf16.msra.mxu3 %v11669_v55  ;;  %v13299_v55 = vld [vmem:[#allocation12 + $0x274] sm:$0xf0]  ;;  %v13513_v32 = vld [vmem:[#allocation15 + $0x128] sm:$0xf0] }
 0x20c   : > { %v11505_v8 = vor.u32 %v13299_v55, %v11504_v30  ;;  %v11850_v13 = vld [vmem:[#allocation15 + $0x118] sm:$0xf] }
 0x20d   : > { %4727 = vmatpush.bf16.msra.mxu0 %v11377_v46  ;;  %4740 = vmatpush.bf16.msra.mxu1 %v11633_v57  ;;  %v11216_v46 = vld [vmem:[#allocation12 + $0x18] sm:$0xf]  ;;  %v11851_v1 = vor.u32 %v13513_v32, %v11850_v13  ;;  %v12012_v32 = vld [vmem:[#allocation15 + $0x26c] sm:$0xf0] }
 0x20e   : > { %4753 = vmatpush.bf16.msra.mxu2 %v11381_v5  ;;  %v13227_v57 = vld [vmem:[#allocation12 + $0x34] sm:$0xf0] }
 0x20f   : > { %4766 = vmatpush.bf16.msra.mxu3 %v11637_v49  ;;  %v11472_v5 = vld [vmem:[#allocation12 + $0x218] sm:$0xf] }
 0x210   : > { %v13291_v49 = vld [vmem:[#allocation12 + $0x234] sm:$0xf0]  ;;  %v3862_v17 = vpop.f32.mrf.mxu2 }
 0x211   : > { %4728 = vmatpush.bf16.msra.mxu0 %v11345_v35  ;;  %4741 = vmatpush.bf16.msra.mxu1 %v11601_v56  ;;  %v3875_v51 = vpop.f32.mrf.mxu3  ;;  %v11217_v35 = vor.u32 %v13227_v57, %v11216_v46  ;;  %v11473_v56 = vor.u32 %v13291_v49, %v11472_v5  ;;  %v12010_v46 = vld [vmem:[#allocation15 + $0x258] sm:$0xf]  ;;  %v13553_v57 = vld [vmem:[#allocation15 + $0x268] sm:$0xf0]  ;;  %v11810_v17 = vld [vmem:[#allocation15 + $0xc8] sm:$0xf] }
 0x212   : > { %4754 = vmatpush.bf16.msra.mxu2 %v11349_v34  ;;  %v13503_v51 = vld [vmem:[#allocation15 + $0xd8] sm:$0xf0] }
 0x213   : > { %4767 = vmatpush.bf16.msra.mxu3 %v11605_v0 }
 0x215   : > { %4729 = vmatpush.bf16.msra.mxu0 %v11313_v47  ;;  %4742 = vmatpush.bf16.msra.mxu1 %v11569_v10  ;;  %v16173_v47 = vld [vmem:[%s20052_s14] sm:$0xff] }
 0x216   : > { %4755 = vmatpush.bf16.msra.mxu2 %v11317_v54  ;;  %v4779_v33 = vperm.slane %v16173_v47, 0  ;;  %v4780_v15 = vperm.slane %v16173_v47, 1  ;;  %v4781_v30 = vperm.slane %v16173_v47, 2  ;;  %v4782_v43 = vperm.slane %v16173_v47, 3 }
 0x217   : > { %4768 = vmatpush.bf16.msra.mxu3 %v11573_v36 }
 0x219   : > { %4730 = vmatpush.bf16.msra.mxu0 %v11281_v4  ;;  %4743 = vmatpush.bf16.msra.mxu1 %v11537_v45 }
 0x21a   : > { %4756 = vmatpush.bf16.msra.mxu2 %v11285_v40 }
 0x21b   : > { %4769 = vmatpush.bf16.msra.mxu3 %v11541_v6 }
 0x21d   : > { %4731 = vmatpush.bf16.msra.mxu0 %v11249_v37  ;;  %4744 = vmatpush.bf16.msra.mxu1 %v11505_v8  ;;  %v11831_v37 = vor.u32 %v13508_v59, %v11830_v28  ;;  %v13501_v28 = vld [vmem:[#allocation15 + $0xcc] sm:$0xf]  ;;  %v11812_v59 = vld [vmem:[#allocation15 + $0xdc] sm:$0xf0] }
 0x21e   : > { %4757 = vmatpush.bf16.msra.mxu2 %v11253_v44  ;;  %v12011_v44 = vor.u32 %v13553_v57, %v12010_v46  ;;  %v11930_v46 = vld [vmem:[#allocation15 + $0x1b8] sm:$0xf]  ;;  %v13533_v57 = vld [vmem:[#allocation15 + $0x1c8] sm:$0xf0] }
 0x21f   : > { %4770 = vmatpush.bf16.msra.mxu3 %v11509_v38 }
 0x220   : > { %v3886_v19 = vpop.f32.mrf.mxu0 }
 0x221   : > { %4732 = vmatpush.bf16.msra.mxu0 %v11217_v35  ;;  %4745 = vmatpush.bf16.msra.mxu1 %v11473_v56  ;;  %v3899_v60 = vpop.f32.mrf.mxu1  ;;  %v11811_v35 = vor.u32 %v13503_v51, %v11810_v17  ;;  %v11990_v56 = vld [vmem:[#allocation15 + $0x230] sm:$0xf]  ;;  %v4784_v17 = vperm.slane %v16173_v47, 5  ;;  %v11931_v51 = vor.u32 %v13533_v57, %v11930_v46 }
 0x222   : > { %4758 = vmatpush.bf16.msra.mxu2 %v11221_v14  ;;  %v16166_v34 = vadd.f32 %v3899_v60, %v3886_v19  ;;  %v13548_v19 = vld [vmem:[#allocation15 + $0x240] sm:$0xf0] }
 0x223   : > { %4771 = vmatpush.bf16.msra.mxu3 %v11477_v18 }
 0x224   : > { %4733 = vmatmul.bf16.vlgmr.msra.gmra.mxu0 %v16137_v11  ;;  %4746 = vmatmul.bf16.vlgmr.msra.gmra.mxu1 %v16139_v20 }
 0x225   : > { %4759 = vmatmul.bf16.vlgmr.msra.gmra.mxu2 %v16137_v11  ;;  %5486 = vmatpush.bf16.msrb.mxu0 %v11851_v1  ;;  %v12015_v1 = vor.u32 %v13551_v25, %v12012_v32 }
 0x226   : > { %4772 = vmatmul.bf16.vlgmr.msra.gmra.mxu3 %v16139_v20  ;;  %5499 = vmatpush.bf16.msrb.mxu1 %v12011_v44 }
 0x227   : > { %5525 = vmatpush.bf16.msrb.mxu3 %v12015_v1 }
 0x228   : > { %v3912_v0 = vpop.f32.mrf.mxu2  ;;  %v3888_v53 = vpop.f32.mrf.mxu0 }
 0x229   : > { %v3925_v12 = vpop.f32.mrf.mxu3  ;;  %v3901_v26 = vpop.f32.mrf.mxu1  ;;  %5487 = vmatpush.bf16.msrb.mxu0 %v11831_v37  ;;  %v13498_v53 = vld [vmem:[#allocation15 + $0xb0] sm:$0xf0] }
 0x22a   : > { %v16168_v2 = vadd.f32 %v3925_v12, %v3912_v0  ;;  %v11991_v0 = vor.u32 %v13548_v19, %v11990_v56  ;;  %v11790_v12 = vld [vmem:[#allocation15 + $0xa0] sm:$0xf] }
 0x22c   : > { %5500 = vmatpush.bf16.msrb.mxu1 %v11991_v0 }
 0x22d   : > { %5488 = vmatpush.bf16.msrb.mxu0 %v11811_v35 }
 0x230   : > { %v3914_v27 = vpop.f32.mrf.mxu2 }
 0x231   : > { %v3927_v39 = vpop.f32.mrf.mxu3  ;;  %v13511_v27 = vld [vmem:[#allocation15 + $0x11c] sm:$0xf] }
 0x232   : > { %v11852_v39 = vld [vmem:[#allocation15 + $0x12c] sm:$0xf0] }
 0x255   : > { %v4578_v11 = vpop.f32.mrf.mxu0 }
 0x256   : > { %v4579_v20 = vadd.f32 %v4578_v11, %v16098_v3  ;;  %v11855_v11 = vor.u32 %v13511_v27, %v11852_v39  ;;  %v11792_v27 = vld [vmem:[#allocation15 + $0xb4] sm:$0xf0] }
 0x257   : > { %v4591_v10 = vpop.f32.mrf.mxu1 }
 0x258   : > { %v4592_v48 = vadd.f32 %v4591_v10, %v4579_v20  ;;  %v11970_v10 = vld [vmem:[#allocation15 + $0x208] sm:$0xf]  ;;  %v13543_v20 = vld [vmem:[#allocation15 + $0x218] sm:$0xf0]  ;;  %5512 = vmatpush.bf16.msrb.mxu2 %v11855_v11 }
 0x25a   : > { %v4795_v54 = vadd.f32 %v4779_v33, %v4592_v48 }
 0x25b   : > { %v4604_v9 = vpop.f32.mrf.mxu2 }
 0x25c   : > { %v11702_v36 = vmul.f32 -1.442695, %v4795_v54  ;;  %v4605_v42 = vadd.f32 %v4604_v9, %v16125_v50  ;;  %v11971_v54 = vor.u32 %v13543_v20, %v11970_v10 }
 0x25d   : > { %v4580_v24 = vpop.f32.mrf.mxu0 }
 0x25e   : > { %13972 = vpow2.f32 %v11702_v36  ;;  %5501 = vmatpush.bf16.msrb.mxu1 %v11971_v54 }
 0x25f   : > { %v4617_v58 = vpop.f32.mrf.mxu3  ;;  %v4593_v21 = vpop.f32.mrf.mxu1 }
 0x260   : > { %v4618_v16 = vadd.f32 %v4617_v58, %v4605_v42  ;;  %v11770_v42 = vld [vmem:[#allocation15 + $0x78] sm:$0xf]  ;;  %v13506_v21 = vld [vmem:[#allocation15 + $0xf4] sm:$0xf] }
 0x262   : > { %v4796_v52 = vadd.f32 %v4780_v15, %v4618_v16  ;;  %v13493_v15 = vld [vmem:[#allocation15 + $0x88] sm:$0xf0]  ;;  %v11832_v16 = vld [vmem:[#allocation15 + $0x104] sm:$0xf0] }
 0x263   : > { %v4606_v45 = vpop.f32.mrf.mxu2 }
 0x264   : > { %v11703_v4 = vmul.f32 -1.442695, %v4796_v52  ;;  %v13973_v3 = vpop.eup %13972  ;;  %v11771_v52 = vor.u32 %v13493_v15, %v11770_v42  ;;  %v11950_v45 = vld [vmem:[#allocation15 + $0x1e0] sm:$0xf]  ;;  %v13528_v42 = vld [vmem:[#allocation15 + $0x1a0] sm:$0xf0] }
 0x265   : > { %v4630_v40 = vpop.f32.mrf.mxu0  ;;  %v16180_v50 = vadd.f32 1.0, %v13973_v3  ;;  %v13541_v15 = vld [vmem:[#allocation15 + $0x20c] sm:$0xf] }
 0x266   : > { %13974 = vpow2.f32 %v11703_v4  ;;  %v4631_v55 = vadd.f32 %v4630_v40, %v16146_v61  ;;  %v11835_v4 = vor.u32 %v13506_v21, %v11832_v16  ;;  %v11750_v40 = vld [vmem:[#allocation15 + $0x50] sm:$0xf] }
 0x267   : > { %v4619_v29 = vpop.f32.mrf.mxu3  ;;  %v4643_v6 = vpop.f32.mrf.mxu1  ;;  %13976 = vrcp.f32 %v16180_v50  ;;  %v4820_v37 = vand.u32 2147483647, %v16180_v50  ;;  %vm4816_vm10 = vweird.f32 %v16180_v50 }
 0x268   : > { %v4644_v7 = vadd.f32 %v4643_v6, %v4631_v55  ;;  %v13538_v29 = vld [vmem:[#allocation15 + $0x1f0] sm:$0xf0]  ;;  %5513 = vmatpush.bf16.msrb.mxu2 %v11835_v4  ;;  %v13488_v6 = vld [vmem:[#allocation15 + $0x60] sm:$0xf0]  ;;  %v4822_v55 = vand.u32 2147483648, %v16180_v50 }
 0x269   : > { %v11951_v13 = vor.u32 %v13538_v29, %v11950_v45  ;;  %vm16228_vm13 = vcmp.eq.f32.partialorder %v4820_v37, 8.507059e+37  ;;  %v11972_v4 = vld [vmem:[#allocation15 + $0x21c] sm:$0xf0] }
 0x26a   : > { %v4797_v8 = vadd.f32 %v4781_v30, %v4644_v7  ;;  %v11751_v7 = vor.u32 %v13488_v6, %v11750_v40  ;;  %v16215_v0 = vor.u32 1.1754944e-38, %v4822_v55  ;;  %v11710_v45 = vld [vmem:[#allocation15] sm:$0xf]  ;;  %v11975_v40 = vor.u32 %v13541_v15, %v11972_v4  ;;  %v13478_v6 = vld [vmem:[#allocation15 + $0x10] sm:$0xf0] }
 0x26b   : > { %v4656_v49 = vpop.f32.mrf.mxu2  ;;  %5502 = vmatpush.bf16.msrb.mxu1 %v11951_v13  ;;  %v13491_v55 = vld [vmem:[#allocation15 + $0x7c] sm:$0xf]  ;;  %v11858_v37 = vld [vmem:[#allocation15 + $0x120] sm:$0xf] }
 0x26c   : > { %v13975_v38 = vpop.eup %13974  ;;  %v11704_v5 = vmul.f32 -1.442695, %v4797_v8  ;;  %v4657_v61 = vadd.f32 %v4656_v49, %v16152_v41  ;;  %v11791_v41 = vor.u32 %v13498_v53, %v11790_v12  ;;  %v11815_v8 = vor.u32 %v13501_v28, %v11812_v59  ;;  %v11730_v12 = vld [vmem:[#allocation15 + $0x28] sm:$0xf]  ;;  %v13483_v53 = vld [vmem:[#allocation15 + $0x38] sm:$0xf0] }
 0x26d   : > { %v4632_v31 = vpop.f32.mrf.mxu0  ;;  %v16186_v14 = vadd.f32 1.0, %v13975_v38  ;;  %v16188_v60 = vpop.eup %13976  ;;  %v4783_v49 = vperm.slane %v16173_v47, 4  ;;  %v11731_v20 = vor.u32 %v13483_v53, %v11730_v12  ;;  %v11711_v28 = vor.u32 %v13478_v6, %v11710_v45  ;;  %v11772_v59 = vld [vmem:[#allocation15 + $0x8c] sm:$0xf0]  ;;  %v13531_v15 = vld [vmem:[#allocation15 + $0x1bc] sm:$0xf] }
 0x26e   : > { %13978 = vpow2.f32 %v11704_v5  ;;  %v4812_v33 = vmul.f32 %v16188_v60, %v16180_v50  ;;  %5489 = vmatpush.bf16.msrb.mxu0 %v11791_v41  ;;  %5514 = vmatpush.bf16.msrb.mxu2 %v11815_v8  ;;  %vm4817_vm11 = vweird.f32 %v16188_v60  ;;  %v13496_v41 = vld [vmem:[#allocation15 + $0xa4] sm:$0xf]  ;;  %v13514_v8 = vld [vmem:[#allocation15 + $0x130] sm:$0xf0]  ;;  %v11932_v45 = vld [vmem:[#allocation15 + $0x1cc] sm:$0xf0] }
 0x26f   : > { %v4669_v23 = vpop.f32.mrf.mxu3  ;;  %v4645_v63 = vpop.f32.mrf.mxu1  ;;  %13980 = vrcp.f32 %v16186_v14  ;;  %vm4831_vm12 = vweird.f32 %v16186_v14  ;;  %5503 = vmatpush.bf16.msrb.mxu1 %v11931_v51  ;;  %v4835_v11 = vand.u32 2147483647, %v16186_v14  ;;  %v4837_v10 = vand.u32 2147483648, %v16186_v14  ;;  %vm16239_vm0 = vmor %vm4816_vm10, %vm4817_vm11  ;;  %v13536_v51 = vld [vmem:[#allocation15 + $0x1e4] sm:$0xf] }
 0x270   : > { %v4670_v18 = vadd.f32 %v4669_v23, %v4657_v61  ;;  %v4813_v3 = vsub.f32 1.0, %v4812_v33  ;;  %v13546_v61 = vld [vmem:[#allocation15 + $0x234] sm:$0xf]  ;;  %v11910_v33 = vld [vmem:[#allocation15 + $0x190] sm:$0xf]  ;;  %v11935_v6 = vor.u32 %v13531_v15, %v11932_v45 }
 0x271   : > { %vm16299_vm9 = vcmp.eq.f32.partialorder %v4835_v11, 8.507059e+37  ;;  %v11998_v11 = vld [vmem:[#allocation15 + $0x238] sm:$0xf]  ;;  %v13539_v45 = vld [vmem:[#allocation15 + $0x1f8] sm:$0xf0] }
 0x272   : > { %v4798_v26 = vadd.f32 %v4782_v43, %v4670_v18  ;;  %5490 = vmatpush.bf16.msrb.mxu0 %v11771_v52  ;;  %v4814_v23 = vmul.f32 %v16188_v60, %v4813_v3  ;;  %v11992_v43 = vld [vmem:[#allocation15 + $0x244] sm:$0xf0]  ;;  %v11911_v52 = vor.u32 %v13528_v42, %v11910_v33  ;;  %v11838_v33 = vld [vmem:[#allocation15 + $0xf8] sm:$0xf]  ;;  %v13518_v42 = vld [vmem:[#allocation15 + $0x150] sm:$0xf0] }
 0x273   : > { %v4658_v9 = vpop.f32.mrf.mxu2  ;;  %v11995_v56 = vor.u32 %v13546_v61, %v11992_v43  ;;  %v13554_v3 = vld [vmem:[#allocation15 + $0x270] sm:$0xf0] }
 0x274   : > { %v11705_v48 = vmul.f32 -1.442695, %v4798_v26  ;;  %v13979_v36 = vpop.eup %13978  ;;  %5504 = vmatpush.bf16.msrb.mxu1 %v11911_v52 }
 0x275   : > { %v16193_v24 = vadd.f32 1.0, %v13979_v36  ;;  %v16196_v30 = vpop.eup %13980  ;;  %5526 = vmatpush.bf16.msrb.mxu3 %v11995_v56  ;;  %v16226_v36 = vadd.f32 %v16188_v60, %v4814_v23  ;;  %v13523_v23 = vld [vmem:[#allocation15 + $0x178] sm:$0xf0] }
 0x276   : > { %13982 = vpow2.f32 %v11705_v48  ;;  %v16205_v31 = vmul.f32 %v16196_v30, %v16186_v14  ;;  %5491 = vmatpush.bf16.msrb.mxu0 %v11751_v7  ;;  %vm4832_vm14 = vweird.f32 %v16196_v30 }
 0x277   : > { %v4671_v58 = vpop.f32.mrf.mxu3  ;;  %13984 = vrcp.f32 %v16193_v24  ;;  %v4860_v19 = vand.u32 2147483648, %v16193_v24  ;;  %vm4854_vm3 = vweird.f32 %v16193_v24  ;;  %v4819_v12 = vsel %vm16239_vm0, %v16188_v60, %v16226_v36  ;;  %vm16280_vm5 = vmor %vm4831_vm12, %vm4832_vm14  ;;  %v13544_v60 = vld [vmem:[#allocation15 + $0x220] sm:$0xf0] }
 0x278   : > { %v4828_v48 = vsub.f32 1.0, %v16205_v31  ;;  %v11795_v58 = vor.u32 %v13496_v41, %v11792_v27  ;;  %v4921_v31 = vld.sshfl [vmem:[#allocation1] sm:$0xff pattern:$0x73625140]  ;;  %v11752_v41 = vld [vmem:[#allocation15 + $0x64] sm:$0xf0]  ;;  %v4824_v52 = vsel %vm16228_vm13, %v16215_v0, %v4819_v12 }
 0x279   : > { %v4861_v21 = vor.u32 1.1754944e-38, %v4860_v19  ;;  %5527 = vmatpush.bf16.msrb.mxu3 %v11975_v40  ;;  %v11952_v19 = vld [vmem:[#allocation15 + $0x1f4] sm:$0xf0]  ;;  %v13499_v12 = vld [vmem:[#allocation15 + $0xb8] sm:$0xf0] }
 0x27a   : > { %5492 = vmatpush.bf16.msrb.mxu0 %v11731_v20  ;;  %5515 = vmatpush.bf16.msrb.mxu2 %v11795_v58 }
 0x27c   : > { %v13983_v44 = vpop.eup %13982 }
 0x27d   : > { %v16207_v63 = vadd.f32 1.0, %v13983_v44  ;;  %v16210_v18 = vpop.eup %13984  ;;  %v4829_v44 = vmul.f32 %v16196_v30, %v4828_v48  ;;  %v13509_v48 = vld [vmem:[#allocation15 + $0x108] sm:$0xf0] }
 0x27e   : > { %v4850_v26 = vmul.f32 %v16210_v18, %v16193_v24  ;;  %vm4855_vm15 = vweird.f32 %v16210_v18  ;;  %5493 = vmatpush.bf16.msrb.mxu0 %v11711_v28  ;;  %v11839_v58 = vor.u32 %v13509_v48, %v11838_v33  ;;  %v11778_v48 = vld [vmem:[#allocation15 + $0x80] sm:$0xf] }
 0x27f   : > { %13986 = vrcp.f32 %v16207_v63  ;;  %vm16257_vm4 = vmor %vm4854_vm3, %vm4855_vm15  ;;  %v4875_v43 = vand.u32 2147483648, %v16207_v63  ;;  %v4873_v53 = vand.u32 2147483647, %v16207_v63  ;;  %v4830_v36 = vadd.f32 %v16196_v30, %v4829_v44 }
 0x280   : > { %v4851_v54 = vsub.f32 1.0, %v4850_v26  ;;  %v11955_v26 = vor.u32 %v13536_v51, %v11952_v19  ;;  %vm4869_vm7 = vweird.f32 %v16207_v63 }
 0x281   : > { %v4682_v38 = vpop.f32.mrf.mxu0  ;;  %v4695_v5 = vpop.f32.mrf.mxu1  ;;  %v4876_v9 = vor.u32 1.1754944e-38, %v4875_v43  ;;  %vm4874_vm10 = vcmp.eq.f32.partialorder %v4873_v53, 8.507059e+37  ;;  %v13476_v43 = vld [vmem:[#allocation15 + $0x4] sm:$0xf] }
 0x282   : > { %v4683_v35 = vadd.f32 %v4682_v38, %v16158_v22  ;;  %v4858_v22 = vand.u32 2147483647, %v16193_v24  ;;  %v4852_v29 = vmul.f32 %v16210_v18, %v4851_v54  ;;  %v11775_v38 = vor.u32 %v13491_v55, %v11772_v59  ;;  %5528 = vmatpush.bf16.msrb.mxu3 %v11955_v26  ;;  %v11860_v26 = vld [vmem:[#allocation15 + $0x134] sm:$0xf0] }
 0x284   : > { %v4696_v39 = vadd.f32 %v4695_v5, %v4683_v35  ;;  %vm16243_vm2 = vcmp.eq.f32.partialorder %v4858_v22, 8.507059e+37  ;;  %v4853_v57 = vadd.f32 %v16210_v18, %v4852_v29  ;;  %v11859_v5 = vor.u32 %v13514_v8, %v11858_v37  ;;  %5516 = vmatpush.bf16.msrb.mxu2 %v11775_v38  ;;  %v13486_v22 = vld [vmem:[#allocation15 + $0x54] sm:$0xf]  ;;  %v12018_v29 = vld [vmem:[#allocation15 + $0x260] sm:$0xf] }
 0x285   : > { %v16249_v46 = vpop.eup %13986  ;;  %v12019_v55 = vor.u32 %v13554_v3, %v12018_v29  ;;  %v13504_v37 = vld [vmem:[#allocation15 + $0xe0] sm:$0xf0]  ;;  %v13526_v38 = vld [vmem:[#allocation15 + $0x194] sm:$0xf] }
 0x286   : > { %v4799_v16 = vadd.f32 %v4783_v49, %v4696_v39  ;;  %v11890_v49 = vld [vmem:[#allocation15 + $0x168] sm:$0xf]  ;;  %v4865_v61 = vmul.f32 %v16249_v46, %v16207_v63  ;;  %v4857_v24 = vsel %vm16257_vm4, %v16210_v18, %v4853_v57  ;;  %5538 = vmatpush.bf16.msra.mxu0 %v11859_v5  ;;  %v11755_v18 = vor.u32 %v13486_v22, %v11752_v41  ;;  %v13521_v41 = vld [vmem:[#allocation15 + $0x16c] sm:$0xf]  ;;  %v13552_v29 = vld [vmem:[#allocation15 + $0x264] sm:$0xf] }
 0x287   : > { %v11891_v56 = vor.u32 %v13523_v23, %v11890_v49  ;;  %v4862_v39 = vsel %vm16243_vm2, %v4861_v21, %v4857_v24  ;;  %vm4870_vm6 = vweird.f32 %v16249_v46  ;;  %v4834_v57 = vsel %vm16280_vm5, %v16196_v30, %v4830_v36  ;;  %5529 = vmatpush.bf16.msrb.mxu3 %v11935_v6  ;;  %v11912_v5 = vld [vmem:[#allocation15 + $0x1a4] sm:$0xf0]  ;;  %v13512_v24 = vld [vmem:[#allocation15 + $0x124] sm:$0xf]  ;;  %v11938_v63 = vld [vmem:[#allocation15 + $0x1c0] sm:$0xf] }
 0x288   : > { %13988 = vtanh.f32 %v4799_v16  ;;  %v4866_v27 = vsub.f32 1.0, %v4865_v61  ;;  %v4925_v54 = vmul.f32 %v4921_v31, %v4862_v39  ;;  %5517 = vmatpush.bf16.msrb.mxu2 %v11755_v18  ;;  %vm16293_vm8 = vmor %vm4869_vm7, %vm4870_vm6  ;;  %v4838_v49 = vor.u32 1.1754944e-38, %v4837_v10  ;;  %v11712_v31 = vld [vmem:[#allocation15 + $0x14] sm:$0xf0]  ;;  %v11978_v39 = vld [vmem:[#allocation15 + $0x210] sm:$0xf] }
 0x289   : > { %v4721_v32 = vpop.f32.mrf.mxu3  ;;  %v4684_v50 = vpop.f32.mrf.mxu0  ;;  %5505 = vmatpush.bf16.msrb.mxu1 %v11891_v56  ;;  %v11915_v51 = vor.u32 %v13526_v38, %v11912_v5  ;;  %v11715_v10 = vor.u32 %v13476_v43, %v11712_v31  ;;  %v11863_v22 = vor.u32 %v13512_v24, %v11860_v26  ;;  %v11979_v33 = vor.u32 %v13544_v60, %v11978_v39  ;;  %v12000_v38 = vld [vmem:[#allocation15 + $0x24c] sm:$0xf0]  ;;  %v11918_v43 = vld [vmem:[#allocation15 + $0x198] sm:$0xf]  ;;  %v13529_v31 = vld [vmem:[#allocation15 + $0x1a8] sm:$0xf0] }
 0x28a   : > { %v4708_v13 = vpop.f32.mrf.mxu2  ;;  %v4697_v7 = vpop.f32.mrf.mxu1  ;;  %v4867_v16 = vmul.f32 %v16249_v46, %v4866_v27  ;;  %5539 = vmatpush.bf16.msra.mxu0 %v11839_v58  ;;  %v11732_v50 = vld [vmem:[#allocation15 + $0x3c] sm:$0xf0]  ;;  %v4839_v19 = vsel %vm16299_vm9, %v4838_v49, %v4834_v57  ;;  %v13507_v58 = vld [vmem:[#allocation15 + $0xfc] sm:$0xf]  ;;  %v13484_v49 = vld [vmem:[#allocation15 + $0x40] sm:$0xf0] }
 0x28b   : > { %v4709_v1 = vadd.f32 %v4708_v13, %v16160_v62  ;;  %v4922_v13 = vld.sshfl [vmem:[#allocation1 + $0x8] sm:$0xff pattern:$0x73625140]  ;;  %v11818_v7 = vld [vmem:[#allocation15 + $0xd0] sm:$0xf]  ;;  %5530 = vmatpush.bf16.msrb.mxu3 %v11915_v51  ;;  %v4786_v39 = vperm.slane %v16173_v47, 7 }
 0x28c   : > { %v4868_v28 = vadd.f32 %v16249_v46, %v4867_v16  ;;  %v11819_v44 = vor.u32 %v13504_v37, %v11818_v7  ;;  %v13549_v62 = vld [vmem:[#allocation15 + $0x248] sm:$0xf0]  ;;  %v11892_v27 = vld [vmem:[#allocation15 + $0x17c] sm:$0xf0]  ;;  %v11872_v16 = vld [vmem:[#allocation15 + $0x154] sm:$0xf0] }
 0x28d   : > { %v4722_v35 = vadd.f32 %v4721_v32, %v4709_v1  ;;  %v13481_v1 = vld [vmem:[#allocation15 + $0x2c] sm:$0xf]  ;;  %v11999_v30 = vor.u32 %v13549_v62, %v11998_v11  ;;  %v4785_v37 = vperm.slane %v16173_v47, 6  ;;  %v11738_v11 = vld [vmem:[#allocation15 + $0x30] sm:$0xf]  ;;  %vm20072_vm4 = vcmask 1045508  }
 0x28e   : > { %v13989_v21 = vpop.eup %13988  ;;  %v11735_v59 = vor.u32 %v13481_v1, %v11732_v50  ;;  %v4872_v23 = vsel %vm16293_vm8, %v16249_v46, %v4868_v28  ;;  %5540 = vmatpush.bf16.msra.mxu0 %v11819_v44  ;;  %v13502_v1 = vld [vmem:[#allocation15 + $0xd4] sm:$0xf]  ;;  %v11820_v50 = vld [vmem:[#allocation15 + $0xe4] sm:$0xf0]  ;;  %v13547_v44 = vld [vmem:[#allocation15 + $0x23c] sm:$0xf]  ;;  %v11739_v51 = vor.u32 %v13484_v49, %v11738_v11 }
 0x28f   : > { %v4800_v20 = vadd.f32 %v4784_v17, %v4722_v35  ;;  %v11870_v17 = vld [vmem:[#allocation15 + $0x140] sm:$0xf]  ;;  %v4927_v25 = vmul.f32 %v13989_v21, %v4824_v52  ;;  %v4877_v61 = vsel %vm4874_vm10, %v4876_v9, %v4872_v23  ;;  %v11798_v35 = vld [vmem:[#allocation15 + $0xa8] sm:$0xf]  ;;  %v13516_v21 = vld [vmem:[#allocation15 + $0x144] sm:$0xf]  ;;  %v11823_v9 = vor.u32 %v13502_v1, %v11820_v50 }
 0x290   : > { %v11871_v4 = vor.u32 %v13518_v42, %v11870_v17  ;;  %5518 = vmatpush.bf16.msrb.mxu2 %v11735_v59  ;;  %v4926_v14 = vmul.f32 %v4922_v13, %v4877_v61  ;;  %v11799_v53 = vor.u32 %v13499_v12, %v11798_v35  ;;  %v11840_v17 = vld [vmem:[#allocation15 + $0x10c] sm:$0xf0]  ;;  %v11875_v52 = vor.u32 %v13516_v21, %v11872_v16  ;;  %v11758_v13 = vld [vmem:[#allocation15 + $0x58] sm:$0xf]  ;;  %v13534_v28 = vld [vmem:[#allocation15 + $0x1d0] sm:$0xf0] }
 0x291   : > { %13990 = vtanh.f32 %v4800_v20  ;;  %v4723_v40 = vpop.f32.mrf.mxu3  ;;  %v16304_v8 = vadd.f32 %v4927_v25, %v4925_v54  ;;  %v11895_v20 = vor.u32 %v13521_v41, %v11892_v27  ;;  %v13494_v54 = vld [vmem:[#allocation15 + $0x90] sm:$0xf0]  ;;  %v11843_v15 = vor.u32 %v13507_v58, %v11840_v17  ;;  %v12020_v25 = vld [vmem:[#allocation15 + $0x274] sm:$0xf0]  ;;  %v13497_v62 = vld [vmem:[#allocation15 + $0xac] sm:$0xf] }
 0x292   : > { %v4710_v32 = vpop.f32.mrf.mxu2  ;;  %5506 = vmatpush.bf16.msrb.mxu1 %v11871_v4  ;;  %5541 = vmatpush.bf16.msra.mxu0 %v11799_v53  ;;  %v11779_v36 = vor.u32 %v13494_v54, %v11778_v48  ;;  %v11958_v4 = vld [vmem:[#allocation15 + $0x1e8] sm:$0xf]  ;;  %v12023_v6 = vor.u32 %v13552_v29, %v12020_v25  ;;  %v11939_v57 = vor.u32 %v13534_v28, %v11938_v63  ;;  %v11800_v61 = vld [vmem:[#allocation15 + $0xbc] sm:$0xf0]  ;;  %v13479_v12 = vld [vmem:[#allocation15 + $0x18] sm:$0xf0] }
 0x293   : > { %5531 = vmatpush.bf16.msrb.mxu3 %v11895_v20  ;;  %v11959_v3 = vor.u32 %v13539_v45, %v11958_v4  ;;  %v13489_v32 = vld [vmem:[#allocation15 + $0x68] sm:$0xf0]  ;;  %v12003_v5 = vor.u32 %v13547_v44, %v12000_v38  ;;  %v11780_v41 = vld [vmem:[#allocation15 + $0x94] sm:$0xf0]  ;;  %v11898_v48 = vld [vmem:[#allocation15 + $0x170] sm:$0xf] }
 0x294   : > { %5519 = vmatpush.bf16.msrb.mxu2 %v11715_v10  ;;  %v11718_v10 = vld [vmem:[#allocation15 + $0x8] sm:$0xf]  ;;  %v13524_v54 = vld [vmem:[#allocation15 + $0x180] sm:$0xf0]  ;;  %v11960_v58 = vld [vmem:[#allocation15 + $0x1fc] sm:$0xf0] }
 0x295   : > { %v11719_v53 = vor.u32 %v13479_v12, %v11718_v10  ;;  %v13487_v21 = vld [vmem:[#allocation15 + $0x5c] sm:$0xf]  ;;  %v11760_v16 = vld [vmem:[#allocation15 + $0x6c] sm:$0xf0]  ;;  %v11878_v47 = vld [vmem:[#allocation15 + $0x148] sm:$0xf] }
 0x296   : > { %5551 = vmatpush.bf16.msra.mxu1 %v12019_v55  ;;  %5542 = vmatpush.bf16.msra.mxu0 %v11779_v36  ;;  %v11759_v55 = vor.u32 %v13489_v32, %v11758_v13  ;;  %v13537_v36 = vld [vmem:[#allocation15 + $0x1ec] sm:$0xf]  ;;  %v13519_v4 = vld [vmem:[#allocation15 + $0x158] sm:$0xf0]  ;;  %v13532_v29 = vld [vmem:[#allocation15 + $0x1c4] sm:$0xf] }
 0x297   : > { %v13991_v56 = vpop.eup %13990  ;;  %5532 = vmatpush.bf16.msrb.mxu3 %v11875_v52  ;;  %v11879_v45 = vor.u32 %v13519_v4, %v11878_v47  ;;  %v11740_v1 = vld [vmem:[#allocation15 + $0x44] sm:$0xf0]  ;;  %v13477_v28 = vld [vmem:[#allocation15 + $0xc] sm:$0xf]  ;;  %vm20071_vm5 = vcmask 1043456   ;;  %vm20077_vm6 = vcmask 17408  }
 0x298   : > { %v4928_v46 = vmul.f32 %v13991_v56, %v4839_v19  ;;  %5564 = vmatpush.bf16.msra.mxu2 %v11863_v22  ;;  %v11919_v56 = vor.u32 %v13529_v31, %v11918_v43  ;;  %v11980_v19 = vld [vmem:[#allocation15 + $0x224] sm:$0xf0]  ;;  %v13492_v22 = vld [vmem:[#allocation15 + $0x84] sm:$0xf]  ;;  %vm20074_vm7 = vcmask 41984   ;;  %vm20076_vm8 = vcmask 1041409  }
 0x299   : > { %v11900_v44 = vld [vmem:[#allocation15 + $0x184] sm:$0xf0]  ;;  %vm5730_vm9 = vcmask 516096  }
 0x29a   : > { %5552 = vmatpush.bf16.msra.mxu1 %v11999_v30  ;;  %v16316_v18 = vadd.f32 %v4928_v46, %v4926_v14  ;;  %5543 = vmatpush.bf16.msra.mxu0 %v11759_v55  ;;  %v11803_v30 = vor.u32 %v13497_v62, %v11800_v61  ;;  %v13482_v55 = vld [vmem:[#allocation15 + $0x34] sm:$0xf]  ;;  %v11866_v12 = vld [vmem:[#allocation15 + $0x128] sm:$0xf] }
 0x29b   : > { %5577 = vmatpush.bf16.msra.mxu3 %v12023_v6 }
 0x29c   : > { %v4956_v42 = vrot.slane %v16316_v18, 6  ;;  %5565 = vmatpush.bf16.msra.mxu2 %v11843_v15  ;;  %v11963_v15 = vor.u32 %v13537_v36, %v11960_v58  ;;  %v12026_v58 = vld [vmem:[#allocation15 + $0x268] sm:$0xf] }
 0x29e   : > { %5553 = vmatpush.bf16.msra.mxu1 %v11979_v33  ;;  %v4957_v40 = vsel %vm20073_vm1, %v16304_v8, %v4956_v42  ;;  %5544 = vmatpush.bf16.msra.mxu0 %v11739_v51  ;;  %v11783_v33 = vor.u32 %v13492_v22, %v11780_v41  ;;  %v11899_v42 = vor.u32 %v13524_v54, %v11898_v48  ;;  %v11880_v51 = vld [vmem:[#allocation15 + $0x15c] sm:$0xf0] }
 0x29f   : > { %4959 = vst [vmem:[#allocation5] sm:$0xf] %v4957_v40  ;;  %5578 = vmatpush.bf16.msra.mxu3 %v12003_v5 }
 0x2a0   : > { %5566 = vmatpush.bf16.msra.mxu2 %v11823_v9  ;;  %v11920_v9 = vld [vmem:[#allocation15 + $0x1ac] sm:$0xf0] }
 0x2a1   : > { %v4734_v7 = vpop.f32.mrf.mxu0  ;;  %v4747_v0 = vpop.f32.mrf.mxu1 }
 0x2a2   : > { %5554 = vmatpush.bf16.msra.mxu1 %v11959_v3  ;;  %v4735_v59 = vadd.f32 %v4734_v7, %v16166_v34  ;;  %v13542_v34 = vld [vmem:[#allocation15 + $0x214] sm:$0xf]  ;;  %5545 = vmatpush.bf16.msra.mxu0 %v11719_v53  ;;  %v11940_v3 = vld [vmem:[#allocation15 + $0x1d4] sm:$0xf0]  ;;  %v11743_v7 = vor.u32 %v13482_v55, %v11740_v1 }
 0x2a3   : > { %v11983_v14 = vor.u32 %v13542_v34, %v11980_v19  ;;  %v11943_v13 = vor.u32 %v13532_v29, %v11940_v3  ;;  %v12006_v29 = vld [vmem:[#allocation15 + $0x240] sm:$0xf]  ;;  %v13550_v3 = vld [vmem:[#allocation15 + $0x250] sm:$0xf0]  ;;  %v11986_v1 = vld [vmem:[#allocation15 + $0x218] sm:$0xf] }
 0x2a4   : > { %v4748_v23 = vadd.f32 %v4747_v0, %v4735_v59  ;;  %5567 = vmatpush.bf16.msra.mxu2 %v11803_v30  ;;  %v13527_v0 = vld [vmem:[#allocation15 + $0x19c] sm:$0xf]  ;;  %v11720_v59 = vld [vmem:[#allocation15 + $0x1c] sm:$0xf0] }
 0x2a5   : > { %5579 = vmatpush.bf16.msra.mxu3 %v11983_v14  ;;  %v11923_v63 = vor.u32 %v13527_v0, %v11920_v9  ;;  %v11786_v9 = vld [vmem:[#allocation15 + $0x88] sm:$0xf] }
 0x2a6   : > { %5555 = vmatpush.bf16.msra.mxu1 %v11939_v57  ;;  %v4801_v35 = vadd.f32 %v4785_v37, %v4748_v23  ;;  %v11723_v37 = vor.u32 %v13477_v28, %v11720_v59  ;;  %v13522_v57 = vld [vmem:[#allocation15 + $0x174] sm:$0xf]  ;;  %v13517_v23 = vld [vmem:[#allocation15 + $0x14c] sm:$0xf]  ;;  %v14226_v28 = vmov 10  }
 0x2a7   : > { %v11903_v5 = vor.u32 %v13522_v57, %v11900_v44  ;;  %v11883_v61 = vor.u32 %v13517_v23, %v11880_v51  ;;  %13886 = vset.pattern.permute.xlu0 %v14226_v28  ;;  %v11966_v57 = vld [vmem:[#allocation15 + $0x1f0] sm:$0xf]  ;;  %v13540_v44 = vld [vmem:[#allocation15 + $0x200] sm:$0xf0]  ;;  %v11946_v23 = vld [vmem:[#allocation15 + $0x1c8] sm:$0xf] }
 0x2a8   : > { %v11706_v24 = vmul.f32 -1.442695, %v4801_v35  ;;  %v4760_v26 = vpop.f32.mrf.mxu2  ;;  %5568 = vmatpush.bf16.msra.mxu2 %v11783_v33  ;;  %v13510_v33 = vld [vmem:[#allocation15 + $0x110] sm:$0xf0]  ;;  %v13535_v51 = vld [vmem:[#allocation15 + $0x1d8] sm:$0xf0] }
 0x2a9   : > { %v4773_v46 = vpop.f32.mrf.mxu3  ;;  %v4761_v27 = vadd.f32 %v4760_v26, %v16168_v2  ;;  %v4736_v20 = vpop.f32.mrf.mxu0  ;;  %v11763_v2 = vor.u32 %v13487_v21, %v11760_v16  ;;  %5580 = vmatpush.bf16.msra.mxu3 %v11963_v15  ;;  %v11826_v21 = vld [vmem:[#allocation15 + $0xd8] sm:$0xf]  ;;  %v13505_v16 = vld [vmem:[#allocation15 + $0xe8] sm:$0xf0] }
 0x2aa   : > { %v4749_v60 = vpop.f32.mrf.mxu1  ;;  %5556 = vmatpush.bf16.msra.mxu1 %v11919_v56  ;;  %13992 = vpow2.f32 %v11706_v24  ;;  %v13515_v24 = vld [vmem:[#allocation15 + $0x138] sm:$0xf0] }
 0x2ab   : > { %v4774_v17 = vadd.f32 %v4773_v46, %v4761_v27  ;;  %v11867_v27 = vor.u32 %v13515_v24, %v11866_v12  ;;  %v11846_v60 = vld [vmem:[#allocation15 + $0x100] sm:$0xf]  ;;  %v11906_v24 = vld [vmem:[#allocation15 + $0x178] sm:$0xf] }
 0x2ac   : > { %5569 = vmatpush.bf16.msra.mxu2 %v11763_v2 }
 0x2ad   : > { %v4802_v52 = vadd.f32 %v4786_v39, %v4774_v17  ;;  %5581 = vmatpush.bf16.msra.mxu3 %v11943_v13  ;;  %v13555_v17 = vld [vmem:[#allocation15 + $0x278] sm:$0xf0]  ;;  %v13500_v13 = vld [vmem:[#allocation15 + $0xc0] sm:$0xf0] }
 0x2ae   : > { %5557 = vmatpush.bf16.msra.mxu1 %v11899_v42 }
 0x2af   : > { %v11707_v25 = vmul.f32 -1.442695, %v4802_v52  ;;  %v12027_v52 = vor.u32 %v13555_v17, %v12026_v58 }
 0x2b0   : > { %v13993_v32 = vpop.eup %13992  ;;  %v4762_v40 = vpop.f32.mrf.mxu2  ;;  %5570 = vmatpush.bf16.msra.mxu2 %v11743_v7  ;;  %v14225_v7 = vmov 8  }
 0x2b1   : > { %v4775_v6 = vpop.f32.mrf.mxu3  ;;  %v4887_v50 = vadd.f32 1.0, %v13993_v32  ;;  %13994 = vpow2.f32 %v11707_v25  ;;  %5582 = vmatpush.bf16.msra.mxu3 %v11923_v63  ;;  %v11806_v25 = vld [vmem:[#allocation15 + $0xb0] sm:$0xf]  ;;  %v16338_v32 = vld [vmem:[%s20180_s7] sm:$0x3]  ;;  %v12007_v40 = vor.u32 %v13550_v3, %v12006_v29  ;;  %13884 = vset.pattern.permute.xlu1 %v14225_v7  ;;  %s20193_s7 = sld [smem:[#allocation65_spill]] }
 0x2b2   : > { %5558 = vmatpush.bf16.msra.mxu1 %v11879_v45  ;;  %v11827_v45 = vor.u32 %v13505_v16, %v11826_v21  ;;  %v14224_v6 = vmov 9   ;;  %v11807_v55 = vor.u32 %v13500_v13, %v11806_v25  ;;  %v13495_v63 = vld [vmem:[#allocation15 + $0x98] sm:$0xf0]  ;;  %5750 = vperm.xlu1 %13884, %v16338_v32  }
 0x2b3   : > { %13996 = vrcp.f32 %v4887_v50  ;;  %v4900_v43 = vand.u32 2147483648, %v4887_v50  ;;  %v4898_v34 = vand.u32 2147483647, %v4887_v50  ;;  %vm4894_vm12 = vweird.f32 %v4887_v50  ;;  %13885 = vset.pattern.permute.xlu2 %v14224_v6  ;;  %5761 = vperm.xlu0 %13886, %v16338_v32  }
 0x2b4   : > { %5571 = vmatpush.bf16.msra.mxu2 %v11723_v37  ;;  %5755 = vperm.xlu2 %13885, %v16338_v32   ;;  %v11787_v37 = vor.u32 %v13495_v63, %v11786_v9 }
 0x2b5   : > { %5583 = vmatpush.bf16.msra.mxu3 %v11903_v5  ;;  %v4901_v19 = vor.u32 1.1754944e-38, %v4900_v43  ;;  %vm4899_vm14 = vcmp.eq.f32.partialorder %v4898_v34, 8.507059e+37  ;;  %v13490_v5 = vld [vmem:[#allocation15 + $0x70] sm:$0xf0]  ;;  %v14228_v43 = vmov 0  }
 0x2b7   : > { %v13995_v38 = vpop.eup %13994 }
 0x2b8   : > { %v4888_v11 = vadd.f32 1.0, %v13995_v38  ;;  %v11766_v38 = vld [vmem:[#allocation15 + $0x60] sm:$0xf] }
 0x2b9   : > { %v13997_v49 = vpop.eup %13996  ;;  %5584 = vmatpush.bf16.msra.mxu3 %v11883_v61  ;;  %v13485_v61 = vld [vmem:[#allocation15 + $0x48] sm:$0xf0] }
 0x2ba   : > { %v4890_v62 = vmul.f32 %v13997_v49, %v4887_v50  ;;  %13998 = vrcp.f32 %v4888_v11  ;;  %vm4895_vm11 = vweird.f32 %v13997_v49  ;;  %v4913_v39 = vand.u32 2147483647, %v4888_v11  ;;  %v13545_v50 = vld [vmem:[#allocation15 + $0x228] sm:$0xf0] }
 0x2bb   : > { %14000 = vtanh.f32 %v16304_v8  ;;  %vm4896_vm13 = vmor %vm4894_vm12, %vm4895_vm11  ;;  %v4915_v8 = vand.u32 2147483648, %v4888_v11  ;;  %vm4909_vm0 = vweird.f32 %v4888_v11  ;;  %v11987_v59 = vor.u32 %v13545_v50, %v11986_v1 }
 0x2bc   : > { %v4891_v30 = vsub.f32 1.0, %v4890_v62  ;;  %14002 = vtanh.f32 %v16316_v18  ;;  %v11847_v18 = vor.u32 %v13510_v33, %v11846_v60  ;;  %vm4914_vm3 = vcmp.eq.f32.partialorder %v4913_v39, 8.507059e+37  ;;  %v11746_v62 = vld [vmem:[#allocation15 + $0x38] sm:$0xf]  ;;  %13888 = vset.pattern.permute.xlu2 %v14228_v43 }
 0x2bd   : > { %v4916_v54 = vor.u32 1.1754944e-38, %v4915_v8  ;;  %5788 = vperm.xlu2 %13888, %v16338_v32   ;;  %v11747_v34 = vor.u32 %v13485_v61, %v11746_v62  ;;  %v14231_v39 = vmov 2   ;;  %v14232_v60 = vmov 6  }
 0x2be   : > { %v4892_v31 = vmul.f32 %v13997_v49, %v4891_v30  ;;  %v14227_v30 = vmov 11   ;;  %v14233_v33 = vmov 5  }
 0x2bf   : > { %13887 = vset.pattern.permute.xlu1 %v14227_v30  ;;  %13891 = vset.pattern.permute.xlu0 %v14233_v33 }
 0x2c0   : > { %v13999_v35 = vpop.eup %13998  ;;  %v4893_v56 = vadd.f32 %v13997_v49, %v4892_v31  ;;  %5767 = vperm.xlu1 %13887, %v16338_v32   ;;  %v11947_v31 = vor.u32 %v13535_v51, %v11946_v23  ;;  %5816 = vperm.xlu0 %13891, %v16338_v32  }
 0x2c1   : > { %v4905_v14 = vmul.f32 %v13999_v35, %v4888_v11  ;;  %v14001_v26 = vpop.eup %14000  ;;  %vm4910_vm15 = vweird.f32 %v13999_v35  ;;  %v11967_v11 = vor.u32 %v13540_v44, %v11966_v57 }
 0x2c2   : > { %v4897_v10 = vsel %vm4896_vm13, %v13997_v49, %v4893_v56  ;;  %vm4911_vm2 = vmor %vm4909_vm0, %vm4910_vm15  ;;  %v14003_v42 = vpop.eup %14002  ;;  %v11767_v49 = vor.u32 %v13490_v5, %v11766_v38  ;;  %v13530_v56 = vld [vmem:[#allocation15 + $0x1b0] sm:$0xf0] }
 0x2c3   : > { %v4906_v46 = vsub.f32 1.0, %v4905_v14  ;;  %v4902_v53 = vsel %vm4899_vm14, %v4901_v19, %v4897_v10  ;;  %v11726_v19 = vld [vmem:[#allocation15 + $0x10] sm:$0xf]  ;;  %v13480_v14 = vld [vmem:[#allocation15 + $0x20] sm:$0xf0] }
 0x2c4   : > { %v4933_v22 = vmul.f32 %v14001_v26, %v4902_v53  ;;  %v11727_v12 = vor.u32 %v13480_v14, %v11726_v19  ;;  %v13525_v26 = vld [vmem:[#allocation15 + $0x188] sm:$0xf0]  ;;  %v14230_v53 = vmov 4  }
 0x2c5   : > { %v4907_v41 = vmul.f32 %v13999_v35, %v4906_v46  ;;  %v14229_v46 = vmov 1   ;;  %13890 = vset.pattern.permute.xlu2 %v14230_v53  ;;  %v11907_v8 = vor.u32 %v13525_v26, %v11906_v24 }
 0x2c6   : > { %v16327_v20 = vpack.c.bf16 %v4933_v22, %v4933_v22  ;;  %5811 = vperm.xlu2 %13890, %v16338_v32  }
 0x2c7   : > { %v4908_v48 = vadd.f32 %v13999_v35, %v4907_v41  ;;  %v13520_v41 = vld [vmem:[#allocation15 + $0x160] sm:$0xf0] }
 0x2c8   : > { %5494 = vmatmul.bf16.vlgmr.msrb.gmra.mxu0 %v16327_v20  ;;  %5520 = vmatmul.bf16.vlgmr.msrb.gmra.mxu2 %v16327_v20 }
 0x2c9   : > { %5590 = vmatpush.bf16.msrb.mxu0 %v11867_v27  ;;  %v4912_v36 = vsel %vm4911_vm2, %v13999_v35, %v4908_v48  ;;  %v11926_v35 = vld [vmem:[#allocation15 + $0x1a0] sm:$0xf]  ;;  %13889 = vset.pattern.permute.xlu1 %v14229_v46  ;;  %v14234_v48 = vmov 7  }
 0x2ca   : > { %v4917_v15 = vsel %vm4914_vm3, %v4916_v54, %v4912_v36  ;;  %v11927_v10 = vor.u32 %v13530_v56, %v11926_v35  ;;  %5793 = vperm.xlu1 %13889, %v16338_v32   ;;  %v14235_v54 = vmov 3   ;;  %13896 = vset.pattern.permute.xlu0 %v14228_v43 }
 0x2cb   : > { %v4934_v2 = vmul.f32 %v14003_v42, %v4917_v15 }
 0x2cd   : > { %5591 = vmatpush.bf16.msrb.mxu0 %v11847_v18  ;;  %v4950_v47 = vrot.slane %v4934_v2, 6  ;;  %v16331_v4 = vpack.c.bf16 %v4934_v2, %v4934_v2 }
 0x2ce   : > { %13893 = vset.pattern.permute.xlu2 %v14232_v60 }
 0x2cf   : > { %5507 = vmatmul.bf16.vlgmr.msrb.gmra.mxu1 %v16331_v4  ;;  %5533 = vmatmul.bf16.vlgmr.msrb.gmra.mxu3 %v16331_v4  ;;  %v4951_v0 = vsel %vm20073_vm1, %v4933_v22, %v4950_v47  ;;  %v11886_v22 = vld [vmem:[#allocation15 + $0x150] sm:$0xf] }
 0x2d0   : > { %5603 = vmatpush.bf16.msrb.mxu1 %v12027_v52  ;;  %4953 = vst [vmem:[#allocation4] sm:$0xf] %v4951_v0  ;;  %v11887_v27 = vor.u32 %v13520_v41, %v11886_v22  ;;  %5822 = vperm.xlu2 %13893, %v16338_v32  }
 0x2d1   : > { %5592 = vmatpush.bf16.msrb.mxu0 %v11827_v45 }
 0x2d2   : > { %13892 = vset.pattern.permute.xlu1 %v14231_v39 }
 0x2d3   : > { %5799 = vperm.xlu1 %13892, %v16338_v32  }
 0x2d4   : > { %5604 = vmatpush.bf16.msrb.mxu1 %v12007_v40 }
 0x2d5   : > { %5593 = vmatpush.bf16.msrb.mxu0 %v11807_v55 }
 0x2d8   : > { %5605 = vmatpush.bf16.msrb.mxu1 %v11987_v59  ;;  %5546 = vmatmul.bf16.vlgmr.msra.gmra.mxu0 %v16327_v20 }
 0x2d9   : > { %5572 = vmatmul.bf16.vlgmr.msra.gmra.mxu2 %v16327_v20  ;;  %5594 = vmatpush.bf16.msrb.mxu0 %v11787_v37 }
 0x2da   : > { %13895 = vset.pattern.permute.xlu2 %v14234_v48 }
 0x2db   : > { %13894 = vset.pattern.permute.xlu1 %v14235_v54  ;;  %5828 = vperm.xlu2 %13895, %v16338_v32  }
 0x2dc   : > { %5606 = vmatpush.bf16.msrb.mxu1 %v11967_v11  ;;  %5805 = vperm.xlu1 %13894, %v16338_v32  }
 0x2dd   : > { %5595 = vmatpush.bf16.msrb.mxu0 %v11767_v49 }
 0x2df   : > { %5559 = vmatmul.bf16.vlgmr.msra.gmra.mxu1 %v16331_v4  ;;  %5585 = vmatmul.bf16.vlgmr.msra.gmra.mxu3 %v16331_v4 }
 0x2e0   : > { %5607 = vmatpush.bf16.msrb.mxu1 %v11947_v31 }
 0x2e1   : > { %5596 = vmatpush.bf16.msrb.mxu0 %v11747_v34 }
 0x2e3   : > { %13898 = vset.pattern.permute.xlu2 %v14231_v39 }
 0x2e4   : > { %5608 = vmatpush.bf16.msrb.mxu1 %v11927_v10  ;;  %13897 = vset.pattern.permute.xlu1 %v14229_v46 }
 0x2e5   : > { %5597 = vmatpush.bf16.msrb.mxu0 %v11727_v12 }
 0x2e8   : > { %5609 = vmatpush.bf16.msrb.mxu1 %v11907_v8  ;;  %5598 = vmatmul.bf16.vlgmr.msrb.gmra.mxu0 %v16327_v20  ;;  %v5058_v20 = vld [vmem:[%s20181_s3] sm:$0x1f]  ;;  %s20906_s3 = sld [smem:[#allocation70_spill]] }
 0x2e9   : > { %v5060_v36 = vperm.slane %v5058_v20, 0  ;;  %v5062_v37 = vperm.slane %v5058_v20, 2  ;;  %v5063_v11 = vperm.slane %v5058_v20, 3  ;;  %v5064_v51 = vperm.slane %v5058_v20, 4 }
 0x2ea   : > { %v5061_v61 = vperm.slane %v5058_v20, 1  ;;  %v5743_v20 = vld [vmem:[#allocation6] sm:$0x3] }
 0x2ec   : > { %5610 = vmatpush.bf16.msrb.mxu1 %v11887_v27 }
 0x2ef   : > { %5611 = vmatmul.bf16.vlgmr.msrb.gmra.mxu1 %v16331_v4 }
 0x30e   : > { %v16385_v60 = vpop.permute.xlu2 %5755 }
 0x317   : > { %v16389_v48 = vpop.permute.xlu2 %5788 }
 0x324   : > { %v16383_v39 = vpop.permute.xlu1 %5750 }
 0x345   : > { %v5495_v18 = vpop.f32.mrf.mxu0 }
 0x346   : > { %v5496_v58 = vadd.f32 %v5495_v18, %v5060_v36  ;;  %v16394_v36 = vpop.permute.xlu2 %5811 }
 0x34b   : > { %v5521_v17 = vpop.f32.mrf.mxu2 }
 0x34c   : > { %v5508_v42 = vpop.f32.mrf.mxu1  ;;  %v5522_v14 = vadd.f32 %v5521_v17, %v5061_v61 }
 0x34d   : > { %v5509_v15 = vadd.f32 %v5508_v42, %v5496_v58  ;;  %v5497_v21 = vpop.f32.mrf.mxu0  ;;  %v16398_v58 = vpop.permute.xlu0 %5761 }
 0x34e   : > { %v16402_v42 = vpop.permute.xlu2 %5822 }
 0x34f   : > { %14004 = vtanh.f32 %v5509_v15 }
 0x352   : > { %v5534_v16 = vpop.f32.mrf.mxu3 }
 0x353   : > { %v5523_v2 = vpop.f32.mrf.mxu2  ;;  %v5535_v26 = vadd.f32 %v5534_v16, %v5522_v14 }
 0x354   : > { %v5510_v52 = vpop.f32.mrf.mxu1  ;;  %v5834_v2 = vlaneseq }
 0x355   : > { %v16362_v47 = vpop.eup %14004  ;;  %v5547_v4 = vpop.f32.mrf.mxu0 }
 0x356   : > { %5723 = vperm.xlu2 %13898, %v16362_v47   ;;  %5718 = vperm.xlu1 %13897, %v16362_v47   ;;  %v5639_v45 = vmul.f32 %v16362_v47, %v16362_v47  ;;  %v5548_v23 = vadd.f32 %v5547_v4, %v5062_v37  ;;  %5631 = vst.msk [vmem:[%s817_s28] sm:$0x3] %vm20077_vm6, %v16362_v47  ;;  %v5817_v15 = vpop.permute.xlu0 %5816  ;;  %v16406_v16 = vpop.permute.xlu2 %5828  ;;  %v16408_v52 = vshrl.u32 %v5834_v2, 7  ;;  %s20903_s28 = sld [smem:[#allocation62_spill]] }
 0x357   : > { %5710 = vperm.xlu0 %13896, %v16362_v47   ;;  %v5744_v18 = vadd.f32 %v16362_v47, %v5743_v20 }
 0x358   : > { %v5648_v29 = vmul.f32 -0.0001984127, %v5639_v45  ;;  %v5640_v3 = vmul.f32 2.4801588e-05, %v5639_v45 }
 0x359   : > { %5745 = vst.msk [vmem:[#allocation6] sm:$0x3] %vm20074_vm7, %v5744_v18 }
 0x35a   : > { %v5536_v25 = vpop.f32.mrf.mxu3  ;;  %v5649_v13 = vadd.f32 0.008333334, %v5648_v29  ;;  %v5641_v32 = vadd.f32 -0.0013888889, %v5640_v3  ;;  %5746 = vst.msk [vmem:[#allocation18] sm:$0x3] %vm20074_vm7, %v5744_v18 }
 0x35b   : > { %v16411_v29 = vadd.s32 8, %v16408_v52  ;;  %v16415_v3 = vadd.s32 16, %v16408_v52 }
 0x35c   : > { %v5560_v40 = vpop.f32.mrf.mxu1  ;;  %v5573_v6 = vpop.f32.mrf.mxu2  ;;  %v5650_v55 = vmul.f32 %v5649_v13, %v5639_v45  ;;  %v5642_v1 = vmul.f32 %v5641_v32, %v5639_v45  ;;  %v5637_v13 = vld [vmem:[%s20183_s30] sm:$0x7]  ;;  %v5638_v32 = vld [vmem:[%s20183_s30 + $0x4] sm:$0x7] }
 0x35d   : > { %v5549_v50 = vpop.f32.mrf.mxu0  ;;  %v5561_v30 = vadd.f32 %v5560_v40, %v5548_v23  ;;  %v5574_v43 = vadd.f32 %v5573_v6, %v5063_v11 }
 0x35e   : > { %13901 = vset.pattern.permute.xlu2 %v14233_v33  ;;  %13900 = vset.pattern.permute.xlu1 %v14230_v53  ;;  %v5651_v7 = vadd.f32 -0.16666667, %v5650_v55  ;;  %v5643_v0 = vadd.f32 0.041666668, %v5642_v1  ;;  %v16387_v33 = vpop.permute.xlu1 %5767  ;;  %v5662_v55 = vrot.slane %v5637_v13, 1  ;;  %v5672_v1 = vrot.slane %v5637_v13, 2 }
 0x35f   : > { %13899 = vset.pattern.permute.xlu0 %v14235_v54  ;;  %v5621_v10 = vrot.slane %v5561_v30, 6  ;;  %v5673_v50 = vrot.slane %v5638_v32, 1 }
 0x360   : > { %v5652_v9 = vmul.f32 %v5651_v7, %v5639_v45  ;;  %v5644_v63 = vmul.f32 %v5643_v0, %v5639_v45  ;;  %v5685_v0 = vrot.slane %v5638_v32, 7 }
 0x361   : > { %v5624_v8 = vsel %vm20073_vm1, %v5535_v26, %v5621_v10 }
 0x362   : > { %v5586_v28 = vpop.f32.mrf.mxu3  ;;  %v5653_v59 = vadd.f32 1.0, %v5652_v9  ;;  %v5645_v5 = vadd.f32 -0.5, %v5644_v63  ;;  %v5664_v9 = vsel %vm20076_vm8, %v5638_v32, %v5662_v55  ;;  %v5674_v63 = vsel %vm20076_vm8, %v5673_v50, %v5672_v1 }
 0x363   : > { %v5587_v34 = vadd.f32 %v5586_v28, %v5574_v43 }
 0x364   : > { %v5562_v57 = vpop.f32.mrf.mxu1  ;;  %v5575_v44 = vpop.f32.mrf.mxu2  ;;  %v5654_v38 = vmul.f32 %v16362_v47, %v5653_v59  ;;  %v5646_v62 = vmul.f32 %v5645_v5, %v5639_v45 }
 0x365   : > { %v5599_v49 = vpop.f32.mrf.mxu0  ;;  %v5622_v46 = vrot.slane %v5587_v34, 4  ;;  %v5686_v44 = vsel %vm20076_vm8, %v5685_v0, %v5637_v13 }
 0x366   : > { %5704 = vperm.xlu2 %13901, %v5654_v38   ;;  %5690 = vperm.xlu1 %13900, %v5654_v38   ;;  %v5600_v35 = vadd.f32 %v5599_v49, %v5064_v51  ;;  %v5647_v19 = vadd.f32 1.0, %v5646_v62  ;;  %v16391_v54 = vpop.permute.xlu1 %5793 }
 0x367   : > { %5669 = vperm.xlu0 %13899, %v5654_v38  }
 0x36a   : > { %v5588_v31 = vpop.f32.mrf.mxu3 }
 0x36c   : > { %v5612_v56 = vpop.f32.mrf.mxu1 }
 0x36d   : > { %v5613_v12 = vadd.f32 %v5612_v56, %v5600_v35  ;;  %v5601_v24 = vpop.f32.mrf.mxu0 }
 0x36e   : > { %5699 = vperm.xlu2 %13901, %v5647_v19   ;;  %5682 = vperm.xlu1 %13900, %v5647_v19   ;;  %v16400_v17 = vpop.permute.xlu1 %5799 }
 0x36f   : > { %v5623_v53 = vrot.slane %v5613_v12, 2  ;;  %5657 = vperm.xlu0 %13899, %v5647_v19  }
 0x371   : > { %v5626_v22 = vsel %vm20072_vm4, %v5622_v46, %v5623_v53 }
 0x372   : > { %v5628_v41 = vsel %vm20071_vm5, %v5624_v8, %v5626_v22 }
 0x373   : > { %5630 = vst [vmem:[%s20182_s24] sm:$0xff] %v5628_v41 }
 0x374   : > { %v5614_v27 = vpop.f32.mrf.mxu1 }
 0x376   : > { %v16404_v21 = vpop.permute.xlu1 %5805  ;;  %13902 = vset.pattern.permute.xlu1 %v16408_v52  ;;  %13903 = vset.pattern.permute.xlu2 %v16411_v29 }
 0x377   : > { %13905 = vset.pattern.permute.xlu0 %v16415_v3 }
 0x3b0   : > { %v5724_v25 = vpop.permute.xlu2 %5723 }
 0x3c0   : > { %v5705_v7 = vpop.permute.xlu2 %5704 }
 0x3c8   : > { %v5719_v4 = vpop.permute.xlu1 %5718  ;;  %v5700_v31 = vpop.permute.xlu2 %5699 }
 0x3c9   : > { %v5711_v45 = vpop.permute.xlu0 %5710 }
 0x3d8   : > { %v5691_v40 = vpop.permute.xlu1 %5690 }
 0x3d9   : > { %v5670_v6 = vpop.permute.xlu0 %5669  ;;  %v5696_v23 = vmul.f32 %v5691_v40, %v5686_v44 }
 0x3da   : > { %v5678_v59 = vmul.f32 %v5670_v6, %v5664_v9  ;;  %v5676_v38 = vmul.f32 %v5674_v63, %v5670_v6 }
 0x3e0   : > { %v5683_v5 = vpop.permute.xlu1 %5682 }
 0x3e1   : > { %v5658_v28 = vpop.permute.xlu0 %5657  ;;  %v5688_v51 = vmul.f32 %v5686_v44, %v5683_v5 }
 0x3e2   : > { %v5666_v37 = vmul.f32 %v5664_v9, %v5658_v28  ;;  %v5679_v57 = vmul.f32 %v5674_v63, %v5658_v28 }
 0x3e4   : > { %v5680_v11 = vadd.f32 %v5679_v57, %v5678_v59  ;;  %v5677_v49 = vsub.f32 %v5666_v37, %v5676_v38  ;;  %v5860_v57 = vadd.s32 32, %v16408_v52 }
 0x3e6   : > { %v5693_v62 = vmul.f32 %v5691_v40, %v5680_v11  ;;  %v5695_v61 = vmul.f32 %v5683_v5, %v5680_v11  ;;  %v5707_v34 = vmul.f32 %v5705_v7, %v5677_v49  ;;  %v5715_v19 = vmul.f32 %v5700_v31, %v5677_v49 }
 0x3e7   : > { %v16501_v5 = vadd.s32 48, %v16408_v52 }
 0x3e8   : > { %v5694_v30 = vadd.f32 %v5693_v62, %v5688_v51  ;;  %v5697_v43 = vsub.f32 %v5695_v61, %v5696_v23  ;;  %v16528_v23 = vadd.s32 56, %v16408_v52 }
 0x3ea   : > { %v5702_v35 = vmul.f32 %v5700_v31, %v5694_v30  ;;  %v5714_v56 = vmul.f32 %v5705_v7, %v5694_v30  ;;  %v5726_v14 = vadd.f32 %v5724_v25, %v5697_v43 }
 0x3ec   : > { %v5708_v10 = vsub.f32 %v5702_v35, %v5707_v34  ;;  %v5716_v12 = vadd.f32 %v5715_v19, %v5714_v56  ;;  %v5739_v24 = vrot.slane %v5726_v14, 1  ;;  %5741 = vst.msk [vmem:[%s20184_s12 + $0x2] sm:$0x1] %vm5730_vm9, %v5726_v14  ;;  %v5764_v2 = vmul.f32 %v16398_v58, %v5726_v14 }
 0x3ed   : > { %v5802_v1 = vmul.f32 %v16400_v17, %v5726_v14 }
 0x3ee   : > { %v5713_v26 = vadd.f32 %v5711_v45, %v5708_v10  ;;  %v5721_v46 = vadd.f32 %v5719_v4, %v5716_v12  ;;  %5742 = vst.msk [vmem:[%s20184_s12 + $0x6] sm:$0x1] %vm5730_vm9, %v5739_v24  ;;  %v6431_v10 = vld [vmem:[%s20193_s7] sm:$0xff] }
 0x3ef   : > { %v5931_v12 = vld [vmem:[%s20194_s22] sm:$0xff]  ;;  %v16583_v24 = vperm.slane %v6431_v10, 0  ;;  %s9570_s22 = sshll.u32 %s20906_s3, 4  ;;  %s9571_s22 = int_to_ptr.hbm [resolvable:$true] %s9570_s22 }
 0x3f0   : > { %v5728_v53 = vrot.slane %v5713_v26, 1  ;;  %5731 = vst.msk [vmem:[%s20184_s12] sm:$0x1] %vm5730_vm9, %v5713_v26  ;;  %v5734_v8 = vrot.slane %v5721_v46, 1  ;;  %v5753_v22 = vmul.f32 %v16383_v39, %v5713_v26  ;;  %v5758_v41 = vmul.f32 %v16385_v60, %v5721_v46  ;;  %13817 = dma.vmem_to_hbm [thread:$0]  (%p13846_p8), %s9569_s27, 32, %s9571_s22, [#allocation11]  }
 0x3f1   : > { %5736 = vst.msk [vmem:[%s20184_s12 + $0x1] sm:$0x1] %vm5730_vm9, %v5721_v46  ;;  %v5814_v27 = vmul.f32 %v16394_v36, %v5713_v26  ;;  %v5819_v20 = vmul.f32 %v5817_v15, %v5721_v46  ;;  %v5825_v60 = vmul.f32 %v16402_v42, %v5726_v14  ;;  %v5791_v58 = vmul.f32 %v16389_v48, %v5713_v26 }
 0x3f2   : > { %5732 = vst.msk [vmem:[%s20184_s12 + $0x4] sm:$0x1] %vm5730_vm9, %v5728_v53  ;;  %v5759_v18 = vadd.f32 %v5758_v41, %v5753_v22  ;;  %v5796_v42 = vmul.f32 %v16391_v54, %v5721_v46  ;;  %v16585_v26 = vperm.slane %v6431_v10, 1  ;;  %v16590_v53 = vperm.slane %v5931_v12, 0 }
 0x3f3   : > { %5737 = vst.msk [vmem:[%s20184_s12 + $0x5] sm:$0x1] %vm5730_vm9, %v5734_v8  ;;  %v5820_v39 = vadd.f32 %v5819_v20, %v5814_v27  ;;  %v16592_v8 = vperm.slane %v6431_v10, 2  ;;  %v16595_v22 = vperm.slane %v6431_v10, 3  ;;  %v16597_v41 = vperm.slane %v6431_v10, 4 }
 0x3f4   : > { %v5765_v4 = vadd.f32 %v5764_v2, %v5759_v18  ;;  %v5797_v6 = vadd.f32 %v5796_v42, %v5791_v58  ;;  %v16599_v27 = vperm.slane %v6431_v10, 5  ;;  %v16601_v20 = vperm.slane %v6431_v10, 6 }
 0x3f5   : > { %v5826_v45 = vadd.f32 %v5825_v60, %v5820_v39  ;;  %20195 = vst [vmem:[#allocation32_spill] sm:$0xff] %v16595_v22  ;;  %v16603_v18 = vperm.slane %v5931_v12, 1  ;;  %v16605_v2 = vperm.slane %v5931_v12, 2  ;;  %v16621_v42 = vperm.slane %v5931_v12, 7 }
 0x3f6   : > { %v5770_v36 = vadd.f32 %v16387_v33, %v5765_v4  ;;  %v16469_v33 = vadd.s32 24, %v16408_v52  ;;  %v5803_v54 = vadd.f32 %v5802_v1, %v5797_v6  ;;  %20196 = vst [vmem:[#allocation33_spill] sm:$0xff] %v16597_v41 }
 0x3f7   : > { %v5831_v15 = vadd.f32 %v16406_v16, %v5826_v45  ;;  %20197 = vst [vmem:[#allocation34_spill] sm:$0xff] %v16599_v27  ;;  %v16611_v45 = vperm.slane %v5931_v12, 3 }
 0x3f8   : > { %v5771_v25 = vmax.f32 %v5770_v36, 1e-06  ;;  %v16459_v13 = vperm.slane %v5770_v36, 0  ;;  %v16461_v32 = vperm.slane %v5770_v36, 1  ;;  %v5808_v28 = vadd.f32 %v16404_v21, %v5803_v54  ;;  %20198 = vst [vmem:[#allocation35_spill] sm:$0xff] %v16601_v20 }
 0x3f9   : > { %v16490_v21 = vadd.s32 40, %v16408_v52  ;;  %v16613_v36 = vperm.slane %v5931_v12, 4 }
 0x3fa   : > { %14006 = vrcp.f32 %v5771_v25  ;;  %7027 = vperm.xlu0 %13905, %v16461_v32   ;;  %6972 = vperm.xlu2 %13903, %v16459_v13   ;;  %v5783_v50 = vand.u32 2147483648, %v5771_v25  ;;  %v5781_v48 = vand.u32 2147483647, %v5771_v25  ;;  %vm5777_vm11 = vweird.f32 %v5771_v25 }
 0x3fb   : > { %6966 = vperm.xlu1 %13902, %v16459_v13  }
 0x3fc   : > { %v5784_v9 = vor.u32 1.1754944e-38, %v5783_v50  ;;  %vm5782_vm13 = vcmp.eq.f32.partialorder %v5781_v48, 8.507059e+37 }
 0x400   : > { %v14007_v16 = vpop.eup %14006 }
 0x401   : > { %v5773_v40 = vmul.f32 %v14007_v16, %v5771_v25  ;;  %vm5778_vm10 = vweird.f32 %v14007_v16  ;;  %v16617_v25 = vperm.slane %v5931_v12, 6 }
 0x402   : > { %13906 = vset.pattern.permute.xlu0 %v16469_v33  ;;  %7021 = vperm.xlu2 %13903, %v16461_v32   ;;  %vm5779_vm12 = vmor %vm5777_vm11, %vm5778_vm10 }
 0x403   : > { %v5774_v55 = vsub.f32 1.0, %v5773_v40  ;;  %7015 = vperm.xlu1 %13902, %v16461_v32  }
 0x405   : > { %v5775_v7 = vmul.f32 %v14007_v16, %v5774_v55 }
 0x407   : > { %v5776_v0 = vadd.f32 %v14007_v16, %v5775_v7 }
 0x409   : > { %v5780_v63 = vsel %vm5779_vm12, %v14007_v16, %v5776_v0 }
 0x40a   : > { %v5785_v59 = vsel %vm5782_vm13, %v5784_v9, %v5780_v63  ;;  %6984 = vperm.xlu0 %13906, %v16459_v13   ;;  %13904 = vset.pattern.permute.xlu2 %v16415_v3 }
 0x40b   : > { %v5809_v17 = vmul.f32 %v5808_v28, %v5785_v59  ;;  %v5832_v37 = vmul.f32 %v5831_v15, %v5785_v59  ;;  %13907 = vset.pattern.permute.xlu1 %v16469_v33  ;;  %v16615_v15 = vperm.slane %v5931_v12, 5 }
 0x40d   : > { %v16483_v44 = vperm.slane %v5832_v37, 0  ;;  %v16492_v38 = vperm.slane %v5809_v17, 0  ;;  %v16509_v11 = vperm.slane %v5809_v17, 1  ;;  %v16511_v49 = vperm.slane %v5832_v37, 1 }
 0x412   : > { %13913 = vset.pattern.permute.xlu0 %v16408_v52  ;;  %6978 = vperm.xlu2 %13904, %v16459_v13  }
 0x413   : > { %7033 = vperm.xlu1 %13907, %v16461_v32  }
 0x41a   : > { %13909 = vset.pattern.permute.xlu2 %v5860_v57  ;;  %5838 = vperm.xlu0 %13913, %v16483_v44  }
 0x41b   : > { %13908 = vset.pattern.permute.xlu1 %v5860_v57 }
 0x422   : > { %7039 = vperm.xlu2 %13909, %v16461_v32   ;;  %13916 = vset.pattern.permute.xlu0 %v16411_v29 }
 0x423   : > { %6990 = vperm.xlu1 %13908, %v16459_v13  }
 0x42a   : > { %13910 = vset.pattern.permute.xlu2 %v16490_v21  ;;  %6344 = vperm.xlu0 %13916, %v16492_v38  }
 0x42b   : > { %13911 = vset.pattern.permute.xlu1 %v16490_v21 }
 0x432   : > { %6996 = vperm.xlu2 %13910, %v16459_v13   ;;  %13921 = vset.pattern.permute.xlu0 %v16415_v3 }
 0x433   : > { %7045 = vperm.xlu1 %13911, %v16461_v32  }
 0x43a   : > { %13912 = vset.pattern.permute.xlu2 %v16501_v5  ;;  %6350 = vperm.xlu0 %13921, %v16492_v38  }
 0x43b   : > { %13914 = vset.pattern.permute.xlu1 %v16411_v29 }
 0x442   : > { %7002 = vperm.xlu2 %13912, %v16459_v13   ;;  %13924 = vset.pattern.permute.xlu0 %v16469_v33 }
 0x443   : > { %5844 = vperm.xlu1 %13914, %v16483_v44  }
 0x44a   : > { %13915 = vset.pattern.permute.xlu2 %v16408_v52  ;;  %6405 = vperm.xlu0 %13924, %v16509_v11  }
 0x44b   : > { %5893 = vperm.xlu1 %13914, %v16511_v49  }
 0x452   : > { %5887 = vperm.xlu2 %13915, %v16511_v49   ;;  %13925 = vset.pattern.permute.xlu0 %v5860_v57 }
 0x453   : > { %13917 = vset.pattern.permute.xlu1 %v16408_v52 }
 0x454   : > { %v16539_v52 = vpop.permute.xlu2 %6972 }
 0x45a   : > { %5862 = vperm.xlu0 %13925, %v16483_v44   ;;  %6338 = vperm.xlu2 %13915, %v16492_v38  }
 0x45b   : > { %6387 = vperm.xlu1 %13917, %v16509_v11  }
 0x462   : > { %13932 = vset.pattern.permute.xlu0 %v16501_v5  ;;  %13918 = vset.pattern.permute.xlu2 %v16411_v29 }
 0x463   : > { %13919 = vset.pattern.permute.xlu1 %v16415_v3 }
 0x46a   : > { %6423 = vperm.xlu0 %13932, %v16509_v11   ;;  %6393 = vperm.xlu2 %13918, %v16509_v11  }
 0x46b   : > { %5850 = vperm.xlu1 %13919, %v16483_v44  }
 0x46c   : > { %v16554_v61 = vpop.permute.xlu0 %7027 }
 0x46d   : > { %v16543_v29 = vpop.permute.xlu1 %6966  ;;  %20185 = vst [vmem:[#allocation24_spill] sm:$0xff] %v16554_v61 }
 0x472   : > { %13935 = vset.pattern.permute.xlu0 %v16528_v23  ;;  %13920 = vset.pattern.permute.xlu2 %v16415_v3  ;;  %v16545_v3 = vpop.permute.xlu2 %7021 }
 0x473   : > { %6399 = vperm.xlu1 %13919, %v16509_v11  }
 0x475   : > { %v16550_v51 = vpop.permute.xlu1 %7015 }
 0x47a   : > { %6380 = vperm.xlu0 %13935, %v16492_v38   ;;  %5899 = vperm.xlu2 %13920, %v16511_v49   ;;  %v16552_v62 = vpop.permute.xlu2 %6978 }
 0x47b   : > { %13923 = vset.pattern.permute.xlu1 %v16469_v33 }
 0x47c   : > { %v16561_v31 = vpop.permute.xlu0 %6984 }
 0x47d   : > { %20188 = vst [vmem:[#allocation27_spill] sm:$0xff] %v16561_v31 }
 0x482   : > { %13936 = vset.pattern.permute.xlu0 %v16501_v5  ;;  %13922 = vset.pattern.permute.xlu2 %v16469_v33  ;;  %v16559_v43 = vpop.permute.xlu2 %7039  ;;  %v16623_v33 = vperm.slane %v6431_v10, 7 }
 0x483   : > { %5905 = vperm.xlu1 %13923, %v16511_v49   ;;  %20187 = vst [vmem:[#allocation26_spill] sm:$0xff] %v16559_v43 }
 0x484   : > { %20199 = vst [vmem:[#allocation36_spill] sm:$0xff] %v16623_v33 }
 0x485   : > { %v16557_v30 = vpop.permute.xlu1 %7033 }
 0x486   : > { %20186 = vst [vmem:[#allocation25_spill] sm:$0xff] %v16557_v30 }
 0x48a   : > { %7051 = vperm.xlu0 %13936, %v16461_v32   ;;  %5856 = vperm.xlu2 %13922, %v16483_v44  }
 0x48b   : > { %13926 = vset.pattern.permute.xlu1 %v5860_v57 }
 0x48c   : > { %v16567_v35 = vpop.permute.xlu2 %6996  ;;  %v16569_v56 = vpop.permute.xlu0 %5838 }
 0x48d   : > { %20190 = vst [vmem:[#allocation29_spill] sm:$0xff] %v16567_v35 }
 0x492   : > { %6356 = vperm.xlu2 %13922, %v16492_v38   ;;  %13937 = vset.pattern.permute.xlu0 %v16528_v23 }
 0x493   : > { %5911 = vperm.xlu1 %13926, %v16511_v49  }
 0x495   : > { %v16565_v34 = vpop.permute.xlu1 %6990 }
 0x496   : > { %20189 = vst [vmem:[#allocation28_spill] sm:$0xff] %v16565_v34 }
 0x49a   : > { %13927 = vset.pattern.permute.xlu2 %v5860_v57 }
 0x49b   : > { %6411 = vperm.xlu1 %13926, %v16509_v11  }
 0x49c   : > { %v16575_v14 = vpop.permute.xlu2 %7002  ;;  %v16587_v46 = vpop.permute.xlu0 %6344 }
 0x49d   : > { %20192 = vst [vmem:[#allocation31_spill] sm:$0xff] %v16575_v14  ;;  %v6457_v39 = vsub.f32 %v16587_v46, %v16583_v24  ;;  %v6458_v60 = vsub.f32 %v16587_v46, %v16585_v26  ;;  %v6459_v16 = vsub.f32 %v16587_v46, %v16592_v8  ;;  %v6460_v6 = vsub.f32 %v16587_v46, %v16595_v22 }
 0x49e   : > { %v6461_v55 = vsub.f32 %v16587_v46, %v16597_v41  ;;  %v6462_v1 = vsub.f32 %v16587_v46, %v16599_v27  ;;  %v6463_v50 = vsub.f32 %v16587_v46, %v16601_v20  ;;  %v6464_v10 = vsub.f32 %v16587_v46, %v16623_v33 }
 0x49f   : > { %v6585_v7 = vand.u32 2147483647, %v6457_v39  ;;  %v6586_v48 = vand.u32 2147483647, %v6458_v60  ;;  %v6587_v12 = vand.u32 2147483647, %v6459_v16 }
 0x4a0   : > { %v6588_v14 = vand.u32 2147483647, %v6460_v6  ;;  %v6591_v46 = vand.u32 2147483647, %v6463_v50  ;;  %v5950_v50 = vsub.f32 %v16569_v56, %v16603_v18 }
 0x4a1   : > { %vm6713_vm0 = vcmp.lt.f32.partialorder %v6585_v7, 0.5  ;;  %vm6714_vm3 = vcmp.lt.f32.partialorder %v6586_v48, 0.5  ;;  %vm6715_vm11 = vcmp.lt.f32.partialorder %v6587_v12, 0.5  ;;  %v5949_v7 = vsub.f32 %v16569_v56, %v16590_v53 }
 0x4a2   : > { %6362 = vperm.xlu2 %13927, %v16492_v38   ;;  %vm6716_vm5 = vcmp.lt.f32.partialorder %v6588_v14, 0.5  ;;  %v5951_v14 = vsub.f32 %v16569_v56, %v16605_v2  ;;  %v6078_v12 = vand.u32 2147483647, %v5950_v50  ;;  %v20226_v48 = vmov 0 }
 0x4a3   : > { %13928 = vset.pattern.permute.xlu1 %v16490_v21 }
 0x4a5   : > { %v16573_v19 = vpop.permute.xlu1 %7045 }
 0x4a6   : > { %20191 = vst [vmem:[#allocation30_spill] sm:$0xff] %v16573_v19  ;;  %v6589_v19 = vand.u32 2147483647, %v6461_v55  ;;  %v6592_v55 = vand.u32 2147483647, %v6464_v10 }
 0x4aa   : > { %13929 = vset.pattern.permute.xlu2 %v16490_v21 }
 0x4ab   : > { %5868 = vperm.xlu1 %13928, %v16483_v44  }
 0x4ac   : > { %v16619_v58 = vpop.permute.xlu2 %5887 }
 0x4b2   : > { %5917 = vperm.xlu2 %13929, %v16511_v49  }
 0x4b3   : > { %6368 = vperm.xlu1 %13928, %v16492_v38  }
 0x4b4   : > { %v16655_v6 = vpop.permute.xlu2 %6338 }
 0x4b5   : > { %v5845_v4 = vpop.permute.xlu1 %5844  ;;  %v6455_v16 = vsub.f32 %v16655_v6, %v16601_v20 }
 0x4b6   : > { %v5957_v40 = vsub.f32 %v5845_v4, %v16590_v53  ;;  %v5958_v54 = vsub.f32 %v5845_v4, %v16603_v18  ;;  %v5959_v0 = vsub.f32 %v5845_v4, %v16605_v2  ;;  %v5960_v9 = vsub.f32 %v5845_v4, %v16611_v45 }
 0x4b7   : > { %v5961_v63 = vsub.f32 %v5845_v4, %v16613_v36  ;;  %v5962_v28 = vsub.f32 %v5845_v4, %v16615_v15  ;;  %v5963_v59 = vsub.f32 %v5845_v4, %v16617_v25  ;;  %v5964_v17 = vsub.f32 %v5845_v4, %v16621_v42 }
 0x4b8   : > { %v6085_v37 = vand.u32 2147483647, %v5957_v40  ;;  %v6086_v57 = vand.u32 2147483647, %v5958_v54  ;;  %v6087_v21 = vand.u32 2147483647, %v5959_v0  ;;  %v6454_v54 = vsub.f32 %v16655_v6, %v16599_v27 }
 0x4b9   : > { %v6088_v39 = vand.u32 2147483647, %v5960_v9  ;;  %v6089_v60 = vand.u32 2147483647, %v5961_v63  ;;  %v6090_v35 = vand.u32 2147483647, %v5962_v28  ;;  %v5952_v9 = vsub.f32 %v16569_v56, %v16611_v45 }
 0x4ba   : > { %6417 = vperm.xlu2 %13929, %v16509_v11   ;;  %vm6213_vm14 = vcmp.lt.f32.partialorder %v6085_v37, 0.5  ;;  %vm6214_vm15 = vcmp.lt.f32.partialorder %v6086_v57, 0.5  ;;  %v6091_v43 = vand.u32 2147483647, %v5963_v59  ;;  %vm6215_vm2 = vcmp.lt.f32.partialorder %v6087_v21, 0.5 }
 0x4bb   : > { %13931 = vset.pattern.permute.xlu1 %v16501_v5  ;;  %v6590_v4 = vand.u32 2147483647, %v6462_v1  ;;  %v6092_v40 = vand.u32 2147483647, %v5964_v17  ;;  %vm6216_vm9 = vcmp.lt.f32.partialorder %v6088_v39, 0.5  ;;  %vm16647_vm10 = vmand %vm6213_vm14, %vm6713_vm0  ;;  %vm6217_vm12 = vcmp.lt.f32.partialorder %v6089_v60, 0.5 }
 0x4bc   : > { %vm16651_vm13 = vmand %vm6214_vm15, %vm6714_vm3  ;;  %vm6218_vm4 = vcmp.lt.f32.partialorder %v6090_v35, 0.5  ;;  %vm6717_vm14 = vcmp.lt.f32.partialorder %v6589_v19, 0.5  ;;  %vm6219_vm15 = vcmp.lt.f32.partialorder %v6091_v43, 0.5  ;;  %v6449_v19 = vsub.f32 %v16655_v6, %v16583_v24 }
 0x4bd   : > { %vm16657_vm1 = vmand %vm6215_vm2, %vm6715_vm11  ;;  %vm6718_vm2 = vcmp.lt.f32.partialorder %v6590_v4, 0.5  ;;  %vm6220_vm3 = vcmp.lt.f32.partialorder %v6092_v40, 0.5  ;;  %v6450_v28 = vsub.f32 %v16655_v6, %v16585_v26  ;;  %v5954_v59 = vsub.f32 %v16569_v56, %v16615_v15 }
 0x4be   : > { %vm16666_vm0 = vmand %vm6216_vm9, %vm6716_vm5  ;;  %vm6719_vm5 = vcmp.lt.f32.partialorder %v6591_v46, 0.5  ;;  %v6451_v35 = vsub.f32 %v16655_v6, %v16592_v8  ;;  %v5955_v37 = vsub.f32 %v16569_v56, %v16617_v25  ;;  %v5956_v57 = vsub.f32 %v16569_v56, %v16621_v42 }
 0x4bf   : > { %vm16674_vm11 = vmand %vm6217_vm12, %vm6717_vm14  ;;  %vm7060_vm12 = vcmp.gt.f32.partialorder %v16539_v52, 0.0  ;;  %vm6720_vm14 = vcmp.lt.f32.partialorder %v6592_v55, 0.5  ;;  %v6077_v21 = vand.u32 2147483647, %v5949_v7  ;;  %v6452_v43 = vsub.f32 %v16655_v6, %v16595_v22 }
 0x4c0   : > { %vm16686_vm9 = vmand %vm6218_vm4, %vm6718_vm2  ;;  %v6079_v39 = vand.u32 2147483647, %v5951_v14  ;;  %v6577_v4 = vand.u32 2147483647, %v6449_v19  ;;  %v6080_v40 = vand.u32 2147483647, %v5952_v9  ;;  %v6456_v19 = vsub.f32 %v16655_v6, %v16623_v33 }
 0x4c1   : > { %vm16696_vm7 = vmand %vm6219_vm15, %vm6719_vm5  ;;  %v6578_v7 = vand.u32 2147483647, %v6450_v28  ;;  %v6082_v50 = vand.u32 2147483647, %v5954_v59  ;;  %v6579_v9 = vand.u32 2147483647, %v6451_v35  ;;  %v16753_v59 = vpop.permute.xlu1 %5893 }
 0x4c2   : > { %13930 = vset.pattern.permute.xlu2 %v16501_v5  ;;  %v5953_v5 = vsub.f32 %v16569_v56, %v16613_v36  ;;  %vm16707_vm4 = vmand %vm6220_vm3, %vm6720_vm14  ;;  %v6453_v56 = vsub.f32 %v16655_v6, %v16597_v41  ;;  %v6084_v34 = vand.u32 2147483647, %v5956_v57  ;;  %v20222_v28 = vmov 0 }
 0x4c3   : > { %5923 = vperm.xlu1 %13931, %v16511_v49   ;;  %vm16717_vm15 = vmand %vm16647_vm10, %vm7060_vm12  ;;  %v6580_v1 = vand.u32 2147483647, %v6452_v43  ;;  %v20224_v6 = vmov 0  ;;  %v20228_v0 = vmov 0  ;;  %vm6706_vm3 = vcmp.lt.f32.partialorder %v6578_v7, 0.5 }
 0x4c4   : > { %v6081_v46 = vand.u32 2147483647, %v5953_v5  ;;  %vm16727_vm2 = vmand %vm16651_vm13, %vm7060_vm12  ;;  %v6083_v5 = vand.u32 2147483647, %v5955_v37  ;;  %v6581_v35 = vand.u32 2147483647, %v6453_v56  ;;  %v6021_v17 = vsub.f32 %v16753_v59, %v16590_v53 }
 0x4c5   : > { %vm16737_vm10 = vmand %vm16657_vm1, %vm7060_vm12  ;;  %v6582_v37 = vand.u32 2147483647, %v6454_v54  ;;  %v6583_v57 = vand.u32 2147483647, %v6455_v16  ;;  %v6584_v43 = vand.u32 2147483647, %v6456_v19  ;;  %v6022_v10 = vsub.f32 %v16753_v59, %v16603_v18  ;;  %v16817_v16 = vpop.permute.xlu2 %6393 }
 0x4c6   : > { %vm16749_vm13 = vmand %vm16666_vm0, %vm7060_vm12  ;;  %vm6707_vm6 = vcmp.lt.f32.partialorder %v6579_v9, 0.5  ;;  %v20237_v54 = vmov 0  ;;  %v6023_v7 = vsub.f32 %v16753_v59, %v16605_v2  ;;  %v16827_v9 = vand.u32 2147483647, %v6021_v17 }
 0x4c7   : > { %v20223_v28 = vsel %vm16749_vm13, 4294967295, %v20222_v28  ;;  %vm16760_vm5 = vmand %vm16674_vm11, %vm7060_vm12  ;;  %vm6710_vm8 = vcmp.lt.f32.partialorder %v6582_v37, 0.5  ;;  %v7243_v30 = vsel %vm16717_vm15, %v16539_v52, 0.0  ;;  %v16842_v61 = vand.u32 2147483647, %v6022_v10 }
 0x4c8   : > { %v20225_v6 = vsel %vm16760_vm5, 4294967295, %v20224_v6  ;;  %vm16768_vm0 = vmand %vm16686_vm9, %vm7060_vm12  ;;  %vm20236_vm5 = vcmp.lt.f32.partialorder %v6078_v12, 0.5  ;;  %v6025_v12 = vsub.f32 %v16753_v59, %v16613_v36  ;;  %v7244_v60 = vsel %vm16727_vm2, %v16539_v52, 0.0 }
 0x4c9   : > { %v20227_v48 = vsel %vm16768_vm0, 4294967295, %v20226_v48  ;;  %vm16777_vm11 = vmand %vm16696_vm7, %vm7060_vm12  ;;  %vm20233_vm0 = vcmp.lt.f32.partialorder %v6077_v21, 0.5  ;;  %v6024_v21 = vsub.f32 %v16753_v59, %v16611_v45  ;;  %vm20239_vm7 = vcmp.lt.f32.partialorder %v6079_v39, 0.5 }
 0x4ca   : > { %5874 = vperm.xlu2 %13930, %v16483_v44   ;;  %v20229_v0 = vsel %vm16777_vm11, 4294967295, %v20228_v0  ;;  %vm16786_vm1 = vmand %vm16707_vm4, %vm7060_vm12  ;;  %vm20232_vm11 = vcmp.lt.f32.partialorder %v6577_v4, 0.5  ;;  %vm20242_vm12 = vcmp.lt.f32.partialorder %v6580_v1, 0.5  ;;  %vm20243_vm4 = vcmp.lt.f32.partialorder %v6080_v40, 0.5 }
 0x4cb   : > { %13933 = vset.pattern.permute.xlu1 %v16528_v23  ;;  %vm16794_vm9 = vmand %vm20233_vm0, %vm20232_vm11  ;;  %vm6212_vm0 = vcmp.lt.f32.partialorder %v6084_v34, 0.5  ;;  %v6026_v39 = vsub.f32 %v16753_v59, %v16615_v15  ;;  %v6027_v40 = vsub.f32 %v16753_v59, %v16617_v25  ;;  %v6028_v1 = vsub.f32 %v16753_v59, %v16621_v42 }
 0x4cc   : > { %vm16801_vm13 = vmand %vm20236_vm5, %vm6706_vm3  ;;  %vm6711_vm3 = vcmp.lt.f32.partialorder %v6583_v57, 0.5  ;;  %vm6712_vm5 = vcmp.lt.f32.partialorder %v6584_v43, 0.5  ;;  %vm20250_vm15 = vcmp.lt.f32.partialorder %v6082_v50, 0.5  ;;  %v16856_v17 = vand.u32 2147483647, %v6024_v21 }
 0x4cd   : > { %v20238_v54 = vsel %vm16801_vm13, 4294967295, %v20237_v54  ;;  %vm16811_vm14 = vmand %vm20239_vm7, %vm6707_vm6  ;;  %vm20246_vm6 = vcmp.lt.f32.partialorder %v6581_v35, 0.5  ;;  %vm20247_vm7 = vcmp.lt.f32.partialorder %v6081_v46, 0.5  ;;  %v16854_v35 = vand.u32 2147483647, %v6023_v7 }
 0x4ce   : > { %vm16821_vm13 = vmand %vm20243_vm4, %vm20242_vm12  ;;  %v6521_v10 = vsub.f32 %v16817_v16, %v16583_v24  ;;  %v7250_v55 = vsel %vm16786_vm1, %v16539_v52, 0.0  ;;  %v16873_v37 = vand.u32 2147483647, %v6025_v12  ;;  %v6522_v7 = vsub.f32 %v16817_v16, %v16585_v26 }
 0x4cf   : > { %vm16834_vm11 = vmand %vm20247_vm7, %vm20246_vm6  ;;  %vm20256_vm4 = vnez %v20223_v28  ;;  %vm6277_vm1 = vcmp.lt.f32.partialorder %v16827_v9, 0.5  ;;  %v6523_v63 = vsub.f32 %v16817_v16, %v16592_v8  ;;  %vm20260_vm6 = vnez %v20227_v48 }
 0x4d0   : > { %vm16850_vm12 = vmand %vm20250_vm15, %vm6710_vm8  ;;  %vm20253_vm8 = vcmp.lt.f32.partialorder %v6083_v5, 0.5  ;;  %v16886_v5 = vand.u32 2147483647, %v6026_v39  ;;  %v7248_v28 = vsel %vm20260_vm6, %v16539_v52, 0.0  ;;  %vm6278_vm15 = vcmp.lt.f32.partialorder %v16842_v61, 0.5  ;;  %v17002_v61 = vpop.permute.xlu1 %6387 }
 0x4d1   : > { %vm16869_vm2 = vmand %vm20253_vm8, %vm6711_vm3  ;;  %vm20259_vm3 = vnez %v20225_v6  ;;  %v6524_v43 = vsub.f32 %v16817_v16, %v16595_v22  ;;  %vm20263_vm8 = vcmask 523264   ;;  %v6525_v48 = vsub.f32 %v16817_v16, %v16597_v41 }
 0x4d2   : > { %6374 = vperm.xlu2 %13930, %v16492_v38   ;;  %v7245_v38 = vsel %vm16737_vm10, %v16539_v52, 0.0  ;;  %vm16882_vm10 = vmand %vm6212_vm0, %vm6712_vm5  ;;  %v7247_v57 = vsel %vm20259_vm3, %v16539_v52, 0.0  ;;  %vm20261_vm0 = vnez %v20229_v0  ;;  %vm20262_vm5 = vcmp.gt.f32.partialorder %v16543_v29, 0.0 }
 0x4d3   : > { %5880 = vperm.xlu1 %13933, %v16483_v44   ;;  %v7246_v44 = vsel %vm20256_vm4, %v16539_v52, 0.0  ;;  %v7249_v34 = vsel %vm20261_vm0, %v16539_v52, 0.0  ;;  %vm7107_vm7 = vmand %vm16794_vm9, %vm20262_vm5  ;;  %v16908_v6 = vsel %vm20263_vm8, %v7250_v55, -inf  ;;  %vm20266_vm3 = vnez %v20238_v54 }
 0x4d4   : > { %20264 = vst [vmem:[#allocation37_spill] sm:$0xff] %v16908_v6  ;;  %vm20265_vm4 = vmmov %vm20262_vm5  ;;  %v7235_v52 = vsel %vm7107_vm7, %v16543_v29, 0.0  ;;  %v6649_v0 = vand.u32 2147483647, %v6521_v10  ;;  %v6526_v12 = vsub.f32 %v16817_v16, %v16599_v27  ;;  %v6650_v54 = vand.u32 2147483647, %v6522_v7 }
 0x4d5   : > { %vm7108_vm6 = vmand %vm20266_vm3, %vm20265_vm4  ;;  %v16922_v21 = vmax.f32 %v7235_v52, %v7243_v30  ;;  %v6527_v4 = vsub.f32 %v16817_v16, %v16601_v20  ;;  %v6651_v55 = vand.u32 2147483647, %v6523_v63  ;;  %v6528_v19 = vsub.f32 %v16817_v16, %v16623_v33 }
 0x4d6   : > { %vm20267_vm9 = vmmov %vm20265_vm4  ;;  %v7236_v56 = vsel %vm7108_vm6, %v16543_v29, 0.0  ;;  %v6652_v52 = vand.u32 2147483647, %v6524_v43  ;;  %v6653_v31 = vand.u32 2147483647, %v6525_v48 }
 0x4d7   : > { %vm7109_vm0 = vmand %vm16811_vm14, %vm20267_vm9  ;;  %v16931_v10 = vmax.f32 %v7236_v56, %v7244_v60  ;;  %vm6778_vm9 = vcmp.lt.f32.partialorder %v6650_v54, 0.5  ;;  %v6656_v48 = vand.u32 2147483647, %v6528_v19  ;;  %v17029_v54 = vpop.permute.xlu0 %6350 }
 0x4d8   : > { %vm20268_vm5 = vmmov %vm20265_vm4  ;;  %v7237_v39 = vsel %vm7109_vm0, %v16543_v29, 0.0  ;;  %v6467_v59 = vsub.f32 %v17029_v54, %v16592_v8  ;;  %v6468_v56 = vsub.f32 %v17029_v54, %v16595_v22  ;;  %v6472_v9 = vsub.f32 %v17029_v54, %v16623_v33 }
 0x4d9   : > { %vm7110_vm7 = vmand %vm16821_vm13, %vm20268_vm5  ;;  %v16940_v7 = vmax.f32 %v7237_v39, %v7245_v38  ;;  %v6654_v38 = vand.u32 2147483647, %v6526_v12  ;;  %v6018_v12 = vsub.f32 %v16619_v58, %v16615_v15  ;;  %v6513_v39 = vsub.f32 %v17002_v61, %v16583_v24 }
 0x4da   : > { %vm20269_vm14 = vmmov %vm20265_vm4  ;;  %v7238_v30 = vsel %vm7110_vm7, %v16543_v29, 0.0  ;;  %13934 = vset.pattern.permute.xlu2 %v16528_v23 }
 0x4db   : > { %vm7111_vm8 = vmand %vm16834_vm11, %vm20269_vm14  ;;  %v16950_v63 = vmax.f32 %v7238_v30, %v7246_v44  ;;  %vm6777_vm11 = vcmp.lt.f32.partialorder %v6649_v0, 0.5  ;;  %6429 = vperm.xlu1 %13933, %v16509_v11   ;;  %v6655_v11 = vand.u32 2147483647, %v6527_v4  ;;  %vm6279_vm14 = vcmp.lt.f32.partialorder %v16854_v35, 0.5 }
 0x4dc   : > { %vm20270_vm13 = vmmov %vm20265_vm4  ;;  %v7239_v60 = vsel %vm7111_vm8, %v16543_v29, 0.0  ;;  %vm6781_vm8 = vcmp.lt.f32.partialorder %v6653_v31, 0.5  ;;  %v6013_v35 = vsub.f32 %v16619_v58, %v16590_v53  ;;  %v6014_v0 = vsub.f32 %v16619_v58, %v16603_v18 }
 0x4dd   : > { %vm7112_vm4 = vmand %vm16850_vm12, %vm20270_vm13  ;;  %v16958_v16 = vmax.f32 %v7239_v60, %v7247_v57  ;;  %v6020_v30 = vsub.f32 %v16619_v58, %v16621_v42  ;;  %v6515_v60 = vsub.f32 %v17002_v61, %v16592_v8  ;;  %v20306_v4 = vmov 0 }
 0x4de   : > { %vm20271_vm3 = vmmov %vm20268_vm5  ;;  %v7240_v23 = vsel %vm7112_vm4, %v16543_v29, 0.0  ;;  %vm6779_vm5 = vcmp.lt.f32.partialorder %v6651_v55, 0.5  ;;  %vm6782_vm4 = vcmp.lt.f32.partialorder %v6654_v38, 0.5  ;;  %v6514_v55 = vsub.f32 %v17002_v61, %v16585_v26 }
 0x4df   : > { %vm7113_vm6 = vmand %vm16869_vm2, %vm20271_vm3  ;;  %v16965_v44 = vmax.f32 %v7240_v23, %v7248_v28  ;;  %vm6780_vm2 = vcmp.lt.f32.partialorder %v6652_v52, 0.5  ;;  %v6155_v28 = vand.u32 2147483647, %v6027_v40  ;;  %v6141_v19 = vand.u32 2147483647, %v6013_v35 }
 0x4e0   : > { %vm20272_vm12 = vmmov %vm20271_vm3  ;;  %v7241_v46 = vsel %vm7113_vm6, %v16543_v29, 0.0  ;;  %vm6783_vm3 = vcmp.lt.f32.partialorder %v6655_v11, 0.5  ;;  %v6142_v52 = vand.u32 2147483647, %v6014_v0  ;;  %v6465_v38 = vsub.f32 %v17029_v54, %v16583_v24 }
 0x4e1   : > { %vm7114_vm0 = vmand %vm16882_vm10, %vm20272_vm12  ;;  %v16968_v43 = vmax.f32 %v7241_v46, %v7249_v34  ;;  %vm20276_vm10 = vcmask 523264   ;;  %v6156_v34 = vand.u32 2147483647, %v6028_v1  ;;  %v6015_v1 = vsub.f32 %v16619_v58, %v16605_v2 }
 0x4e2   : > { %v7242_v50 = vsel %vm7114_vm0, %v16543_v29, 0.0  ;;  %vm16973_vm7 = vmand %vm6277_vm1, %vm6777_vm11  ;;  %vm6280_vm1 = vcmp.lt.f32.partialorder %v16856_v17, 0.5  ;;  %v6016_v17 = vsub.f32 %v16619_v58, %v16611_v45  ;;  %vm6784_vm12 = vcmp.lt.f32.partialorder %v6656_v48, 0.5  ;;  %5929 = vperm.xlu2 %13934, %v16511_v49  }
 0x4e3   : > { %20273 = vst [vmem:[#allocation38_spill] sm:$0xff] %v16968_v43  ;;  %v16978_v14 = vsel %vm20276_vm10, %v7242_v50, -inf  ;;  %vm16987_vm13 = vmand %vm6278_vm15, %vm6778_vm9  ;;  %vm6281_vm15 = vcmp.lt.f32.partialorder %v16873_v37, 0.5  ;;  %vm6282_vm9 = vcmp.lt.f32.partialorder %v16886_v5, 0.5  ;;  %v6017_v37 = vsub.f32 %v16619_v58, %v16613_v36  ;;  %7008 = vperm.xlu1 %13933, %v16459_v13   ;;  %v17170_v43 = vpop.permute.xlu0 %6405 }
 0x4e4   : > { %20277 = vst [vmem:[#allocation39_spill] sm:$0xff] %v16978_v14  ;;  %vm16998_vm11 = vmand %vm6279_vm14, %vm6779_vm5  ;;  %vm6283_vm5 = vcmp.lt.f32.partialorder %v6155_v28, 0.5  ;;  %vm7068_vm10 = vcmp.gt.f32.partialorder %v16545_v3, 0.0  ;;  %v6019_v49 = vsub.f32 %v16619_v58, %v16617_v25  ;;  %vm6284_vm14 = vcmp.lt.f32.partialorder %v6156_v34, 0.5 }
 0x4e5   : > { %vm17010_vm6 = vmand %vm6280_vm1, %vm6780_vm2  ;;  %v6143_v31 = vand.u32 2147483647, %v6015_v1  ;;  %v6144_v23 = vand.u32 2147483647, %v6016_v17  ;;  %v6516_v46 = vsub.f32 %v17002_v61, %v16595_v22  ;;  %v17062_v11 = vand.u32 2147483647, %v6017_v37 }
 0x4e6   : > { %vm17020_vm0 = vmand %vm6281_vm15, %vm6781_vm8  ;;  %v17064_v58 = vand.u32 2147483647, %v6018_v12  ;;  %v6517_v50 = vsub.f32 %v17002_v61, %v16597_v41  ;;  %v6641_v48 = vand.u32 2147483647, %v6513_v39  ;;  %v17068_v28 = vand.u32 2147483647, %v6019_v49 }
 0x4e7   : > { %vm17032_vm2 = vmand %vm6282_vm9, %vm6782_vm4  ;;  %v6466_v34 = vsub.f32 %v17029_v54, %v16585_v26  ;;  %v6518_v35 = vsub.f32 %v17002_v61, %v16599_v27  ;;  %v6642_v0 = vand.u32 2147483647, %v6514_v55  ;;  %v17074_v1 = vand.u32 2147483647, %v6020_v30 }
 0x4e8   : > { %vm17043_vm8 = vmand %vm6283_vm5, %vm6783_vm3  ;;  %vm6269_vm4 = vcmp.lt.f32.partialorder %v6141_v19, 0.5  ;;  %v6519_v37 = vsub.f32 %v17002_v61, %v16601_v20  ;;  %v6643_v12 = vand.u32 2147483647, %v6515_v60  ;;  %v6520_v29 = vsub.f32 %v17002_v61, %v16623_v33 }
 0x4e9   : > { %vm17052_vm1 = vmand %vm6284_vm14, %vm6784_vm12  ;;  %v6644_v55 = vand.u32 2147483647, %v6516_v46  ;;  %v6646_v5 = vand.u32 2147483647, %v6518_v35  ;;  %v6469_v60 = vsub.f32 %v17029_v54, %v16597_v41  ;;  %v6470_v46 = vsub.f32 %v17029_v54, %v16599_v27 }
 0x4ea   : > { %vm17080_vm15 = vmand %vm16973_vm7, %vm7068_vm10  ;;  %7057 = vperm.xlu2 %13934, %v16461_v32   ;;  %v6645_v32 = vand.u32 2147483647, %v6517_v50  ;;  %v6647_v50 = vand.u32 2147483647, %v6519_v37  ;;  %v6471_v35 = vsub.f32 %v17029_v54, %v16601_v20  ;;  %v6648_v6 = vand.u32 2147483647, %v6520_v29 }
 0x4eb   : > { %vm17090_vm12 = vmand %vm16987_vm13, %vm7068_vm10  ;;  %vm6769_vm13 = vcmp.lt.f32.partialorder %v6641_v48, 0.5  ;;  %v20308_v14 = vmov 0  ;;  %v17166_v13 = vand.u32 2147483647, %v6465_v38  ;;  %v17168_v37 = vand.u32 2147483647, %v6466_v34  ;;  %v17189_v34 = vpop.permute.xlu1 %5850 }
 0x4ec   : > { %vm17098_vm7 = vmand %vm16998_vm11, %vm7068_vm10  ;;  %v20311_v54 = vmov 0  ;;  %v17179_v19 = vand.u32 2147483647, %v6467_v59  ;;  %v17181_v48 = vand.u32 2147483647, %v6468_v56  ;;  %vm20314_vm11 = vcmp.lt.f32.partialorder %v6143_v31, 0.5  ;;  %v17202_v31 = vpop.permute.xlu2 %5899 }
 0x4ed   : > { %vm17106_vm5 = vmand %vm17010_vm6, %vm7068_vm10  ;;  %v17206_v59 = vand.u32 2147483647, %v6472_v9  ;;  %v6537_v56 = vsub.f32 %v17170_v43, %v16583_v24  ;;  %v7308_v17 = vsel %vm17090_vm12, %v16545_v3, 0.0  ;;  %v5971_v38 = vsub.f32 %v17189_v34, %v16617_v25 }
 0x4ee   : > { %vm17118_vm14 = vmand %vm17020_vm0, %vm7068_vm10  ;;  %v5972_v29 = vsub.f32 %v17189_v34, %v16621_v42 }
 0x4ef   : > { %vm17126_vm6 = vmand %vm17032_vm2, %vm7068_vm10  ;;  %vm6770_vm2 = vcmp.lt.f32.partialorder %v6642_v0, 0.5  ;;  %v17194_v0 = vand.u32 2147483647, %v6470_v46  ;;  %v7307_v46 = vsel %vm17080_vm15, %v16545_v3, 0.0  ;;  %vm20332_vm15 = vcmp.lt.f32.partialorder %v6648_v6, 0.5 }
 0x4f0   : > { %vm17138_vm0 = vmand %vm17043_vm8, %vm7068_vm10  ;;  %vm20310_vm8 = vcmp.lt.f32.partialorder %v6142_v52, 0.5  ;;  %v17192_v52 = vand.u32 2147483647, %v6469_v60  ;;  %v5967_v60 = vsub.f32 %v17189_v34, %v16605_v2  ;;  %v7311_v39 = vsel %vm17118_vm14, %v16545_v3, 0.0 }
 0x4f1   : > { %vm17151_vm9 = vmand %vm17052_vm1, %vm7068_vm10  ;;  %vm20313_vm10 = vcmp.lt.f32.partialorder %v6643_v12, 0.5  ;;  %vm20318_vm1 = vcmp.lt.f32.partialorder %v6144_v23, 0.5  ;;  %v17204_v12 = vand.u32 2147483647, %v6471_v35  ;;  %v6538_v23 = vsub.f32 %v17170_v43, %v16585_v26 }
 0x4f2   : > { %v20307_v4 = vsel %vm17151_vm9, 4294967295, %v20306_v4  ;;  %vm17161_vm3 = vmand %vm6269_vm4, %vm6769_vm13  ;;  %vm6774_vm13 = vcmp.lt.f32.partialorder %v6646_v5, 0.5  ;;  %vm20317_vm4 = vcmp.lt.f32.partialorder %v6644_v55, 0.5  ;;  %5633 = vrot.lane.b32.xlu2 %v16362_v47, %s14236_s16  ;;  %v5966_v35 = vsub.f32 %v17189_v34, %v16603_v18 }
 0x4f3   : > { %v20309_v14 = vsel %vm17161_vm3, 4294967295, %v20308_v14  ;;  %vm17174_vm9 = vmand %vm20310_vm8, %vm6770_vm2  ;;  %vm20322_vm2 = vcmp.lt.f32.partialorder %v17062_v11, 0.5  ;;  %v7312_v57 = vsel %vm17126_vm6, %v16545_v3, 0.0  ;;  %v7313_v6 = vsel %vm17138_vm0, %v16545_v3, 0.0 }
 0x4f4   : > { %v20312_v54 = vsel %vm17174_vm9, 4294967295, %v20311_v54  ;;  %vm17185_vm3 = vmand %vm20314_vm11, %vm20313_vm10  ;;  %vm20321_vm10 = vcmp.lt.f32.partialorder %v6645_v32, 0.5  ;;  %v5965_v32 = vsub.f32 %v17189_v34, %v16590_v53  ;;  %vm20338_vm14 = vnez %v20307_v4 }
 0x4f5   : > { %vm17198_vm9 = vmand %vm20318_vm1, %vm20317_vm4  ;;  %vm20325_vm1 = vcmp.lt.f32.partialorder %v17064_v58, 0.5  ;;  %v6029_v58 = vsub.f32 %v17202_v31, %v16590_v53  ;;  %v7314_v49 = vsel %vm20338_vm14, %v16545_v3, 0.0  ;;  %vm6724_vm0 = vcmp.lt.f32.partialorder %v17181_v48, 0.5 }
 0x4f6   : > { %vm17213_vm8 = vmand %vm20322_vm2, %vm20321_vm10  ;;  %vm20328_vm2 = vcmp.lt.f32.partialorder %v6647_v50, 0.5  ;;  %vm20329_vm10 = vcmp.lt.f32.partialorder %v17068_v28, 0.5  ;;  %v7309_v28 = vsel %vm17098_vm7, %v16545_v3, 0.0  ;;  %v7310_v50 = vsel %vm17106_vm5, %v16545_v3, 0.0 }
 0x4f7   : > { %vm17228_vm4 = vmand %vm20325_vm1, %vm6774_vm13  ;;  %vm6721_vm13 = vcmp.lt.f32.partialorder %v17166_v13, 0.5  ;;  %vm20333_vm1 = vcmp.lt.f32.partialorder %v17074_v1, 0.5  ;;  %vm20336_vm7 = vcmp.gt.f32.partialorder %v16550_v51, 0.0  ;;  %vm20337_vm5 = vnez %v20309_v14 }
 0x4f8   : > { %vm17242_vm11 = vmand %vm20329_vm10, %vm20328_vm2  ;;  %v5968_v1 = vsub.f32 %v17189_v34, %v16611_v45  ;;  %v5969_v14 = vsub.f32 %v17189_v34, %v16613_v36  ;;  %v6093_v61 = vand.u32 2147483647, %v5965_v32  ;;  %v5970_v4 = vsub.f32 %v17189_v34, %v16615_v15 }
 0x4f9   : > { %vm17263_vm2 = vmand %vm20333_vm1, %vm20332_vm15  ;;  %vm6723_vm15 = vcmp.lt.f32.partialorder %v17179_v19, 0.5  ;;  %vm20340_vm1 = vnez %v20312_v54  ;;  %v6094_v54 = vand.u32 2147483647, %v5966_v35 }
 0x4fa   : > { %vm7171_vm10 = vmand %vm20337_vm5, %vm20336_vm7  ;;  %v6097_v55 = vand.u32 2147483647, %v5969_v14  ;;  %v6099_v14 = vand.u32 2147483647, %v5971_v38  ;;  %v6032_v38 = vsub.f32 %v17202_v31, %v16611_v45 }
 0x4fb   : > { %vm20339_vm6 = vmmov %vm20336_vm7  ;;  %v7299_v40 = vsel %vm7171_vm10, %v16550_v51, 0.0  ;;  %vm6725_vm10 = vcmp.lt.f32.partialorder %v17192_v52, 0.5  ;;  %v17536_v52 = vpop.permute.xlu2 %5856 }
 0x4fc   : > { %vm7172_vm12 = vmand %vm20340_vm1, %vm20339_vm6  ;;  %v17302_v30 = vmax.f32 %v7299_v40, %v7307_v46  ;;  %v6095_v46 = vand.u32 2147483647, %v5967_v60 }
 0x4fd   : > { %vm20341_vm7 = vmmov %vm20339_vm6  ;;  %v7300_v3 = vsel %vm7172_vm12, %v16550_v51, 0.0 }
 0x4fe   : > { %vm7173_vm5 = vmand %vm17185_vm3, %vm20341_vm7  ;;  %v17312_v9 = vmax.f32 %v7300_v3, %v7308_v17  ;;  %vm6726_vm3 = vcmp.lt.f32.partialorder %v17194_v0, 0.5  ;;  %v6096_v17 = vand.u32 2147483647, %v5968_v1  ;;  %v6098_v1 = vand.u32 2147483647, %v5970_v4 }
 0x4ff   : > { %vm20342_vm14 = vmmov %vm20339_vm6  ;;  %v7301_v32 = vsel %vm7173_vm5, %v16550_v51, 0.0 }
 0x500   : > { %vm7174_vm6 = vmand %vm17198_vm9, %vm20342_vm14  ;;  %v17322_v40 = vmax.f32 %v7301_v32, %v7309_v28  ;;  %vm6222_vm9 = vcmp.lt.f32.partialorder %v6094_v54, 0.5  ;;  %vm6223_vm14 = vcmp.lt.f32.partialorder %v6095_v46, 0.5  ;;  %v17388_v54 = vpop.permute.xlu1 %6399  ;;  %v6035_v46 = vsub.f32 %v17202_v31, %v16617_v25 }
 0x501   : > { %vm20343_vm12 = vmmov %vm20341_vm7  ;;  %v7302_v35 = vsel %vm7174_vm6, %v16550_v51, 0.0  ;;  %v6534_v13 = vsub.f32 %v17388_v54, %v16599_v27  ;;  %v6536_v19 = vsub.f32 %v17388_v54, %v16623_v33 }
 0x502   : > { %vm7175_vm1 = vmand %vm17213_vm8, %vm20343_vm12  ;;  %v17332_v3 = vmax.f32 %v7302_v35, %v7310_v50  ;;  %vm6221_vm8 = vcmp.lt.f32.partialorder %v6093_v61, 0.5  ;;  %v6031_v61 = vsub.f32 %v17202_v31, %v16605_v2  ;;  %v6033_v35 = vsub.f32 %v17202_v31, %v16613_v36 }
 0x503   : > { %vm7176_vm5 = vmand %vm17228_vm4, %vm20341_vm7  ;;  %v7303_v60 = vsel %vm7175_vm1, %v16550_v51, 0.0  ;;  %vm7061_vm4 = vcmp.gt.f32.partialorder %v16552_v62, 0.0 }
 0x504   : > { %vm20344_vm6 = vmmov %vm20341_vm7  ;;  %v7304_v34 = vsel %vm7176_vm5, %v16550_v51, 0.0  ;;  %v17340_v28 = vmax.f32 %v7303_v60, %v7311_v39  ;;  %v6100_v39 = vand.u32 2147483647, %v5972_v29  ;;  %v6034_v29 = vsub.f32 %v17202_v31, %v16615_v15 }
 0x505   : > { %vm7177_vm12 = vmand %vm17242_vm11, %vm20344_vm6  ;;  %v17348_v50 = vmax.f32 %v7304_v34, %v7312_v57  ;;  %vm6224_vm11 = vcmp.lt.f32.partialorder %v6096_v17, 0.5  ;;  %v6036_v60 = vsub.f32 %v17202_v31, %v16621_v42  ;;  %v17410_v34 = vand.u32 2147483647, %v6029_v58 }
 0x506   : > { %vm20345_vm1 = vmmov %vm20344_vm6  ;;  %v7305_v11 = vsel %vm7177_vm12, %v16550_v51, 0.0  ;;  %vm6225_vm12 = vcmp.lt.f32.partialorder %v6097_v55, 0.5  ;;  %v17440_v58 = vand.u32 2147483647, %v6538_v23  ;;  %v17458_v23 = vand.u32 2147483647, %v6033_v35 }
 0x507   : > { %vm7178_vm7 = vmand %vm17263_vm2, %vm20345_vm1  ;;  %v17351_v32 = vmax.f32 %v7305_v11, %v7313_v6  ;;  %vm20348_vm2 = vcmask 523264   ;;  %vm20350_vm1 = vcmp.lt.f32.partialorder %v17168_v37, 0.5  ;;  %v17424_v11 = vand.u32 2147483647, %v6537_v56 }
 0x508   : > { %v7306_v5 = vsel %vm7178_vm7, %v16550_v51, 0.0  ;;  %vm17356_vm5 = vmand %vm6221_vm8, %vm6721_vm13  ;;  %v17361_v47 = vsel %vm20348_vm2, %v7314_v49, -inf  ;;  %v6030_v51 = vsub.f32 %v17202_v31, %v16603_v18  ;;  %vm6226_vm13 = vcmp.lt.f32.partialorder %v6098_v1, 0.5 }
 0x509   : > { %vm20349_vm6 = vmmov %vm20348_vm2  ;;  %v6529_v31 = vsub.f32 %v17388_v54, %v16583_v24  ;;  %v20361_v56 = vsub.f32 %v17170_v43, %v16592_v8  ;;  %v6530_v1 = vsub.f32 %v17388_v54, %v16585_v26  ;;  %v17456_v49 = vand.u32 2147483647, %v6032_v38 }
 0x50a   : > { %v17364_v57 = vsel %vm20349_vm6, %v7306_v5, -inf  ;;  %vm17371_vm7 = vmand %vm6222_vm9, %vm20350_vm1  ;;  %vm6227_vm9 = vcmp.lt.f32.partialorder %v6099_v14, 0.5  ;;  %v17426_v5 = vand.u32 2147483647, %v6030_v51  ;;  %v6159_v51 = vand.u32 2147483647, %v6031_v61 }
 0x50b   : > { %vm17384_vm8 = vmand %vm6223_vm14, %vm6723_vm15  ;;  %vm6228_vm15 = vcmp.lt.f32.partialorder %v6100_v39, 0.5  ;;  %v17445_v55 = vand.u32 2147483647, %v20361_v56  ;;  %v17460_v17 = vand.u32 2147483647, %v6034_v29  ;;  %v6533_v38 = vsub.f32 %v17388_v54, %v16597_v41 }
 0x50c   : > { %vm17399_vm2 = vmand %vm6224_vm11, %vm6724_vm0  ;;  %vm20366_vm11 = vcmp.lt.f32.partialorder %v17206_v59, 0.5  ;;  %v17471_v14 = vand.u32 2147483647, %v6035_v46  ;;  %v17473_v56 = vand.u32 2147483647, %v6036_v60  ;;  %v6532_v59 = vsub.f32 %v17388_v54, %v16595_v22 }
 0x50d   : > { %vm17415_vm14 = vmand %vm6225_vm12, %vm6725_vm10  ;;  %20362 = vst [vmem:[#allocation40_spill] sm:$0xff] %v17445_v55  ;;  %vm20363_vm10 = vcmp.lt.f32.partialorder %v17204_v12, 0.5  ;;  %v6531_v12 = vsub.f32 %v17388_v54, %v16592_v8  ;;  %vm6285_vm12 = vcmp.lt.f32.partialorder %v17410_v34, 0.5  ;;  %v6657_v35 = vand.u32 2147483647, %v6529_v31 }
 0x50e   : > { %vm17431_vm0 = vmand %vm6226_vm13, %vm6726_vm3  ;;  %vm6286_vm13 = vcmp.lt.f32.partialorder %v17426_v5, 0.5  ;;  %v6658_v46 = vand.u32 2147483647, %v6530_v1  ;;  %v6535_v37 = vsub.f32 %v17388_v54, %v16601_v20  ;;  %v6661_v48 = vand.u32 2147483647, %v6533_v38 }
 0x50f   : > { %vm17450_vm3 = vmand %vm6227_vm9, %vm20363_vm10  ;;  %v6659_v6 = vand.u32 2147483647, %v6531_v12  ;;  %v5974_v5 = vsub.f32 %v17536_v52, %v16603_v18 }
 0x510   : > { %vm17465_vm6 = vmand %vm6228_vm15, %vm20366_vm11  ;;  %vm6785_vm15 = vcmp.lt.f32.partialorder %v6657_v35, 0.5  ;;  %vm6786_vm10 = vcmp.lt.f32.partialorder %v6658_v46, 0.5  ;;  %v6663_v38 = vand.u32 2147483647, %v6535_v37  ;;  %v20377_v35 = vld [vmem:[#allocation37_spill] sm:$0xff]  ;;  %v20382_v46 = vsub.f32 %v17170_v43, %v16595_v22 }
 0x511   : > { %vm7123_vm1 = vmand %vm17356_vm5, %vm7061_vm4 }
 0x512   : > { %vm7124_vm9 = vmand %vm17371_vm7, %vm7061_vm4  ;;  %v7251_v39 = vsel %vm7123_vm1, %v16552_v62, 0.0 }
 0x513   : > { %vm7125_vm5 = vmand %vm17384_vm8, %vm7061_vm4  ;;  %v7252_v4 = vsel %vm7124_vm9, %v16552_v62, 0.0  ;;  %v17496_v29 = vmax.f32 %v16922_v21, %v7251_v39  ;;  %v6660_v39 = vand.u32 2147483647, %v6532_v59  ;;  %v6662_v59 = vand.u32 2147483647, %v6534_v13  ;;  %v20370_v13 = vld [vmem:[#allocation38_spill] sm:$0xff] }
 0x514   : > { %vm7126_vm7 = vmand %vm17399_vm2, %vm7061_vm4  ;;  %v7253_v60 = vsel %vm7125_vm5, %v16552_v62, 0.0  ;;  %v17506_v31 = vmax.f32 %v16931_v10, %v7252_v4  ;;  %v20369_v4 = vld [vmem:[#allocation24_spill] sm:$0xff]  ;;  %vm20373_vm5 = vcmask 523264  }
 0x515   : > { %vm7127_vm8 = vmand %vm17415_vm14, %vm7061_vm4  ;;  %v7254_v21 = vsel %vm7126_vm7, %v16552_v62, 0.0  ;;  %v17516_v1 = vmax.f32 %v16940_v7, %v7253_v60  ;;  %vm6788_vm1 = vcmp.lt.f32.partialorder %v6660_v39, 0.5  ;;  %vm6789_vm7 = vcmp.lt.f32.partialorder %v6661_v48, 0.5  ;;  %v17592_v48 = vpop.permute.xlu0 %5862 }
 0x516   : > { %vm7128_vm2 = vmand %vm17431_vm0, %vm7061_vm4  ;;  %v7255_v10 = vsel %vm7127_vm8, %v16552_v62, 0.0  ;;  %v17526_v12 = vmax.f32 %v16950_v63, %v7254_v21  ;;  %vm7069_vm0 = vcmp.gt.f32.partialorder %v20369_v4, 0.0  ;;  %v6664_v21 = vand.u32 2147483647, %v6536_v19 }
 0x517   : > { %vm7129_vm14 = vmand %vm17450_vm3, %vm7061_vm4  ;;  %v7256_v7 = vsel %vm7128_vm2, %v16552_v62, 0.0  ;;  %v17534_v54 = vmax.f32 %v16958_v16, %v7255_v10  ;;  %vm6787_vm3 = vcmp.lt.f32.partialorder %v6659_v6, 0.5  ;;  %v20376_v6 = vld [vmem:[#allocation39_spill] sm:$0xff]  ;;  %v17583_v19 = vand.u32 2147483647, %v20382_v46 }
 0x518   : > { %vm7130_vm11 = vmand %vm17465_vm6, %vm7061_vm4  ;;  %v7257_v63 = vsel %vm7129_vm14, %v16552_v62, 0.0  ;;  %v17545_v0 = vmax.f32 %v16965_v44, %v7256_v7  ;;  %vm6287_vm4 = vcmp.lt.f32.partialorder %v6159_v51, 0.5  ;;  %vm6288_vm6 = vcmp.lt.f32.partialorder %v17456_v49, 0.5 }
 0x519   : > { %v7258_v16 = vsel %vm7130_vm11, %v16552_v62, 0.0  ;;  %v17549_v60 = vmax.f32 %v20370_v13, %v7257_v63  ;;  %vm17554_vm9 = vmand %vm6285_vm12, %vm6785_vm15  ;;  %v20378_v34 = vmax.f32 %v20376_v6, %v20377_v35  ;;  %vm6790_vm12 = vcmp.lt.f32.partialorder %v6662_v59, 0.5  ;;  %20383 = vst [vmem:[#allocation38_spill] sm:$0xff] %v17583_v19  ;;  %v6357_v35 = vpop.permute.xlu2 %6356 }
 0x51a   : > { %v7458_v44 = vsel %vm20373_vm5, %v7258_v16, -inf  ;;  %vm17563_vm8 = vmand %vm6286_vm13, %vm6786_vm10  ;;  %v5973_v49 = vsub.f32 %v17536_v52, %v16590_v53  ;;  %vm6289_vm13 = vcmp.lt.f32.partialorder %v17458_v23, 0.5  ;;  %vm6290_vm15 = vcmp.lt.f32.partialorder %v17460_v17, 0.5 }
 0x51b   : > { %v17570_v37 = vmax.f32 %v20378_v34, %v7458_v44  ;;  %vm17572_vm2 = vmand %vm6287_vm4, %vm6787_vm3  ;;  %vm6791_vm14 = vcmp.lt.f32.partialorder %v6663_v38, 0.5  ;;  %vm6792_vm11 = vcmp.lt.f32.partialorder %v6664_v21, 0.5  ;;  %v5975_v63 = vsub.f32 %v17536_v52, %v16605_v2 }
 0x51c   : > { %vm17588_vm10 = vmand %vm6288_vm6, %vm6788_vm1  ;;  %v5976_v23 = vsub.f32 %v17536_v52, %v16611_v45  ;;  %v5977_v17 = vsub.f32 %v17536_v52, %v16613_v36  ;;  %v20388_v39 = vsub.f32 %v17170_v43, %v16597_v41  ;;  %vm6291_vm1 = vcmp.lt.f32.partialorder %v17471_v14, 0.5 }
 0x51d   : > { %20379 = vst [vmem:[#allocation24_spill] sm:$0xff] %v17570_v37  ;;  %vm17594_vm3 = vmand %vm6289_vm13, %vm6789_vm7  ;;  %v5978_v44 = vsub.f32 %v17536_v52, %v16615_v15  ;;  %v5979_v6 = vsub.f32 %v17536_v52, %v16617_v25  ;;  %vm6292_vm6 = vcmp.lt.f32.partialorder %v17473_v56, 0.5  ;;  %v6101_v14 = vand.u32 2147483647, %v5973_v49 }
 0x51e   : > { %v17607_v16 = vand.u32 2147483647, %v20388_v39  ;;  %vm17611_vm4 = vmand %vm6290_vm15, %vm6790_vm12  ;;  %v17627_v59 = vand.u32 2147483647, %v5974_v5  ;;  %v20393_v46 = vsub.f32 %v17170_v43, %v16599_v27  ;;  %v20394_v19 = vsub.f32 %v17170_v43, %v16601_v20 }
 0x51f   : > { %vm17623_vm5 = vmand %vm6291_vm1, %vm6791_vm14  ;;  %v17656_v56 = vand.u32 2147483647, %v5977_v17  ;;  %v5980_v5 = vsub.f32 %v17536_v52, %v16621_v42  ;;  %v17665_v38 = vand.u32 2147483647, %v5978_v44  ;;  %v17667_v61 = vand.u32 2147483647, %v5979_v6 }
 0x520   : > { %v17632_v39 = vand.u32 2147483647, %v20393_v46  ;;  %v17637_v37 = vand.u32 2147483647, %v20394_v19  ;;  %vm17644_vm7 = vmand %vm6292_vm6, %vm6792_vm11  ;;  %v6103_v19 = vand.u32 2147483647, %v5975_v63  ;;  %v6473_v51 = vsub.f32 %v6357_v35, %v16583_v24 }
 0x521   : > { %vm7187_vm12 = vmand %vm17554_vm9, %vm7069_vm0  ;;  %v17654_v46 = vand.u32 2147483647, %v5976_v23  ;;  %vm6230_vm15 = vcmp.lt.f32.partialorder %v17627_v59, 0.5  ;;  %v6474_v17 = vsub.f32 %v6357_v35, %v16585_v26  ;;  %v6475_v10 = vsub.f32 %v6357_v35, %v16592_v8 }
 0x522   : > { %20395 = vst [vmem:[#allocation39_spill] sm:$0xff] %v17637_v37  ;;  %vm7188_vm13 = vmand %vm17563_vm8, %vm7069_vm0  ;;  %v7315_v21 = vsel %vm7187_vm12, %v20369_v4, 0.0  ;;  %vm6229_vm8 = vcmp.lt.f32.partialorder %v6101_v14, 0.5  ;;  %v6476_v6 = vsub.f32 %v6357_v35, %v16595_v22  ;;  %v6477_v7 = vsub.f32 %v6357_v35, %v16597_v41 }
 0x523   : > { %vm7189_vm9 = vmand %vm17572_vm2, %vm7069_vm0  ;;  %v7316_v63 = vsel %vm7188_vm13, %v20369_v4, 0.0  ;;  %v17675_v23 = vmax.f32 %v17302_v30, %v7315_v21  ;;  %v6479_v13 = vsub.f32 %v6357_v35, %v16601_v20  ;;  %v6601_v34 = vand.u32 2147483647, %v6473_v51 }
 0x524   : > { %vm7190_vm14 = vmand %vm17588_vm10, %vm7069_vm0  ;;  %v7317_v52 = vsel %vm7189_vm9, %v20369_v4, 0.0  ;;  %v17684_v62 = vmax.f32 %v17312_v9, %v7316_v63  ;;  %v6478_v63 = vsub.f32 %v6357_v35, %v16599_v27  ;;  %vm20403_vm1 = vcmask 523264  }
 0x525   : > { %20398 = vst [vmem:[#allocation37_spill] sm:$0xff] %v17675_v23  ;;  %vm7191_vm2 = vmand %vm17594_vm3, %vm7069_vm0  ;;  %v7318_v30 = vsel %vm7190_vm14, %v20369_v4, 0.0  ;;  %v17694_v44 = vmax.f32 %v17322_v40, %v7317_v52  ;;  %v6604_v23 = vand.u32 2147483647, %v6476_v6  ;;  %v20404_v49 = vmax.f32 %v17364_v57, %v17361_v47  ;;  %v17783_v6 = vpop.permute.xlu0 %6423 }
 0x526   : > { %20399 = vst [vmem:[#allocation41_spill] sm:$0xff] %v17684_v62  ;;  %vm7192_vm10 = vmand %vm17611_vm4, %vm7069_vm0  ;;  %v7319_v9 = vsel %vm7191_vm2, %v20369_v4, 0.0  ;;  %v17704_v21 = vmax.f32 %v17332_v3, %v7318_v30  ;;  %v6606_v37 = vand.u32 2147483647, %v6478_v63  ;;  %vm6729_vm4 = vcmp.lt.f32.partialorder %v6601_v34, 0.5 }
 0x527   : > { %20400 = vst [vmem:[#allocation42_spill] sm:$0xff] %v17694_v44  ;;  %vm7193_vm11 = vmand %vm17623_vm5, %vm7069_vm0  ;;  %v7320_v40 = vsel %vm7192_vm10, %v20369_v4, 0.0  ;;  %v17714_v52 = vmax.f32 %v17340_v28, %v7319_v9  ;;  %v6480_v44 = vsub.f32 %v6357_v35, %v16623_v33  ;;  %v6603_v9 = vand.u32 2147483647, %v6475_v10 }
 0x528   : > { %20401 = vst [vmem:[#allocation43_spill] sm:$0xff] %v17704_v21  ;;  %vm7194_vm3 = vmand %vm17644_vm7, %vm7069_vm0  ;;  %v7321_v3 = vsel %vm7193_vm11, %v20369_v4, 0.0  ;;  %v17724_v30 = vmax.f32 %v17348_v50, %v7320_v40  ;;  %v6602_v21 = vand.u32 2147483647, %v6474_v17  ;;  %v6607_v50 = vand.u32 2147483647, %v6479_v13 }
 0x529   : > { %20402 = vst [vmem:[#allocation44_spill] sm:$0xff] %v17714_v52  ;;  %v7322_v62 = vsel %vm7194_vm3, %v20369_v4, 0.0  ;;  %v17728_v28 = vmax.f32 %v17351_v32, %v7321_v3  ;;  %v6605_v52 = vand.u32 2147483647, %v6477_v7  ;;  %v6608_v51 = vand.u32 2147483647, %v6480_v44  ;;  %vm17737_vm6 = vmand %vm6229_vm8, %vm6729_vm4 }
 0x52a   : > { %v7570_v35 = vsel %vm20403_vm1, %v7322_v62, -inf  ;;  %vm6730_vm0 = vcmp.lt.f32.partialorder %v6602_v21, 0.5  ;;  %vm6231_vm5 = vcmp.lt.f32.partialorder %v6103_v19, 0.5  ;;  %vm6731_vm7 = vcmp.lt.f32.partialorder %v6603_v9, 0.5  ;;  %v20419_v21 = vld [vmem:[#allocation27_spill] sm:$0xff] }
 0x52b   : > { %v17734_v55 = vmax.f32 %v20404_v49, %v7570_v35  ;;  %vm6732_vm12 = vcmp.lt.f32.partialorder %v6604_v23, 0.5  ;;  %vm6733_vm13 = vcmp.lt.f32.partialorder %v6605_v52, 0.5  ;;  %vm17743_vm9 = vmand %vm6230_vm15, %vm6730_vm0  ;;  %v5984_v47 = vsub.f32 %v17592_v48, %v16611_v45 }
 0x52c   : > { %v6108_v57 = vand.u32 2147483647, %v5980_v5  ;;  %vm6232_vm14 = vcmp.lt.f32.partialorder %v17654_v46, 0.5  ;;  %vm6734_vm8 = vcmp.lt.f32.partialorder %v6606_v37, 0.5  ;;  %vm17750_vm2 = vmand %vm6231_vm5, %vm6731_vm7  ;;  %v5985_v19 = vsub.f32 %v17592_v48, %v16613_v36 }
 0x52d   : > { %v5986_v59 = vsub.f32 %v17592_v48, %v16615_v15  ;;  %vm6233_vm15 = vcmp.lt.f32.partialorder %v17656_v56, 0.5  ;;  %vm6735_vm10 = vcmp.lt.f32.partialorder %v6607_v50, 0.5  ;;  %vm17759_vm11 = vmand %vm6232_vm14, %vm6732_vm12  ;;  %v5987_v5 = vsub.f32 %v17592_v48, %v16617_v25 }
 0x52e   : > { %v5988_v46 = vsub.f32 %v17592_v48, %v16621_v42  ;;  %vm6234_vm3 = vcmp.lt.f32.partialorder %v17665_v38, 0.5  ;;  %vm6736_vm1 = vcmp.lt.f32.partialorder %v6608_v51, 0.5  ;;  %vm17769_vm4 = vmand %vm6233_vm15, %vm6733_vm13  ;;  %v20415_v56 = vsub.f32 %v17170_v43, %v16623_v33 }
 0x52f   : > { %v20416_v44 = vsub.f32 %v17592_v48, %v16590_v53  ;;  %vm6235_vm0 = vcmp.lt.f32.partialorder %v17667_v61, 0.5  ;;  %vm17787_vm5 = vmand %vm6234_vm3, %vm6734_vm8  ;;  %vm7062_vm7 = vcmp.gt.f32.partialorder %v20419_v21, 0.0  ;;  %v20420_v43 = vsub.f32 %v17592_v48, %v16603_v18 }
 0x530   : > { %v17776_v17 = vand.u32 2147483647, %v20415_v56  ;;  %v20421_v63 = vsub.f32 %v17592_v48, %v16605_v2  ;;  %vm6236_vm12 = vcmp.lt.f32.partialorder %v6108_v57, 0.5  ;;  %vm17803_vm13 = vmand %vm6235_vm0, %vm6735_vm10  ;;  %v17807_v61 = vand.u32 2147483647, %v5984_v47  ;;  %v17818_v48 = vpop.permute.xlu1 %5905 }
 0x531   : > { %v17781_v10 = vand.u32 2147483647, %v20416_v44  ;;  %v17795_v7 = vand.u32 2147483647, %v20420_v43  ;;  %v17809_v52 = vand.u32 2147483647, %v5985_v19  ;;  %vm17814_vm14 = vmand %vm6236_vm12, %vm6736_vm1  ;;  %v6561_v35 = vsub.f32 %v17783_v6, %v16583_v24 }
 0x532   : > { %v17800_v40 = vand.u32 2147483647, %v20421_v63  ;;  %v17811_v13 = vand.u32 2147483647, %v5986_v59  ;;  %v17820_v34 = vand.u32 2147483647, %v5987_v5  ;;  %v6562_v49 = vsub.f32 %v17783_v6, %v16585_v26  ;;  %vm7131_vm8 = vmand %vm17737_vm6, %vm7062_vm7 }
 0x533   : > { %v17822_v9 = vand.u32 2147483647, %v5988_v46  ;;  %v6563_v50 = vsub.f32 %v17783_v6, %v16592_v8  ;;  %v6564_v51 = vsub.f32 %v17783_v6, %v16595_v22  ;;  %v6565_v47 = vsub.f32 %v17783_v6, %v16597_v41  ;;  %vm7132_vm15 = vmand %vm17743_vm9, %vm7062_vm7 }
 0x534   : > { %v7259_v57 = vsel %vm7131_vm8, %v20419_v21, 0.0  ;;  %v6566_v4 = vsub.f32 %v17783_v6, %v16599_v27  ;;  %vm7133_vm6 = vmand %vm17750_vm2, %vm7062_vm7  ;;  %v7260_v19 = vsel %vm7132_vm15, %v20419_v21, 0.0  ;;  %v6037_v5 = vsub.f32 %v17818_v48, %v16590_v53 }
 0x535   : > { %v17851_v59 = vmax.f32 %v17496_v29, %v7259_v57  ;;  %v6567_v32 = vsub.f32 %v17783_v6, %v16601_v20  ;;  %vm7134_vm9 = vmand %vm17759_vm11, %vm7062_vm7  ;;  %v7261_v46 = vsel %vm7133_vm6, %v20419_v21, 0.0  ;;  %v17863_v14 = vmax.f32 %v17506_v31, %v7260_v19 }
 0x536   : > { %v6038_v29 = vsub.f32 %v17818_v48, %v16603_v18  ;;  %vm6793_vm2 = vcmp.lt.f32.partialorder %v17424_v11, 0.5  ;;  %v17868_v56 = vand.u32 2147483647, %v6561_v35  ;;  %vm7135_vm10 = vmand %vm17769_vm4, %vm7062_vm7  ;;  %v7262_v23 = vsel %vm7134_vm9, %v20419_v21, 0.0 }
 0x537   : > { %v17876_v44 = vmax.f32 %v17516_v1, %v7261_v46  ;;  %v6041_v31 = vsub.f32 %v17818_v48, %v16613_v36  ;;  %vm6794_vm11 = vcmp.lt.f32.partialorder %v17440_v58, 0.5  ;;  %v17881_v43 = vand.u32 2147483647, %v6562_v49  ;;  %vm7136_vm3 = vmand %vm17787_vm5, %vm7062_vm7  ;;  %v20465_v58 = vld [vmem:[#allocation44_spill] sm:$0xff] }
 0x538   : > { %20426 = vst [vmem:[#allocation27_spill] sm:$0xff] %v17868_v56  ;;  %v7263_v62 = vsel %vm7135_vm10, %v20419_v21, 0.0  ;;  %v17889_v63 = vmax.f32 %v17526_v12, %v7262_v23  ;;  %v6042_v1 = vsub.f32 %v17818_v48, %v16615_v15  ;;  %vm6797_vm1 = vcmp.lt.f32.partialorder %v17607_v16, 0.5  ;;  %vm7137_vm4 = vmand %vm17803_vm13, %vm7062_vm7  ;;  %v20433_v56 = vld [vmem:[#allocation25_spill] sm:$0xff] }
 0x539   : > { %20427 = vst [vmem:[#allocation45_spill] sm:$0xff] %v17881_v43  ;;  %v7264_v35 = vsel %vm7136_vm3, %v20419_v21, 0.0  ;;  %v17900_v38 = vmax.f32 %v17534_v54, %v7263_v62  ;;  %v6043_v49 = vsub.f32 %v17818_v48, %v16617_v25  ;;  %v6165_v12 = vand.u32 2147483647, %v6037_v5  ;;  %vm7138_vm5 = vmand %vm17814_vm14, %vm7062_vm7 }
 0x53a   : > { %vm6798_vm0 = vcmp.lt.f32.partialorder %v17632_v39, 0.5  ;;  %v7265_v57 = vsel %vm7137_vm4, %v20419_v21, 0.0  ;;  %v17911_v37 = vmax.f32 %v17545_v0, %v7264_v35  ;;  %v6044_v54 = vsub.f32 %v17818_v48, %v16621_v42 }
 0x53b   : > { %v6166_v19 = vand.u32 2147483647, %v6038_v29  ;;  %v7266_v46 = vsel %vm7138_vm5, %v20419_v21, 0.0  ;;  %v17917_v5 = vmax.f32 %v17549_v60, %v7265_v57  ;;  %v6039_v23 = vsub.f32 %v17818_v48, %v16605_v2  ;;  %v20434_v29 = vld [vmem:[#allocation40_spill] sm:$0xff] }
 0x53c   : > { %20428 = vst [vmem:[#allocation46_spill] sm:$0xff] %v17911_v37  ;;  %v6169_v62 = vand.u32 2147483647, %v6041_v31  ;;  %v6568_v3 = vsub.f32 %v17783_v6, %v16623_v33  ;;  %v17923_v43 = vand.u32 2147483647, %v6563_v50  ;;  %vm20431_vm7 = vcmask 523264   ;;  %v17934_v31 = vpop.permute.xlu2 %6362 }
 0x53d   : > { %20429 = vst [vmem:[#allocation47_spill] sm:$0xff] %v17917_v5  ;;  %v17926_v0 = vsel %vm20431_vm7, %v7266_v46, -inf  ;;  %v6170_v35 = vand.u32 2147483647, %v6042_v1  ;;  %vm20099_vm12 = vcmp.gt.f32.partialorder %v20433_v56, 0.0  ;;  %vm6795_vm13 = vcmp.lt.f32.partialorder %v20434_v29, 0.5  ;;  %v17939_v46 = vpop.permute.xlu0 %6380 }
 0x53e   : > { %20430 = vst [vmem:[#allocation48_spill] sm:$0xff] %v17923_v43  ;;  %v17930_v21 = vand.u32 2147483647, %v6564_v51  ;;  %v6171_v5 = vand.u32 2147483647, %v6043_v49  ;;  %vm6293_vm14 = vcmp.lt.f32.partialorder %v6165_v12, 0.5  ;;  %v6481_v12 = vsub.f32 %v17934_v31, %v16583_v24 }
 0x53f   : > { %20432 = vst [vmem:[#allocation49_spill] sm:$0xff] %v17926_v0  ;;  %v20437_v6 = vld [vmem:[#allocation39_spill] sm:$0xff]  ;;  %v17937_v50 = vand.u32 2147483647, %v6565_v47  ;;  %v6172_v1 = vand.u32 2147483647, %v6044_v54  ;;  %vm17950_vm3 = vmand %vm6293_vm14, %vm6793_vm2  ;;  %v6506_v54 = vsub.f32 %v17939_v46, %v16585_v26  ;;  %v6482_v11 = vsub.f32 %v17934_v31, %v16585_v26 }
 0x540   : > { %20435 = vst [vmem:[#allocation25_spill] sm:$0xff] %v17930_v21  ;;  %vm6799_vm8 = vcmp.lt.f32.partialorder %v20437_v6, 0.5  ;;  %vm6294_vm15 = vcmp.lt.f32.partialorder %v6166_v19, 0.5  ;;  %vm6800_vm6 = vcmp.lt.f32.partialorder %v17776_v17, 0.5  ;;  %v17942_v43 = vand.u32 2147483647, %v6566_v4 }
 0x541   : > { %20438 = vst [vmem:[#allocation40_spill] sm:$0xff] %v17937_v50  ;;  %v6167_v51 = vand.u32 2147483647, %v6039_v23  ;;  %vm6297_vm9 = vcmp.lt.f32.partialorder %v6169_v62, 0.5  ;;  %v17944_v21 = vand.u32 2147483647, %v6567_v32  ;;  %v6505_v4 = vsub.f32 %v17939_v46, %v16583_v24  ;;  %vm17962_vm5 = vmand %vm6294_vm15, %vm6794_vm11  ;;  %v18010_v50 = vpop.permute.xlu1 %5911 }
 0x542   : > { %20439 = vst [vmem:[#allocation39_spill] sm:$0xff] %v17942_v43  ;;  %v17946_v49 = vand.u32 2147483647, %v6568_v3  ;;  %vm6298_vm10 = vcmp.lt.f32.partialorder %v6170_v35, 0.5  ;;  %vm6299_vm4 = vcmp.lt.f32.partialorder %v6171_v5, 0.5  ;;  %v6507_v19 = vsub.f32 %v17939_v46, %v16592_v8  ;;  %vm17976_vm14 = vmand %vm6297_vm9, %vm6797_vm1 }
 0x543   : > { %20440 = vst [vmem:[#allocation50_spill] sm:$0xff] %v17944_v21  ;;  %v6508_v23 = vsub.f32 %v17939_v46, %v16595_v22  ;;  %vm6300_vm7 = vcmp.lt.f32.partialorder %v6172_v1, 0.5  ;;  %v6483_v3 = vsub.f32 %v17934_v31, %v16592_v8  ;;  %vm6238_vm11 = vcmp.lt.f32.partialorder %v17795_v7, 0.5  ;;  %vm17990_vm2 = vmand %vm6298_vm10, %vm6798_vm0 }
 0x544   : > { %20441 = vst [vmem:[#allocation51_spill] sm:$0xff] %v17946_v49  ;;  %v6509_v57 = vsub.f32 %v17939_v46, %v16597_v41  ;;  %v6040_v49 = vsub.f32 %v17818_v48, %v16611_v45  ;;  %vm6295_vm15 = vcmp.lt.f32.partialorder %v6167_v51, 0.5  ;;  %v6484_v62 = vsub.f32 %v17934_v31, %v16595_v22  ;;  %vm18002_vm9 = vmand %vm6299_vm4, %vm6799_vm8 }
 0x545   : > { %vm6239_vm1 = vcmp.lt.f32.partialorder %v17800_v40, 0.5  ;;  %v6485_v39 = vsub.f32 %v17934_v31, %v16597_v41  ;;  %v6486_v35 = vsub.f32 %v17934_v31, %v16599_v27  ;;  %v6609_v43 = vand.u32 2147483647, %v6481_v12  ;;  %vm18020_vm8 = vmand %vm6300_vm7, %vm6800_vm6 }
 0x546   : > { %vm6240_vm0 = vcmp.lt.f32.partialorder %v17807_v61, 0.5  ;;  %v18015_v6 = vand.u32 2147483647, %v6505_v4  ;;  %v6487_v0 = vsub.f32 %v17934_v31, %v16601_v20  ;;  %v6610_v12 = vand.u32 2147483647, %v6482_v11  ;;  %vm18034_vm4 = vmand %vm6295_vm15, %vm6795_vm13  ;;  %v20461_v11 = vld [vmem:[#allocation38_spill] sm:$0xff] }
 0x547   : > { %v18027_v60 = vand.u32 2147483647, %v6506_v54  ;;  %v18029_v37 = vand.u32 2147483647, %v6507_v19  ;;  %vm18042_vm6 = vmand %vm17950_vm3, %vm20099_vm12  ;;  %v6488_v4 = vsub.f32 %v17934_v31, %v16623_v33  ;;  %v6611_v54 = vand.u32 2147483647, %v6483_v3 }
 0x548   : > { %20452 = vst [vmem:[#allocation52_spill] sm:$0xff] %v18015_v6  ;;  %v6512_v29 = vsub.f32 %v17939_v46, %v16623_v33  ;;  %v18052_v51 = vand.u32 2147483647, %v6508_v23  ;;  %v6168_v19 = vand.u32 2147483647, %v6040_v49  ;;  %vm7199_vm13 = vmand %vm17976_vm14, %vm20099_vm12  ;;  %vm6737_vm10 = vcmp.lt.f32.partialorder %v6609_v43, 0.5 }
 0x549   : > { %20455 = vst [vmem:[#allocation53_spill] sm:$0xff] %v18027_v60  ;;  %v6612_v47 = vand.u32 2147483647, %v6484_v62  ;;  %vm7200_vm15 = vmand %vm17990_vm2, %vm20099_vm12  ;;  %v7327_v31 = vsel %vm7199_vm13, %v20433_v56, 0.0  ;;  %v6613_v3 = vand.u32 2147483647, %v6485_v39  ;;  %v6045_v5 = vsub.f32 %v18010_v50, %v16590_v53 }
 0x54a   : > { %20456 = vst [vmem:[#allocation54_spill] sm:$0xff] %v18029_v37  ;;  %v6614_v21 = vand.u32 2147483647, %v6486_v35  ;;  %vm18069_vm14 = vmand %vm17962_vm5, %vm20099_vm12  ;;  %v7328_v23 = vsel %vm7200_vm15, %v20433_v56, 0.0  ;;  %v18079_v16 = vmax.f32 %v20465_v58, %v7327_v31  ;;  %v6615_v62 = vand.u32 2147483647, %v6487_v0 }
 0x54b   : > { %20462 = vst [vmem:[#allocation38_spill] sm:$0xff] %v18052_v51  ;;  %vm7201_vm2 = vmand %vm18002_vm9, %vm20099_vm12  ;;  %vm6738_vm13 = vcmp.lt.f32.partialorder %v6610_v12, 0.5  ;;  %v20466_v39 = vld [vmem:[#allocation28_spill] sm:$0xff]  ;;  %v18088_v35 = vmax.f32 %v17724_v30, %v7328_v23  ;;  %v6616_v48 = vand.u32 2147483647, %v6488_v4  ;;  %vm6739_vm9 = vcmp.lt.f32.partialorder %v6611_v54, 0.5 }
 0x54c   : > { %vm7202_vm5 = vmand %vm18020_vm8, %vm20099_vm12  ;;  %v7329_v32 = vsel %vm7201_vm2, %v20433_v56, 0.0  ;;  %vm6740_vm15 = vcmp.lt.f32.partialorder %v6612_v47, 0.5  ;;  %vm20467_vm7 = vcmp.lt.f32.partialorder %v17781_v10, 0.5  ;;  %v18103_v30 = vand.u32 2147483647, %v6509_v57  ;;  %v18139_v47 = vpop.permute.xlu1 %6411 }
 0x54d   : > { %v7330_v51 = vsel %vm7202_vm5, %v20433_v56, 0.0  ;;  %v18092_v31 = vmax.f32 %v17728_v28, %v7329_v32  ;;  %vm18097_vm3 = vmand %vm20467_vm7, %vm6737_vm10  ;;  %vm20471_vm8 = vcmask 523264   ;;  %vm6741_vm2 = vcmp.lt.f32.partialorder %v6613_v3, 0.5 }
 0x54e   : > { %20470 = vst [vmem:[#allocation44_spill] sm:$0xff] %v18103_v30  ;;  %v18106_v4 = vsel %vm20471_vm8, %v7330_v51, -inf  ;;  %vm18111_vm5 = vmand %vm6238_vm11, %vm6738_vm13  ;;  %v6046_v10 = vsub.f32 %v18010_v50, %v16603_v18  ;;  %vm6296_vm10 = vcmp.lt.f32.partialorder %v6168_v19, 0.5  ;;  %vm6742_vm7 = vcmp.lt.f32.partialorder %v6614_v21, 0.5 }
 0x54f   : > { %vm18121_vm8 = vmand %vm6239_vm1, %vm6739_vm9  ;;  %v6047_v7 = vsub.f32 %v18010_v50, %v16605_v2  ;;  %v6048_v54 = vsub.f32 %v18010_v50, %v16611_v45  ;;  %v6049_v40 = vsub.f32 %v18010_v50, %v16613_v36  ;;  %v6050_v51 = vsub.f32 %v18010_v50, %v16615_v15 }
 0x550   : > { %vm18129_vm13 = vmand %vm6240_vm0, %vm6740_vm15  ;;  %vm20478_vm9 = vcmp.lt.f32.partialorder %v17809_v52, 0.5  ;;  %v6051_v23 = vsub.f32 %v18010_v50, %v16617_v25  ;;  %v6052_v58 = vsub.f32 %v18010_v50, %v16621_v42  ;;  %v18152_v32 = vand.u32 2147483647, %v6045_v5 }
 0x551   : > { %vm18144_vm11 = vmand %vm20478_vm9, %vm6741_vm2  ;;  %v20481_v43 = vsub.f32 %v17939_v46, %v16599_v27  ;;  %v20483_v52 = vsub.f32 %v17939_v46, %v16601_v20  ;;  %vm20485_vm0 = vcmp.lt.f32.partialorder %v20461_v11, 0.5  ;;  %vm20488_vm2 = vcmp.lt.f32.partialorder %v17811_v13, 0.5 }
 0x552   : > { %vm18167_vm15 = vmand %vm6296_vm10, %vm20485_vm0  ;;  %v18178_v5 = vand.u32 2147483647, %v6046_v10  ;;  %v7323_v13 = vsel %vm18042_vm6, %v20433_v56, 0.0  ;;  %vm20494_vm10 = vcmp.lt.f32.partialorder %v6615_v62, 0.5  ;;  %v18200_v11 = vand.u32 2147483647, %v6047_v7  ;;  %v18230_v7 = vpop.permute.xlu2 %5917 }
 0x553   : > { %v18157_v30 = vand.u32 2147483647, %v20481_v43  ;;  %v18162_v3 = vand.u32 2147483647, %v20483_v52  ;;  %vm18174_vm9 = vmand %vm20488_vm2, %vm6742_vm7  ;;  %v18180_v43 = vand.u32 2147483647, %v6512_v29  ;;  %v6545_v17 = vsub.f32 %v18139_v47, %v16583_v24 }
 0x554   : > { %vm18186_vm1 = vmand %vm18034_vm4, %vm20099_vm12  ;;  %vm20495_vm7 = vcmp.lt.f32.partialorder %v17820_v34, 0.5  ;;  %vm20498_vm4 = vcmp.lt.f32.partialorder %v6616_v48, 0.5  ;;  %vm20499_vm2 = vcmp.lt.f32.partialorder %v17822_v9, 0.5  ;;  %v18211_v1 = vand.u32 2147483647, %v6048_v54 }
 0x555   : > { %20482 = vst [vmem:[#allocation28_spill] sm:$0xff] %v18157_v30  ;;  %vm18196_vm0 = vmand %vm20495_vm7, %vm20494_vm10  ;;  %v18213_v19 = vand.u32 2147483647, %v6049_v40  ;;  %v18215_v34 = vand.u32 2147483647, %v6050_v51  ;;  %v6546_v62 = vsub.f32 %v18139_v47, %v16585_v26  ;;  %vm20502_vm6 = vcmp.gt.f32.partialorder %v20466_v39, 0.0  ;;  %v18451_v30 = vpop.permute.xlu1 %5868 }
 0x556   : > { %20484 = vst [vmem:[#allocation55_spill] sm:$0xff] %v18162_v3  ;;  %vm18207_vm12 = vmand %vm20499_vm2, %vm20498_vm4  ;;  %v18223_v48 = vand.u32 2147483647, %v6051_v23  ;;  %v18225_v9 = vand.u32 2147483647, %v6052_v58  ;;  %v6547_v10 = vsub.f32 %v18139_v47, %v16592_v8  ;;  %v7324_v54 = vsel %vm18069_vm14, %v20433_v56, 0.0 }
 0x557   : > { %20491 = vst [vmem:[#allocation56_spill] sm:$0xff] %v18180_v43  ;;  %vm7139_vm10 = vmand %vm18097_vm3, %vm20502_vm6  ;;  %v20503_v40 = vld [vmem:[#allocation37_spill] sm:$0xff]  ;;  %vm6302_vm2 = vcmp.lt.f32.partialorder %v18178_v5, 0.5  ;;  %v6548_v23 = vsub.f32 %v18139_v47, %v16595_v22  ;;  %vm6303_vm7 = vcmp.lt.f32.partialorder %v18200_v11, 0.5  ;;  %v6549_v28 = vsub.f32 %v18139_v47, %v16597_v41 }
 0x558   : > { %v18236_v51 = vmax.f32 %v20503_v40, %v7323_v13  ;;  %vm20504_vm3 = vmmov %vm20502_vm6  ;;  %v7267_v0 = vsel %vm7139_vm10, %v20466_v39, 0.0  ;;  %v6673_v52 = vand.u32 2147483647, %v6545_v17  ;;  %v6674_v40 = vand.u32 2147483647, %v6546_v62 }
 0x559   : > { %vm7140_vm4 = vmand %vm18111_vm5, %vm20504_vm3  ;;  %v18252_v58 = vmax.f32 %v17851_v59, %v7267_v0  ;;  %v6550_v59 = vsub.f32 %v18139_v47, %v16599_v27  ;;  %v6675_v0 = vand.u32 2147483647, %v6547_v10  ;;  %v6054_v5 = vsub.f32 %v18230_v7, %v16603_v18 }
 0x55a   : > { %vm20505_vm6 = vmmov %vm20504_vm3  ;;  %v7268_v49 = vsel %vm7140_vm4, %v20466_v39, 0.0  ;;  %v6057_v11 = vsub.f32 %v18230_v7, %v16613_v36 }
 0x55b   : > { %vm7141_vm14 = vmand %vm18121_vm8, %vm20505_vm6  ;;  %20506 = vst [vmem:[#allocation37_spill] sm:$0xff] %v18252_v58  ;;  %v18263_v57 = vmax.f32 %v17863_v14, %v7268_v49  ;;  %vm6304_vm8 = vcmp.lt.f32.partialorder %v18211_v1, 0.5  ;;  %v6551_v14 = vsub.f32 %v18139_v47, %v16601_v20  ;;  %v6676_v49 = vand.u32 2147483647, %v6548_v23  ;;  %v20512_v23 = vld [vmem:[#allocation46_spill] sm:$0xff] }
 0x55c   : > { %vm20507_vm5 = vmmov %vm20504_vm3  ;;  %v7269_v13 = vsel %vm7141_vm14, %v20466_v39, 0.0  ;;  %v6678_v21 = vand.u32 2147483647, %v6550_v59  ;;  %v7325_v59 = vsel %vm18186_vm1, %v20433_v56, 0.0 }
 0x55d   : > { %vm7142_vm10 = vmand %vm18129_vm13, %vm20507_vm5  ;;  %20508 = vst [vmem:[#allocation57_spill] sm:$0xff] %v18263_v57  ;;  %v18274_v12 = vmax.f32 %v17876_v44, %v7269_v13  ;;  %vm6305_vm13 = vcmp.lt.f32.partialorder %v18213_v19, 0.5  ;;  %v6552_v44 = vsub.f32 %v18139_v47, %v16623_v33  ;;  %v6060_v19 = vsub.f32 %v18230_v7, %v16621_v42 }
 0x55e   : > { %vm7143_vm4 = vmand %vm18144_vm11, %vm20504_vm3  ;;  %v7270_v17 = vsel %vm7142_vm10, %v20466_v39, 0.0 }
 0x55f   : > { %vm20509_vm6 = vmmov %vm20504_vm3  ;;  %v7271_v62 = vsel %vm7143_vm4, %v20466_v39, 0.0  ;;  %v18285_v61 = vmax.f32 %v17889_v63, %v7270_v17  ;;  %v6677_v63 = vand.u32 2147483647, %v6549_v28  ;;  %v20517_v17 = vld [vmem:[#allocation47_spill] sm:$0xff]  ;;  %v6680_v43 = vand.u32 2147483647, %v6552_v44 }
 0x560   : > { %vm7144_vm14 = vmand %vm18174_vm9, %vm20509_vm6  ;;  %v18296_v50 = vmax.f32 %v17900_v38, %v7271_v62  ;;  %v20513_v38 = vld [vmem:[#allocation26_spill] sm:$0xff]  ;;  %vm20514_vm9 = vcmp.gt.f32.partialorder %v20433_v56, 0.0  ;;  %v6058_v28 = vsub.f32 %v18230_v7, %v16615_v15 }
 0x561   : > { %vm20510_vm5 = vmmov %vm20504_vm3  ;;  %v7272_v10 = vsel %vm7144_vm14, %v20466_v39, 0.0  ;;  %vm6801_vm3 = vcmp.lt.f32.partialorder %v6673_v52, 0.5  ;;  %vm6802_vm14 = vcmp.lt.f32.partialorder %v6674_v40, 0.5  ;;  %vm6805_vm1 = vcmp.lt.f32.partialorder %v6677_v63, 0.5  ;;  %v6418_v52 = vpop.permute.xlu2 %6417 }
 0x562   : > { %vm7145_vm10 = vmand %vm18196_vm0, %vm20510_vm5  ;;  %v18305_v13 = vmax.f32 %v20512_v23, %v7272_v10  ;;  %vm6308_vm0 = vcmp.lt.f32.partialorder %v18225_v9, 0.5  ;;  %v6679_v10 = vand.u32 2147483647, %v6551_v14  ;;  %v20523_v14 = vld [vmem:[#allocation24_spill] sm:$0xff]  ;;  %v6055_v40 = vsub.f32 %v18230_v7, %v16605_v2 }
 0x563   : > { %vm20511_vm4 = vmmov %vm20510_vm5  ;;  %v7273_v47 = vsel %vm7145_vm10, %v20466_v39, 0.0  ;;  %vm7071_vm5 = vcmp.gt.f32.partialorder %v20513_v38, 0.0  ;;  %vm20518_vm10 = vcmask 523264   ;;  %v6557_v3 = vsub.f32 %v6418_v52, %v16597_v41 }
 0x564   : > { %vm7146_vm6 = vmand %vm18207_vm12, %vm20511_vm4  ;;  %v18319_v62 = vmax.f32 %v20517_v17, %v7273_v47  ;;  %vm6803_vm12 = vcmp.lt.f32.partialorder %v6675_v0, 0.5  ;;  %vm6804_vm4 = vcmp.lt.f32.partialorder %v6676_v49, 0.5  ;;  %v20524_v0 = vld [vmem:[#allocation49_spill] sm:$0xff] }
 0x565   : > { %vm18313_vm11 = vmand %vm18167_vm15, %vm20514_vm9  ;;  %v7274_v29 = vsel %vm7146_vm6, %v20466_v39, 0.0  ;;  %vm20519_vm15 = vcmp.lt.f32.partialorder %v18152_v32, 0.5  ;;  %v20522_v39 = vld [vmem:[#allocation41_spill] sm:$0xff]  ;;  %v20525_v17 = vmax.f32 %v20523_v14, %v20524_v0  ;;  %v6053_v32 = vsub.f32 %v18230_v7, %v16590_v53  ;;  %v20535_v0 = vld [vmem:[#allocation43_spill] sm:$0xff] }
 0x566   : > { %v7462_v23 = vsel %vm20518_vm10, %v7274_v29, -inf  ;;  %vm18328_vm9 = vmand %vm20519_vm15, %vm6801_vm3  ;;  %v18333_v47 = vmax.f32 %v20522_v39, %v7324_v54  ;;  %v7326_v54 = vsel %vm18313_vm11, %v20433_v56, 0.0  ;;  %vm6806_vm3 = vcmp.lt.f32.partialorder %v6678_v21, 0.5  ;;  %v20532_v29 = vld [vmem:[#allocation42_spill] sm:$0xff] }
 0x567   : > { %v18338_v57 = vmax.f32 %v20525_v17, %v7462_v23  ;;  %vm18343_vm6 = vmand %vm6302_vm2, %vm6802_vm14  ;;  %vm6807_vm2 = vcmp.lt.f32.partialorder %v6679_v10, 0.5  ;;  %v6056_v56 = vsub.f32 %v18230_v7, %v16611_v45  ;;  %v18375_v23 = vmax.f32 %v20532_v29, %v7325_v59 }
 0x568   : > { %vm18354_vm10 = vmand %vm6303_vm7, %vm6803_vm12  ;;  %vm6808_vm7 = vcmp.lt.f32.partialorder %v6680_v43, 0.5  ;;  %v6059_v39 = vsub.f32 %v18230_v7, %v16617_v25  ;;  %v6553_v14 = vsub.f32 %v6418_v52, %v16583_v24  ;;  %v18388_v17 = vmax.f32 %v20535_v0, %v7326_v54 }
 0x569   : > { %vm18364_vm14 = vmand %vm6304_vm8, %vm6804_vm4  ;;  %vm20536_vm11 = vcmp.lt.f32.partialorder %v18215_v34, 0.5  ;;  %v6181_v63 = vand.u32 2147483647, %v6053_v32  ;;  %v6554_v59 = vsub.f32 %v6418_v52, %v16585_v26  ;;  %v6182_v21 = vand.u32 2147483647, %v6054_v5 }
 0x56a   : > { %vm18380_vm8 = vmand %vm6305_vm13, %vm6805_vm1  ;;  %vm20539_vm13 = vcmp.lt.f32.partialorder %v18223_v48, 0.5  ;;  %v6183_v54 = vand.u32 2147483647, %v6055_v40  ;;  %v6555_v34 = vsub.f32 %v6418_v52, %v16592_v8  ;;  %v6556_v0 = vsub.f32 %v6418_v52, %v16595_v22 }
 0x56b   : > { %vm18393_vm12 = vmand %vm20536_vm11, %vm6806_vm3  ;;  %v6184_v32 = vand.u32 2147483647, %v6056_v56  ;;  %v18415_v10 = vand.u32 2147483647, %v6057_v11  ;;  %v18417_v48 = vand.u32 2147483647, %v6058_v28  ;;  %v6558_v40 = vsub.f32 %v6418_v52, %v16599_v27 }
 0x56c   : > { %vm18403_vm4 = vmand %vm20539_vm13, %vm6807_vm2  ;;  %v18428_v9 = vand.u32 2147483647, %v6059_v39  ;;  %v6559_v56 = vsub.f32 %v6418_v52, %v16601_v20  ;;  %v6681_v11 = vand.u32 2147483647, %v6553_v14  ;;  %v18448_v39 = vand.u32 2147483647, %v6060_v19 }
 0x56d   : > { %vm18411_vm15 = vmand %vm6308_vm0, %vm6808_vm7  ;;  %v6560_v14 = vsub.f32 %v6418_v52, %v16623_v33  ;;  %v6682_v58 = vand.u32 2147483647, %v6554_v59  ;;  %v6683_v44 = vand.u32 2147483647, %v6555_v34  ;;  %v6684_v60 = vand.u32 2147483647, %v6556_v0 }
 0x56e   : > { %vm18424_vm1 = vmand %vm18328_vm9, %vm7071_vm5  ;;  %v6685_v52 = vand.u32 2147483647, %v6557_v3  ;;  %v6686_v19 = vand.u32 2147483647, %v6558_v40  ;;  %v6687_v59 = vand.u32 2147483647, %v6559_v56  ;;  %v5989_v7 = vsub.f32 %v18451_v30, %v16590_v53 }
 0x56f   : > { %vm18436_vm0 = vmand %vm18343_vm6, %vm7071_vm5  ;;  %vm6809_vm2 = vcmp.lt.f32.partialorder %v6681_v11, 0.5  ;;  %v6688_v3 = vand.u32 2147483647, %v6560_v14  ;;  %vm6810_vm3 = vcmp.lt.f32.partialorder %v6682_v58, 0.5  ;;  %v20552_v0 = vld [vmem:[#allocation30_spill] sm:$0xff]  ;;  %v5990_v56 = vsub.f32 %v18451_v30, %v16603_v18 }
 0x570   : > { %vm18444_vm9 = vmand %vm18354_vm10, %vm7071_vm5  ;;  %vm6310_vm10 = vcmp.lt.f32.partialorder %v6182_v21, 0.5  ;;  %v20559_v14 = vmax.f32 %v17734_v55, %v18106_v4  ;;  %v5993_v21 = vsub.f32 %v18451_v30, %v16613_v36  ;;  %v5995_v4 = vsub.f32 %v18451_v30, %v16617_v25 }
 0x571   : > { %vm18457_vm6 = vmand %vm18364_vm14, %vm7071_vm5  ;;  %v7333_v5 = vsel %vm18444_vm9, %v20513_v38, 0.0  ;;  %vm20573_vm9 = vcmp.lt.f32.partialorder %v18428_v9, 0.5 }
 0x572   : > { %vm7207_vm7 = vmand %vm18380_vm8, %vm7071_vm5  ;;  %v7334_v28 = vsel %vm18457_vm6, %v20513_v38, 0.0  ;;  %vm20578_vm6 = vcmp.gt.f32.partialorder %v20552_v0, 0.0 }
 0x573   : > { %vm7208_vm14 = vmand %vm18393_vm12, %vm7071_vm5  ;;  %v7335_v49 = vsel %vm7207_vm7, %v20513_v38, 0.0  ;;  %vm6812_vm7 = vcmp.lt.f32.partialorder %v6684_v60, 0.5 }
 0x574   : > { %vm7209_vm8 = vmand %vm18403_vm4, %vm7071_vm5  ;;  %v7336_v1 = vsel %vm7208_vm14, %v20513_v38, 0.0  ;;  %v18478_v34 = vmax.f32 %v18079_v16, %v7335_v49  ;;  %vm6811_vm4 = vcmp.lt.f32.partialorder %v6683_v44, 0.5  ;;  %vm20553_vm14 = vcmp.lt.f32.partialorder %v6181_v63, 0.5 }
 0x575   : > { %vm7210_vm12 = vmand %vm18411_vm15, %vm7071_vm5  ;;  %v7337_v43 = vsel %vm7209_vm8, %v20513_v38, 0.0  ;;  %v18487_v40 = vmax.f32 %v18088_v35, %v7336_v1  ;;  %vm20556_vm5 = vcmask 523264   ;;  %vm6813_vm15 = vcmp.lt.f32.partialorder %v6685_v52, 0.5 }
 0x576   : > { %v7338_v29 = vsel %vm7210_vm12, %v20513_v38, 0.0  ;;  %v18491_v16 = vmax.f32 %v18092_v31, %v7337_v43  ;;  %vm18494_vm11 = vmand %vm20553_vm14, %vm6809_vm2  ;;  %v5991_v31 = vsub.f32 %v18451_v30, %v16605_v2  ;;  %v5992_v63 = vsub.f32 %v18451_v30, %v16611_v45 }
 0x577   : > { %v7574_v35 = vsel %vm20556_vm5, %v7338_v29, -inf  ;;  %vm18504_vm8 = vmand %vm6310_vm10, %vm6810_vm3  ;;  %vm6814_vm2 = vcmp.lt.f32.partialorder %v6686_v19, 0.5  ;;  %vm20561_vm12 = vcmp.lt.f32.partialorder %v6183_v54, 0.5  ;;  %v5994_v1 = vsub.f32 %v18451_v30, %v16615_v15 }
 0x578   : > { %v18515_v44 = vmax.f32 %v20559_v14, %v7574_v35  ;;  %vm18518_vm14 = vmand %vm20561_vm12, %vm6811_vm4  ;;  %vm6815_vm10 = vcmp.lt.f32.partialorder %v6687_v59, 0.5  ;;  %vm20564_vm5 = vcmp.lt.f32.partialorder %v6184_v32, 0.5  ;;  %v5996_v54 = vsub.f32 %v18451_v30, %v16621_v42  ;;  %v18551_v35 = vpop.permute.xlu1 %6368  ;;  %v18617_v14 = vpop.permute.xlu2 %5874 }
 0x579   : > { %vm18529_vm13 = vmand %vm20564_vm5, %vm6812_vm7  ;;  %v7331_v43 = vsel %vm18424_vm1, %v20513_v38, 0.0  ;;  %vm6816_vm4 = vcmp.lt.f32.partialorder %v6688_v3, 0.5  ;;  %vm20567_vm12 = vcmp.lt.f32.partialorder %v18415_v10, 0.5  ;;  %v18547_v32 = vand.u32 2147483647, %v5989_v7 }
 0x57a   : > { %20560 = vst [vmem:[#allocation46_spill] sm:$0xff] %v18515_v44  ;;  %vm18543_vm3 = vmand %vm20567_vm12, %vm6813_vm15  ;;  %v18549_v29 = vand.u32 2147483647, %v5990_v56  ;;  %v7332_v30 = vsel %vm18436_vm0, %v20513_v38, 0.0  ;;  %vm20570_vm1 = vcmp.lt.f32.partialorder %v18417_v48, 0.5  ;;  %vm6316_vm0 = vcmp.lt.f32.partialorder %v18448_v39, 0.5 }
 0x57b   : > { %vm18562_vm7 = vmand %vm20570_vm1, %vm6814_vm2  ;;  %v18566_v52 = vand.u32 2147483647, %v5991_v31  ;;  %v18568_v7 = vand.u32 2147483647, %v5992_v63  ;;  %v18581_v48 = vand.u32 2147483647, %v5993_v21  ;;  %v7479_v56 = vmax.f32 %v18236_v51, %v7331_v43 }
 0x57c   : > { %vm18577_vm15 = vmand %vm20573_vm9, %vm6815_vm10  ;;  %v18583_v19 = vand.u32 2147483647, %v5994_v1  ;;  %v18591_v38 = vand.u32 2147483647, %v5995_v4  ;;  %v18593_v39 = vand.u32 2147483647, %v5996_v54  ;;  %v6489_v9 = vsub.f32 %v18551_v35, %v16583_v24 }
 0x57d   : > { %vm18587_vm2 = vmand %vm6316_vm0, %vm6816_vm4  ;;  %v7492_v46 = vmax.f32 %v18333_v47, %v7332_v30  ;;  %v7505_v59 = vmax.f32 %v18375_v23, %v7333_v5  ;;  %v6490_v51 = vsub.f32 %v18551_v35, %v16585_v26  ;;  %v6491_v3 = vsub.f32 %v18551_v35, %v16592_v8  ;;  %v12142_v10 = vld [vmem:[#allocation17 + $0xe0] sm:$0xf] }
 0x57e   : > { %vm7211_vm10 = vmand %vm18494_vm11, %vm20578_vm6  ;;  %v7518_v63 = vmax.f32 %v18388_v17, %v7334_v28  ;;  %v6492_v23 = vsub.f32 %v18551_v35, %v16595_v22  ;;  %v6493_v58 = vsub.f32 %v18551_v35, %v16597_v41  ;;  %v6494_v11 = vsub.f32 %v18551_v35, %v16599_v27 }
 0x57f   : > { %vm20579_vm5 = vmmov %vm20578_vm6  ;;  %v7339_v47 = vsel %vm7211_vm10, %v20552_v0, 0.0  ;;  %v6495_v1 = vsub.f32 %v18551_v35, %v16601_v20  ;;  %v6496_v49 = vsub.f32 %v18551_v35, %v16623_v33  ;;  %v6617_v43 = vand.u32 2147483647, %v6489_v9 }
 0x580   : > { %vm7212_vm4 = vmand %vm18504_vm8, %vm20579_vm5  ;;  %v18624_v21 = vmax.f32 %v7479_v56, %v7339_v47  ;;  %v6618_v55 = vand.u32 2147483647, %v6490_v51  ;;  %v6619_v28 = vand.u32 2147483647, %v6491_v3  ;;  %v6620_v60 = vand.u32 2147483647, %v6492_v23 }
 0x581   : > { %vm20580_vm11 = vmmov %vm20579_vm5  ;;  %v7340_v17 = vsel %vm7212_vm4, %v20552_v0, 0.0  ;;  %v6621_v9 = vand.u32 2147483647, %v6493_v58  ;;  %v13586_v51 = vld [vmem:[#allocation17 + $0xec] sm:$0xf0] }
 0x582   : > { %vm7213_vm12 = vmand %vm18518_vm14, %vm20580_vm11  ;;  %20581 = vst [vmem:[#allocation26_spill] sm:$0xff] %v18624_v21  ;;  %v18635_v54 = vmax.f32 %v7492_v46, %v7340_v17  ;;  %vm6245_vm14 = vcmp.lt.f32.partialorder %v18547_v32, 0.5  ;;  %v6622_v37 = vand.u32 2147483647, %v6494_v11  ;;  %v6623_v23 = vand.u32 2147483647, %v6495_v1 }
 0x583   : > { %vm20582_vm8 = vmmov %vm20579_vm5  ;;  %v7341_v4 = vsel %vm7213_vm12, %v20552_v0, 0.0  ;;  %v6624_v58 = vand.u32 2147483647, %v6496_v49  ;;  %v12270_v17 = vld [vmem:[#allocation17 + $0x1e0] sm:$0xf]  ;;  %v20595_v49 = vld [vmem:[#allocation29_spill] sm:$0xff]  ;;  %v6000_v32 = vsub.f32 %v18617_v14, %v16611_v45 }
 0x584   : > { %vm7214_vm1 = vmand %vm18529_vm13, %vm20582_vm8  ;;  %20583 = vst [vmem:[#allocation47_spill] sm:$0xff] %v18635_v54  ;;  %v18645_v5 = vmax.f32 %v7505_v59, %v7341_v4  ;;  %vm6246_vm13 = vcmp.lt.f32.partialorder %v18549_v29, 0.5  ;;  %vm6745_vm8 = vcmp.lt.f32.partialorder %v6617_v43, 0.5  ;;  %v12398_v1 = vld [vmem:[#allocation17 + $0x2e0] sm:$0xf]  ;;  %v6003_v43 = vsub.f32 %v18617_v14, %v16617_v25  ;;  %v20688_v54 = vld [vmem:[#allocation50_spill] sm:$0xff] }
 0x585   : > { %vm20584_vm0 = vmmov %vm20579_vm5  ;;  %v7342_v30 = vsel %vm7214_vm1, %v20552_v0, 0.0  ;;  %vm6247_vm5 = vcmp.lt.f32.partialorder %v18566_v52, 0.5  ;;  %vm6250_vm1 = vcmp.lt.f32.partialorder %v18583_v19, 0.5  ;;  %v13650_v4 = vld [vmem:[#allocation17 + $0x2ec] sm:$0xf0]  ;;  %v6004_v29 = vsub.f32 %v18617_v14, %v16621_v42 }
 0x586   : > { %vm7215_vm9 = vmand %vm18543_vm3, %vm20584_vm0  ;;  %20585 = vst [vmem:[#allocation41_spill] sm:$0xff] %v18645_v5  ;;  %v18653_v56 = vmax.f32 %v7518_v63, %v7342_v30  ;;  %v5997_v30 = vsub.f32 %v18617_v14, %v16590_v53  ;;  %v12399_v11 = vor.u32 %v13650_v4, %v12398_v1  ;;  %v12366_v21 = vld [vmem:[#allocation17 + $0x2a0] sm:$0xf] }
 0x587   : > { %vm20586_vm6 = vmmov %vm20584_vm0  ;;  %v7343_v35 = vsel %vm7215_vm9, %v20552_v0, 0.0  ;;  %vm6746_vm9 = vcmp.lt.f32.partialorder %v6618_v55, 0.5  ;;  %v18773_v19 = vand.u32 2147483647, %v6004_v29  ;;  %v13638_v55 = vld [vmem:[#allocation17 + $0x28c] sm:$0xf0] }
 0x588   : > { %vm7216_vm10 = vmand %vm18562_vm7, %vm20586_vm6  ;;  %20587 = vst [vmem:[#allocation24_spill] sm:$0xff] %v18653_v56  ;;  %v18662_v59 = vmax.f32 %v18478_v34, %v7343_v35  ;;  %vm6248_vm7 = vcmp.lt.f32.partialorder %v18568_v7, 0.5  ;;  %vm6747_vm6 = vcmp.lt.f32.partialorder %v6619_v28, 0.5  ;;  %v6001_v35 = vsub.f32 %v18617_v14, %v16613_v36  ;;  %9128 = vmatpush.bf16.msra.mxu0 %v12399_v11  ;;  %v12238_v56 = vld [vmem:[#allocation17 + $0x1a0] sm:$0xf] }
 0x589   : > { %vm20588_vm3 = vmmov %vm20584_vm0  ;;  %v7344_v46 = vsel %vm7216_vm10, %v20552_v0, 0.0  ;;  %v18734_v28 = vand.u32 2147483647, %v5997_v30  ;;  %v20631_v11 = vld [vmem:[#allocation31_spill] sm:$0xff] }
 0x58a   : > { %vm7217_vm4 = vmand %vm18577_vm15, %vm20588_vm3  ;;  %20589 = vst [vmem:[#allocation49_spill] sm:$0xff] %v18662_v59  ;;  %v18671_v63 = vmax.f32 %v18487_v40, %v7344_v46  ;;  %vm6249_vm15 = vcmp.lt.f32.partialorder %v18581_v48, 0.5  ;;  %v12143_v40 = vor.u32 %v13586_v51, %v12142_v10  ;;  %v6375_v46 = vpop.permute.xlu2 %6374  ;;  %v5998_v51 = vsub.f32 %v18617_v14, %v16603_v18 }
 0x58b   : > { %vm20590_vm11 = vmmov %vm20584_vm0  ;;  %v7345_v3 = vsel %vm7217_vm4, %v20552_v0, 0.0  ;;  %vm20593_vm0 = vcmask 523264   ;;  %vm6748_vm4 = vcmp.lt.f32.partialorder %v6620_v60, 0.5  ;;  %v6497_v44 = vsub.f32 %v6375_v46, %v16583_v24 }
 0x58c   : > { %vm7218_vm12 = vmand %vm18587_vm2, %vm20590_vm11  ;;  %20591 = vst [vmem:[#allocation42_spill] sm:$0xff] %v18671_v63  ;;  %v18676_v47 = vmax.f32 %v18491_v16, %v7345_v3  ;;  %vm6251_vm2 = vcmp.lt.f32.partialorder %v18591_v38, 0.5  ;;  %v13618_v16 = vld [vmem:[#allocation17 + $0x1ec] sm:$0xf0]  ;;  %vm6749_vm11 = vcmp.lt.f32.partialorder %v6621_v9, 0.5  ;;  %9102 = vmatpush.bf16.msrb.mxu2 %v12143_v40  ;;  %v6002_v3 = vsub.f32 %v18617_v14, %v16615_v15 }
 0x58d   : > { %v7346_v34 = vsel %vm7218_vm12, %v20552_v0, 0.0  ;;  %v5999_v0 = vsub.f32 %v18617_v14, %v16605_v2  ;;  %vm6750_vm12 = vcmp.lt.f32.partialorder %v6622_v37, 0.5  ;;  %vm18696_vm10 = vmand %vm6245_vm14, %vm6745_vm8  ;;  %v12271_v40 = vor.u32 %v13618_v16, %v12270_v17  ;;  %v13646_v63 = vld [vmem:[#allocation17 + $0x2cc] sm:$0xf0] }
 0x58e   : > { %20592 = vst [vmem:[#allocation43_spill] sm:$0xff] %v18676_v47  ;;  %v18680_v31 = vsel %vm20593_vm0, %v7346_v34, -inf  ;;  %vm6751_vm0 = vcmp.lt.f32.partialorder %v6623_v23, 0.5  ;;  %vm18707_vm3 = vmand %vm6246_vm13, %vm6746_vm9  ;;  %vm6752_vm14 = vcmp.lt.f32.partialorder %v6624_v58, 0.5  ;;  %v18736_v52 = vand.u32 2147483647, %v6001_v35 }
 0x58f   : > { %20594 = vst [vmem:[#allocation30_spill] sm:$0xff] %v18680_v31  ;;  %vm18718_vm8 = vmand %vm6247_vm5, %vm6747_vm6  ;;  %v18724_v31 = vand.u32 2147483647, %v5999_v0  ;;  %v6498_v16 = vsub.f32 %v6375_v46, %v16585_v26  ;;  %v6499_v1 = vsub.f32 %v6375_v46, %v16592_v8  ;;  %9115 = vmatpush.bf16.msrb.mxu3 %v12271_v40  ;;  %v18747_v7 = vand.u32 2147483647, %v5998_v51 }
 0x590   : > { %vm18730_vm13 = vmand %vm6248_vm7, %vm6748_vm4  ;;  %v18749_v60 = vand.u32 2147483647, %v6002_v3  ;;  %v6500_v0 = vsub.f32 %v6375_v46, %v16595_v22  ;;  %v6501_v4 = vsub.f32 %v6375_v46, %v16597_v41  ;;  %v18760_v48 = vand.u32 2147483647, %v6000_v32  ;;  %v12382_v47 = vld [vmem:[#allocation17 + $0x2c0] sm:$0xf] }
 0x591   : > { %vm18743_vm5 = vmand %vm6249_vm15, %vm6749_vm11  ;;  %v18762_v9 = vand.u32 2147483647, %v6003_v43  ;;  %v6502_v30 = vsub.f32 %v6375_v46, %v16599_v27  ;;  %v6503_v35 = vsub.f32 %v6375_v46, %v16601_v20  ;;  %v6504_v37 = vsub.f32 %v6375_v46, %v16623_v33  ;;  %v12126_v43 = vld [vmem:[#allocation17 + $0xc0] sm:$0xf]  ;;  %v13582_v46 = vld [vmem:[#allocation17 + $0xcc] sm:$0xf0] }
 0x592   : > { %vm18756_vm7 = vmand %vm6250_vm1, %vm6750_vm12  ;;  %vm6255_vm1 = vcmp.lt.f32.partialorder %v18724_v31, 0.5  ;;  %v18777_v3 = vand.u32 2147483647, %v6497_v44  ;;  %vm20610_vm9 = vcmp.lt.f32.partialorder %v18593_v39, 0.5  ;;  %v18787_v38 = vand.u32 2147483647, %v6498_v16  ;;  %v18809_v16 = vpop.permute.xlu1 %5923  ;;  %v18853_v5 = vpop.permute.xlu2 %5929 }
 0x593   : > { %vm18769_vm15 = vmand %vm6251_vm2, %vm6751_vm0  ;;  %v6627_v23 = vand.u32 2147483647, %v6499_v1  ;;  %vm20613_vm4 = vcmp.gt.f32.partialorder %v20595_v49, 0.0  ;;  %v18798_v39 = vand.u32 2147483647, %v6500_v0  ;;  %v6061_v14 = vsub.f32 %v18809_v16, %v16590_v53 }
 0x594   : > { %vm18782_vm6 = vmand %vm20610_vm9, %vm6752_vm14  ;;  %v6629_v58 = vand.u32 2147483647, %v6501_v4  ;;  %v6630_v10 = vand.u32 2147483647, %v6502_v30  ;;  %v6631_v29 = vand.u32 2147483647, %v6503_v35  ;;  %v12127_v30 = vor.u32 %v13582_v46, %v12126_v43 }
 0x595   : > { %vm18793_vm11 = vmand %vm18696_vm10, %vm20613_vm4  ;;  %v12254_v1 = vld [vmem:[#allocation17 + $0x1c0] sm:$0xf]  ;;  %v18827_v4 = vand.u32 2147483647, %v6504_v37  ;;  %v13614_v35 = vld [vmem:[#allocation17 + $0x1cc] sm:$0xf0]  ;;  %v6062_v46 = vsub.f32 %v18809_v16, %v16603_v18  ;;  %v6063_v59 = vsub.f32 %v18809_v16, %v16605_v2  ;;  %v6065_v51 = vsub.f32 %v18809_v16, %v16613_v36 }
 0x596   : > { %vm20616_vm0 = vmmov %vm20613_vm4  ;;  %v12255_v17 = vor.u32 %v13614_v35, %v12254_v1  ;;  %v12110_v37 = vld [vmem:[#allocation17 + $0xa0] sm:$0xf]  ;;  %9103 = vmatpush.bf16.msrb.mxu2 %v12127_v30  ;;  %v12383_v1 = vor.u32 %v13646_v63, %v12382_v47  ;;  %v13578_v35 = vld [vmem:[#allocation17 + $0xac] sm:$0xf0]  ;;  %v6064_v30 = vsub.f32 %v18809_v16, %v16611_v45  ;;  %v6066_v33 = vsub.f32 %v18809_v16, %v16615_v15 }
 0x597   : > { %vm18804_vm14 = vmand %vm18718_vm8, %vm20616_vm0  ;;  %v12111_v63 = vor.u32 %v13578_v35, %v12110_v37  ;;  %v13610_v47 = vld [vmem:[#allocation17 + $0x1ac] sm:$0xf0]  ;;  %v12094_v20 = vld [vmem:[#allocation17 + $0x80] sm:$0xf]  ;;  %v6068_v27 = vsub.f32 %v18809_v16, %v16621_v42  ;;  %v18901_v31 = vand.u32 2147483647, %v6063_v59 }
 0x598   : > { %vm20619_vm10 = vmmov %vm20616_vm0  ;;  %9116 = vmatpush.bf16.msrb.mxu3 %v12255_v17  ;;  %v6067_v17 = vsub.f32 %v18809_v16, %v16617_v25  ;;  %9129 = vmatpush.bf16.msra.mxu0 %v12383_v1  ;;  %v12239_v37 = vor.u32 %v13610_v47, %v12238_v56  ;;  %v13642_v35 = vld [vmem:[#allocation17 + $0x2ac] sm:$0xf0]  ;;  %v20641_v56 = vmov 0  ;;  %v18897_v1 = vand.u32 2147483647, %v6061_v14 }
 0x599   : > { %vm18815_vm4 = vmand %vm18707_vm3, %vm20619_vm10  ;;  %v12367_v41 = vor.u32 %v13642_v35, %v12366_v21  ;;  %v13574_v22 = vld [vmem:[#allocation17 + $0x8c] sm:$0xf0]  ;;  %v12222_v59 = vld [vmem:[#allocation17 + $0x180] sm:$0xf]  ;;  %v6075_v21 = vsub.f32 %v18853_v5, %v16617_v25 }
 0x59a   : > { %vm20622_vm8 = vmmov %vm20616_vm0  ;;  %9104 = vmatpush.bf16.msrb.mxu2 %v12111_v63  ;;  %v12078_v43 = vld [vmem:[#allocation17 + $0x60] sm:$0xf]  ;;  %v13570_v63 = vld [vmem:[#allocation17 + $0x6c] sm:$0xf0]  ;;  %v19046_v14 = vpop.permute.xlu1 %5880 }
 0x59b   : > { %vm18823_vm0 = vmand %vm18730_vm13, %vm20622_vm8  ;;  %v12206_v35 = vld [vmem:[#allocation17 + $0x160] sm:$0xf]  ;;  %v13678_v16 = vld [vmem:[#allocation17 + $0x3cc] sm:$0xf0] }
 0x59c   : > { %vm20625_vm9 = vmmov %vm20622_vm8  ;;  %vm6755_vm8 = vcmp.lt.f32.partialorder %v6627_v23, 0.5  ;;  %v18899_v23 = vand.u32 2147483647, %v6062_v46  ;;  %9117 = vmatpush.bf16.msrb.mxu3 %v12239_v37  ;;  %v18923_v46 = vand.u32 2147483647, %v6065_v51  ;;  %9130 = vmatpush.bf16.msra.mxu0 %v12367_v41  ;;  %v12079_v37 = vor.u32 %v13570_v63, %v12078_v43 }
 0x59d   : > { %vm18833_vm3 = vmand %vm18743_vm5, %vm20625_vm9  ;;  %v13606_v41 = vld [vmem:[#allocation17 + $0x18c] sm:$0xf0] }
 0x59e   : > { %vm20628_vm12 = vmmov %vm20625_vm9 }
 0x59f   : > { %vm18843_vm2 = vmand %vm18756_vm7, %vm20628_vm12 }
 0x5a0   : > { %vm20632_vm7 = vmmov %vm20625_vm9  ;;  %vm6757_vm9 = vcmp.lt.f32.partialorder %v6629_v58, 0.5  ;;  %v12095_v58 = vor.u32 %v13574_v22, %v12094_v20  ;;  %v7278_v22 = vsel %vm18823_vm0, %v20595_v49, 0.0  ;;  %v7280_v40 = vsel %vm18843_vm2, %v20595_v49, 0.0  ;;  %v20678_v20 = vld [vmem:[#allocation48_spill] sm:$0xff] }
 0x5a1   : > { %vm18860_vm12 = vmand %vm18769_vm15, %vm20632_vm7  ;;  %vm6759_vm15 = vcmp.lt.f32.partialorder %v6631_v29, 0.5  ;;  %vm20654_vm0 = vcmp.lt.f32.partialorder %v18760_v48, 0.5  ;;  %v12350_v29 = vld [vmem:[#allocation17 + $0x280] sm:$0xf]  ;;  %vm6253_vm2 = vcmp.lt.f32.partialorder %v18734_v28, 0.5 }
 0x5a2   : > { %vm20635_vm13 = vmmov %vm20632_vm7  ;;  %vm20644_vm7 = vcmp.lt.f32.partialorder %v18749_v60, 0.5  ;;  %v18927_v60 = vand.u32 2147483647, %v6067_v17  ;;  %9105 = vmatpush.bf16.msrb.mxu2 %v12095_v58  ;;  %v12351_v48 = vor.u32 %v13638_v55, %v12350_v29  ;;  %v7406_v17 = vmax.f32 %v18285_v61, %v7278_v22  ;;  %v13602_v58 = vld [vmem:[#allocation17 + $0x16c] sm:$0xf0] }
 0x5a3   : > { %vm18870_vm5 = vmand %vm18782_vm6, %vm20635_vm13  ;;  %vm20640_vm13 = vcmp.lt.f32.partialorder %v18736_v52, 0.5  ;;  %v18914_v52 = vand.u32 2147483647, %v6064_v30  ;;  %v7277_v30 = vsel %vm18804_vm14, %v20595_v49, 0.0  ;;  %vm6754_vm14 = vcmp.lt.f32.partialorder %v18787_v38, 0.5 }
 0x5a4   : > { %vm18884_vm6 = vmand %vm6255_vm1, %vm6755_vm8  ;;  %vm6756_vm1 = vcmp.lt.f32.partialorder %v18798_v39, 0.5  ;;  %vm20643_vm8 = vcmp.lt.f32.partialorder %v6630_v10, 0.5  ;;  %v18925_v10 = vand.u32 2147483647, %v6066_v33  ;;  %v18944_v33 = vand.u32 2147483647, %v6068_v27  ;;  %9131 = vmatpush.bf16.msra.mxu0 %v12351_v48 }
 0x5a5   : > { %vm18893_vm10 = vmand %vm20640_vm13, %vm6757_vm9  ;;  %vm20647_vm13 = vcmp.lt.f32.partialorder %v18762_v9, 0.5  ;;  %v7279_v9 = vsel %vm18833_vm3, %v20595_v49, 0.0  ;;  %v12223_v27 = vor.u32 %v13606_v41, %v12222_v59  ;;  %v7281_v39 = vsel %vm18860_vm12, %v20595_v49, 0.0  ;;  %v13634_v22 = vld [vmem:[#allocation17 + $0x26c] sm:$0xf0]  ;;  %v20670_v48 = vld [vmem:[#allocation27_spill] sm:$0xff] }
 0x5a6   : > { %v20642_v56 = vsel %vm18893_vm10, 4294967295, %v20641_v56  ;;  %vm18910_vm9 = vmand %vm20644_vm7, %vm20643_vm8  ;;  %vm20650_vm7 = vcmp.lt.f32.partialorder %v18827_v4, 0.5  ;;  %vm20651_vm8 = vcmp.lt.f32.partialorder %v18773_v19, 0.5  ;;  %v18961_v4 = vpop.permute.xlu2 %7057  ;;  %v7282_v47 = vsel %vm18870_vm5, %v20595_v49, 0.0  ;;  %9106 = vmatpush.bf16.msrb.mxu2 %v12079_v37  ;;  %v12526_v19 = vld [vmem:[#allocation17 + $0x3e0] sm:$0xf] }
 0x5a7   : > { %vm18919_vm10 = vmand %vm20647_vm13, %vm6759_vm15  ;;  %vm6753_vm15 = vcmp.lt.f32.partialorder %v18777_v3, 0.5  ;;  %v7393_v51 = vmax.f32 %v18274_v12, %v7277_v30  ;;  %vm6254_vm3 = vcmp.lt.f32.partialorder %v18747_v7, 0.5  ;;  %9118 = vmatpush.bf16.msrb.mxu3 %v12223_v27  ;;  %v7419_v6 = vmax.f32 %v18296_v50, %v7279_v9  ;;  %v12334_v30 = vld [vmem:[#allocation17 + $0x260] sm:$0xf] }
 0x5a8   : > { %vm18940_vm13 = vmand %vm20651_vm8, %vm20650_vm7  ;;  %v7432_v12 = vmax.f32 %v18305_v13, %v7280_v40  ;;  %v12207_v59 = vor.u32 %v13602_v58, %v12206_v35  ;;  %v7445_v50 = vmax.f32 %v18319_v62, %v7281_v39  ;;  %v12335_v40 = vor.u32 %v13634_v22, %v12334_v30  ;;  %v13682_v62 = vld [vmem:[#allocation17 + $0x3ec] sm:$0xf0]  ;;  %v12062_v30 = vld [vmem:[#allocation17 + $0x40] sm:$0xf] }
 0x5a9   : > { %vm18957_vm7 = vmand %vm20654_vm0, %vm6756_vm1  ;;  %vm20657_vm1 = vcmp.gt.f32.partialorder %v20631_v11, 0.0  ;;  %vm20664_vm0 = vnez %v20642_v56  ;;  %v12527_v39 = vor.u32 %v13682_v62, %v12526_v19  ;;  %v6071_v58 = vsub.f32 %v18853_v5, %v16605_v2  ;;  %v20680_v22 = vld [vmem:[#allocation25_spill] sm:$0xff]  ;;  %v20685_v3 = vld [vmem:[#allocation39_spill] sm:$0xff] }
 0x5aa   : > { %vm18980_vm12 = vmand %vm18884_vm6, %vm20657_vm1  ;;  %9132 = vmatpush.bf16.msra.mxu0 %v12335_v40  ;;  %v20682_v40 = vld [vmem:[#allocation40_spill] sm:$0xff]  ;;  %v6074_v62 = vsub.f32 %v18853_v5, %v16615_v15  ;;  %v6076_v7 = vsub.f32 %v18853_v5, %v16621_v42 }
 0x5ab   : > { %vm20660_vm5 = vmmov %vm20657_vm1  ;;  %v7285_v32 = vsel %vm18980_vm12, %v20631_v11, 0.0  ;;  %vm20667_vm12 = vcmask 523264   ;;  %9119 = vmatpush.bf16.msrb.mxu3 %v12207_v59  ;;  %9141 = vmatpush.bf16.msra.mxu1 %v12527_v39  ;;  %v6073_v59 = vsub.f32 %v18853_v5, %v16613_v36 }
 0x5ac   : > { %vm18990_vm8 = vmand %vm18957_vm7, %vm20660_vm5  ;;  %v19009_v9 = vmax.f32 %v7393_v51, %v7285_v32  ;;  %v7464_v27 = vsel %vm20667_vm12, %v7282_v47, -inf  ;;  %v6069_v47 = vsub.f32 %v18853_v5, %v16590_v53  ;;  %v6070_v51 = vsub.f32 %v18853_v5, %v16603_v18 }
 0x5ad   : > { %vm20663_vm6 = vmmov %vm20657_vm1  ;;  %v7286_v41 = vsel %vm18990_vm8, %v20631_v11, 0.0  ;;  %vm6318_vm8 = vcmp.lt.f32.partialorder %v18899_v23, 0.5  ;;  %v7465_v61 = vmax.f32 %v18338_v57, %v7464_v27  ;;  %v12190_v57 = vld [vmem:[#allocation17 + $0x140] sm:$0xf]  ;;  %v19119_v38 = vand.u32 2147483647, %v6073_v59 }
 0x5ae   : > { %vm19002_vm1 = vmand %vm20664_vm0, %vm20663_vm6  ;;  %v19024_v55 = vmax.f32 %v7406_v17, %v7286_v41  ;;  %vm6817_vm0 = vcmp.lt.f32.partialorder %v20670_v48, 0.5  ;;  %v20674_v17 = vld [vmem:[#allocation45_spill] sm:$0xff]  ;;  %v19094_v27 = vand.u32 2147483647, %v6069_v47  ;;  %v19096_v56 = vand.u32 2147483647, %v6070_v51  ;;  %v5634_v39 = vpop.permute.xlu2 %5633 }
 0x5af   : > { %vm19017_vm6 = vmand %vm18910_vm9, %vm20660_vm5  ;;  %v7287_v29 = vsel %vm19002_vm1, %v20631_v11, 0.0  ;;  %v13566_v41 = vld [vmem:[#allocation17 + $0x4c] sm:$0xf0]  ;;  %vm6821_vm9 = vcmp.lt.f32.partialorder %v20682_v40, 0.5  ;;  %v12318_v51 = vld [vmem:[#allocation17 + $0x240] sm:$0xf] }
 0x5b0   : > { %vm20671_vm12 = vmmov %vm20660_vm5  ;;  %v7288_v43 = vsel %vm19017_vm6, %v20631_v11, 0.0  ;;  %v19039_v63 = vmax.f32 %v7419_v6, %v7287_v29  ;;  %v6072_v6 = vsub.f32 %v18853_v5, %v16611_v45  ;;  %v13598_v29 = vld [vmem:[#allocation17 + $0x14c] sm:$0xf0]  ;;  %v20693_v5 = vld [vmem:[#allocation51_spill] sm:$0xff]  ;;  %v19171_v48 = vand.u32 2147483647, %v6076_v7 }
 0x5b1   : > { %vm19032_vm7 = vmand %vm18919_vm10, %vm20671_vm12  ;;  %vm6818_vm10 = vcmp.lt.f32.partialorder %v20674_v17, 0.5  ;;  %v19060_v35 = vmax.f32 %v7432_v12, %v7288_v43  ;;  %vm6820_vm12 = vcmp.lt.f32.partialorder %v20680_v22, 0.5  ;;  %v19109_v43 = vand.u32 2147483647, %v6071_v58  ;;  %v12510_v58 = vld [vmem:[#allocation17 + $0x3c0] sm:$0xf] }
 0x5b2   : > { %vm20675_vm1 = vmmov %vm20660_vm5  ;;  %v7289_v37 = vsel %vm19032_vm7, %v20631_v11, 0.0  ;;  %v19111_v47 = vand.u32 2147483647, %v6072_v6  ;;  %vm20692_vm7 = vcmask 17408   ;;  %v6012_v17 = vsub.f32 %v19046_v14, %v16621_v42  ;;  %v13658_v59 = vld [vmem:[#allocation17 + $0x32c] sm:$0xf0] }
 0x5b3   : > { %vm19053_vm5 = vmand %vm18940_vm13, %vm20675_vm1  ;;  %vm6819_vm13 = vcmp.lt.f32.partialorder %v20678_v20, 0.5  ;;  %v19072_v12 = vmax.f32 %v7445_v50, %v7289_v37  ;;  %vm20681_vm1 = vcmask 523264   ;;  %v19114_v37 = vpop.permute.xlu0 %7051  ;;  %5636 = vst.msk [vmem:[%s821_s29] sm:$0x3] %vm20692_vm7, %v5634_v39  ;;  %v13562_v50 = vld [vmem:[#allocation17 + $0x2c] sm:$0xf0] }
 0x5b4   : > { %v7290_v32 = vsel %vm19053_vm5, %v20631_v11, 0.0  ;;  %vm19085_vm5 = vmand %vm6253_vm2, %vm6753_vm15  ;;  %vm6824_vm2 = vcmp.lt.f32.partialorder %v20693_v5, 0.5  ;;  %v20729_v5 = vld [vmem:[#allocation36_spill] sm:$0xff]  ;;  %v20775_v39 = vsel %vm18815_vm4, %v20595_v49, 0.0 }
 0x5b5   : > { %20679 = vst [vmem:[#allocation29_spill] sm:$0xff] %v19072_v12  ;;  %v7466_v13 = vsel %vm20681_vm1, %v7290_v32, -inf  ;;  %vm19103_vm15 = vmand %vm6254_vm3, %vm6754_vm14  ;;  %v12191_v32 = vor.u32 %v13598_v29, %v12190_v57  ;;  %vm20689_vm14 = vcmp.gt.f32.partialorder %v20631_v11, 0.0  ;;  %v12046_v12 = vld [vmem:[#allocation17 + $0x20] sm:$0xf]  ;;  %v12511_v57 = vor.u32 %v13678_v16, %v12510_v58 }
 0x5b6   : > { %v19089_v19 = vmax.f32 %v7465_v61, %v7466_v13  ;;  %v12063_v61 = vor.u32 %v13566_v41, %v12062_v30  ;;  %v13630_v13 = vld [vmem:[#allocation17 + $0x24c] sm:$0xf0]  ;;  %vm19125_vm3 = vmand %vm19085_vm5, %vm20689_vm14  ;;  %v19144_v30 = vand.u32 2147483647, %v6074_v62  ;;  %v6005_v41 = vsub.f32 %v19046_v14, %v16590_v53  ;;  %v12174_v29 = vld [vmem:[#allocation17 + $0x120] sm:$0xf] }
 0x5b7   : > { %v12319_v34 = vor.u32 %v13630_v13, %v12318_v51  ;;  %vm20694_vm6 = vmmov %vm20689_vm14  ;;  %9120 = vmatpush.bf16.msrb.mxu3 %v12191_v32  ;;  %vm20697_vm5 = vcmp.lt.f32.partialorder %v18897_v1, 0.5  ;;  %v19157_v62 = vand.u32 2147483647, %v6075_v21  ;;  %v6006_v53 = vsub.f32 %v19046_v14, %v16603_v18  ;;  %v13594_v51 = vld [vmem:[#allocation17 + $0x12c] sm:$0xf0]  ;;  %9142 = vmatpush.bf16.msra.mxu1 %v12511_v57  ;;  %v19177_v32 = vpop.permute.xlu1 %6429 }
 0x5b8   : > { %vm19140_vm1 = vmand %vm19103_vm15, %vm20694_vm6  ;;  %9107 = vmatpush.bf16.msrb.mxu2 %v12063_v61  ;;  %v6007_v16 = vsub.f32 %v19046_v14, %v16605_v2  ;;  %v12047_v28 = vor.u32 %v13562_v50, %v12046_v12  ;;  %v12302_v61 = vld [vmem:[#allocation17 + $0x220] sm:$0xf]  ;;  %v6008_v18 = vsub.f32 %v19046_v14, %v16611_v45  ;;  %v6009_v2 = vsub.f32 %v19046_v14, %v16613_v36  ;;  %v13626_v12 = vld [vmem:[#allocation17 + $0x22c] sm:$0xf0] }
 0x5b9   : > { %vm19153_vm6 = vmand %vm20697_vm5, %vm6817_vm0  ;;  %9133 = vmatpush.bf16.msra.mxu0 %v12319_v34  ;;  %v12175_v34 = vor.u32 %v13594_v51, %v12174_v29  ;;  %v12494_v21 = vld [vmem:[#allocation17 + $0x3a0] sm:$0xf]  ;;  %v6010_v45 = vsub.f32 %v19046_v14, %v16615_v15  ;;  %v6011_v36 = vsub.f32 %v19046_v14, %v16617_v25  ;;  %v12303_v7 = vor.u32 %v13626_v12, %v12302_v61  ;;  %v13674_v13 = vld [vmem:[#allocation17 + $0x3ac] sm:$0xf0] }
 0x5ba   : > { %vm19167_vm0 = vmand %vm6318_vm8, %vm6818_vm10  ;;  %vm20702_vm8 = vcmp.lt.f32.partialorder %v18901_v31, 0.5  ;;  %v7283_v20 = vsel %vm19125_vm3, %v20631_v11, 0.0  ;;  %v7284_v31 = vsel %vm19140_vm1, %v20631_v11, 0.0  ;;  %v19207_v25 = vand.u32 2147483647, %v6005_v41 }
 0x5bb   : > { %vm19183_vm10 = vmand %vm20702_vm8, %vm6819_vm13  ;;  %vm20705_vm13 = vcmp.lt.f32.partialorder %v18914_v52, 0.5  ;;  %9121 = vmatpush.bf16.msrb.mxu3 %v12175_v34  ;;  %v12495_v42 = vor.u32 %v13674_v13, %v12494_v21  ;;  %vm20708_vm14 = vcmp.lt.f32.partialorder %v18923_v46, 0.5  ;;  %v19217_v22 = vand.u32 2147483647, %v6006_v53  ;;  %v12030_v61 = vld [vmem:[#allocation17] sm:$0xf] }
 0x5bc   : > { %vm19203_vm15 = vmand %vm20705_vm13, %vm6820_vm12  ;;  %9108 = vmatpush.bf16.msrb.mxu2 %v12047_v28  ;;  %v19219_v52 = vand.u32 2147483647, %v6007_v16  ;;  %v6569_v58 = vsub.f32 %v19177_v32, %v16583_v24  ;;  %v6570_v41 = vsub.f32 %v19177_v32, %v16585_v26  ;;  %vm20711_vm12 = vcmp.lt.f32.partialorder %v20685_v3, 0.5  ;;  %v20715_v24 = vld [vmem:[#allocation32_spill] sm:$0xff]  ;;  %v20720_v16 = vld [vmem:[#allocation33_spill] sm:$0xff] }
 0x5bd   : > { %vm19213_vm5 = vmand %vm20708_vm14, %vm6821_vm9  ;;  %9134 = vmatpush.bf16.msra.mxu0 %v12303_v7  ;;  %vm20712_vm8 = vcmp.lt.f32.partialorder %v18925_v10, 0.5  ;;  %v19233_v40 = vand.u32 2147483647, %v6008_v18  ;;  %v19235_v57 = vand.u32 2147483647, %v6009_v2  ;;  %9143 = vmatpush.bf16.msra.mxu1 %v12495_v42  ;;  %v6571_v50 = vsub.f32 %v19177_v32, %v16592_v8  ;;  %v20721_v28 = vld [vmem:[#allocation34_spill] sm:$0xff] }
 0x5be   : > { %vm19229_vm13 = vmand %vm20712_vm8, %vm20711_vm12  ;;  %v6572_v29 = vsub.f32 %v19177_v32, %v20715_v24  ;;  %vm20716_vm9 = vcmp.lt.f32.partialorder %v20688_v54, 0.5  ;;  %vm20717_vm14 = vcmp.lt.f32.partialorder %v18927_v60, 0.5  ;;  %v19249_v10 = vand.u32 2147483647, %v6010_v45  ;;  %v13558_v54 = vld [vmem:[#allocation17 + $0xc] sm:$0xf0] }
 0x5bf   : > { %vm19245_vm7 = vmand %vm20717_vm14, %vm20716_vm9  ;;  %v19251_v3 = vand.u32 2147483647, %v6011_v36  ;;  %v19253_v53 = vand.u32 2147483647, %v6012_v17  ;;  %v6573_v8 = vsub.f32 %v19177_v32, %v20720_v16  ;;  %v6574_v51 = vsub.f32 %v19177_v32, %v20721_v28  ;;  %v12158_v18 = vld [vmem:[#allocation17 + $0x100] sm:$0xf] }
 0x5c0   : > { %vm20722_vm12 = vcmp.lt.f32.partialorder %v18944_v33, 0.5  ;;  %v20725_v2 = vld [vmem:[#allocation35_spill] sm:$0xff]  ;;  %v19270_v12 = vand.u32 2147483647, %v6569_v58  ;;  %v19272_v21 = vand.u32 2147483647, %v6570_v41  ;;  %v6576_v36 = vsub.f32 %v19177_v32, %v20729_v5 }
 0x5c1   : > { %vm19263_vm8 = vmand %vm20722_vm12, %vm6824_vm2  ;;  %v6575_v34 = vsub.f32 %v19177_v32, %v20725_v2  ;;  %v13590_v45 = vld [vmem:[#allocation17 + $0x10c] sm:$0xf0]  ;;  %vm20726_vm14 = vcmp.gt.f32.partialorder %v19114_v37, 0.0  ;;  %v19285_v17 = vand.u32 2147483647, %v6571_v50  ;;  %v12031_v58 = vor.u32 %v13558_v54, %v12030_v61  ;;  %v20767_v33 = vld [vmem:[#allocation28_spill] sm:$0xff] }
 0x5c2   : > { %vm19278_vm1 = vmand %vm19153_vm6, %vm20726_vm14  ;;  %v19287_v7 = vand.u32 2147483647, %v6572_v29  ;;  %v12286_v13 = vld [vmem:[#allocation17 + $0x200] sm:$0xf]  ;;  %v19298_v42 = vand.u32 2147483647, %v6573_v8  ;;  %v12159_v41 = vor.u32 %v13590_v45, %v12158_v18 }
 0x5c3   : > { %vm20730_vm12 = vmmov %vm20726_vm14  ;;  %v13622_v32 = vld [vmem:[#allocation17 + $0x20c] sm:$0xf0]  ;;  %v12478_v50 = vld [vmem:[#allocation17 + $0x380] sm:$0xf]  ;;  %v19309_v1 = vand.u32 2147483647, %v6574_v51  ;;  %9109 = vmatpush.bf16.msrb.mxu2 %v12031_v58 }
 0x5c4   : > { %vm19293_vm9 = vmand %vm19167_vm0, %vm20730_vm12  ;;  %v12287_v29 = vor.u32 %v13622_v32, %v12286_v13  ;;  %v13670_v16 = vld [vmem:[#allocation17 + $0x38c] sm:$0xf0]  ;;  %v12654_v8 = vld [vmem:[#allocation17 + $0x4e0] sm:$0xf]  ;;  %v20736_v28 = vmov 0  ;;  %9122 = vmatpush.bf16.msrb.mxu3 %v12159_v41  ;;  %v20739_v18 = vmov 0 }
 0x5c5   : > { %vm20733_vm14 = vmmov %vm20730_vm12  ;;  %v19320_v23 = vand.u32 2147483647, %v6575_v34  ;;  %v12479_v61 = vor.u32 %v13670_v16, %v12478_v50  ;;  %v13714_v51 = vld [vmem:[#allocation17 + $0x4ec] sm:$0xf0]  ;;  %v12782_v54 = vld [vmem:[#allocation17 + $0x5e0] sm:$0xf] }
 0x5c6   : > { %vm19304_vm2 = vmand %vm19183_vm10, %vm20733_vm14  ;;  %v19332_v15 = vand.u32 2147483647, %v6576_v36  ;;  %9135 = vmatpush.bf16.msra.mxu0 %v12287_v29  ;;  %v12655_v2 = vor.u32 %v13714_v51, %v12654_v8  ;;  %v13746_v34 = vld [vmem:[#allocation17 + $0x5ec] sm:$0xf0]  ;;  %v12910_v45 = vld [vmem:[#allocation17 + $0x6e0] sm:$0xf] }
 0x5c7   : > { %vm19315_vm6 = vmand %vm19203_vm15, %vm20730_vm12  ;;  %v20742_v14 = vmov 0  ;;  %9144 = vmatpush.bf16.msra.mxu1 %v12479_v61  ;;  %v12783_v5 = vor.u32 %v13746_v34, %v12782_v54  ;;  %v13778_v36 = vld [vmem:[#allocation17 + $0x6ec] sm:$0xf0]  ;;  %v12462_v13 = vld [vmem:[#allocation17 + $0x360] sm:$0xf]  ;;  %v20746_v46 = vmov 0 }
 0x5c8   : > { %v20737_v28 = vsel %vm19315_vm6, 4294967295, %v20736_v28  ;;  %vm20738_vm14 = vmmov %vm20730_vm12  ;;  %v20744_v58 = vld [vmem:[#allocation52_spill] sm:$0xff]  ;;  %9154 = vmatpush.bf16.msra.mxu2 %v12655_v2  ;;  %v12911_v41 = vor.u32 %v13778_v36, %v12910_v45  ;;  %v13666_v32 = vld [vmem:[#allocation17 + $0x36c] sm:$0xf0]  ;;  %vm20763_vm15 = vcmp.lt.f32.partialorder %v19285_v17, 0.5 }
 0x5c9   : > { %vm19326_vm0 = vmand %vm19213_vm5, %vm20738_vm14  ;;  %v12638_v50 = vld [vmem:[#allocation17 + $0x4c0] sm:$0xf]  ;;  %v20748_v29 = vld [vmem:[#allocation53_spill] sm:$0xff]  ;;  %9167 = vmatpush.bf16.msra.mxu3 %v12783_v5  ;;  %v12463_v16 = vor.u32 %v13666_v32, %v12462_v13  ;;  %vm6829_vm5 = vcmp.lt.f32.partialorder %v19298_v42, 0.5  ;;  %vm20758_vm14 = vcmp.lt.f32.partialorder %v19272_v21, 0.5  ;;  %v19405_v32 = vpop.permute.xlu1 %7008 }
 0x5ca   : > { %v20740_v18 = vsel %vm19326_vm0, 4294967295, %v20739_v18  ;;  %vm20741_vm10 = vmmov %vm20730_vm12  ;;  %v13710_v8 = vld [vmem:[#allocation17 + $0x4cc] sm:$0xf0]  ;;  %v12766_v61 = vld [vmem:[#allocation17 + $0x5c0] sm:$0xf]  ;;  %9180 = vmatpush.bf16.msrb.mxu0 %v12911_v41  ;;  %v7347_v41 = vsel %vm19278_vm1, %v19114_v37, 0.0 }
 0x5cb   : > { %vm19338_vm6 = vmand %vm19229_vm13, %vm20741_vm10  ;;  %v20752_v51 = vld [vmem:[#allocation54_spill] sm:$0xff]  ;;  %v12639_v54 = vor.u32 %v13710_v8, %v12638_v50  ;;  %v12894_v34 = vld [vmem:[#allocation17 + $0x6c0] sm:$0xf]  ;;  %9145 = vmatpush.bf16.msra.mxu1 %v12463_v16  ;;  %v20768_v8 = vsel %vm18793_vm11, %v20595_v49, 0.0 }
 0x5cc   : > { %v20743_v14 = vsel %vm19338_vm6, 4294967295, %v20742_v14  ;;  %vm20745_vm0 = vmmov %vm20741_vm10  ;;  %v13742_v2 = vld [vmem:[#allocation17 + $0x5cc] sm:$0xf0]  ;;  %vm20759_vm6 = vcmp.lt.f32.partialorder %v19096_v56, 0.5  ;;  %v12446_v36 = vld [vmem:[#allocation17 + $0x340] sm:$0xf] }
 0x5cd   : > { %vm19350_vm13 = vmand %vm19245_vm7, %vm20745_vm0  ;;  %v20757_v45 = vld [vmem:[#allocation38_spill] sm:$0xff]  ;;  %v20762_v13 = vld [vmem:[#allocation44_spill] sm:$0xff]  ;;  %9155 = vmatpush.bf16.msra.mxu2 %v12639_v54  ;;  %vm20770_vm10 = vcmp.lt.f32.partialorder %v19287_v7, 0.5 }
 0x5ce   : > { %v20747_v46 = vsel %vm19350_vm13, 4294967295, %v20746_v46  ;;  %vm20749_vm12 = vmmov %vm20745_vm0  ;;  %vm20753_vm13 = vcmp.lt.f32.partialorder %v19270_v12, 0.5  ;;  %v12767_v12 = vor.u32 %v13742_v2, %v12766_v61  ;;  %v13774_v5 = vld [vmem:[#allocation17 + $0x6cc] sm:$0xf0]  ;;  %v12622_v16 = vld [vmem:[#allocation17 + $0x4a0] sm:$0xf] }
 0x5cf   : > { %vm19362_vm7 = vmand %vm19263_vm8, %vm20749_vm12  ;;  %vm20754_vm8 = vcmp.lt.f32.partialorder %v19094_v27, 0.5  ;;  %v12895_v21 = vor.u32 %v13774_v5, %v12894_v34  ;;  %v13662_v50 = vld [vmem:[#allocation17 + $0x34c] sm:$0xf0]  ;;  %v12750_v34 = vld [vmem:[#allocation17 + $0x5a0] sm:$0xf] }
 0x5d0   : > { %vm19375_vm12 = vmand %vm20754_vm8, %vm20753_vm13  ;;  %v20769_v61 = vld [vmem:[#allocation37_spill] sm:$0xff]  ;;  %vm20771_vm8 = vcmp.lt.f32.partialorder %v19111_v47, 0.5  ;;  %9168 = vmatpush.bf16.msra.mxu3 %v12767_v12  ;;  %v12447_v44 = vor.u32 %v13662_v50, %v12446_v36  ;;  %v20774_v5 = vld [vmem:[#allocation55_spill] sm:$0xff]  ;;  %v7349_v47 = vsel %vm19304_vm2, %v19114_v37, 0.0  ;;  %vm20781_vm2 = vnez %v20737_v28 }
 0x5d1   : > { %vm19387_vm13 = vmand %vm20759_vm6, %vm20758_vm14  ;;  %vm20764_vm6 = vcmp.lt.f32.partialorder %v19109_v43, 0.5  ;;  %v7367_v17 = vmax.f32 %v20769_v61, %v20768_v8  ;;  %v7348_v43 = vsel %vm19293_vm9, %v19114_v37, 0.0  ;;  %v13706_v2 = vld [vmem:[#allocation17 + $0x4ac] sm:$0xf0]  ;;  %vm6832_vm9 = vcmp.lt.f32.partialorder %v19332_v15, 0.5  ;;  %9181 = vmatpush.bf16.msrb.mxu0 %v12895_v21  ;;  %v20780_v36 = vld [vmem:[#allocation56_spill] sm:$0xff] }
 0x5d2   : > { %vm19401_vm14 = vmand %vm20764_vm6, %vm20763_vm15  ;;  %vm6831_vm6 = vcmp.lt.f32.partialorder %v19320_v23, 0.5  ;;  %v20776_v8 = vld [vmem:[#allocation57_spill] sm:$0xff]  ;;  %v12623_v0 = vor.u32 %v13706_v2, %v12622_v16  ;;  %v12878_v49 = vld [vmem:[#allocation17 + $0x6a0] sm:$0xf]  ;;  %v7354_v42 = vsel %vm19362_vm7, %v19114_v37, 0.0  ;;  %9146 = vmatpush.bf16.msra.mxu1 %v12447_v44  ;;  %vm20787_vm7 = vnez %v20740_v18 }
 0x5d3   : > { %vm19422_vm0 = vmand %vm20771_vm8, %vm20770_vm10  ;;  %v7380_v61 = vmax.f32 %v20776_v8, %v20775_v39  ;;  %vm20777_vm10 = vcmp.lt.f32.partialorder %v19119_v38, 0.5  ;;  %v13738_v12 = vld [vmem:[#allocation17 + $0x5ac] sm:$0xf0]  ;;  %v19449_v24 = vmax.f32 %v7367_v17, %v7283_v20  ;;  %v7350_v38 = vsel %vm20781_vm2, %v19114_v37, 0.0  ;;  %v12430_v50 = vld [vmem:[#allocation17 + $0x320] sm:$0xf] }
 0x5d4   : > { %vm19440_vm8 = vmand %vm20777_vm10, %vm6829_vm5  ;;  %vm20782_vm5 = vcmp.lt.f32.partialorder %v19309_v1, 0.5  ;;  %vm20783_vm10 = vcmp.lt.f32.partialorder %v19144_v30, 0.5  ;;  %v12751_v6 = vor.u32 %v13738_v12, %v12750_v34  ;;  %v13770_v20 = vld [vmem:[#allocation17 + $0x6ac] sm:$0xf0]  ;;  %v7351_v30 = vsel %vm20787_vm7, %v19114_v37, 0.0  ;;  %9156 = vmatpush.bf16.msra.mxu2 %v12623_v0  ;;  %v20803_v2 = vld [vmem:[#allocation24_spill] sm:$0xff] }
 0x5d5   : > { %vm19461_vm15 = vmand %vm20783_vm10, %vm20782_vm5  ;;  %v19470_v28 = vmax.f32 %v7380_v61, %v7284_v31  ;;  %vm20788_vm5 = vnez %v20743_v14  ;;  %vm20789_vm10 = vcmp.lt.f32.partialorder %v19157_v62, 0.5  ;;  %v12879_v11 = vor.u32 %v13770_v20, %v12878_v49  ;;  %v12606_v31 = vld [vmem:[#allocation17 + $0x480] sm:$0xf]  ;;  %v20793_v16 = vld [vmem:[#allocation26_spill] sm:$0xff] }
 0x5d6   : > { %v7352_v1 = vsel %vm20788_vm5, %v19114_v37, 0.0  ;;  %vm19482_vm3 = vmand %vm20789_vm10, %vm6831_vm6  ;;  %vm20792_vm2 = vnez %v20747_v46  ;;  %v7481_v17 = vmax.f32 %v20793_v16, %v7347_v41  ;;  %v20794_v14 = vld [vmem:[#allocation47_spill] sm:$0xff]  ;;  %vm20795_vm7 = vcmp.lt.f32.partialorder %v20744_v58, 0.5  ;;  %9169 = vmatpush.bf16.msra.mxu3 %v12751_v6  ;;  %v13702_v46 = vld [vmem:[#allocation17 + $0x48c] sm:$0xf0] }
 0x5d7   : > { %v7353_v18 = vsel %vm20792_vm2, %v19114_v37, 0.0  ;;  %v7494_v44 = vmax.f32 %v20794_v14, %v7348_v43  ;;  %vm20796_vm5 = vcmp.lt.f32.partialorder %v19207_v25, 0.5  ;;  %vm20799_vm10 = vcmp.lt.f32.partialorder %v19171_v48, 0.5  ;;  %v12734_v41 = vld [vmem:[#allocation17 + $0x580] sm:$0xf]  ;;  %v20802_v43 = vld [vmem:[#allocation41_spill] sm:$0xff]  ;;  %9182 = vmatpush.bf16.msrb.mxu0 %v12879_v11 }
 0x5d8   : > { %vm19495_vm6 = vmand %vm20796_vm5, %vm20795_vm7  ;;  %v12431_v37 = vor.u32 %v13658_v59, %v12430_v50  ;;  %v7507_v58 = vmax.f32 %v20802_v43, %v7349_v47  ;;  %v7520_v25 = vmax.f32 %v20803_v2, %v7350_v38  ;;  %vm20804_vm2 = vcmask 523264   ;;  %v13734_v8 = vld [vmem:[#allocation17 + $0x58c] sm:$0xf0]  ;;  %v12862_v61 = vld [vmem:[#allocation17 + $0x680] sm:$0xf] }
 0x5d9   : > { %vm19503_vm4 = vmand %vm20799_vm10, %vm6832_vm9  ;;  %v7578_v34 = vsel %vm20804_vm2, %v7354_v42, -inf  ;;  %vm20805_vm7 = vcmp.lt.f32.partialorder %v20748_v29, 0.5  ;;  %vm20806_vm5 = vcmp.lt.f32.partialorder %v19217_v22, 0.5  ;;  %vm20809_vm9 = vcmp.gt.f32.partialorder %v18961_v4, 0.0  ;;  %v20812_v47 = vld [vmem:[#allocation49_spill] sm:$0xff]  ;;  %v20813_v22 = vld [vmem:[#allocation42_spill] sm:$0xff] }
 0x5da   : > { %vm19514_vm11 = vmand %vm20806_vm5, %vm20805_vm7  ;;  %v12607_v39 = vor.u32 %v13702_v46, %v12606_v31  ;;  %v19527_v29 = vmax.f32 %v20812_v47, %v7351_v30  ;;  %v19530_v0 = vmax.f32 %v20813_v22, %v7352_v1  ;;  %vm20814_vm2 = vcmp.lt.f32.partialorder %v20752_v51, 0.5  ;;  %9147 = vmatpush.bf16.msra.mxu1 %v12431_v37  ;;  %v13766_v38 = vld [vmem:[#allocation17 + $0x68c] sm:$0xf0]  ;;  %v20821_v42 = vld [vmem:[#allocation43_spill] sm:$0xff] }
 0x5db   : > { %vm19522_vm10 = vmand %vm19375_vm12, %vm20809_vm9  ;;  %vm20815_vm7 = vcmp.lt.f32.partialorder %v19219_v52, 0.5  ;;  %v12735_v51 = vor.u32 %v13734_v8, %v12734_v41  ;;  %v12414_v52 = vld [vmem:[#allocation17 + $0x300] sm:$0xf]  ;;  %v19552_v6 = vmax.f32 %v20821_v42, %v7353_v18  ;;  %v13654_v30 = vld [vmem:[#allocation17 + $0x30c] sm:$0xf0] }
 0x5dc   : > { %vm19536_vm5 = vmand %vm20815_vm7, %vm20814_vm2  ;;  %v7355_v49 = vsel %vm19522_vm10, %v18961_v4, 0.0  ;;  %vm20822_vm2 = vcmp.lt.f32.partialorder %v20757_v45, 0.5  ;;  %vm20823_vm7 = vcmp.lt.f32.partialorder %v19233_v40, 0.5  ;;  %9157 = vmatpush.bf16.msra.mxu2 %v12607_v39  ;;  %v12863_v45 = vor.u32 %v13766_v38, %v12862_v61  ;;  %v12590_v40 = vld [vmem:[#allocation17 + $0x460] sm:$0xf]  ;;  %v20829_v11 = vld [vmem:[#allocation46_spill] sm:$0xff] }
 0x5dd   : > { %vm20818_vm12 = vmmov %vm20809_vm9  ;;  %v7482_v1 = vmax.f32 %v7481_v17, %v7355_v49  ;;  %v20830_v59 = vld [vmem:[#allocation30_spill] sm:$0xff]  ;;  %9170 = vmatpush.bf16.msra.mxu3 %v12735_v51  ;;  %v12942_v26 = vld [vmem:[#allocation17 + $0x720] sm:$0xf] }
 0x5de   : > { %vm19544_vm9 = vmand %vm19387_vm13, %vm20818_vm12  ;;  %v20831_v31 = vmax.f32 %v20829_v11, %v20830_v59  ;;  %v13698_v14 = vld [vmem:[#allocation17 + $0x46c] sm:$0xf0]  ;;  %9183 = vmatpush.bf16.msrb.mxu0 %v12863_v45 }
 0x5df   : > { %vm19558_vm1 = vmand %vm20823_vm7, %vm20822_vm2  ;;  %v7356_v50 = vsel %vm19544_vm9, %v18961_v4, 0.0  ;;  %v13730_v41 = vld [vmem:[#allocation17 + $0x56c] sm:$0xf0]  ;;  %v7483_v43 = vrot.slane %v7482_v1, 4 }
 0x5e0   : > { %vm20826_vm13 = vmmov %vm20818_vm12  ;;  %v7579_v18 = vmax.f32 %v20831_v31, %v7578_v34  ;;  %vm20832_vm12 = vcmp.lt.f32.partialorder %v20762_v13, 0.5  ;;  %v12415_v13 = vor.u32 %v13654_v30, %v12414_v52  ;;  %v7495_v37 = vmax.f32 %v7494_v44, %v7356_v50  ;;  %v13762_v15 = vld [vmem:[#allocation17 + $0x66c] sm:$0xf0]  ;;  %v12702_v52 = vld [vmem:[#allocation17 + $0x540] sm:$0xf] }
 0x5e1   : > { %vm19566_vm10 = vmand %vm19401_vm14, %vm20826_vm13  ;;  %vm20833_vm14 = vcmp.lt.f32.partialorder %v19235_v57, 0.5  ;;  %v12718_v57 = vld [vmem:[#allocation17 + $0x560] sm:$0xf]  ;;  %v13794_v47 = vld [vmem:[#allocation17 + $0x76c] sm:$0xf0]  ;;  %v7484_v22 = vmax.f32 %v7482_v1, %v7483_v43 }
 0x5e2   : > { %vm19580_vm2 = vmand %vm20833_vm14, %vm20832_vm12  ;;  %v7357_v17 = vsel %vm19566_vm10, %v18961_v4, 0.0  ;;  %vm20840_vm12 = vcmp.lt.f32.partialorder %v19249_v10, 0.5  ;;  %v12846_v10 = vld [vmem:[#allocation17 + $0x660] sm:$0xf]  ;;  %vm20846_vm10 = vcmp.lt.f32.partialorder %v20774_v5, 0.5  ;;  %9148 = vmatpush.bf16.msra.mxu1 %v12415_v13  ;;  %v12719_v5 = vor.u32 %v13730_v41, %v12718_v57 }
 0x5e3   : > { %vm20836_vm7 = vmmov %vm20826_vm13  ;;  %vm20839_vm13 = vcmp.lt.f32.partialorder %v20767_v33, 0.5  ;;  %v12591_v33 = vor.u32 %v13698_v14, %v12590_v40  ;;  %v7508_v2 = vmax.f32 %v7507_v58, %v7357_v17  ;;  %v7496_v39 = vrot.slane %v7495_v37, 4  ;;  %v13694_v38 = vld [vmem:[#allocation17 + $0x44c] sm:$0xf0]  ;;  %v12830_v40 = vld [vmem:[#allocation17 + $0x640] sm:$0xf] }
 0x5e4   : > { %vm19588_vm9 = vmand %vm19422_vm0, %vm20836_vm7  ;;  %9171 = vmatpush.bf16.msra.mxu3 %v12719_v5  ;;  %v13726_v30 = vld [vmem:[#allocation17 + $0x54c] sm:$0xf0]  ;;  %v7485_v1 = vrot.slane %v7484_v22, 2  ;;  %v12958_v13 = vld [vmem:[#allocation17 + $0x740] sm:$0xf] }
 0x5e5   : > { %vm19599_vm14 = vmand %vm20840_vm12, %vm20839_vm13  ;;  %v7358_v44 = vsel %vm19588_vm9, %v18961_v4, 0.0  ;;  %vm20847_vm13 = vcmp.lt.f32.partialorder %v19251_v3, 0.5  ;;  %v12974_v3 = vld [vmem:[#allocation17 + $0x760] sm:$0xf]  ;;  %vm20853_vm9 = vcmp.lt.f32.partialorder %v20780_v36, 0.5  ;;  %9158 = vmatpush.bf16.msra.mxu2 %v12591_v33  ;;  %v12847_v36 = vor.u32 %v13762_v15, %v12846_v10 }
 0x5e6   : > { %vm20843_vm0 = vmmov %vm20836_vm7  ;;  %v7521_v8 = vmax.f32 %v7520_v25, %v7358_v44  ;;  %v7509_v12 = vrot.slane %v7508_v2, 4  ;;  %v12975_v51 = vor.u32 %v13794_v47, %v12974_v3  ;;  %v19663_v42 = vmax.f32 %v7495_v37, %v7496_v39  ;;  %v13758_v17 = vld [vmem:[#allocation17 + $0x64c] sm:$0xf0]  ;;  %v12558_v41 = vld [vmem:[#allocation17 + $0x420] sm:$0xf] }
 0x5e7   : > { %vm19607_vm7 = vmand %vm19440_vm8, %vm20843_vm0  ;;  %9184 = vmatpush.bf16.msrb.mxu0 %v12847_v36  ;;  %v12703_v16 = vor.u32 %v13726_v30, %v12702_v52  ;;  %v12831_v44 = vor.u32 %v13758_v17, %v12830_v40  ;;  %v13790_v33 = vld [vmem:[#allocation17 + $0x74c] sm:$0xf0]  ;;  %v12686_v5 = vld [vmem:[#allocation17 + $0x520] sm:$0xf]  ;;  %v7486_v15 = vmax.f32 %v7484_v22, %v7485_v1 }
 0x5e8   : > { %vm19618_vm12 = vmand %vm20847_vm13, %vm20846_vm10  ;;  %v7359_v58 = vsel %vm19607_vm7, %v18961_v4, 0.0  ;;  %vm20854_vm10 = vcmp.lt.f32.partialorder %v19253_v53, 0.5  ;;  %v12574_v53 = vld [vmem:[#allocation17 + $0x440] sm:$0xf]  ;;  %v7522_v20 = vrot.slane %v7521_v8, 4  ;;  %v19676_v11 = vmax.f32 %v7508_v2, %v7509_v12  ;;  %9197 = vmatpush.bf16.msrb.mxu1 %v12975_v51 }
 0x5e9   : > { %vm20850_vm8 = vmmov %vm20843_vm0  ;;  %v12575_v45 = vor.u32 %v13694_v38, %v12574_v53  ;;  %9172 = vmatpush.bf16.msra.mxu3 %v12703_v16  ;;  %v12959_v43 = vor.u32 %v13790_v33, %v12958_v13  ;;  %v13690_v2 = vld [vmem:[#allocation17 + $0x42c] sm:$0xf0]  ;;  %v12814_v47 = vld [vmem:[#allocation17 + $0x620] sm:$0xf]  ;;  %v7487_v23 = vrot.slane %v7486_v15, 1  ;;  %v7498_v13 = vrot.slane %v19663_v42, 2 }
 0x5ea   : > { %vm19626_vm0 = vmand %vm19461_vm15, %vm20850_vm8  ;;  %v19690_v14 = vmax.f32 %v7521_v8, %v7522_v20  ;;  %v12559_v8 = vor.u32 %v13690_v2, %v12558_v41  ;;  %v13722_v36 = vld [vmem:[#allocation17 + $0x52c] sm:$0xf0]  ;;  %v12670_v1 = vld [vmem:[#allocation17 + $0x500] sm:$0xf] }
 0x5eb   : > { %vm19637_vm13 = vmand %vm20854_vm10, %vm20853_vm9  ;;  %v7360_v25 = vsel %vm19626_vm0, %v18961_v4, 0.0  ;;  %9159 = vmatpush.bf16.msra.mxu2 %v12575_v45  ;;  %9185 = vmatpush.bf16.msrb.mxu0 %v12831_v44  ;;  %v12687_v22 = vor.u32 %v13722_v36, %v12686_v5  ;;  %v13754_v12 = vld [vmem:[#allocation17 + $0x62c] sm:$0xf0]  ;;  %v12798_v16 = vld [vmem:[#allocation17 + $0x600] sm:$0xf]  ;;  %v7488_v17 = vmax.f32 %v7486_v15, %v7487_v23  ;;  %v7499_v5 = vmax.f32 %v19663_v42, %v7498_v13 }
 0x5ec   : > { %vm20857_vm15 = vmmov %vm20850_vm8  ;;  %9198 = vmatpush.bf16.msrb.mxu1 %v12959_v43  ;;  %v12815_v52 = vor.u32 %v13754_v12, %v12814_v47  ;;  %v13786_v20 = vld [vmem:[#allocation17 + $0x72c] sm:$0xf0]  ;;  %v12926_v33 = vld [vmem:[#allocation17 + $0x700] sm:$0xf]  ;;  %v7524_v7 = vrot.slane %v19690_v14, 2 }
 0x5ed   : > { %vm19645_vm8 = vmand %vm19482_vm3, %vm20857_vm15  ;;  %9173 = vmatpush.bf16.msra.mxu3 %v12687_v22  ;;  %v12943_v30 = vor.u32 %v13786_v20, %v12942_v26  ;;  %v13686_v40 = vld [vmem:[#allocation17 + $0x40c] sm:$0xf0]  ;;  %v7596_v2 = vpack.c.bf16 %v7488_v17, %v7488_v17  ;;  %v19779_v36 = vld [vmem:[#allocation17 + $0xe4] sm:$0xf]  ;;  %v7511_v22 = vrot.slane %v19676_v11, 2 }
 0x5ee   : > { %vm20860_vm9 = vmmov %vm20857_vm15  ;;  %v7361_v49 = vsel %vm19645_vm8, %v18961_v4, 0.0  ;;  %vm20866_vm15 = vcmask 523264   ;;  %v13750_v44 = vld [vmem:[#allocation17 + $0x60c] sm:$0xf0]  ;;  %v19781_v47 = vld [vmem:[#allocation17 + $0xf0] sm:$0xf0]  ;;  %v7525_v17 = vmax.f32 %v19690_v14, %v7524_v7 }
 0x5ef   : > { %vm19656_vm10 = vmand %vm19503_vm4, %vm20860_vm9  ;;  %vm20863_vm4 = vcmp.gt.f32.partialorder %v19405_v32, 0.0  ;;  %9160 = vmatpush.bf16.msra.mxu2 %v12559_v8  ;;  %9186 = vmatpush.bf16.msrb.mxu0 %v12815_v52  ;;  %v13782_v43 = vld [vmem:[#allocation17 + $0x70c] sm:$0xf0]  ;;  %v19786_v52 = vld [vmem:[#allocation17 + $0x1e4] sm:$0xf]  ;;  %v7512_v23 = vmax.f32 %v19676_v11, %v7511_v22 }
 0x5f0   : > { %v7362_v50 = vsel %vm19656_vm10, %v18961_v4, 0.0  ;;  %vm19672_vm3 = vmand %vm19495_vm6, %vm20863_vm4  ;;  %9199 = vmatpush.bf16.msrb.mxu1 %v12943_v30  ;;  %v12927_v15 = vor.u32 %v13782_v43, %v12926_v33  ;;  %v19788_v20 = vld [vmem:[#allocation17 + $0x1f0] sm:$0xf0]  ;;  %v12147_v30 = vor.u32 %v19779_v36, %v19781_v47 }
 0x5f1   : > { %v7580_v59 = vsel %vm20866_vm15, %v7362_v50, -inf  ;;  %vm20867_vm9 = vmmov %vm20863_vm4  ;;  %v7291_v62 = vsel %vm19672_vm3, %v19405_v32, 0.0  ;;  %v12542_v50 = vld [vmem:[#allocation17 + $0x400] sm:$0xf]  ;;  %v7513_v11 = vrot.slane %v7512_v23, 1  ;;  %v12275_v13 = vor.u32 %v19786_v52, %v19788_v20 }
 0x5f2   : > { %vm19683_vm10 = vmand %vm19514_vm11, %vm20867_vm9  ;;  %v19692_v57 = vmax.f32 %v7579_v18, %v7580_v59  ;;  %v7369_v10 = vmax.f32 %v19449_v24, %v7291_v62  ;;  %v12543_v21 = vor.u32 %v13686_v40, %v12542_v50  ;;  %v13718_v62 = vld [vmem:[#allocation17 + $0x50c] sm:$0xf0]  ;;  %v19794_v40 = vld [vmem:[#allocation17 + $0x2e4] sm:$0xf]  ;;  %v7547_v20 = vmax.f32 %v19530_v0, %v7360_v25 }
 0x5f3   : > { %vm20870_vm6 = vmmov %vm20863_vm4  ;;  %v7292_v37 = vsel %vm19683_vm10, %v19405_v32, 0.0  ;;  %v19851_v14 = vld [vmem:[#allocation17 + $0x90] sm:$0xf0]  ;;  %v19853_v24 = vld [vmem:[#allocation17 + $0x184] sm:$0xf] }
 0x5f4   : > { %vm19698_vm11 = vmand %vm19536_vm5, %vm20870_vm6  ;;  %v7382_v3 = vmax.f32 %v19470_v28, %v7292_v37  ;;  %v7370_v51 = vrot.slane %v7369_v10, 4  ;;  %v12671_v37 = vor.u32 %v13718_v62, %v12670_v1  ;;  %9161 = vmatpush.bf16.msra.mxu2 %v12543_v21  ;;  %9200 = vmatpush.bf16.msrb.mxu1 %v12927_v15  ;;  %v19796_v1 = vld [vmem:[#allocation17 + $0x2f0] sm:$0xf0]  ;;  %v19799_v21 = vld [vmem:[#allocation17 + $0x3e4] sm:$0xf]  ;;  %vm20888_vm6 = vcmask 1041409  }
 0x5f5   : > { %vm19710_vm3 = vmand %vm19558_vm1, %vm20863_vm4  ;;  %v7293_v18 = vsel %vm19698_vm11, %v19405_v32, 0.0  ;;  %v19801_v62 = vld [vmem:[#allocation17 + $0x3f0] sm:$0xf0]  ;;  %v19816_v15 = vld [vmem:[#allocation17 + $0x2c4] sm:$0xf]  ;;  %v7548_v56 = vrot.slane %v7547_v20, 4 }
 0x5f6   : > { %vm20875_vm5 = vmmov %vm20863_vm4  ;;  %v7294_v39 = vsel %vm19710_vm3, %v19405_v32, 0.0  ;;  %v7395_v28 = vmax.f32 %v19009_v9, %v7293_v18  ;;  %v7371_v59 = vmax.f32 %v7369_v10, %v7370_v51  ;;  %v7383_v31 = vrot.slane %v7382_v3, 4  ;;  %9174 = vmatpush.bf16.msra.mxu3 %v12671_v37  ;;  %v19808_v37 = vld [vmem:[#allocation17 + $0xd0] sm:$0xf0] }
 0x5f7   : > { %vm19723_vm1 = vmand %vm19580_vm2, %vm20875_vm5  ;;  %v19743_v38 = vmax.f32 %v19024_v55, %v7294_v39  ;;  %v12799_v18 = vor.u32 %v13750_v44, %v12798_v16  ;;  %v12531_v7 = vor.u32 %v19799_v21, %v19801_v62 }
 0x5f8   : > { %vm20878_vm15 = vmmov %vm20863_vm4  ;;  %v7295_v53 = vsel %vm19723_vm1, %v19405_v32, 0.0  ;;  %v7372_v41 = vrot.slane %v7371_v59, 2  ;;  %v7384_v10 = vmax.f32 %v7382_v3, %v7383_v31  ;;  %v7396_v8 = vrot.slane %v7395_v28, 4 }
 0x5f9   : > { %vm19735_vm9 = vmand %vm19599_vm14, %vm20878_vm15  ;;  %v19757_v55 = vmax.f32 %v19039_v63, %v7295_v53  ;;  %9187 = vmatpush.bf16.msrb.mxu0 %v12799_v18  ;;  %v7500_v53 = vrot.slane %v7499_v5, 1  ;;  %v7409_v51 = vrot.slane %v19743_v38, 4  ;;  %v19812_v18 = vld [vmem:[#allocation17 + $0x1d0] sm:$0xf0] }
 0x5fa   : > { %vm20881_vm2 = vmmov %vm20863_vm4  ;;  %v7296_v46 = vsel %vm19735_vm9, %v19405_v32, 0.0  ;;  %v7373_v27 = vmax.f32 %v7371_v59, %v7372_v41  ;;  %v7385_v39 = vrot.slane %v7384_v10, 2  ;;  %v7397_v42 = vmax.f32 %v7395_v28, %v7396_v8 }
 0x5fb   : > { %vm19749_vm14 = vmand %vm19618_vm12, %vm20881_vm2  ;;  %v7501_v50 = vmax.f32 %v7499_v5, %v7500_v53  ;;  %v7526_v5 = vrot.slane %v7525_v17, 1  ;;  %v7434_v52 = vmax.f32 %v19060_v35, %v7296_v46  ;;  %v7560_v35 = vmax.f32 %v19552_v6, %v7361_v49 }
 0x5fc   : > { %vm20884_vm10 = vmmov %vm20881_vm2  ;;  %v7297_v45 = vsel %vm19749_vm14, %v19405_v32, 0.0  ;;  %v7374_v12 = vrot.slane %v7373_v27, 1  ;;  %v7386_v26 = vmax.f32 %v7384_v10, %v7385_v39  ;;  %v7398_v31 = vrot.slane %v7397_v42, 2 }
 0x5fd   : > { %vm19763_vm12 = vmand %vm19637_vm13, %vm20884_vm10  ;;  %vm20887_vm13 = vcmask 523264   ;;  %v7597_v16 = vpack.c.bf16 %v7501_v50, %v7501_v50  ;;  %v7435_v25 = vrot.slane %v7434_v52, 4  ;;  %v7549_v49 = vmax.f32 %v7547_v20, %v7548_v56 }
 0x5fe   : > { %v7298_v63 = vsel %vm19763_vm12, %v19405_v32, 0.0  ;;  %v7375_v59 = vmax.f32 %v7373_v27, %v7374_v12  ;;  %v7387_v28 = vrot.slane %v7386_v26, 1  ;;  %v7399_v41 = vmax.f32 %v7397_v42, %v7398_v31  ;;  %v19818_v27 = vld [vmem:[#allocation17 + $0x2d0] sm:$0xf0]  ;;  %v19820_v12 = vld [vmem:[#allocation17 + $0x3c4] sm:$0xf]  ;;  %vm20889_vm11 = vmmov %vm20888_vm6 }
 0x5ff   : > { %v7468_v48 = vsel %vm20887_vm13, %v7298_v63, -inf  ;;  %v7410_v63 = vmax.f32 %v19743_v38, %v7409_v51  ;;  %v19810_v38 = vld [vmem:[#allocation17 + $0x1c4] sm:$0xf]  ;;  %v7869_v43 = vunpack.c.l.b16 %v7597_v16  ;;  %v19826_v51 = vld [vmem:[#allocation17 + $0xb0] sm:$0xf0]  ;;  %vm20890_vm4 = vmmov %vm20888_vm6  ;;  %v7561_v32 = vrot.slane %v7560_v35, 4 }
 0x600   : > { %v19776_v60 = vmax.f32 %v19089_v19, %v7468_v48  ;;  %v7868_v19 = vunpack.c.l.b16 %v7596_v2  ;;  %v19806_v48 = vld [vmem:[#allocation17 + $0xc4] sm:$0xf]  ;;  %v7588_v44 = vpack.c.bf16 %v7375_v59, %v7375_v59  ;;  %v7388_v33 = vmax.f32 %v7386_v26, %v7387_v28  ;;  %v19822_v26 = vld [vmem:[#allocation17 + $0x3d0] sm:$0xf0]  ;;  %vm20891_vm3 = vmmov %vm20890_vm4 }
 0x601   : > { %v7411_v10 = vrot.slane %v7410_v63, 2  ;;  %v7514_v2 = vmax.f32 %v7512_v23, %v7513_v11  ;;  %v7400_v53 = vrot.slane %v7399_v41, 1  ;;  %v19824_v42 = vld [vmem:[#allocation17 + $0xa4] sm:$0xf]  ;;  %v7527_v23 = vmax.f32 %v7525_v17, %v7526_v5  ;;  %v19834_v31 = vld [vmem:[#allocation17 + $0x1b0] sm:$0xf0]  ;;  %vm20895_vm7 = vmmov %vm20891_vm3 }
 0x602   : > { %v7470_v3 = vrot.slane %v19776_v60, 4  ;;  %v7860_v39 = vunpack.c.l.b16 %v7588_v44  ;;  %v7589_v8 = vpack.c.bf16 %v7388_v33, %v7388_v33  ;;  %v12131_v59 = vor.u32 %v19806_v48, %v19808_v37  ;;  %v19832_v28 = vld [vmem:[#allocation17 + $0x1a4] sm:$0xf]  ;;  %v19838_v16 = vld [vmem:[#allocation17 + $0x2b0] sm:$0xf0]  ;;  %vm20896_vm0 = vmmov %vm20891_vm3 }
 0x603   : > { %v7412_v22 = vmax.f32 %v7410_v63, %v7411_v10  ;;  %v7598_v50 = vpack.c.bf16 %v7514_v2, %v7514_v2  ;;  %v19836_v63 = vld [vmem:[#allocation17 + $0x2a4] sm:$0xf]  ;;  %v7401_v33 = vmax.f32 %v7399_v41, %v7400_v53  ;;  %v19843_v2 = vld [vmem:[#allocation17 + $0x3b0] sm:$0xf0]  ;;  %v7599_v48 = vpack.c.bf16 %v7527_v23, %v7527_v23  ;;  %vm20897_vm8 = vmmov %vm20896_vm0 }
 0x604   : > { %v7876_v11 = vsel %vm20888_vm6, %v7868_v19, %v7860_v39  ;;  %v7861_v44 = vunpack.c.l.b16 %v7589_v8  ;;  %v19841_v17 = vld [vmem:[#allocation17 + $0x3a4] sm:$0xf]  ;;  %v12259_v37 = vor.u32 %v19810_v38, %v19812_v18  ;;  %v12387_v8 = vor.u32 %v19816_v15, %v19818_v27  ;;  %v19858_v53 = vld [vmem:[#allocation17 + $0x190] sm:$0xf0]  ;;  %vm20898_vm5 = vmmov %vm20896_vm0 }
 0x605   : > { %v7413_v10 = vrot.slane %v7412_v22, 1  ;;  %v19845_v21 = vpack.c.b16 %v7876_v11, %v7876_v11  ;;  %v7870_v62 = vunpack.c.l.b16 %v7598_v50  ;;  %v19849_v5 = vld [vmem:[#allocation17 + $0x84] sm:$0xf]  ;;  %v7590_v41 = vpack.c.bf16 %v7401_v33, %v7401_v33  ;;  %v19862_v23 = vld [vmem:[#allocation17 + $0x290] sm:$0xf0]  ;;  %vm20899_vm1 = vmmov %vm20887_vm13 }
 0x606   : > { %v7877_v19 = vsel %vm20889_vm11, %v7869_v43, %v7861_v44  ;;  %v19860_v50 = vld [vmem:[#allocation17 + $0x284] sm:$0xf]  ;;  %v7871_v18 = vunpack.c.l.b16 %v7599_v48  ;;  %v12515_v11 = vor.u32 %v19820_v12, %v19822_v26  ;;  %v12115_v43 = vor.u32 %v19824_v42, %v19826_v51  ;;  %v19873_v44 = vld [vmem:[#allocation17 + $0x390] sm:$0xf0]  ;;  %vm20900_vm15 = vmmov %vm20899_vm1 }
 0x607   : > { %v7414_v39 = vmax.f32 %v7412_v22, %v7413_v10  ;;  %9110 = vmatmul.bf16.vlgmr.msrb.gmra.mxu2 %v19845_v21  ;;  %v19865_v38 = vpack.c.b16 %v7877_v19, %v7877_v19  ;;  %v19871_v22 = vld [vmem:[#allocation17 + $0x384] sm:$0xf]  ;;  %v7862_v33 = vunpack.c.l.b16 %v7590_v41  ;;  %v12243_v19 = vor.u32 %v19832_v28, %v19834_v31  ;;  %vm20901_vm9 = vmmov %vm20899_vm1 }
 0x608   : > { %9206 = vmatpush.bf16.msrb.mxu2 %v12147_v30  ;;  %v12371_v48 = vor.u32 %v19836_v63, %v19838_v16  ;;  %v12499_v12 = vor.u32 %v19841_v17, %v19843_v2  ;;  %v12099_v26 = vor.u32 %v19849_v5, %v19851_v14  ;;  %v12227_v42 = vor.u32 %v19853_v24, %v19858_v53  ;;  %v13664_v63 = vld [vmem:[#allocation17 + $0x364] sm:$0xf]  ;;  %v12464_v16 = vld [vmem:[#allocation17 + $0x370] sm:$0xf0]  ;;  %vm20902_vm2 = vmmov %vm20899_vm1 }
 0x609   : > { %v7591_v10 = vpack.c.bf16 %v7414_v39, %v7414_v39  ;;  %9123 = vmatmul.bf16.vlgmr.msrb.gmra.mxu3 %v19865_v38  ;;  %v12355_v36 = vor.u32 %v19860_v50, %v19862_v23  ;;  %v7878_v47 = vsel %vm20890_vm4, %v7870_v62, %v7862_v33  ;;  %v12483_v51 = vor.u32 %v19871_v22, %v19873_v44 }
 0x60a   : > { %9219 = vmatpush.bf16.msrb.mxu3 %v12275_v13  ;;  %v7422_v28 = vrot.slane %v19757_v55, 4  ;;  %v19898_v31 = vpack.c.b16 %v7878_v47, %v7878_v47  ;;  %v7534_v24 = vmax.f32 %v19527_v29, %v7359_v58  ;;  %v20892_v29 = vld [vmem:[#allocation29_spill] sm:$0xff]  ;;  %v7471_v61 = vmax.f32 %v19776_v60, %v7470_v3 }
 0x60b   : > { %v7863_v30 = vunpack.c.l.b16 %v7591_v10  ;;  %v7447_v58 = vmax.f32 %v20892_v29, %v7297_v45  ;;  %v7436_v6 = vmax.f32 %v7434_v52, %v7435_v25  ;;  %v20894_v14 = vor.u32 %v19794_v40, %v19796_v1 }
 0x60c   : > { %9207 = vmatpush.bf16.msrb.mxu2 %v12131_v59  ;;  %v7423_v54 = vmax.f32 %v19757_v55, %v7422_v28  ;;  %9136 = vmatmul.bf16.vlgmr.msra.gmra.mxu0 %v19898_v31  ;;  %v7535_v34 = vrot.slane %v7534_v24, 4  ;;  %v20893_v55 = vrot.slane %v19692_v57, 4  ;;  %v7562_v62 = vmax.f32 %v7560_v35, %v7561_v32  ;;  %v12080_v35 = vld [vmem:[#allocation17 + $0x70] sm:$0xf0] }
 0x60d   : > { %v7879_v13 = vsel %vm20891_vm3, %v7871_v18, %v7863_v30  ;;  %9245 = vmatpush.bf16.msra.mxu0 %v12531_v7  ;;  %v7448_v46 = vrot.slane %v7447_v58, 4  ;;  %v7437_v60 = vrot.slane %v7436_v6, 2  ;;  %v7550_v3 = vrot.slane %v7549_v49, 2  ;;  %v12208_v32 = vld [vmem:[#allocation17 + $0x170] sm:$0xf0] }
 0x60e   : > { %v19928_v0 = vpack.c.b16 %v7879_v13, %v7879_v13  ;;  %9220 = vmatpush.bf16.msrb.mxu3 %v12259_v37  ;;  %v7424_v9 = vrot.slane %v7423_v54, 2  ;;  %v7536_v4 = vmax.f32 %v7534_v24, %v7535_v34  ;;  %v7583_v45 = vmax.f32 %v19692_v57, %v20893_v55 }
 0x60f   : > { %v7449_v59 = vmax.f32 %v7447_v58, %v7448_v46  ;;  %v7472_v37 = vrot.slane %v7471_v61, 2  ;;  %v7563_v18 = vrot.slane %v7562_v62, 2  ;;  %v7438_v10 = vmax.f32 %v7436_v6, %v7437_v60  ;;  %v13568_v58 = vld [vmem:[#allocation17 + $0x64] sm:$0xf]  ;;  %v12192_v60 = vld [vmem:[#allocation17 + $0x150] sm:$0xf0] }
 0x610   : > { %9149 = vmatmul.bf16.vlgmr.msra.gmra.mxu1 %v19928_v0  ;;  %9208 = vmatpush.bf16.msrb.mxu2 %v12115_v43  ;;  %v7425_v7 = vmax.f32 %v7423_v54, %v7424_v9  ;;  %v7537_v5 = vrot.slane %v7536_v4, 2  ;;  %v7584_v41 = vrot.slane %v7583_v45, 2  ;;  %v7551_v47 = vmax.f32 %v7549_v49, %v7550_v3  ;;  %v13600_v46 = vld [vmem:[#allocation17 + $0x164] sm:$0xf] }
 0x611   : > { %9232 = vmatpush.bf16.msra.mxu1 %v20894_v14  ;;  %9246 = vmatpush.bf16.msra.mxu0 %v12515_v11  ;;  %v7450_v53 = vrot.slane %v7449_v59, 2  ;;  %v7473_v33 = vmax.f32 %v7471_v61, %v7472_v37  ;;  %v7564_v30 = vmax.f32 %v7562_v62, %v7563_v18  ;;  %v7439_v11 = vrot.slane %v7438_v10, 1  ;;  %v13564_v62 = vld [vmem:[#allocation17 + $0x44] sm:$0xf] }
 0x612   : > { %9221 = vmatpush.bf16.msrb.mxu3 %v12243_v19  ;;  %v7426_v39 = vrot.slane %v7425_v7, 1  ;;  %v7538_v57 = vmax.f32 %v7536_v4, %v7537_v5  ;;  %v7585_v40 = vmax.f32 %v7583_v45, %v7584_v41  ;;  %v7552_v19 = vrot.slane %v7551_v47, 1  ;;  %v13596_v5 = vld [vmem:[#allocation17 + $0x144] sm:$0xf] }
 0x613   : > { %v7451_v43 = vmax.f32 %v7449_v59, %v7450_v53  ;;  %v7474_v28 = vrot.slane %v7473_v33, 1  ;;  %v7565_v54 = vrot.slane %v7564_v30, 1  ;;  %v7440_v27 = vmax.f32 %v7438_v10, %v7439_v11  ;;  %v12336_v59 = vld [vmem:[#allocation17 + $0x270] sm:$0xf0]  ;;  %v13660_v18 = vld [vmem:[#allocation17 + $0x344] sm:$0xf] }
 0x614   : > { %9209 = vmatpush.bf16.msrb.mxu2 %v12099_v26  ;;  %v7427_v1 = vmax.f32 %v7425_v7, %v7426_v39  ;;  %v7539_v24 = vrot.slane %v7538_v57, 1  ;;  %v7586_v52 = vrot.slane %v7585_v40, 1  ;;  %v12083_v49 = vor.u32 %v13568_v58, %v12080_v35  ;;  %v13632_v7 = vld [vmem:[#allocation17 + $0x264] sm:$0xf]  ;;  %v12032_v35 = vld [vmem:[#allocation17 + $0x10] sm:$0xf0] }
 0x615   : > { %9233 = vmatpush.bf16.msra.mxu1 %v12387_v8  ;;  %9247 = vmatpush.bf16.msra.mxu0 %v12499_v12  ;;  %v7452_v13 = vrot.slane %v7451_v43, 1  ;;  %v7475_v29 = vmax.f32 %v7473_v33, %v7474_v28  ;;  %v7553_v8 = vmax.f32 %v7551_v47, %v7552_v19  ;;  %v7566_v56 = vmax.f32 %v7564_v30, %v7565_v54  ;;  %v12448_v33 = vld [vmem:[#allocation17 + $0x350] sm:$0xf0]  ;;  %v13628_v10 = vld [vmem:[#allocation17 + $0x244] sm:$0xf] }
 0x616   : > { %9222 = vmatpush.bf16.msrb.mxu3 %v12227_v42  ;;  %v7592_v20 = vpack.c.bf16 %v7427_v1, %v7427_v1  ;;  %v7540_v15 = vmax.f32 %v7538_v57, %v7539_v24  ;;  %v7587_v26 = vmax.f32 %v7585_v40, %v7586_v52  ;;  %v7593_v12 = vpack.c.bf16 %v7440_v27, %v7440_v27  ;;  %v12320_v47 = vld [vmem:[#allocation17 + $0x250] sm:$0xf0]  ;;  %v13560_v28 = vld [vmem:[#allocation17 + $0x24] sm:$0xf] }
 0x617   : > { %v7453_v25 = vmax.f32 %v7451_v43, %v7452_v13  ;;  %v7595_v17 = vpack.c.bf16 %v7475_v29, %v7475_v29  ;;  %v7601_v42 = vpack.c.bf16 %v7553_v8, %v7553_v8  ;;  %v7602_v4 = vpack.c.bf16 %v7566_v56, %v7566_v56  ;;  %v12048_v24 = vld [vmem:[#allocation17 + $0x30] sm:$0xf0]  ;;  %v13592_v11 = vld [vmem:[#allocation17 + $0x124] sm:$0xf] }
 0x618   : > { %v7864_v34 = vunpack.c.l.b16 %v7592_v20  ;;  %v7600_v2 = vpack.c.bf16 %v7540_v15, %v7540_v15  ;;  %v7603_v9 = vpack.c.bf16 %v7587_v26, %v7587_v26  ;;  %v7865_v55 = vunpack.c.l.b16 %v7593_v12  ;;  %9210 = vmatpush.bf16.msrb.mxu2 %v12083_v49  ;;  %v12176_v52 = vld [vmem:[#allocation17 + $0x130] sm:$0xf0]  ;;  %v13656_v20 = vld [vmem:[#allocation17 + $0x324] sm:$0xf] }
 0x619   : > { %9234 = vmatpush.bf16.msra.mxu1 %v12371_v48  ;;  %9248 = vmatpush.bf16.msra.mxu0 %v12483_v51  ;;  %v7594_v61 = vpack.c.bf16 %v7453_v25, %v7453_v25  ;;  %v7867_v6 = vunpack.c.l.b16 %v7595_v17  ;;  %v7873_v45 = vunpack.c.l.b16 %v7601_v42  ;;  %v7874_v22 = vunpack.c.l.b16 %v7602_v4  ;;  %v12064_v51 = vld [vmem:[#allocation17 + $0x50] sm:$0xf0]  ;;  %v13624_v15 = vld [vmem:[#allocation17 + $0x224] sm:$0xf] }
 0x61a   : > { %v7872_v48 = vunpack.c.l.b16 %v7600_v2  ;;  %v7875_v14 = vunpack.c.l.b16 %v7603_v9  ;;  %v12211_v44 = vor.u32 %v13600_v46, %v12208_v32  ;;  %v12467_v53 = vor.u32 %v13664_v63, %v12464_v16  ;;  %v12432_v13 = vld [vmem:[#allocation17 + $0x330] sm:$0xf0]  ;;  %v13556_v8 = vld [vmem:[#allocation17 + $0x4] sm:$0xf] }
 0x61b   : > { %v7866_v37 = vunpack.c.l.b16 %v7594_v61  ;;  %v7881_v41 = vsel %vm20896_vm0, %v7873_v45, %v7865_v55  ;;  %v12067_v43 = vor.u32 %v13564_v62, %v12064_v51  ;;  %v12195_v30 = vor.u32 %v13596_v5, %v12192_v60  ;;  %v12304_v27 = vld [vmem:[#allocation17 + $0x230] sm:$0xf0]  ;;  %v13652_v56 = vld [vmem:[#allocation17 + $0x304] sm:$0xf] }
 0x61c   : > { %v7880_v3 = vsel %vm20895_vm7, %v7872_v48, %v7864_v34  ;;  %v7883_v39 = vsel %vm20897_vm8, %v7875_v14, %v7867_v6  ;;  %v19960_v50 = vpack.c.b16 %v7881_v41, %v7881_v41  ;;  %9223 = vmatpush.bf16.msrb.mxu3 %v12211_v44  ;;  %v12451_v19 = vor.u32 %v13660_v18, %v12448_v33  ;;  %v13588_v34 = vld [vmem:[#allocation17 + $0x104] sm:$0xf]  ;;  %v12160_v25 = vld [vmem:[#allocation17 + $0x110] sm:$0xf0] }
 0x61d   : > { %9235 = vmatpush.bf16.msra.mxu1 %v12355_v36  ;;  %v19958_v57 = vpack.c.b16 %v7880_v3, %v7880_v3  ;;  %v7882_v23 = vsel %vm20898_vm5, %v7874_v22, %v7866_v37  ;;  %v12339_v36 = vor.u32 %v13632_v7, %v12336_v59  ;;  %v19965_v1 = vpack.c.b16 %v7883_v39, %v7883_v39  ;;  %v12416_v17 = vld [vmem:[#allocation17 + $0x310] sm:$0xf0]  ;;  %v13712_v2 = vld [vmem:[#allocation17 + $0x4e4] sm:$0xf] }
 0x61e   : > { %v19963_v40 = vpack.c.b16 %v7882_v23, %v7882_v23  ;;  %9249 = vmatpush.bf16.msra.mxu0 %v12467_v53  ;;  %9175 = vmatmul.bf16.vlgmr.msra.gmra.mxu3 %v19960_v50  ;;  %v12323_v54 = vor.u32 %v13628_v10, %v12320_v47  ;;  %v12051_v29 = vor.u32 %v13560_v28, %v12048_v24  ;;  %v12656_v12 = vld [vmem:[#allocation17 + $0x4f0] sm:$0xf0]  ;;  %v13744_v42 = vld [vmem:[#allocation17 + $0x5e4] sm:$0xf]  ;;  %vm20904_vm14 = vcmask 17408  }
 0x61f   : > { %9162 = vmatmul.bf16.vlgmr.msra.gmra.mxu2 %v19958_v57  ;;  %v12179_v26 = vor.u32 %v13592_v11, %v12176_v52  ;;  %v12435_v58 = vor.u32 %v13656_v20, %v12432_v13  ;;  %v12784_v9 = vld [vmem:[#allocation17 + $0x5f0] sm:$0xf0]  ;;  %v12307_v46 = vor.u32 %v13624_v15, %v12304_v27  ;;  %v12035_v32 = vor.u32 %v13556_v8, %v12032_v35  ;;  %v13792_v61 = vld [vmem:[#allocation17 + $0x764] sm:$0xf]  ;;  %v12406_v35 = vld [vmem:[#allocation17 + $0x2e8] sm:$0xf] }
 0x620   : > { %9188 = vmatmul.bf16.vlgmr.msrb.gmra.mxu0 %v19963_v40  ;;  %12988 = vmatmul.msk.bf16.vlgmr.msrb.gmra.mxu1 %vm20899_vm1, %v19965_v1  ;;  %v12976_v4 = vld [vmem:[#allocation17 + $0x770] sm:$0xf0]  ;;  %v12163_v6 = vor.u32 %v13588_v34, %v12160_v25  ;;  %v13620_v49 = vld [vmem:[#allocation17 + $0x204] sm:$0xf]  ;;  %v12419_v16 = vor.u32 %v13652_v56, %v12416_v17  ;;  %v12659_v48 = vor.u32 %v13712_v2, %v12656_v12  ;;  %v13651_v34 = vld [vmem:[#allocation17 + $0x2f4] sm:$0xf0] }
 0x621   : > { %9236 = vmatpush.bf16.msra.mxu1 %v12339_v36  ;;  %9211 = vmatpush.bf16.msrb.mxu2 %v12067_v43  ;;  %v12288_v63 = vld [vmem:[#allocation17 + $0x210] sm:$0xf0]  ;;  %v12787_v55 = vor.u32 %v13744_v42, %v12784_v9  ;;  %v13776_v45 = vld [vmem:[#allocation17 + $0x6e4] sm:$0xf]  ;;  %v12979_v7 = vor.u32 %v13792_v61, %v12976_v4  ;;  %vm20905_vm10 = vcmask 41984   ;;  %vm20907_vm12 = vcmask 1041408   ;;  %vm20908_vm13 = vmmov %vm20904_vm14 }
 0x622   : > { %9224 = vmatpush.bf16.msrb.mxu3 %v12195_v30  ;;  %9250 = vmatpush.bf16.msra.mxu0 %v12451_v19  ;;  %v12912_v14 = vld [vmem:[#allocation17 + $0x6f0] sm:$0xf0]  ;;  %v12291_v59 = vor.u32 %v13620_v49, %v12288_v63  ;;  %v13708_v62 = vld [vmem:[#allocation17 + $0x4c4] sm:$0xf]  ;;  %v13647_v49 = vld [vmem:[#allocation17 + $0x2d4] sm:$0xf0] }
 0x623   : > { %v12640_v37 = vld [vmem:[#allocation17 + $0x4d0] sm:$0xf0]  ;;  %v12915_v22 = vor.u32 %v13776_v45, %v12912_v14  ;;  %v13740_v44 = vld [vmem:[#allocation17 + $0x5c4] sm:$0xf]  ;;  %vm20909_vm6 = vcmask 1045508   ;;  %vm20910_vm11 = vcmask 1043456  }
 0x624   : > { %v12768_v51 = vld [vmem:[#allocation17 + $0x5d0] sm:$0xf0]  ;;  %v13772_v5 = vld [vmem:[#allocation17 + $0x6c4] sm:$0xf]  ;;  %v12643_v39 = vor.u32 %v13708_v62, %v12640_v37 }
 0x625   : > { %9237 = vmatpush.bf16.msra.mxu1 %v12323_v54  ;;  %9212 = vmatpush.bf16.msrb.mxu2 %v12051_v29  ;;  %v12896_v60 = vld [vmem:[#allocation17 + $0x6d0] sm:$0xf0]  ;;  %v13788_v3 = vld [vmem:[#allocation17 + $0x744] sm:$0xf]  ;;  %v12771_v53 = vor.u32 %v13740_v44, %v12768_v51  ;;  %v13643_v44 = vld [vmem:[#allocation17 + $0x2b4] sm:$0xf0] }
 0x626   : > { %9225 = vmatpush.bf16.msrb.mxu3 %v12179_v26  ;;  %9251 = vmatpush.bf16.msra.mxu0 %v12435_v58  ;;  %v12960_v41 = vld [vmem:[#allocation17 + $0x750] sm:$0xf0]  ;;  %v13704_v18 = vld [vmem:[#allocation17 + $0x4a4] sm:$0xf]  ;;  %v12899_v23 = vor.u32 %v13772_v5, %v12896_v60 }
 0x627   : > { %v12624_v33 = vld [vmem:[#allocation17 + $0x4b0] sm:$0xf0]  ;;  %v12963_v36 = vor.u32 %v13788_v3, %v12960_v41  ;;  %v13736_v10 = vld [vmem:[#allocation17 + $0x5a4] sm:$0xf] }
 0x628   : > { %v12752_v47 = vld [vmem:[#allocation17 + $0x5b0] sm:$0xf0]  ;;  %v13768_v43 = vld [vmem:[#allocation17 + $0x6a4] sm:$0xf]  ;;  %v12627_v11 = vor.u32 %v13704_v18, %v12624_v33 }
 0x629   : > { %9238 = vmatpush.bf16.msra.mxu1 %v12307_v46  ;;  %9213 = vmatpush.bf16.msrb.mxu2 %v12035_v32  ;;  %v12880_v30 = vld [vmem:[#allocation17 + $0x6b0] sm:$0xf0]  ;;  %v13784_v28 = vld [vmem:[#allocation17 + $0x724] sm:$0xf]  ;;  %v12755_v19 = vor.u32 %v13736_v10, %v12752_v47  ;;  %v12407_v32 = vor.u32 %v13651_v34, %v12406_v35  ;;  %v13639_v10 = vld [vmem:[#allocation17 + $0x294] sm:$0xf0] }
 0x62a   : > { %9226 = vmatpush.bf16.msrb.mxu3 %v12163_v6  ;;  %9252 = vmatpush.bf16.msra.mxu0 %v12419_v16  ;;  %v12944_v24 = vld [vmem:[#allocation17 + $0x730] sm:$0xf0]  ;;  %v13700_v52 = vld [vmem:[#allocation17 + $0x484] sm:$0xf]  ;;  %v12883_v13 = vor.u32 %v13768_v43, %v12880_v30  ;;  %v12390_v6 = vld [vmem:[#allocation17 + $0x2c8] sm:$0xf] }
 0x62b   : > { %v12608_v20 = vld [vmem:[#allocation17 + $0x490] sm:$0xf0]  ;;  %v12947_v54 = vor.u32 %v13784_v28, %v12944_v24  ;;  %v13732_v29 = vld [vmem:[#allocation17 + $0x584] sm:$0xf]  ;;  %v12534_v34 = vld [vmem:[#allocation17 + $0x3e8] sm:$0xf] }
 0x62c   : > { %v12736_v15 = vld [vmem:[#allocation17 + $0x590] sm:$0xf0]  ;;  %v13764_v27 = vld [vmem:[#allocation17 + $0x684] sm:$0xf]  ;;  %v12611_v25 = vor.u32 %v13700_v52, %v12608_v20 }
 0x62d   : > { %9258 = vmatpush.bf16.msra.mxu2 %v12659_v48  ;;  %9239 = vmatpush.bf16.msra.mxu1 %v12291_v59  ;;  %v12864_v8 = vld [vmem:[#allocation17 + $0x690] sm:$0xf0]  ;;  %v13780_v26 = vld [vmem:[#allocation17 + $0x704] sm:$0xf]  ;;  %v12739_v56 = vor.u32 %v13732_v29, %v12736_v15  ;;  %v12391_v59 = vor.u32 %v13647_v49, %v12390_v6  ;;  %v13587_v29 = vld [vmem:[#allocation17 + $0xf4] sm:$0xf0] }
 0x62e   : > { %9271 = vmatpush.bf16.msra.mxu3 %v12787_v55  ;;  %9301 = vmatpush.bf16.msrb.mxu0 %v12979_v7  ;;  %v12928_v58 = vld [vmem:[#allocation17 + $0x710] sm:$0xf0]  ;;  %v13696_v17 = vld [vmem:[#allocation17 + $0x464] sm:$0xf]  ;;  %v12867_v2 = vor.u32 %v13764_v27, %v12864_v8  ;;  %v12278_v15 = vld [vmem:[#allocation17 + $0x1e8] sm:$0xf] }
 0x62f   : > { %9214 = vmatmul.bf16.vlgmr.msrb.gmra.mxu2 %v19845_v21  ;;  %9227 = vmatmul.bf16.vlgmr.msrb.gmra.mxu3 %v19865_v38  ;;  %v12931_v12 = vor.u32 %v13780_v26, %v12928_v58  ;;  %v12592_v42 = vld [vmem:[#allocation17 + $0x470] sm:$0xf0]  ;;  %v13728_v9 = vld [vmem:[#allocation17 + $0x564] sm:$0xf]  ;;  %v13619_v27 = vld [vmem:[#allocation17 + $0x1f4] sm:$0xf0] }
 0x630   : > { %9240 = vmatmul.bf16.vlgmr.msra.gmra.mxu1 %v19898_v31  ;;  %9253 = vmatmul.bf16.vlgmr.msra.gmra.mxu0 %v19928_v0  ;;  %v12720_v46 = vld [vmem:[#allocation17 + $0x570] sm:$0xf0]  ;;  %v13760_v61 = vld [vmem:[#allocation17 + $0x664] sm:$0xf]  ;;  %v12595_v63 = vor.u32 %v13696_v17, %v12592_v42  ;;  %v12342_v8 = vld [vmem:[#allocation17 + $0x268] sm:$0xf] }
 0x631   : > { %9284 = vmatpush.bf16.msrb.mxu1 %v12915_v22  ;;  %9259 = vmatpush.bf16.msra.mxu2 %v12643_v39  ;;  %v12848_v4 = vld [vmem:[#allocation17 + $0x670] sm:$0xf0]  ;;  %v12723_v16 = vor.u32 %v13728_v9, %v12720_v46  ;;  %v13692_v48 = vld [vmem:[#allocation17 + $0x444] sm:$0xf]  ;;  %v12374_v22 = vld [vmem:[#allocation17 + $0x2a8] sm:$0xf] }
 0x632   : > { %9272 = vmatpush.bf16.msra.mxu3 %v12771_v53  ;;  %9302 = vmatpush.bf16.msrb.mxu0 %v12963_v36  ;;  %v12851_v55 = vor.u32 %v13760_v61, %v12848_v4  ;;  %v12576_v45 = vld [vmem:[#allocation17 + $0x450] sm:$0xf0]  ;;  %v13724_v14 = vld [vmem:[#allocation17 + $0x544] sm:$0xf]  ;;  %v12375_v18 = vor.u32 %v13643_v44, %v12374_v22  ;;  %v12358_v36 = vld [vmem:[#allocation17 + $0x288] sm:$0xf] }
 0x633   : > { %v12704_v7 = vld [vmem:[#allocation17 + $0x550] sm:$0xf0]  ;;  %v13756_v62 = vld [vmem:[#allocation17 + $0x644] sm:$0xf]  ;;  %v12579_v51 = vor.u32 %v13692_v48, %v12576_v45  ;;  %v13635_v26 = vld [vmem:[#allocation17 + $0x274] sm:$0xf0] }
 0x634   : > { %v12832_v37 = vld [vmem:[#allocation17 + $0x650] sm:$0xf0]  ;;  %v12707_v5 = vor.u32 %v13724_v14, %v12704_v7  ;;  %v13688_v60 = vld [vmem:[#allocation17 + $0x424] sm:$0xf]  ;;  %v12134_v42 = vld [vmem:[#allocation17 + $0xc8] sm:$0xf] }
 0x635   : > { %9285 = vmatpush.bf16.msrb.mxu1 %v12899_v23  ;;  %9260 = vmatpush.bf16.msra.mxu2 %v12627_v11  ;;  %v12835_v3 = vor.u32 %v13756_v62, %v12832_v37  ;;  %v12560_v41 = vld [vmem:[#allocation17 + $0x430] sm:$0xf0]  ;;  %v13720_v39 = vld [vmem:[#allocation17 + $0x524] sm:$0xf]  ;;  %v13583_v9 = vld [vmem:[#allocation17 + $0xd4] sm:$0xf0] }
 0x636   : > { %9273 = vmatpush.bf16.msra.mxu3 %v12755_v19  ;;  %9303 = vmatpush.bf16.msrb.mxu0 %v12947_v54  ;;  %v12688_v53 = vld [vmem:[#allocation17 + $0x530] sm:$0xf0]  ;;  %v13752_v33 = vld [vmem:[#allocation17 + $0x624] sm:$0xf]  ;;  %v12563_v47 = vor.u32 %v13688_v60, %v12560_v41  ;;  %v12150_v54 = vld [vmem:[#allocation17 + $0xe8] sm:$0xf] }
 0x637   : > { %v12816_v23 = vld [vmem:[#allocation17 + $0x630] sm:$0xf0]  ;;  %v12691_v43 = vor.u32 %v13720_v39, %v12688_v53  ;;  %v13684_v30 = vld [vmem:[#allocation17 + $0x404] sm:$0xf]  ;;  %v12151_v17 = vor.u32 %v13587_v29, %v12150_v54  ;;  %v12262_v46 = vld [vmem:[#allocation17 + $0x1c8] sm:$0xf] }
 0x638   : > { %v12544_v28 = vld [vmem:[#allocation17 + $0x410] sm:$0xf0]  ;;  %v13716_v24 = vld [vmem:[#allocation17 + $0x504] sm:$0xf]  ;;  %v12819_v11 = vor.u32 %v13752_v33, %v12816_v23  ;;  %v13615_v61 = vld [vmem:[#allocation17 + $0x1d4] sm:$0xf0] }
 0x639   : > { %9286 = vmatpush.bf16.msrb.mxu1 %v12883_v13  ;;  %9261 = vmatpush.bf16.msra.mxu2 %v12611_v25  ;;  %v12672_v19 = vld [vmem:[#allocation17 + $0x510] sm:$0xf0]  ;;  %v13748_v52 = vld [vmem:[#allocation17 + $0x604] sm:$0xf]  ;;  %v12359_v13 = vor.u32 %v13639_v10, %v12358_v36  ;;  %v12547_v58 = vor.u32 %v13684_v30, %v12544_v28  ;;  %v13683_v25 = vld [vmem:[#allocation17 + $0x3f4] sm:$0xf0]  ;;  %v12263_v48 = vor.u32 %v13615_v61, %v12262_v46 }
 0x63a   : > { %9274 = vmatpush.bf16.msra.mxu3 %v12739_v56  ;;  %9304 = vmatpush.bf16.msrb.mxu0 %v12931_v12  ;;  %v12800_v20 = vld [vmem:[#allocation17 + $0x610] sm:$0xf0]  ;;  %v12675_v35 = vor.u32 %v13716_v24, %v12672_v19  ;;  %v12343_v12 = vor.u32 %v13635_v26, %v12342_v8  ;;  %v12326_v4 = vld [vmem:[#allocation17 + $0x248] sm:$0xf]  ;;  %v13631_v6 = vld [vmem:[#allocation17 + $0x254] sm:$0xf0] }
 0x63b   : > { %v12803_v56 = vor.u32 %v13748_v52, %v12800_v20  ;;  %v12518_v49 = vld [vmem:[#allocation17 + $0x3c8] sm:$0xf]  ;;  %v13579_v14 = vld [vmem:[#allocation17 + $0xb4] sm:$0xf0] }
 0x63c   : > { %v12118_v45 = vld [vmem:[#allocation17 + $0xa8] sm:$0xf]  ;;  %v13611_v62 = vld [vmem:[#allocation17 + $0x1b4] sm:$0xf0] }
 0x63d   : > { %9287 = vmatpush.bf16.msrb.mxu1 %v12867_v2  ;;  %9262 = vmatpush.bf16.msra.mxu2 %v12595_v63  ;;  %v12279_v2 = vor.u32 %v13619_v27, %v12278_v15  ;;  %v13679_v63 = vld [vmem:[#allocation17 + $0x3d4] sm:$0xf0]  ;;  %v12246_v7 = vld [vmem:[#allocation17 + $0x1a8] sm:$0xf] }
 0x63e   : > { %9336 = vmatpush.bf16.msra.mxu0 %v12407_v32  ;;  %9275 = vmatpush.bf16.msra.mxu3 %v12723_v16  ;;  %v12535_v32 = vor.u32 %v13683_v25, %v12534_v34  ;;  %v12135_v16 = vor.u32 %v13583_v9, %v12134_v42  ;;  %v12310_v37 = vld [vmem:[#allocation17 + $0x228] sm:$0xf]  ;;  %v13627_v22 = vld [vmem:[#allocation17 + $0x234] sm:$0xf0] }
 0x63f   : > { %v12502_v44 = vld [vmem:[#allocation17 + $0x3a8] sm:$0xf]  ;;  %v12311_v41 = vor.u32 %v13627_v22, %v12310_v37  ;;  %v13575_v39 = vld [vmem:[#allocation17 + $0x94] sm:$0xf0] }
 0x640   : > { %12989 = vmatmul.msk.bf16.vlgmr.msrb.gmra.mxu0 %vm20900_vm15, %v19965_v1  ;;  %v12102_v60 = vld [vmem:[#allocation17 + $0x88] sm:$0xf]  ;;  %v13623_v36 = vld [vmem:[#allocation17 + $0x214] sm:$0xf0] }
 0x641   : > { %9288 = vmatpush.bf16.msrb.mxu1 %v12851_v55  ;;  %9263 = vmatpush.bf16.msra.mxu2 %v12579_v51  ;;  %v12327_v55 = vor.u32 %v13631_v6, %v12326_v4  ;;  %v13675_v51 = vld [vmem:[#allocation17 + $0x3b4] sm:$0xf0]  ;;  %v12230_v53 = vld [vmem:[#allocation17 + $0x188] sm:$0xf]  ;;  %v12103_v28 = vor.u32 %v13575_v39, %v12102_v60 }
 0x642   : > { %9337 = vmatpush.bf16.msra.mxu0 %v12391_v59  ;;  %9276 = vmatpush.bf16.msra.mxu3 %v12707_v5  ;;  %v12519_v59 = vor.u32 %v13679_v63, %v12518_v49  ;;  %v12119_v5 = vor.u32 %v13579_v14, %v12118_v45  ;;  %v12503_v33 = vor.u32 %v13675_v51, %v12502_v44  ;;  %v12294_v23 = vld [vmem:[#allocation17 + $0x208] sm:$0xf]  ;;  %v13779_v30 = vld [vmem:[#allocation17 + $0x6f4] sm:$0xf0] }
 0x643   : > { %v12486_v10 = vld [vmem:[#allocation17 + $0x388] sm:$0xf]  ;;  %v13571_v52 = vld [vmem:[#allocation17 + $0x74] sm:$0xf0] }
 0x644   : > { %v12086_v19 = vld [vmem:[#allocation17 + $0x68] sm:$0xf]  ;;  %v13603_v29 = vld [vmem:[#allocation17 + $0x174] sm:$0xf0] }
 0x645   : > { %9289 = vmatpush.bf16.msrb.mxu1 %v12835_v3  ;;  %9264 = vmatpush.bf16.msra.mxu2 %v12563_v47  ;;  %v12247_v3 = vor.u32 %v13611_v62, %v12246_v7  ;;  %v13671_v47 = vld [vmem:[#allocation17 + $0x394] sm:$0xf0]  ;;  %v12214_v54 = vld [vmem:[#allocation17 + $0x168] sm:$0xf] }
 0x646   : > { %9338 = vmatpush.bf16.msra.mxu0 %v12375_v18  ;;  %9277 = vmatpush.bf16.msra.mxu3 %v12691_v43  ;;  %v13607_v18 = vld [vmem:[#allocation17 + $0x194] sm:$0xf0]  ;;  %v12918_v43 = vld [vmem:[#allocation17 + $0x6e8] sm:$0xf]  ;;  %v12487_v20 = vor.u32 %v13671_v47, %v12486_v10 }
 0x647   : > { %v12231_v24 = vor.u32 %v13607_v18, %v12230_v53  ;;  %v12470_v15 = vld [vmem:[#allocation17 + $0x368] sm:$0xf]  ;;  %v13667_v27 = vld [vmem:[#allocation17 + $0x374] sm:$0xf0] }
 0x648   : > { %v12902_v8 = vld [vmem:[#allocation17 + $0x6c8] sm:$0xf]  ;;  %v13775_v26 = vld [vmem:[#allocation17 + $0x6d4] sm:$0xf0] }
 0x649   : > { %9290 = vmatpush.bf16.msrb.mxu1 %v12819_v11  ;;  %9265 = vmatpush.bf16.msra.mxu2 %v12547_v58  ;;  %v12295_v11 = vor.u32 %v13623_v36, %v12294_v23  ;;  %v12087_v58 = vor.u32 %v13571_v52, %v12086_v19  ;;  %v12070_v34 = vld [vmem:[#allocation17 + $0x48] sm:$0xf]  ;;  %v13567_v25 = vld [vmem:[#allocation17 + $0x54] sm:$0xf0] }
 0x64a   : > { %9339 = vmatpush.bf16.msra.mxu0 %v12359_v13  ;;  %9278 = vmatpush.bf16.msra.mxu3 %v12675_v35  ;;  %v12919_v13 = vor.u32 %v13779_v30, %v12918_v43  ;;  %v12215_v35 = vor.u32 %v13603_v29, %v12214_v54  ;;  %v12454_v42 = vld [vmem:[#allocation17 + $0x348] sm:$0xf]  ;;  %v13663_v9 = vld [vmem:[#allocation17 + $0x354] sm:$0xf0]  ;;  %v12071_v61 = vor.u32 %v13567_v25, %v12070_v34 }
 0x64b   : > { %v12886_v46 = vld [vmem:[#allocation17 + $0x6a8] sm:$0xf]  ;;  %v13563_v49 = vld [vmem:[#allocation17 + $0x34] sm:$0xf0]  ;;  %v12455_v63 = vor.u32 %v13663_v9, %v12454_v42 }
 0x64c   : > { %9266 = vmatmul.bf16.vlgmr.msra.gmra.mxu2 %v19958_v57  ;;  %v12054_v6 = vld [vmem:[#allocation17 + $0x28] sm:$0xf]  ;;  %v13659_v14 = vld [vmem:[#allocation17 + $0x334] sm:$0xf0] }
 0x64d   : > { %9291 = vmatpush.bf16.msrb.mxu1 %v12803_v56  ;;  %9310 = vmatpush.bf16.msrb.mxu2 %v12151_v17  ;;  %v12471_v56 = vor.u32 %v13667_v27, %v12470_v15  ;;  %v12903_v17 = vor.u32 %v13775_v26, %v12902_v8  ;;  %v12438_v45 = vld [vmem:[#allocation17 + $0x328] sm:$0xf]  ;;  %v12055_v62 = vor.u32 %v13563_v49, %v12054_v6  ;;  %v13559_v22 = vld [vmem:[#allocation17 + $0x14] sm:$0xf0] }
 0x64e   : > { %9323 = vmatpush.bf16.msrb.mxu3 %v12279_v2  ;;  %9340 = vmatpush.bf16.msra.mxu0 %v12343_v12  ;;  %v12198_v2 = vld [vmem:[#allocation17 + $0x148] sm:$0xf]  ;;  %v13599_v12 = vld [vmem:[#allocation17 + $0x154] sm:$0xf0] }
 0x64f   : > { %9279 = vmatmul.bf16.vlgmr.msra.gmra.mxu3 %v19960_v50  ;;  %v12199_v4 = vor.u32 %v13599_v12, %v12198_v2  ;;  %v12870_v7 = vld [vmem:[#allocation17 + $0x688] sm:$0xf]  ;;  %v13655_v39 = vld [vmem:[#allocation17 + $0x314] sm:$0xf0] }
 0x650   : > { %9292 = vmatmul.bf16.vlgmr.msrb.gmra.mxu1 %v19963_v40  ;;  %v12038_v37 = vld [vmem:[#allocation17 + $0x8] sm:$0xf]  ;;  %v13715_v18 = vld [vmem:[#allocation17 + $0x4f4] sm:$0xf0] }
 0x651   : > { %9349 = vmatpush.bf16.msra.mxu1 %v12535_v32  ;;  %9311 = vmatpush.bf16.msrb.mxu2 %v12135_v16  ;;  %v13771_v32 = vld [vmem:[#allocation17 + $0x6b4] sm:$0xf0]  ;;  %v12166_v51 = vld [vmem:[#allocation17 + $0x108] sm:$0xf]  ;;  %v12039_v10 = vor.u32 %v13559_v22, %v12038_v37  ;;  %v13585_v37 = vld [vmem:[#allocation17 + $0xec] sm:$0xf] }
 0x652   : > { %9324 = vmatpush.bf16.msrb.mxu3 %v12263_v48  ;;  %9341 = vmatpush.bf16.msra.mxu0 %v12327_v55  ;;  %v12887_v16 = vor.u32 %v13771_v32, %v12886_v46  ;;  %v12182_v48 = vld [vmem:[#allocation17 + $0x128] sm:$0xf]  ;;  %v13595_v55 = vld [vmem:[#allocation17 + $0x134] sm:$0xf0] }
 0x653   : > { %v12183_v44 = vor.u32 %v13595_v55, %v12182_v48  ;;  %v12422_v60 = vld [vmem:[#allocation17 + $0x308] sm:$0xf]  ;;  %v13747_v23 = vld [vmem:[#allocation17 + $0x5f4] sm:$0xf0] }
 0x654   : > { %v12662_v53 = vld [vmem:[#allocation17 + $0x4e8] sm:$0xf]  ;;  %v13763_v47 = vld [vmem:[#allocation17 + $0x674] sm:$0xf0] }
 0x655   : > { %9350 = vmatpush.bf16.msra.mxu1 %v12519_v59  ;;  %9312 = vmatpush.bf16.msrb.mxu2 %v12119_v5  ;;  %v13767_v59 = vld [vmem:[#allocation17 + $0x694] sm:$0xf0]  ;;  %v12854_v36 = vld [vmem:[#allocation17 + $0x668] sm:$0xf] }
 0x656   : > { %9325 = vmatpush.bf16.msrb.mxu3 %v12247_v3  ;;  %9342 = vmatpush.bf16.msra.mxu0 %v12311_v41  ;;  %v13591_v5 = vld [vmem:[#allocation17 + $0x114] sm:$0xf0]  ;;  %v12439_v3 = vor.u32 %v13659_v14, %v12438_v45  ;;  %v12871_v41 = vor.u32 %v13767_v59, %v12870_v7  ;;  %v12982_v43 = vld [vmem:[#allocation17 + $0x768] sm:$0xf] }
 0x657   : > { %v13795_v30 = vld [vmem:[#allocation17 + $0x774] sm:$0xf0]  ;;  %v12646_v52 = vld [vmem:[#allocation17 + $0x4c8] sm:$0xf] }
 0x658   : > { %v12983_v54 = vor.u32 %v13795_v30, %v12982_v43  ;;  %v12774_v29 = vld [vmem:[#allocation17 + $0x5c8] sm:$0xf]  ;;  %v13743_v15 = vld [vmem:[#allocation17 + $0x5d4] sm:$0xf0]  ;;  %v12136_v43 = vld [vmem:[#allocation17 + $0xd8] sm:$0xf0] }
 0x659   : > { %9351 = vmatpush.bf16.msra.mxu1 %v12503_v33  ;;  %9313 = vmatpush.bf16.msrb.mxu2 %v12103_v28  ;;  %v12790_v33 = vld [vmem:[#allocation17 + $0x5e8] sm:$0xf]  ;;  %v12167_v28 = vor.u32 %v13591_v5, %v12166_v51  ;;  %v13759_v8 = vld [vmem:[#allocation17 + $0x654] sm:$0xf0]  ;;  %v12775_v34 = vor.u32 %v13743_v15, %v12774_v29  ;;  %v13681_v51 = vld [vmem:[#allocation17 + $0x3ec] sm:$0xf] }
 0x65a   : > { %9326 = vmatpush.bf16.msrb.mxu3 %v12231_v24  ;;  %9343 = vmatpush.bf16.msra.mxu0 %v12295_v11  ;;  %v12663_v24 = vor.u32 %v13715_v18, %v12662_v53  ;;  %v12423_v11 = vor.u32 %v13655_v39, %v12422_v60  ;;  %v12791_v19 = vor.u32 %v13747_v23, %v12790_v33  ;;  %v12838_v27 = vld [vmem:[#allocation17 + $0x648] sm:$0xf]  ;;  %v13739_v42 = vld [vmem:[#allocation17 + $0x5b4] sm:$0xf0]  ;;  %v12536_v5 = vld [vmem:[#allocation17 + $0x3f8] sm:$0xf0] }
 0x65b   : > { %v12966_v26 = vld [vmem:[#allocation17 + $0x748] sm:$0xf]  ;;  %v13755_v46 = vld [vmem:[#allocation17 + $0x634] sm:$0xf0]  ;;  %v13677_v30 = vld [vmem:[#allocation17 + $0x3cc] sm:$0xf] }
 0x65c   : > { %v12630_v25 = vld [vmem:[#allocation17 + $0x4a8] sm:$0xf]  ;;  %v13735_v45 = vld [vmem:[#allocation17 + $0x594] sm:$0xf0]  ;;  %v13577_v29 = vld [vmem:[#allocation17 + $0xac] sm:$0xf] }
 0x65d   : > { %9352 = vmatpush.bf16.msra.mxu1 %v12487_v20  ;;  %9344 = vmatmul.bf16.vlgmr.msra.gmra.mxu0 %v19898_v31  ;;  %v13711_v20 = vld [vmem:[#allocation17 + $0x4d4] sm:$0xf0]  ;;  %v12758_v12 = vld [vmem:[#allocation17 + $0x5a8] sm:$0xf] }
 0x65e   : > { %9388 = vmatpush.bf16.msrb.mxu0 %v12919_v13  ;;  %9314 = vmatpush.bf16.msrb.mxu2 %v12087_v58  ;;  %v12855_v13 = vor.u32 %v13763_v47, %v12854_v36  ;;  %v13791_v58 = vld [vmem:[#allocation17 + $0x754] sm:$0xf0]  ;;  %v12822_v9 = vld [vmem:[#allocation17 + $0x628] sm:$0xf]  ;;  %v12759_v6 = vor.u32 %v13739_v42, %v12758_v12  ;;  %v12539_v36 = vor.u32 %v13681_v51, %v12536_v5  ;;  %v13573_v12 = vld [vmem:[#allocation17 + $0x8c] sm:$0xf] }
 0x65f   : > { %9327 = vmatpush.bf16.msrb.mxu3 %v12215_v35  ;;  %v12647_v35 = vor.u32 %v13711_v20, %v12646_v52  ;;  %v12967_v2 = vor.u32 %v13791_v58, %v12966_v26  ;;  %v12950_v32 = vld [vmem:[#allocation17 + $0x728] sm:$0xf]  ;;  %v12823_v48 = vor.u32 %v13755_v46, %v12822_v9  ;;  %v13751_v7 = vld [vmem:[#allocation17 + $0x614] sm:$0xf0]  ;;  %v12504_v26 = vld [vmem:[#allocation17 + $0x3b8] sm:$0xf0] }
 0x660   : > { %v12614_v49 = vld [vmem:[#allocation17 + $0x488] sm:$0xf]  ;;  %v13731_v33 = vld [vmem:[#allocation17 + $0x574] sm:$0xf0]  ;;  %v12104_v9 = vld [vmem:[#allocation17 + $0x98] sm:$0xf0] }
 0x661   : > { %9353 = vmatpush.bf16.msra.mxu1 %v12471_v56  ;;  %v13707_v56 = vld [vmem:[#allocation17 + $0x4b4] sm:$0xf0]  ;;  %v12806_v14 = vld [vmem:[#allocation17 + $0x608] sm:$0xf]  ;;  %v13669_v46 = vld [vmem:[#allocation17 + $0x38c] sm:$0xf] }
 0x662   : > { %9389 = vmatpush.bf16.msrb.mxu0 %v12903_v17  ;;  %9315 = vmatpush.bf16.msrb.mxu2 %v12071_v61  ;;  %v12839_v17 = vor.u32 %v13759_v8, %v12838_v27  ;;  %v13787_v61 = vld [vmem:[#allocation17 + $0x734] sm:$0xf0]  ;;  %v12934_v59 = vld [vmem:[#allocation17 + $0x708] sm:$0xf]  ;;  %v12807_v39 = vor.u32 %v13751_v7, %v12806_v14  ;;  %v12120_v27 = vld [vmem:[#allocation17 + $0xb8] sm:$0xf0] }
 0x663   : > { %9328 = vmatpush.bf16.msrb.mxu3 %v12199_v4  ;;  %v12631_v4 = vor.u32 %v13707_v56, %v12630_v25  ;;  %v12951_v55 = vor.u32 %v13787_v61, %v12950_v32  ;;  %v12726_v18 = vld [vmem:[#allocation17 + $0x568] sm:$0xf]  ;;  %v13727_v20 = vld [vmem:[#allocation17 + $0x554] sm:$0xf0]  ;;  %v13673_v8 = vld [vmem:[#allocation17 + $0x3ac] sm:$0xf] }
 0x664   : > { %v12710_v52 = vld [vmem:[#allocation17 + $0x548] sm:$0xf]  ;;  %v13723_v56 = vld [vmem:[#allocation17 + $0x534] sm:$0xf0]  ;;  %v12488_v32 = vld [vmem:[#allocation17 + $0x398] sm:$0xf0] }
 0x665   : > { %9354 = vmatpush.bf16.msra.mxu1 %v12455_v63  ;;  %v13703_v63 = vld [vmem:[#allocation17 + $0x494] sm:$0xf0]  ;;  %v12711_v58 = vor.u32 %v13727_v20, %v12710_v52  ;;  %v12694_v25 = vld [vmem:[#allocation17 + $0x528] sm:$0xf]  ;;  %v13569_v14 = vld [vmem:[#allocation17 + $0x6c] sm:$0xf] }
 0x666   : > { %9390 = vmatpush.bf16.msrb.mxu0 %v12887_v16  ;;  %9316 = vmatpush.bf16.msrb.mxu2 %v12055_v62  ;;  %v12742_v16 = vld [vmem:[#allocation17 + $0x588] sm:$0xf]  ;;  %v13783_v62 = vld [vmem:[#allocation17 + $0x714] sm:$0xf0]  ;;  %v12615_v22 = vor.u32 %v13703_v63, %v12614_v49  ;;  %v12695_v61 = vor.u32 %v13723_v56, %v12694_v25  ;;  %v13649_v7 = vld [vmem:[#allocation17 + $0x2ec] sm:$0xf] }
 0x667   : > { %9329 = vmatpush.bf16.msrb.mxu3 %v12183_v44  ;;  %v12152_v44 = vld [vmem:[#allocation17 + $0xf8] sm:$0xf0]  ;;  %v12743_v60 = vor.u32 %v13735_v45, %v12742_v16  ;;  %v12935_v53 = vor.u32 %v13783_v62, %v12934_v59  ;;  %v12678_v49 = vld [vmem:[#allocation17 + $0x508] sm:$0xf]  ;;  %v13719_v63 = vld [vmem:[#allocation17 + $0x514] sm:$0xf0]  ;;  %v12491_v45 = vor.u32 %v13669_v46, %v12488_v32 }
 0x668   : > { %v12155_v23 = vor.u32 %v13585_v37, %v12152_v44  ;;  %v13617_v16 = vld [vmem:[#allocation17 + $0x1ec] sm:$0xf]  ;;  %v12408_v59 = vld [vmem:[#allocation17 + $0x2f8] sm:$0xf0]  ;;  %v12679_v51 = vor.u32 %v13719_v63, %v12678_v49 }
 0x669   : > { %9355 = vmatpush.bf16.msra.mxu1 %v12439_v3  ;;  %v12598_v3 = vld [vmem:[#allocation17 + $0x468] sm:$0xf]  ;;  %v12088_v37 = vld [vmem:[#allocation17 + $0x78] sm:$0xf0]  ;;  %v13561_v52 = vld [vmem:[#allocation17 + $0x2c] sm:$0xf] }
 0x66a   : > { %9391 = vmatpush.bf16.msrb.mxu0 %v12871_v41  ;;  %9317 = vmatpush.bf16.msrb.mxu2 %v12039_v10  ;;  %v13699_v41 = vld [vmem:[#allocation17 + $0x474] sm:$0xf0]  ;;  %v13581_v10 = vld [vmem:[#allocation17 + $0xcc] sm:$0xf]  ;;  %v12472_v44 = vld [vmem:[#allocation17 + $0x378] sm:$0xf0] }
 0x66b   : > { %9330 = vmatpush.bf16.msrb.mxu3 %v12167_v28  ;;  %v12599_v47 = vor.u32 %v13699_v41, %v12598_v3  ;;  %v12520_v28 = vld [vmem:[#allocation17 + $0x3d8] sm:$0xf0]  ;;  %v13613_v3 = vld [vmem:[#allocation17 + $0x1cc] sm:$0xf] }
 0x66c   : > { %v12264_v41 = vld [vmem:[#allocation17 + $0x1d8] sm:$0xf0]  ;;  %v13641_v20 = vld [vmem:[#allocation17 + $0x2ac] sm:$0xf] }
 0x66d   : > { %9356 = vmatpush.bf16.msra.mxu1 %v12423_v11  ;;  %9318 = vmatmul.bf16.vlgmr.msrb.gmra.mxu2 %v19845_v21  ;;  %v12582_v11 = vld [vmem:[#allocation17 + $0x448] sm:$0xf]  ;;  %v13653_v46 = vld [vmem:[#allocation17 + $0x30c] sm:$0xf]  ;;  %v12424_v32 = vld [vmem:[#allocation17 + $0x318] sm:$0xf0] }
 0x66e   : > { %9362 = vmatpush.bf16.msra.mxu2 %v12663_v24  ;;  %9392 = vmatpush.bf16.msrb.mxu0 %v12855_v13  ;;  %v12727_v24 = vor.u32 %v13731_v33, %v12726_v18  ;;  %v12139_v13 = vor.u32 %v13581_v10, %v12136_v43  ;;  %v13565_v18 = vld [vmem:[#allocation17 + $0x4c] sm:$0xf]  ;;  %v12267_v43 = vor.u32 %v13613_v3, %v12264_v41  ;;  %v12664_v49 = vld [vmem:[#allocation17 + $0x4f8] sm:$0xf0] }
 0x66f   : > { %9375 = vmatpush.bf16.msra.mxu3 %v12791_v19  ;;  %v13695_v19 = vld [vmem:[#allocation17 + $0x454] sm:$0xf0]  ;;  %v13645_v33 = vld [vmem:[#allocation17 + $0x2cc] sm:$0xf]  ;;  %v12648_v3 = vld [vmem:[#allocation17 + $0x4d8] sm:$0xf0] }
 0x670   : > { %9331 = vmatmul.bf16.vlgmr.msrb.gmra.mxu3 %v19865_v38  ;;  %9357 = vmatmul.bf16.vlgmr.msra.gmra.mxu1 %v19928_v0  ;;  %v12583_v15 = vor.u32 %v13695_v19, %v12582_v11  ;;  %v13661_v10 = vld [vmem:[#allocation17 + $0x34c] sm:$0xf] }
 0x671   : > { %9405 = vmatpush.bf16.msrb.mxu1 %v12983_v54  ;;  %v12523_v54 = vor.u32 %v13677_v30, %v12520_v28  ;;  %v13609_v28 = vld [vmem:[#allocation17 + $0x1ac] sm:$0xf] }
 0x672   : > { %9363 = vmatpush.bf16.msra.mxu2 %v12647_v35  ;;  %9393 = vmatpush.bf16.msrb.mxu0 %v12839_v17  ;;  %v12566_v35 = vld [vmem:[#allocation17 + $0x428] sm:$0xf]  ;;  %v12123_v17 = vor.u32 %v13577_v29, %v12120_v27  ;;  %v13657_v29 = vld [vmem:[#allocation17 + $0x32c] sm:$0xf] }
 0x673   : > { %9376 = vmatpush.bf16.msra.mxu3 %v12775_v34  ;;  %v13691_v34 = vld [vmem:[#allocation17 + $0x434] sm:$0xf0]  ;;  %v13789_v41 = vld [vmem:[#allocation17 + $0x74c] sm:$0xf] }
 0x674   : > { %v12567_v42 = vor.u32 %v13691_v34, %v12566_v35  ;;  %v13605_v35 = vld [vmem:[#allocation17 + $0x18c] sm:$0xf]  ;;  %v12232_v34 = vld [vmem:[#allocation17 + $0x198] sm:$0xf0] }
 0x675   : > { %9406 = vmatpush.bf16.msrb.mxu1 %v12967_v2  ;;  %v12507_v2 = vor.u32 %v13673_v8, %v12504_v26 }
 0x676   : > { %9364 = vmatpush.bf16.msra.mxu2 %v12631_v4  ;;  %9394 = vmatpush.bf16.msrb.mxu0 %v12823_v48  ;;  %v12550_v4 = vld [vmem:[#allocation17 + $0x408] sm:$0xf]  ;;  %v12280_v48 = vld [vmem:[#allocation17 + $0x1f8] sm:$0xf0] }
 0x677   : > { %9377 = vmatpush.bf16.msra.mxu3 %v12759_v6  ;;  %v13687_v6 = vld [vmem:[#allocation17 + $0x414] sm:$0xf0]  ;;  %v12283_v5 = vor.u32 %v13617_v16, %v12280_v48  ;;  %v13793_v16 = vld [vmem:[#allocation17 + $0x76c] sm:$0xf]  ;;  %v12984_v48 = vld [vmem:[#allocation17 + $0x778] sm:$0xf0] }
 0x678   : > { %v12551_v62 = vor.u32 %v13687_v6, %v12550_v4  ;;  %v12235_v6 = vor.u32 %v13605_v35, %v12232_v34  ;;  %v13701_v34 = vld [vmem:[#allocation17 + $0x48c] sm:$0xf] }
 0x679   : > { %9407 = vmatpush.bf16.msrb.mxu1 %v12951_v55  ;;  %v12107_v55 = vor.u32 %v13573_v12, %v12104_v9  ;;  %v13637_v12 = vld [vmem:[#allocation17 + $0x28c] sm:$0xf] }
 0x67a   : > { %9365 = vmatpush.bf16.msra.mxu2 %v12615_v22  ;;  %9395 = vmatpush.bf16.msrb.mxu0 %v12807_v39  ;;  %v13665_v22 = vld [vmem:[#allocation17 + $0x36c] sm:$0xf]  ;;  %v12091_v39 = vor.u32 %v13569_v14, %v12088_v37  ;;  %v12216_v14 = vld [vmem:[#allocation17 + $0x178] sm:$0xf0] }
 0x67b   : > { %9378 = vmatpush.bf16.msra.mxu3 %v12743_v60  ;;  %v12411_v60 = vor.u32 %v13649_v7, %v12408_v59  ;;  %v12427_v59 = vor.u32 %v13653_v46, %v12424_v32  ;;  %v13621_v32 = vld [vmem:[#allocation17 + $0x20c] sm:$0xf] }
 0x67d   : > { %9408 = vmatpush.bf16.msrb.mxu1 %v12935_v53  ;;  %9396 = vmatmul.bf16.vlgmr.msrb.gmra.mxu0 %v19963_v40  ;;  %v12475_v53 = vor.u32 %v13665_v22, %v12472_v44  ;;  %v13633_v22 = vld [vmem:[#allocation17 + $0x26c] sm:$0xf]  ;;  %v12344_v44 = vld [vmem:[#allocation17 + $0x278] sm:$0xf0] }
 0x67e   : > { %9453 = vmatpush.bf16.msra.mxu0 %v12539_v36  ;;  %9366 = vmatpush.bf16.msra.mxu2 %v12599_v47  ;;  %v12072_v36 = vld [vmem:[#allocation17 + $0x58] sm:$0xf0] }
 0x67f   : > { %9379 = vmatpush.bf16.msra.mxu3 %v12727_v24  ;;  %v12456_v47 = vld [vmem:[#allocation17 + $0x358] sm:$0xf0]  ;;  %v12075_v11 = vor.u32 %v13565_v18, %v12072_v36 }
 0x680   : > { %12990 = vmatmul.msk.bf16.vlgmr.msrb.gmra.mxu1 %vm20901_vm9, %v19965_v1  ;;  %v12248_v24 = vld [vmem:[#allocation17 + $0x1b8] sm:$0xf0]  ;;  %v12459_v19 = vor.u32 %v13661_v10, %v12456_v47  ;;  %v12347_v10 = vor.u32 %v13633_v22, %v12344_v44  ;;  %v13741_v22 = vld [vmem:[#allocation17 + $0x5cc] sm:$0xf] }
 0x681   : > { %9414 = vmatpush.bf16.msra.mxu1 %v12155_v23  ;;  %v12392_v23 = vld [vmem:[#allocation17 + $0x2d8] sm:$0xf0]  ;;  %v12251_v27 = vor.u32 %v13609_v28, %v12248_v24 }
 0x682   : > { %9454 = vmatpush.bf16.msra.mxu0 %v12523_v54  ;;  %9367 = vmatpush.bf16.msra.mxu2 %v12583_v15  ;;  %v12395_v30 = vor.u32 %v13645_v33, %v12392_v23  ;;  %v12056_v54 = vld [vmem:[#allocation17 + $0x38] sm:$0xf0]  ;;  %v13597_v33 = vld [vmem:[#allocation17 + $0x14c] sm:$0xf] }
 0x683   : > { %9380 = vmatpush.bf16.msra.mxu3 %v12711_v58  ;;  %v12440_v15 = vld [vmem:[#allocation17 + $0x338] sm:$0xf0]  ;;  %v13557_v58 = vld [vmem:[#allocation17 + $0xc] sm:$0xf]  ;;  %v12059_v56 = vor.u32 %v13561_v52, %v12056_v54 }
 0x684   : > { %v12200_v23 = vld [vmem:[#allocation17 + $0x158] sm:$0xf0] }
 0x685   : > { %9415 = vmatpush.bf16.msra.mxu1 %v12139_v13  ;;  %v12376_v13 = vld [vmem:[#allocation17 + $0x2b8] sm:$0xf0]  ;;  %v12203_v52 = vor.u32 %v13597_v33, %v12200_v23 }
 0x686   : > { %9455 = vmatpush.bf16.msra.mxu0 %v12507_v2  ;;  %9368 = vmatpush.bf16.msra.mxu2 %v12567_v42  ;;  %v12379_v8 = vor.u32 %v13641_v20, %v12376_v13  ;;  %v12040_v2 = vld [vmem:[#allocation17 + $0x18] sm:$0xf0]  ;;  %v13785_v13 = vld [vmem:[#allocation17 + $0x72c] sm:$0xf] }
 0x687   : > { %9381 = vmatpush.bf16.msra.mxu3 %v12695_v61  ;;  %v12360_v42 = vld [vmem:[#allocation17 + $0x298] sm:$0xf0]  ;;  %v13713_v61 = vld [vmem:[#allocation17 + $0x4ec] sm:$0xf]  ;;  %v12043_v7 = vor.u32 %v13557_v58, %v12040_v2 }
 0x688   : > { %v12667_v37 = vor.u32 %v13713_v61, %v12664_v49  ;;  %v12328_v28 = vld [vmem:[#allocation17 + $0x258] sm:$0xf0] }
 0x689   : > { %9416 = vmatpush.bf16.msra.mxu1 %v12123_v17  ;;  %v9137_v26 = vpop.f32.mrf.mxu0  ;;  %v12443_v17 = vor.u32 %v13657_v29, %v12440_v15  ;;  %v12632_v20 = vld [vmem:[#allocation17 + $0x4b8] sm:$0xf0]  ;;  %v13593_v29 = vld [vmem:[#allocation17 + $0x12c] sm:$0xf] }
 0x68a   : > { %9456 = vmatpush.bf16.msra.mxu0 %v12491_v45  ;;  %9369 = vmatpush.bf16.msra.mxu2 %v12551_v62  ;;  %v9111_v25 = vpop.f32.mrf.mxu2  ;;  %v13601_v45 = vld [vmem:[#allocation17 + $0x16c] sm:$0xf]  ;;  %v12952_v54 = vld [vmem:[#allocation17 + $0x738] sm:$0xf0] }
 0x68b   : > { %9382 = vmatpush.bf16.msra.mxu3 %v12679_v51  ;;  %v12987_v51 = vor.u32 %v13793_v16, %v12984_v48  ;;  %v12184_v15 = vld [vmem:[#allocation17 + $0x138] sm:$0xf0]  ;;  %v12955_v35 = vor.u32 %v13785_v13, %v12952_v54  ;;  %v13777_v16 = vld [vmem:[#allocation17 + $0x6ec] sm:$0xf] }
 0x68c   : > { %v9124_v4 = vpop.f32.mrf.mxu3  ;;  %v12312_v58 = vld [vmem:[#allocation17 + $0x238] sm:$0xf0]  ;;  %v13685_v54 = vld [vmem:[#allocation17 + $0x40c] sm:$0xf] }
 0x68d   : > { %9417 = vmatpush.bf16.msra.mxu1 %v12107_v55  ;;  %9370 = vmatmul.bf16.vlgmr.msra.gmra.mxu2 %v19958_v57  ;;  %v9150_v9 = vpop.f32.mrf.mxu1  ;;  %v9125_v63 = vadd.f32 %v9124_v4, %v9111_v25  ;;  %v12363_v55 = vor.u32 %v13637_v12, %v12360_v42  ;;  %v12187_v25 = vor.u32 %v13593_v29, %v12184_v15  ;;  %v12936_v2 = vld [vmem:[#allocation17 + $0x718] sm:$0xf0]  ;;  %v13589_v12 = vld [vmem:[#allocation17 + $0x10c] sm:$0xf] }
 0x68e   : > { %9427 = vmatpush.bf16.msrb.mxu2 %v12283_v5  ;;  %9457 = vmatpush.bf16.msra.mxu0 %v12475_v53  ;;  %v13709_v5 = vld [vmem:[#allocation17 + $0x4cc] sm:$0xf]  ;;  %v12296_v61 = vld [vmem:[#allocation17 + $0x218] sm:$0xf0] }
 0x68f   : > { %9440 = vmatpush.bf16.msrb.mxu3 %v12411_v60  ;;  %v9138_v62 = vadd.f32 %v9137_v26, %v9125_v63  ;;  %v12219_v60 = vor.u32 %v13601_v45, %v12216_v14  ;;  %v13625_v26 = vld [vmem:[#allocation17 + $0x22c] sm:$0xf]  ;;  %v12600_v63 = vld [vmem:[#allocation17 + $0x478] sm:$0xf0] }
 0x690   : > { %9383 = vmatmul.bf16.vlgmr.msra.gmra.mxu3 %v19960_v50  ;;  %v13745_v42 = vld [vmem:[#allocation17 + $0x5ec] sm:$0xf]  ;;  %v12920_v48 = vld [vmem:[#allocation17 + $0x6f8] sm:$0xf0] }
 0x691   : > { %9418 = vmatpush.bf16.msra.mxu1 %v12091_v39  ;;  %v12968_v39 = vld [vmem:[#allocation17 + $0x758] sm:$0xf0]  ;;  %v19990_v53 = vadd.f32 %v9150_v9, %v9138_v62  ;;  %v9139_v18 = vpop.f32.mrf.mxu0  ;;  %v12923_v62 = vor.u32 %v13777_v16, %v12920_v48  ;;  %v13721_v48 = vld [vmem:[#allocation17 + $0x52c] sm:$0xf] }
 0x692   : > { %9428 = vmatpush.bf16.msrb.mxu2 %v12267_v43  ;;  %9458 = vmatpush.bf16.msra.mxu0 %v12459_v19  ;;  %v9113_v36 = vpop.f32.mrf.mxu2  ;;  %v12651_v43 = vor.u32 %v13709_v5, %v12648_v3  ;;  %v12971_v24 = vor.u32 %v13789_v41, %v12968_v39  ;;  %v12792_v9 = vld [vmem:[#allocation17 + $0x5f8] sm:$0xf0]  ;;  %v13773_v5 = vld [vmem:[#allocation17 + $0x6cc] sm:$0xf] }
 0x693   : > { %9441 = vmatpush.bf16.msrb.mxu3 %v12395_v30  ;;  %v13629_v30 = vld [vmem:[#allocation17 + $0x24c] sm:$0xf]  ;;  %v12795_v14 = vor.u32 %v13745_v42, %v12792_v9  ;;  %v12776_v44 = vld [vmem:[#allocation17 + $0x5d8] sm:$0xf0] }
 0x694   : > { %v9126_v19 = vpop.f32.mrf.mxu3  ;;  %v12779_v39 = vor.u32 %v13741_v22, %v12776_v44  ;;  %v13689_v36 = vld [vmem:[#allocation17 + $0x42c] sm:$0xf]  ;;  %v12744_v29 = vld [vmem:[#allocation17 + $0x598] sm:$0xf0] }
 0x695   : > { %9419 = vmatpush.bf16.msra.mxu1 %v12075_v11  ;;  %v9152_v47 = vpop.f32.mrf.mxu1  ;;  %v13705_v11 = vld [vmem:[#allocation17 + $0x4ac] sm:$0xf]  ;;  %v12552_v15 = vld [vmem:[#allocation17 + $0x418] sm:$0xf0] }
 0x696   : > { %9429 = vmatpush.bf16.msrb.mxu2 %v12251_v27  ;;  %9459 = vmatpush.bf16.msra.mxu0 %v12443_v17  ;;  %v12331_v27 = vor.u32 %v13629_v30, %v12328_v28  ;;  %v13781_v17 = vld [vmem:[#allocation17 + $0x70c] sm:$0xf]  ;;  %v12760_v47 = vld [vmem:[#allocation17 + $0x5b8] sm:$0xf0] }
 0x697   : > { %9442 = vmatpush.bf16.msrb.mxu3 %v12379_v8  ;;  %v12635_v8 = vor.u32 %v13705_v11, %v12632_v20  ;;  %v12939_v4 = vor.u32 %v13781_v17, %v12936_v2  ;;  %v13769_v30 = vld [vmem:[#allocation17 + $0x6ac] sm:$0xf]  ;;  %v12888_v28 = vld [vmem:[#allocation17 + $0x6b8] sm:$0xf0] }
 0x698   : > { %v12891_v13 = vor.u32 %v13769_v30, %v12888_v28  ;;  %v13761_v17 = vld [vmem:[#allocation17 + $0x66c] sm:$0xf]  ;;  %v12856_v2 = vld [vmem:[#allocation17 + $0x678] sm:$0xf0] }
 0x699   : > { %9420 = vmatpush.bf16.msra.mxu1 %v12059_v56  ;;  %v12616_v56 = vld [vmem:[#allocation17 + $0x498] sm:$0xf0]  ;;  %v12859_v42 = vor.u32 %v13761_v17, %v12856_v2  ;;  %v13725_v9 = vld [vmem:[#allocation17 + $0x54c] sm:$0xf] }
 0x69a   : > { %9430 = vmatpush.bf16.msrb.mxu2 %v12235_v6  ;;  %9460 = vmatpush.bf16.msra.mxu0 %v12427_v59  ;;  %v12619_v46 = vor.u32 %v13701_v34, %v12616_v56  ;;  %v13697_v6 = vld [vmem:[#allocation17 + $0x46c] sm:$0xf]  ;;  %v12728_v56 = vld [vmem:[#allocation17 + $0x578] sm:$0xf0] }
 0x69b   : > { %9443 = vmatpush.bf16.msrb.mxu3 %v12363_v55  ;;  %v12603_v59 = vor.u32 %v13697_v6, %v12600_v63  ;;  %v13717_v44 = vld [vmem:[#allocation17 + $0x50c] sm:$0xf] }
 0x69d   : > { %9421 = vmatpush.bf16.msra.mxu1 %v12043_v7  ;;  %9461 = vmatmul.bf16.vlgmr.msra.gmra.mxu0 %v19928_v0  ;;  %v12315_v0 = vor.u32 %v13625_v26, %v12312_v58  ;;  %v9189_v55 = vpop.f32.mrf.mxu0  ;;  %v9202_v45 = vpop.f32.mrf.mxu1  ;;  %v12299_v7 = vor.u32 %v13621_v32, %v12296_v61  ;;  %v13757_v32 = vld [vmem:[#allocation17 + $0x64c] sm:$0xf]  ;;  %v12840_v61 = vld [vmem:[#allocation17 + $0x658] sm:$0xf0] }
 0x69e   : > { %9509 = vmatpush.bf16.msrb.mxu0 %v12987_v51  ;;  %9431 = vmatpush.bf16.msrb.mxu2 %v12219_v60  ;;  %v12584_v51 = vld [vmem:[#allocation17 + $0x458] sm:$0xf0]  ;;  %v12843_v16 = vor.u32 %v13757_v32, %v12840_v61 }
 0x69f   : > { %9444 = vmatpush.bf16.msrb.mxu3 %v12347_v10  ;;  %v12904_v60 = vld [vmem:[#allocation17 + $0x6d8] sm:$0xf0]  ;;  %v13737_v10 = vld [vmem:[#allocation17 + $0x5ac] sm:$0xf] }
 0x6a0   : > { %9422 = vmatmul.bf16.vlgmr.msra.gmra.mxu1 %v19845_v21  ;;  %v12168_v21 = vld [vmem:[#allocation17 + $0x118] sm:$0xf0]  ;;  %v12907_v23 = vor.u32 %v13773_v5, %v12904_v60  ;;  %v13749_v5 = vld [vmem:[#allocation17 + $0x60c] sm:$0xf] }
 0x6a1   : > { %9466 = vmatpush.bf16.msrb.mxu1 %v12667_v37  ;;  %v12171_v49 = vor.u32 %v13589_v12, %v12168_v21  ;;  %v13693_v37 = vld [vmem:[#allocation17 + $0x44c] sm:$0xf]  ;;  %v9176_v41 = vpop.f32.mrf.mxu3  ;;  %v12808_v60 = vld [vmem:[#allocation17 + $0x618] sm:$0xf0] }
 0x6a2   : > { %9510 = vmatpush.bf16.msrb.mxu0 %v12971_v24  ;;  %9432 = vmatpush.bf16.msrb.mxu2 %v12203_v52  ;;  %v9163_v3 = vpop.f32.mrf.mxu2  ;;  %v12587_v33 = vor.u32 %v13693_v37, %v12584_v51 }
 0x6a3   : > { %9445 = vmatpush.bf16.msrb.mxu3 %v12331_v27  ;;  %v9164_v18 = vadd.f32 %v9163_v3, %v19990_v53  ;;  %v12763_v53 = vor.u32 %v13737_v10, %v12760_v47  ;;  %v13765_v27 = vld [vmem:[#allocation17 + $0x68c] sm:$0xf] }
 0x6a5   : > { %9467 = vmatpush.bf16.msrb.mxu1 %v12651_v43  ;;  %v12568_v43 = vld [vmem:[#allocation17 + $0x438] sm:$0xf0]  ;;  %v9177_v24 = vadd.f32 %v9176_v41, %v9164_v18  ;;  %v9191_v11 = vpop.f32.mrf.mxu0  ;;  %v9204_v19 = vpop.f32.mrf.mxu1  ;;  %v12811_v18 = vor.u32 %v13749_v5, %v12808_v60 }
 0x6a6   : > { %9511 = vmatpush.bf16.msrb.mxu0 %v12955_v35  ;;  %9433 = vmatpush.bf16.msrb.mxu2 %v12187_v25  ;;  %v12571_v20 = vor.u32 %v13689_v36, %v12568_v43  ;;  %v12555_v35 = vor.u32 %v13685_v54, %v12552_v15  ;;  %v13729_v25 = vld [vmem:[#allocation17 + $0x56c] sm:$0xf] }
 0x6a7   : > { %9446 = vmatpush.bf16.msrb.mxu3 %v12315_v0  ;;  %v9190_v52 = vadd.f32 %v9189_v55, %v9177_v24  ;;  %v12731_v0 = vor.u32 %v13729_v25, %v12728_v56  ;;  %v12696_v55 = vld [vmem:[#allocation17 + $0x538] sm:$0xf0] }
 0x6a8   : > { %v12699_v37 = vor.u32 %v13721_v48, %v12696_v55 }
 0x6a9   : > { %9468 = vmatpush.bf16.msrb.mxu1 %v12635_v8  ;;  %v12872_v8 = vld [vmem:[#allocation17 + $0x698] sm:$0xf0]  ;;  %v19999_v26 = vadd.f32 %v9202_v45, %v9190_v52  ;;  %v13753_v45 = vld [vmem:[#allocation17 + $0x62c] sm:$0xf] }
 0x6aa   : > { %9512 = vmatpush.bf16.msrb.mxu0 %v12939_v4  ;;  %9434 = vmatpush.bf16.msrb.mxu2 %v12171_v49  ;;  %v12875_v34 = vor.u32 %v13765_v27, %v12872_v8 }
 0x6ab   : > { %9447 = vmatpush.bf16.msrb.mxu3 %v12299_v7  ;;  %v9518_v15 = vmul.f32 0.0125, %v19999_v26 }
 0x6ad   : > { %9469 = vmatpush.bf16.msrb.mxu1 %v12619_v46  ;;  %9435 = vmatmul.bf16.vlgmr.msrb.gmra.mxu2 %v19865_v38  ;;  %v13733_v38 = vld [vmem:[#allocation17 + $0x58c] sm:$0xf]  ;;  %v9241_v12 = vpop.f32.mrf.mxu1  ;;  %v9254_v21 = vpop.f32.mrf.mxu0  ;;  %v12712_v46 = vld [vmem:[#allocation17 + $0x558] sm:$0xf0] }
 0x6ae   : > { %9479 = vmatpush.bf16.msra.mxu2 %v12795_v14  ;;  %9448 = vmatmul.bf16.vlgmr.msrb.gmra.mxu3 %v19898_v31  ;;  %v9165_v31 = vpop.f32.mrf.mxu2  ;;  %v12747_v58 = vor.u32 %v13733_v38, %v12744_v29  ;;  %v12715_v49 = vor.u32 %v13725_v9, %v12712_v46  ;;  %v12824_v14 = vld [vmem:[#allocation17 + $0x638] sm:$0xf0] }
 0x6af   : > { %9492 = vmatpush.bf16.msra.mxu3 %v12923_v62  ;;  %12991 = vmatmul.msk.bf16.vlgmr.msrb.gmra.mxu0 %vm20902_vm2, %v19965_v1  ;;  %v9178_v1 = vpop.f32.mrf.mxu3  ;;  %v12827_v22 = vor.u32 %v13753_v45, %v12824_v14 }
 0x6b1   : > { %9470 = vmatpush.bf16.msrb.mxu1 %v12603_v59 }
 0x6b2   : > { %9480 = vmatpush.bf16.msra.mxu2 %v12779_v39 }
 0x6b3   : > { %9493 = vmatpush.bf16.msra.mxu3 %v12907_v23  ;;  %v839_v23 = vld [vmem:[%s20903_s28] sm:$0x3] }
 0x6b5   : > { %9471 = vmatpush.bf16.msrb.mxu1 %v12587_v33  ;;  %v9243_v59 = vpop.f32.mrf.mxu1  ;;  %v9256_v62 = vpop.f32.mrf.mxu0  ;;  %v838_v33 = vld [vmem:[#allocation7] sm:$0x3] }
 0x6b6   : > { %9481 = vmatpush.bf16.msra.mxu2 %v12763_v53  ;;  %v9215_v4 = vpop.f32.mrf.mxu2  ;;  %v840_v10 = vsub.f32 %v839_v23, %v838_v33 }
 0x6b7   : > { %9494 = vmatpush.bf16.msra.mxu3 %v12891_v13  ;;  %v9228_v6 = vpop.f32.mrf.mxu3 }
 0x6b8   : > { %v9229_v63 = vadd.f32 %v9228_v6, %v9215_v4  ;;  %v841_v47 = vmul.f32 0.1, %v840_v10 }
 0x6b9   : > { %9472 = vmatpush.bf16.msrb.mxu1 %v12571_v20 }
 0x6ba   : > { %9482 = vmatpush.bf16.msra.mxu2 %v12747_v58  ;;  %v9242_v7 = vadd.f32 %v9241_v12, %v9229_v63  ;;  %v9775_v43 = vclamps-f32 %v841_v47, 0.5 }
 0x6bb   : > { %9495 = vmatpush.bf16.msra.mxu3 %v12875_v34 }
 0x6bc   : > { %v9255_v51 = vadd.f32 %v9254_v21, %v9242_v7  ;;  %850 = vrot.lane.b32.xlu1 %v9775_v43, %s14236_s16  ;;  %v844_v30 = vadd.f32 %v9775_v43, %v838_v33  ;;  %848 = vst.msk [vmem:[%s809_s25] sm:$0x3] %vm20904_vm14, %v9775_v43 }
 0x6bd   : > { %9473 = vmatpush.bf16.msrb.mxu1 %v12555_v35  ;;  %v9306_v36 = vpop.f32.mrf.mxu0 }
 0x6be   : > { %9483 = vmatpush.bf16.msra.mxu2 %v12731_v0  ;;  %v9217_v3 = vpop.f32.mrf.mxu2  ;;  %846 = vst.msk [vmem:[#allocation7] sm:$0x3] %vm20905_vm10, %v844_v30 }
 0x6bf   : > { %9496 = vmatpush.bf16.msra.mxu3 %v12859_v42  ;;  %v9230_v41 = vpop.f32.mrf.mxu3 }
 0x6c0   : > { %9474 = vmatmul.bf16.vlgmr.msrb.gmra.mxu1 %v19958_v57  ;;  %v12680_v57 = vld [vmem:[#allocation17 + $0x518] sm:$0xf0] }
 0x6c1   : > { %v12683_v39 = vor.u32 %v13717_v44, %v12680_v57 }
 0x6c2   : > { %9484 = vmatpush.bf16.msra.mxu2 %v12715_v49 }
 0x6c3   : > { %9497 = vmatpush.bf16.msra.mxu3 %v12843_v16 }
 0x6c5   : > { %v9308_v28 = vpop.f32.mrf.mxu0 }
 0x6c6   : > { %9485 = vmatpush.bf16.msra.mxu2 %v12699_v37 }
 0x6c7   : > { %9498 = vmatpush.bf16.msra.mxu3 %v12827_v22 }
 0x6ca   : > { %9486 = vmatpush.bf16.msra.mxu2 %v12683_v39 }
 0x6cb   : > { %9499 = vmatpush.bf16.msra.mxu3 %v12811_v18 }
 0x6cd   : > { %9487 = vmatmul.bf16.vlgmr.msra.gmra.mxu2 %v19960_v50  ;;  %v9293_v24 = vpop.f32.mrf.mxu1 }
 0x6ce   : > { %9500 = vmatmul.bf16.vlgmr.msra.gmra.mxu3 %v19963_v40 }
 0x6cf   : > { %v9267_v11 = vpop.f32.mrf.mxu2 }
 0x6d0   : > { %v9268_v19 = vadd.f32 %v9267_v11, %v9255_v51 }
 0x6d2   : > { %v9280_v50 = vpop.f32.mrf.mxu3 }
 0x6d3   : > { %v9281_v53 = vadd.f32 %v9280_v50, %v9268_v19 }
 0x6d5   : > { %v9295_v40 = vpop.f32.mrf.mxu1  ;;  %v9294_v52 = vadd.f32 %v9293_v24, %v9281_v53 }
 0x6d7   : > { %v9307_v20 = vadd.f32 %v9306_v36, %v9294_v52  ;;  %v9269_v54 = vpop.f32.mrf.mxu2 }
 0x6d9   : > { %v9519_v38 = vmul.f32 0.0125, %v9307_v20 }
 0x6da   : > { %v9345_v13 = vpop.f32.mrf.mxu0  ;;  %v9282_v29 = vpop.f32.mrf.mxu3 }
 0x6db   : > { %v9526_v27 = vrot.slane %v9519_v38, 6 }
 0x6dd   : > { %v9529_v8 = vsel %vm20907_vm12, %v9518_v15, %v9526_v27 }
 0x6e2   : > { %v9347_v31 = vpop.f32.mrf.mxu0 }
 0x6ed   : > { %v9358_v1 = vpop.f32.mrf.mxu1 }
 0x6f0   : > { %v9319_v58 = vpop.f32.mrf.mxu2 }
 0x6f3   : > { %v9332_v35 = vpop.f32.mrf.mxu3 }
 0x6f4   : > { %v9333_v34 = vadd.f32 %v9332_v35, %v9319_v58 }
 0x6f5   : > { %v9360_v56 = vpop.f32.mrf.mxu1 }
 0x6f6   : > { %v9346_v25 = vadd.f32 %v9345_v13, %v9333_v34 }
 0x6f8   : > { %v9359_v17 = vadd.f32 %v9358_v1, %v9346_v25  ;;  %v9321_v12 = vpop.f32.mrf.mxu2 }
 0x6fa   : > { %v9397_v2 = vpop.f32.mrf.mxu0 }
 0x6fb   : > { %v9334_v21 = vpop.f32.mrf.mxu3 }
 0x6fd   : > { %v9410_v0 = vpop.f32.mrf.mxu1 }
 0x702   : > { %v9399_v42 = vpop.f32.mrf.mxu0 }
 0x705   : > { %v9412_v9 = vpop.f32.mrf.mxu1 }
 0x710   : > { %v9371_v46 = vpop.f32.mrf.mxu2 }
 0x711   : > { %v9372_v26 = vadd.f32 %v9371_v46, %v9359_v17 }
 0x713   : > { %v9384_v32 = vpop.f32.mrf.mxu3 }
 0x714   : > { %v9385_v61 = vadd.f32 %v9384_v32, %v9372_v26 }
 0x716   : > { %v9398_v4 = vadd.f32 %v9397_v2, %v9385_v61 }
 0x718   : > { %v9411_v6 = vadd.f32 %v9410_v0, %v9398_v4  ;;  %v9373_v16 = vpop.f32.mrf.mxu2 }
 0x71a   : > { %v9462_v63 = vpop.f32.mrf.mxu0  ;;  %v9520_v36 = vmul.f32 0.0125, %v9411_v6 }
 0x71b   : > { %v9386_v48 = vpop.f32.mrf.mxu3 }
 0x71c   : > { %v9527_v30 = vrot.slane %v9520_v36, 4 }
 0x71d   : > { %v9423_v49 = vpop.f32.mrf.mxu1 }
 0x722   : > { %v9464_v45 = vpop.f32.mrf.mxu0 }
 0x725   : > { %v9425_v55 = vpop.f32.mrf.mxu1 }
 0x72c   : > { %v9514_v14 = vpop.f32.mrf.mxu0 }
 0x72e   : > { %v851_v57 = vpop.permute.xlu1 %850 }
 0x72f   : > { %853 = vst.msk [vmem:[%s813_s26] sm:$0x3] %vm20908_vm13, %v851_v57 }
 0x730   : > { %v9436_v7 = vpop.f32.mrf.mxu2 }
 0x731   : > { %v9449_v59 = vpop.f32.mrf.mxu3  ;;  %v9437_v51 = vadd.f32 %v9436_v7, %v9423_v49 }
 0x733   : > { %v9450_v60 = vadd.f32 %v9449_v59, %v9437_v51 }
 0x734   : > { %v9516_v62 = vpop.f32.mrf.mxu0 }
 0x735   : > { %v9463_v3 = vadd.f32 %v9462_v63, %v9450_v60 }
 0x738   : > { %v9438_v22 = vpop.f32.mrf.mxu2 }
 0x739   : > { %v9451_v44 = vpop.f32.mrf.mxu3 }
 0x73d   : > { %v9475_v37 = vpop.f32.mrf.mxu1 }
 0x73e   : > { %v9476_v41 = vadd.f32 %v9475_v37, %v9463_v3 }
 0x745   : > { %v9477_v5 = vpop.f32.mrf.mxu1 }
 0x750   : > { %v9488_v39 = vpop.f32.mrf.mxu2 }
 0x751   : > { %v9489_v18 = vadd.f32 %v9488_v39, %v9476_v41  ;;  %v9501_v33 = vpop.f32.mrf.mxu3 }
 0x753   : > { %v9502_v23 = vadd.f32 %v9501_v33, %v9489_v18 }
 0x755   : > { %v9515_v10 = vadd.f32 %v9514_v14, %v9502_v23 }
 0x757   : > { %v9521_v47 = vmul.f32 0.0125, %v9515_v10 }
 0x758   : > { %v9490_v43 = vpop.f32.mrf.mxu2 }
 0x759   : > { %v9528_v28 = vrot.slane %v9521_v47, 2  ;;  %v9503_v24 = vpop.f32.mrf.mxu3 }
 0x75b   : > { %v9530_v11 = vsel %vm20909_vm6, %v9527_v30, %v9528_v28 }
 0x75c   : > { %v9531_v19 = vsel %vm20910_vm11, %v9529_v8, %v9530_v11 }
 0x75d   : > { %9533 = vst [vmem:[#allocation8] sm:$0xff] %v9531_v19 }
 0x75e   : > { %14203 = dma.done.wait (%p13846_p8), [#allocation11], 32  }
 0x75f   : > { %14205 = vsyncadd (%p13846_p8), [#allocation11], 4294967264 }
 0x760 PF: > { %s20911_s23 = sld [smem:[#allocation23_spill]] }
 0x766   : > { %s39_s5 = sadd.s32 1, %s20911_s23  }
 0x767   : > { %p36_p9 = scmp.ge.s32.totalorder %s39_s5, 6  }
 0x769   :  { %38 = sbr.rel (!%p36_p9) target bundleno = 20 (0x14), region = 205 }
 0x76e   :  { %9624 = vsyncpa [#allocation10], 1 }
 0x76f   :  { %9626 = vsyncpa [#allocation10 + $0x1], 1 }
 0x770   :  { %9627 = vsyncpa [#allocation13], 1 }
 0x771   :  { %9628 = vsyncpa [#allocation16], 1 }
 0x772   :  { %9629 = vsyncpa [#allocation11], 1 }
 0x773   :  { %9631 = vsyncpa [#allocation11 + $0x1], 1 }

</bundles_post_ra>
